<compile_context>
chip_gen: v5e
topology: v5e:2x2
jax: 0.10.0
libtpu: 0.0.40
codegen_flags: <defaults>
</compile_context>

<pallas_src>
import functools

import jax
import jax.numpy as jnp
from jax.experimental import pallas as pl
from jax.experimental.pallas import tpu as pltpu


def vae_vision_mlp_kernel(x_ref, w1_ref, b1_ref, w2_ref, b2_ref,
                          gamma_ref, beta_ref, w3_ref, b3_ref, o_ref,
                          *, sub_tiles, gelu_approximate):
    tm = x_ref.shape[0]
    sub = tm // sub_tiles

    b1 = b1_ref[...]          # [1, H] f32
    b2 = b2_ref[...]          # [1, D] f32
    b3 = b3_ref[...]          # [1, H] f32
    gamma = gamma_ref[...]    # [1, D] f32
    beta = beta_ref[...]      # [1, D] f32

    # Static unrolled loop over independent row sub-tiles: sub-tile B's MXU
    # matmuls co-issue with sub-tile A's VPU/XLU epilogue in the same bundles.
    for t in range(sub_tiles):
        rows = pl.ds(t * sub, sub)
        x = x_ref[rows, :]                                     # [sub, D] f32
        residual = x

        # fc1 + activation (bf16 MXU inputs, f32 accumulation & elementwise)
        h = jnp.dot(x.astype(jnp.bfloat16), w1_ref[...],
                    preferred_element_type=jnp.float32) + b1   # [sub, H]
        h = jax.nn.gelu(h, approximate=gelu_approximate)

        # fc2 + residual
        y = jnp.dot(h.astype(jnp.bfloat16), w2_ref[...],
                    preferred_element_type=jnp.float32) + b2 + residual  # [sub, D]

        # LayerNorm over D (biased variance, eps=1e-5, affine).
        # mean and mean(y^2) are independent -> overlapping XLU reductions.
        mean = jnp.mean(y, axis=-1, keepdims=True)
        mean_sq = jnp.mean(y * y, axis=-1, keepdims=True)
        var = mean_sq - mean * mean
        y = (y - mean) * jax.lax.rsqrt(var + 1e-5) * gamma + beta

        # fc_out (dim -> hidden_dim, matches nn.Linear(dim, hidden_dim))
        out = jnp.dot(y.astype(jnp.bfloat16), w3_ref[...],
                      preferred_element_type=jnp.float32) + b3  # [sub, H]
        o_ref[rows, :] = out.astype(o_ref.dtype)


def vae_vision_mlp(x, params, *, tm=256, sub_tiles=2, gelu_approximate=True,
                   out_dtype=None):
    """x: [S, D]. params: pre-transposed [in, out] bf16 weights, f32 biases/LN."""
    S, D = x.shape
    H = params["w1"].shape[1]
    out_dtype = x.dtype if out_dtype is None else out_dtype

    tm = min(tm, S)
    # TODO(synk): ragged S needs padding or a masked last tile for production.
    assert S % tm == 0, "wrapper assumes S divisible by the row tile TM"
    assert tm % 8 == 0 and D % 128 == 0 and H % 128 == 0, \
        "expect sublane-aligned TM and lane-dense (multiple-of-128) D/H"
    if sub_tiles < 1 or tm % (8 * sub_tiles) != 0:
        sub_tiles = 1

    # TODO(synk): if 3*D*H*2B of resident bf16 weights exceeds ~40 MiB (v7x has
    # only 64 MiB VMEM), switch to an H-tiled second grid axis with an f32 fc2
    # accumulator instead of the all-weights-resident plan below.

    grid = (S // tm,)

    def rows(i):          # x / out tiles march down the token dimension
        return (i, 0)

    def resident(i):      # weights / biases: same block every step
        return (0, 0)

    def wspec(arr):
        # Constant block + single buffer: fetched once, half the VMEM of the
        # default double-buffered pipeline.
        return pl.BlockSpec(arr.shape, resident, pipeline_mode=pl.Buffered(1))

    in_specs = [
        pl.BlockSpec((tm, D), rows),       # x tile (auto double-buffered)
        wspec(params["w1"]),               # [D, H] bf16
        wspec(params["b1"]),               # [1, H] f32
        wspec(params["w2"]),               # [H, D] bf16
        wspec(params["b2"]),               # [1, D] f32
        wspec(params["gamma"]),            # [1, D] f32
        wspec(params["beta"]),             # [1, D] f32
        wspec(params["w3"]),               # [D, H] bf16
        wspec(params["b3"]),               # [1, H] f32
    ]
    out_specs = pl.BlockSpec((tm, H), rows)

    # Explicit VMEM budget: resident params (single-buffered) + double-buffered
    # x / out tiles + per-sub-tile intermediates, with headroom. Capped at the
    # smallest physical VMEM (v7x 64 MiB); floored at 32 MiB so we never go
    # below the default scoped limit.
    param_bytes = sum(int(v.size) * v.dtype.itemsize for v in params.values())
    io_bytes = (2 * tm * D * x.dtype.itemsize
                + 2 * tm * H * jnp.dtype(out_dtype).itemsize)
    inter_bytes = 6 * (tm // sub_tiles) * max(D, H) * 4
    vmem_limit = min(max(param_bytes + io_bytes + inter_bytes + (8 << 20),
                         32 << 20), 64 << 20)

    flops = 3 * 2 * S * D * H                      # fc1 + fc2 + fc_out
    bytes_accessed = (x.size * x.dtype.itemsize + param_bytes
                      + S * H * jnp.dtype(out_dtype).itemsize)
    cost = pl.CostEstimate(flops=flops, transcendentals=S * H,
                           bytes_accessed=bytes_accessed)

    kernel = functools.partial(vae_vision_mlp_kernel,
                               sub_tiles=sub_tiles,
                               gelu_approximate=gelu_approximate)

    return pl.pallas_call(
        kernel,
        out_shape=jax.ShapeDtypeStruct((S, H), out_dtype),
        grid=grid,
        in_specs=in_specs,
        out_specs=out_specs,
        compiler_params=pltpu.CompilerParams(
            dimension_semantics=("parallel",),   # row tiles shard across TCs (v7x)
            vmem_limit_bytes=vmem_limit,
        ),
        cost_estimate=cost,
    )(x, params["w1"], params["b1"], params["w2"], params["b2"],
      params["gamma"], params["beta"], params["w3"], params["b3"])


def init_params(key, dim, hidden_dim):
    ks = jax.random.split(key, 3)

    def lin(k, fan_in, fan_out):
        kw, kb = jax.random.split(k)
        bound = 1.0 / jnp.sqrt(fan_in)
        w = jax.random.uniform(kw, (fan_in, fan_out), jnp.float32, -bound, bound)
        b = jax.random.uniform(kb, (1, fan_out), jnp.float32, -bound, bound)
        return w.astype(jnp.bfloat16), b   # matmul weights bf16, biases f32

    w1, b1 = lin(ks[0], dim, hidden_dim)        # fc1
    w2, b2 = lin(ks[1], hidden_dim, dim)        # fc2
    w3, b3 = lin(ks[2], dim, hidden_dim)        # fc_out
    gamma = jnp.ones((1, dim), jnp.float32)     # LayerNorm weight
    beta = jnp.zeros((1, dim), jnp.float32)     # LayerNorm bias
    return dict(w1=w1, b1=b1, w2=w2, b2=b2, w3=w3, b3=b3, gamma=gamma, beta=beta)


def reference(x, p, gelu_approximate=True):
    # Matches the kernel's numerics: bf16 matmul inputs, f32 accumulation,
    # all elementwise / LayerNorm math in f32.
    def mm(a, w):
        return jnp.dot(a.astype(jnp.bfloat16), w, preferred_element_type=jnp.float32)

    h = jax.nn.gelu(mm(x, p["w1"]) + p["b1"], approximate=gelu_approximate)
    y = mm(h, p["w2"]) + p["b2"] + x
    mean = jnp.mean(y, axis=-1, keepdims=True)
    var = jnp.mean((y - mean) ** 2, axis=-1, keepdims=True)
    y = (y - mean) * jax.lax.rsqrt(var + 1e-5) * p["gamma"] + p["beta"]
    return mm(y, p["w3"]) + p["b3"]


if __name__ == "__main__":
    key = jax.random.PRNGKey(0)
    kx, kp = jax.random.split(key)
    # Small but MXU-friendly demo shapes: 256-wide contraction dims, grid of 2
    # even row tiles (balanced across v7x's two TensorCores).
    S, D, H = 512, 256, 512
    x = jax.random.normal(kx, (S, D), jnp.float32)
    params = init_params(kp, D, H)

    out = vae_vision_mlp(x, params, tm=256, sub_tiles=2,
                         gelu_approximate=True, out_dtype=jnp.bfloat16)
    jax.block_until_ready(out)

    ref = reference(x, params, gelu_approximate=True)
    assert out.shape == (S, H)
    out_f32 = out.astype(jnp.float32)
    assert jnp.allclose(out_f32, ref, atol=2e-2, rtol=2e-2), \
        float(jnp.max(jnp.abs(out_f32 - ref)))
    print("KERNEL_OK")
</pallas_src>

<mosaic_0001>
module attributes {stable_mosaic.version = 11 : i64} {
  func.func @vae_vision_mlp_kernel(%arg0: i32, %arg1: memref<256x256xf32, #tpu.memory_space<vmem>>, %arg2: memref<256x512xbf16, #tpu.memory_space<vmem>>, %arg3: memref<1x512xf32, #tpu.memory_space<vmem>>, %arg4: memref<512x256xbf16, #tpu.memory_space<vmem>>, %arg5: memref<1x256xf32, #tpu.memory_space<vmem>>, %arg6: memref<1x256xf32, #tpu.memory_space<vmem>>, %arg7: memref<1x256xf32, #tpu.memory_space<vmem>>, %arg8: memref<256x512xbf16, #tpu.memory_space<vmem>>, %arg9: memref<1x512xf32, #tpu.memory_space<vmem>>, %arg10: memref<256x512xbf16, #tpu.memory_space<vmem>>) attributes {dimension_semantics = [#tpu.dimension_semantics<parallel>], iteration_bounds = array<i64: 2>, scalar_prefetch = 0 : i64, scratch_operands = 0 : i64, tpu.core_type = #tpu.core_type<tc>, window_params = [{transform_indices = @transform_0, window_bounds = array<i64: 256, 256>}, {pipeline_mode = #tpu.pipeline_mode<synchronous>, transform_indices = @transform_1, window_bounds = array<i64: 256, 512>}, {pipeline_mode = #tpu.pipeline_mode<synchronous>, transform_indices = @transform_2, window_bounds = array<i64: 1, 512>}, {pipeline_mode = #tpu.pipeline_mode<synchronous>, transform_indices = @transform_3, window_bounds = array<i64: 512, 256>}, {pipeline_mode = #tpu.pipeline_mode<synchronous>, transform_indices = @transform_4, window_bounds = array<i64: 1, 256>}, {pipeline_mode = #tpu.pipeline_mode<synchronous>, transform_indices = @transform_5, window_bounds = array<i64: 1, 256>}, {pipeline_mode = #tpu.pipeline_mode<synchronous>, transform_indices = @transform_6, window_bounds = array<i64: 1, 256>}, {pipeline_mode = #tpu.pipeline_mode<synchronous>, transform_indices = @transform_7, window_bounds = array<i64: 256, 512>}, {pipeline_mode = #tpu.pipeline_mode<synchronous>, transform_indices = @transform_8, window_bounds = array<i64: 1, 512>}, {transform_indices = @transform_9, window_bounds = array<i64: 256, 512>}]} {
    %c0 = arith.constant 0 : index
    %c0_0 = arith.constant 0 : index
    %0 = vector.load %arg3[%c0, %c0_0] : memref<1x512xf32, #tpu.memory_space<vmem>>, vector<1x512xf32>
    %c0_1 = arith.constant 0 : index
    %c0_2 = arith.constant 0 : index
    %1 = vector.load %arg5[%c0_1, %c0_2] : memref<1x256xf32, #tpu.memory_space<vmem>>, vector<1x256xf32>
    %c0_3 = arith.constant 0 : index
    %c0_4 = arith.constant 0 : index
    %2 = vector.load %arg9[%c0_3, %c0_4] : memref<1x512xf32, #tpu.memory_space<vmem>>, vector<1x512xf32>
    %c0_5 = arith.constant 0 : index
    %c0_6 = arith.constant 0 : index
    %3 = vector.load %arg6[%c0_5, %c0_6] : memref<1x256xf32, #tpu.memory_space<vmem>>, vector<1x256xf32>
    %c0_7 = arith.constant 0 : index
    %c0_8 = arith.constant 0 : index
    %4 = vector.load %arg7[%c0_7, %c0_8] : memref<1x256xf32, #tpu.memory_space<vmem>>, vector<1x256xf32>
    %c0_9 = arith.constant 0 : index
    %c0_10 = arith.constant 0 : index
    %5 = vector.load %arg1[%c0_9, %c0_10] : memref<256x256xf32, #tpu.memory_space<vmem>>, vector<128x256xf32>
    %6 = arith.truncf %5 : vector<128x256xf32> to vector<128x256xbf16>
    %c0_11 = arith.constant 0 : index
    %c0_12 = arith.constant 0 : index
    %7 = vector.load %arg2[%c0_11, %c0_12] : memref<256x512xbf16, #tpu.memory_space<vmem>>, vector<256x512xbf16>
    %cst = arith.constant dense<0.000000e+00> : vector<128x512xf32>
    %8 = tpu.matmul %6, %7, %cst {dimension_numbers = #tpu.dot_dimension_numbers<[1], [0], [0], [1], [0, 0, 1, 1], [], []>} : vector<128x256xbf16>, vector<256x512xbf16>, vector<128x512xf32> -> vector<128x512xf32>
    %9 = vector.broadcast %0 : vector<1x512xf32> to vector<128x512xf32>
    %10 = arith.addf %8, %9 : vector<128x512xf32>
    %11 = arith.mulf %10, %10 : vector<128x512xf32>
    %12 = arith.mulf %10, %11 : vector<128x512xf32>
    %cst_13 = arith.constant 4.471500e-02 : f32
    %13 = vector.broadcast %cst_13 : f32 to vector<128x512xf32>
    %14 = arith.mulf %13, %12 : vector<128x512xf32>
    %15 = arith.addf %10, %14 : vector<128x512xf32>
    %cst_14 = arith.constant 0.797884583 : f32
    %16 = vector.broadcast %cst_14 : f32 to vector<128x512xf32>
    %17 = arith.mulf %16, %15 : vector<128x512xf32>
    %18 = math.tanh %17 : vector<128x512xf32>
    %cst_15 = arith.constant 1.000000e+00 : f32
    %19 = vector.broadcast %cst_15 : f32 to vector<128x512xf32>
    %20 = arith.addf %19, %18 : vector<128x512xf32>
    %cst_16 = arith.constant 5.000000e-01 : f32
    %21 = vector.broadcast %cst_16 : f32 to vector<128x512xf32>
    %22 = arith.mulf %21, %20 : vector<128x512xf32>
    %23 = arith.mulf %10, %22 : vector<128x512xf32>
    %24 = arith.truncf %23 : vector<128x512xf32> to vector<128x512xbf16>
    %c0_17 = arith.constant 0 : index
    %c0_18 = arith.constant 0 : index
    %25 = vector.load %arg4[%c0_17, %c0_18] : memref<512x256xbf16, #tpu.memory_space<vmem>>, vector<512x256xbf16>
    %cst_19 = arith.constant dense<0.000000e+00> : vector<128x256xf32>
    %26 = tpu.matmul %24, %25, %cst_19 {dimension_numbers = #tpu.dot_dimension_numbers<[1], [0], [0], [1], [0, 0, 1, 1], [], []>} : vector<128x512xbf16>, vector<512x256xbf16>, vector<128x256xf32> -> vector<128x256xf32>
    %27 = vector.broadcast %1 : vector<1x256xf32> to vector<128x256xf32>
    %28 = arith.addf %26, %27 : vector<128x256xf32>
    %29 = arith.addf %28, %5 : vector<128x256xf32>
    %cst_20 = arith.constant dense<0.000000e+00> : vector<128xf32>
    %30 = vector.multi_reduction <add>, %29, %cst_20 [1] : vector<128x256xf32> to vector<128xf32>
    %31 = vector.shape_cast %30 : vector<128xf32> to vector<128x1xf32>
    %cst_21 = arith.constant 2.560000e+02 : f32
    %32 = vector.broadcast %cst_21 : f32 to vector<128x1xf32>
    %33 = arith.divf %31, %32 : vector<128x1xf32>
    %34 = arith.mulf %29, %29 : vector<128x256xf32>
    %cst_22 = arith.constant dense<0.000000e+00> : vector<128xf32>
    %35 = vector.multi_reduction <add>, %34, %cst_22 [1] : vector<128x256xf32> to vector<128xf32>
    %36 = vector.shape_cast %35 : vector<128xf32> to vector<128x1xf32>
    %cst_23 = arith.constant 2.560000e+02 : f32
    %37 = vector.broadcast %cst_23 : f32 to vector<128x1xf32>
    %38 = arith.divf %36, %37 : vector<128x1xf32>
    %39 = arith.mulf %33, %33 : vector<128x1xf32>
    %40 = arith.subf %38, %39 : vector<128x1xf32>
    %41 = vector.broadcast %33 : vector<128x1xf32> to vector<128x256xf32>
    %42 = arith.subf %29, %41 : vector<128x256xf32>
    %cst_24 = arith.constant 9.99999974E-6 : f32
    %43 = vector.broadcast %cst_24 : f32 to vector<128x1xf32>
    %44 = arith.addf %40, %43 : vector<128x1xf32>
    %45 = math.rsqrt %44 : vector<128x1xf32>
    %46 = vector.broadcast %45 : vector<128x1xf32> to vector<128x256xf32>
    %47 = arith.mulf %42, %46 : vector<128x256xf32>
    %48 = vector.broadcast %3 : vector<1x256xf32> to vector<128x256xf32>
    %49 = arith.mulf %47, %48 : vector<128x256xf32>
    %50 = vector.broadcast %4 : vector<1x256xf32> to vector<128x256xf32>
    %51 = arith.addf %49, %50 : vector<128x256xf32>
    %52 = arith.truncf %51 : vector<128x256xf32> to vector<128x256xbf16>
    %c0_25 = arith.constant 0 : index
    %c0_26 = arith.constant 0 : index
    %53 = vector.load %arg8[%c0_25, %c0_26] : memref<256x512xbf16, #tpu.memory_space<vmem>>, vector<256x512xbf16>
    %cst_27 = arith.constant dense<0.000000e+00> : vector<128x512xf32>
    %54 = tpu.matmul %52, %53, %cst_27 {dimension_numbers = #tpu.dot_dimension_numbers<[1], [0], [0], [1], [0, 0, 1, 1], [], []>} : vector<128x256xbf16>, vector<256x512xbf16>, vector<128x512xf32> -> vector<128x512xf32>
    %55 = vector.broadcast %2 : vector<1x512xf32> to vector<128x512xf32>
    %56 = arith.addf %54, %55 : vector<128x512xf32>
    %57 = arith.truncf %56 : vector<128x512xf32> to vector<128x512xbf16>
    %c0_28 = arith.constant 0 : index
    %c0_29 = arith.constant 0 : index
    %58 = vector.load %arg10[%c0_28, %c0_29] : memref<256x512xbf16, #tpu.memory_space<vmem>>, vector<128x512xbf16>
    tpu.vector_store %arg10[%c0_28, %c0_29], %57 {strides = array<i32>} : memref<256x512xbf16, #tpu.memory_space<vmem>>, vector<128x512xbf16>,
    %c128 = arith.constant 128 : index
    %c0_30 = arith.constant 0 : index
    %59 = vector.load %arg1[%c128, %c0_30] : memref<256x256xf32, #tpu.memory_space<vmem>>, vector<128x256xf32>
    %60 = arith.truncf %59 : vector<128x256xf32> to vector<128x256xbf16>
    %c0_31 = arith.constant 0 : index
    %c0_32 = arith.constant 0 : index
    %61 = vector.load %arg2[%c0_31, %c0_32] : memref<256x512xbf16, #tpu.memory_space<vmem>>, vector<256x512xbf16>
    %cst_33 = arith.constant dense<0.000000e+00> : vector<128x512xf32>
    %62 = tpu.matmul %60, %61, %cst_33 {dimension_numbers = #tpu.dot_dimension_numbers<[1], [0], [0], [1], [0, 0, 1, 1], [], []>} : vector<128x256xbf16>, vector<256x512xbf16>, vector<128x512xf32> -> vector<128x512xf32>
    %63 = vector.broadcast %0 : vector<1x512xf32> to vector<128x512xf32>
    %64 = arith.addf %62, %63 : vector<128x512xf32>
    %65 = arith.mulf %64, %64 : vector<128x512xf32>
    %66 = arith.mulf %64, %65 : vector<128x512xf32>
    %cst_34 = arith.constant 4.471500e-02 : f32
    %67 = vector.broadcast %cst_34 : f32 to vector<128x512xf32>
    %68 = arith.mulf %67, %66 : vector<128x512xf32>
    %69 = arith.addf %64, %68 : vector<128x512xf32>
    %cst_35 = arith.constant 0.797884583 : f32
    %70 = vector.broadcast %cst_35 : f32 to vector<128x512xf32>
    %71 = arith.mulf %70, %69 : vector<128x512xf32>
    %72 = math.tanh %71 : vector<128x512xf32>
    %cst_36 = arith.constant 1.000000e+00 : f32
    %73 = vector.broadcast %cst_36 : f32 to vector<128x512xf32>
    %74 = arith.addf %73, %72 : vector<128x512xf32>
    %cst_37 = arith.constant 5.000000e-01 : f32
    %75 = vector.broadcast %cst_37 : f32 to vector<128x512xf32>
    %76 = arith.mulf %75, %74 : vector<128x512xf32>
    %77 = arith.mulf %64, %76 : vector<128x512xf32>
    %78 = arith.truncf %77 : vector<128x512xf32> to vector<128x512xbf16>
    %c0_38 = arith.constant 0 : index
    %c0_39 = arith.constant 0 : index
    %79 = vector.load %arg4[%c0_38, %c0_39] : memref<512x256xbf16, #tpu.memory_space<vmem>>, vector<512x256xbf16>
    %cst_40 = arith.constant dense<0.000000e+00> : vector<128x256xf32>
    %80 = tpu.matmul %78, %79, %cst_40 {dimension_numbers = #tpu.dot_dimension_numbers<[1], [0], [0], [1], [0, 0, 1, 1], [], []>} : vector<128x512xbf16>, vector<512x256xbf16>, vector<128x256xf32> -> vector<128x256xf32>
    %81 = vector.broadcast %1 : vector<1x256xf32> to vector<128x256xf32>
    %82 = arith.addf %80, %81 : vector<128x256xf32>
    %83 = arith.addf %82, %59 : vector<128x256xf32>
    %cst_41 = arith.constant dense<0.000000e+00> : vector<128xf32>
    %84 = vector.multi_reduction <add>, %83, %cst_41 [1] : vector<128x256xf32> to vector<128xf32>
    %85 = vector.shape_cast %84 : vector<128xf32> to vector<128x1xf32>
    %cst_42 = arith.constant 2.560000e+02 : f32
    %86 = vector.broadcast %cst_42 : f32 to vector<128x1xf32>
    %87 = arith.divf %85, %86 : vector<128x1xf32>
    %88 = arith.mulf %83, %83 : vector<128x256xf32>
    %cst_43 = arith.constant dense<0.000000e+00> : vector<128xf32>
    %89 = vector.multi_reduction <add>, %88, %cst_43 [1] : vector<128x256xf32> to vector<128xf32>
    %90 = vector.shape_cast %89 : vector<128xf32> to vector<128x1xf32>
    %cst_44 = arith.constant 2.560000e+02 : f32
    %91 = vector.broadcast %cst_44 : f32 to vector<128x1xf32>
    %92 = arith.divf %90, %91 : vector<128x1xf32>
    %93 = arith.mulf %87, %87 : vector<128x1xf32>
    %94 = arith.subf %92, %93 : vector<128x1xf32>
    %95 = vector.broadcast %87 : vector<128x1xf32> to vector<128x256xf32>
    %96 = arith.subf %83, %95 : vector<128x256xf32>
    %cst_45 = arith.constant 9.99999974E-6 : f32
    %97 = vector.broadcast %cst_45 : f32 to vector<128x1xf32>
    %98 = arith.addf %94, %97 : vector<128x1xf32>
    %99 = math.rsqrt %98 : vector<128x1xf32>
    %100 = vector.broadcast %99 : vector<128x1xf32> to vector<128x256xf32>
    %101 = arith.mulf %96, %100 : vector<128x256xf32>
    %102 = vector.broadcast %3 : vector<1x256xf32> to vector<128x256xf32>
    %103 = arith.mulf %101, %102 : vector<128x256xf32>
    %104 = vector.broadcast %4 : vector<1x256xf32> to vector<128x256xf32>
    %105 = arith.addf %103, %104 : vector<128x256xf32>
    %106 = arith.truncf %105 : vector<128x256xf32> to vector<128x256xbf16>
    %c0_46 = arith.constant 0 : index
    %c0_47 = arith.constant 0 : index
    %107 = vector.load %arg8[%c0_46, %c0_47] : memref<256x512xbf16, #tpu.memory_space<vmem>>, vector<256x512xbf16>
    %cst_48 = arith.constant dense<0.000000e+00> : vector<128x512xf32>
    %108 = tpu.matmul %106, %107, %cst_48 {dimension_numbers = #tpu.dot_dimension_numbers<[1], [0], [0], [1], [0, 0, 1, 1], [], []>} : vector<128x256xbf16>, vector<256x512xbf16>, vector<128x512xf32> -> vector<128x512xf32>
    %109 = vector.broadcast %2 : vector<1x512xf32> to vector<128x512xf32>
    %110 = arith.addf %108, %109 : vector<128x512xf32>
    %111 = arith.truncf %110 : vector<128x512xf32> to vector<128x512xbf16>
    %c128_49 = arith.constant 128 : index
    %c0_50 = arith.constant 0 : index
    %112 = vector.load %arg10[%c128_49, %c0_50] : memref<256x512xbf16, #tpu.memory_space<vmem>>, vector<128x512xbf16>
    tpu.vector_store %arg10[%c128_49, %c0_50], %111 {strides = array<i32>} : memref<256x512xbf16, #tpu.memory_space<vmem>>, vector<128x512xbf16>,
    return
  }
  func.func @transform_0(%arg0: i32) -> (i32, i32) {
    %c0_i32 = arith.constant 0 : i32
    %c0_i32_0 = arith.constant 0 : i32
    return %arg0, %c0_i32 : i32, i32
  }
  func.func @transform_1(%arg0: i32) -> (i32, i32) {
    %c0_i32 = arith.constant 0 : i32
    %c0_i32_0 = arith.constant 0 : i32
    %c0_i32_1 = arith.constant 0 : i32
    return %c0_i32, %c0_i32_0 : i32, i32
  }
  func.func @transform_2(%arg0: i32) -> (i32, i32) {
    %c0_i32 = arith.constant 0 : i32
    %c0_i32_0 = arith.constant 0 : i32
    %c0_i32_1 = arith.constant 0 : i32
    return %c0_i32, %c0_i32_0 : i32, i32
  }
  func.func @transform_3(%arg0: i32) -> (i32, i32) {
    %c0_i32 = arith.constant 0 : i32
    %c0_i32_0 = arith.constant 0 : i32
    %c0_i32_1 = arith.constant 0 : i32
    return %c0_i32, %c0_i32_0 : i32, i32
  }
  func.func @transform_4(%arg0: i32) -> (i32, i32) {
    %c0_i32 = arith.constant 0 : i32
    %c0_i32_0 = arith.constant 0 : i32
    %c0_i32_1 = arith.constant 0 : i32
    return %c0_i32, %c0_i32_0 : i32, i32
  }
  func.func @transform_5(%arg0: i32) -> (i32, i32) {
    %c0_i32 = arith.constant 0 : i32
    %c0_i32_0 = arith.constant 0 : i32
    %c0_i32_1 = arith.constant 0 : i32
    return %c0_i32, %c0_i32_0 : i32, i32
  }
  func.func @transform_6(%arg0: i32) -> (i32, i32) {
    %c0_i32 = arith.constant 0 : i32
    %c0_i32_0 = arith.constant 0 : i32
    %c0_i32_1 = arith.constant 0 : i32
    return %c0_i32, %c0_i32_0 : i32, i32
  }
  func.func @transform_7(%arg0: i32) -> (i32, i32) {
    %c0_i32 = arith.constant 0 : i32
    %c0_i32_0 = arith.constant 0 : i32
    %c0_i32_1 = arith.constant 0 : i32
    return %c0_i32, %c0_i32_0 : i32, i32
  }
  func.func @transform_8(%arg0: i32) -> (i32, i32) {
    %c0_i32 = arith.constant 0 : i32
    %c0_i32_0 = arith.constant 0 : i32
    %c0_i32_1 = arith.constant 0 : i32
    return %c0_i32, %c0_i32_0 : i32, i32
  }
  func.func @transform_9(%arg0: i32) -> (i32, i32) {
    %c0_i32 = arith.constant 0 : i32
    %c0_i32_0 = arith.constant 0 : i32
    return %arg0, %c0_i32 : i32, i32
  }
}

</mosaic_0001>

<bundles_post_ra>
// kernel: tpu_custom_call.1
= control target key start
LH: loop header
LB: loop body
LE: loop exit
PB: predicated region body
PF: predicated region fallthrough
CT: control target
= control target key end

     0   :  { %s14146_s0 = inlined_call_operand.hbm [shape: f32[512,256], index: 0, kind: input, shape index: {}]   ;;  %s14147_s1 = inlined_call_operand.hbm [shape: bf16[256,512], index: 1, kind: input, shape index: {}]   ;;  %s14148_s2 = inlined_call_operand.hbm [shape: f32[1,512], index: 2, kind: input, shape index: {}]   ;;  %s14149_s3 = inlined_call_operand.hbm [shape: bf16[512,256], index: 3, kind: input, shape index: {}]   ;;  %s14150_s4 = inlined_call_operand.vmem [shape: f32[1,256], index: 4, kind: input, shape index: {}]   ;;  %s14151_s5 = inlined_call_operand.hbm [shape: f32[1,256], index: 5, kind: input, shape index: {}]   ;;  %s14152_s6 = inlined_call_operand.hbm [shape: f32[1,256], index: 6, kind: input, shape index: {}]   ;;  %s14153_s7 = inlined_call_operand.hbm [shape: bf16[256,512], index: 7, kind: input, shape index: {}]   ;;  %s14154_s8 = inlined_call_operand.vmem [shape: f32[1,512], index: 8, kind: input, shape index: {}]   ;;  %s14155_s9 = inlined_call_operand.hbm [shape: bf16[512,512], index: 9, kind: output, shape index: {}]  }
   0x1   :  { %14184 = sst [smem:[#allocation33_spill]] %s14147_s1 }
   0x2   :  { %14185 = sst [smem:[#allocation34_spill]] %s14148_s2 }
   0x3   :  { %14186 = sst [smem:[#allocation35_spill]] %s14149_s3 }
   0x4   :  { %14187 = sst [smem:[#allocation36_spill]] %s14151_s5 }
   0x5   :  { %14 = vsyncpa [#allocation3], 0 }
   0x6   :  { %16 = vsyncpa [#allocation3 + $0x1], 0 }
   0x7   :  { %17 = vsyncpa [#allocation6], 0 }
   0x8   :  { %18 = vsyncpa [#allocation9], 0 }
   0x9   :  { %19 = vsyncpa [#allocation12], 0 }
   0xa   :  { %20 = vsyncpa [#allocation4], 0 }
   0xb   :  { %22 = vsyncpa [#allocation4 + $0x1], 0  ;;  %s10631_s30 = smov 0   ;;  %s10633_s10 = smov 0  }
   0xc   :  { %s10635_s11 = smov 0   ;;  %s10637_s12 = smov 0  }
   0xd LB: > { %s14188_s1 = sld [smem:[#allocation33_spill]]  ;;  %s10655_s16 = sadd.s32 4294967295, %s10566_s12   ;;  %s10566_s12 = sphi %s10637_s12, %s14231_s12   ;;  %s10562_s11 = sphi %s10635_s11, %s14230_s11   ;;  %s10558_s10 = sphi %s10633_s10, %s14229_s10   ;;  %s10554_s30 = sphi %s10631_s30, %s14228_s30  }
   0xe   : > { %p7826_p0 = scmp.ge.s32.totalorder %s10566_s12, 1  ;;  %p49_p1 = scmp.eq.s32.totalorder %s10655_s16, 0 }
   0xf   : > { %p253_p2 = scmp.lt.s32.totalorder %s10566_s12, 3  ;;  %s10568_s18 = smov [#allocation5]  }
  0x10   : > { %s266_s19 = sshll.u32 %s10568_s18, 4  ;;  %s14190_s3 = sld [smem:[#allocation35_spill]]  ;;  %s267_s19 = int_to_ptr.vmem [resolvable:$true] %s266_s19 }
  0x11   : > { %p10660_p3 = pnand %p7826_p0, %p253_p2  ;;  %s10569_s24 = smov [#allocation8]  }
  0x12   : > { %s292_s25 = sshll.u32 %s10569_s24, 4  ;;  %s14156_s26 = smov 256   ;;  %s293_s25 = int_to_ptr.vmem [resolvable:$true] %s292_s25 }
  0x13   : > { %s264_s15 = sshll.u32 %s14188_s1, 4  ;;  %p9805_p4 = pneg %p10660_p3  ;;  %s265_s15 = int_to_ptr.hbm [resolvable:$true] %s264_s15 }
  0x14   : > { %s14157_s27 = smov 16   ;;  %s10572_s28 = smov 128  }
  0x15   : > { %p10672_p6 = pnand %p9805_p4, %p49_p1  ;;  %s10573_s29 = smov 8  }
  0x16   : > { %s290_s22 = sshll.u32 %s14190_s3, 4  ;;  %s320_s18 = sshll.u32 %s14152_s6, 4  ;;  %s291_s22 = int_to_ptr.hbm [resolvable:$true] %s290_s22  ;;  %s321_s18 = int_to_ptr.hbm [resolvable:$true] %s320_s18 }
  0x17   : > { %9808 = dma.hbm_to_vmem [thread:$0]  (!%p10672_p6), %s265_s15, 8192, %s267_s19, [#allocation6], %s14156_s26, %s14156_s26, %s14157_s27  }
  0x18   : > { %9814 = dma.hbm_to_vmem [thread:$0]  (!%p10672_p6), %s291_s22, 8192, %s293_s25, [#allocation9], %s10572_s28, %s10572_s28, %s10573_s29  }
  0x19   : > { %s10574_s20 = smov [#allocation11]   ;;  %s14192_s2 = sld [smem:[#allocation34_spill]] }
  0x1a   : > { %s322_s21 = sshll.u32 %s10574_s20, 4  ;;  %s10575_s15 = smov [#allocation7]   ;;  %s323_s21 = int_to_ptr.vmem [resolvable:$true] %s322_s21 }
  0x1b   : > { %9820 = dma.hbm_to_vmem [thread:$0]  (!%p10672_p6), %s321_s18, 32, %s323_s21, [#allocation12]  }
  0x1c   : > { %s281_s19 = sshll.u32 %s10575_s15, 4  ;;  %s14193_s5 = sld [smem:[#allocation36_spill]]  ;;  %s282_s19 = int_to_ptr.vmem [resolvable:$true] %s281_s19 }
  0x1d   : > { %s331_s13 = sshll.u32 %s14153_s7, 4  ;;  %s10576_s14 = smov [#allocation10]   ;;  %s332_s13 = int_to_ptr.hbm [resolvable:$true] %s331_s13 }
  0x1e   : > { %s310_s18 = sshll.u32 %s10576_s14, 4  ;;  %s10577_s20 = smov [#allocation13]   ;;  %s311_s18 = int_to_ptr.vmem [resolvable:$true] %s310_s18 }
  0x1f   : > { %s279_s3 = sshll.u32 %s14192_s2, 4  ;;  %s7825_s21 = sadd.s32 4294967294, %s10566_s12   ;;  %s280_s3 = int_to_ptr.hbm [resolvable:$true] %s279_s3 }
  0x20   : > { %9811 = dma.hbm_to_vmem [thread:$0]  (!%p10672_p6), %s280_s3, 64, %s282_s19, [#allocation6]  }
  0x21   : > { %s333_s3 = sshll.u32 %s10577_s20, 4  ;;  %s10708_s24 = sadd.s32 1, %s10566_s12   ;;  %s334_s3 = int_to_ptr.vmem [resolvable:$true] %s333_s3 }
  0x22   : > { %s308_s28 = sshll.u32 %s14193_s5, 4  ;;  %s32_s15 = ssub.s32 %s10566_s12, %s10708_s24  ;;  %s309_s28 = int_to_ptr.hbm [resolvable:$true] %s308_s28 }
  0x23   : > { %9817 = dma.hbm_to_vmem [thread:$0]  (!%p10672_p6), %s309_s28, 32, %s311_s18, [#allocation9]  }
  0x24   : > { %9823 = dma.hbm_to_vmem [thread:$0]  (!%p10672_p6), %s332_s13, 8192, %s334_s3, [#allocation12], %s14156_s26, %s14156_s26, %s14157_s27  }
  0x25   : > { %s35_s19 = sadd.s32 1, %s10562_s11  ;;  %p33_p7 = scmp.eq.s32.totalorder %s32_s15, 0 }
  0x26   : > { %p42_p8 = scmp.ne.s32.totalorder %s10562_s11, %s10558_s10  ;;  %p43_p9 = scmp.eq.s32.totalorder %s10566_s12, 0 }
  0x27   : > { %p48_p10 = scmp.ne.s32.totalorder %s10558_s10, %s10554_s30  ;;  %p240_p13 = scmp.eq.s32.totalorder %s10655_s16, 1 }
  0x28   : > { %s10719_s22 = scalar_select %p33_p7, %s10562_s11, %s35_s19  }
  0x29   : > { %p10721_p11 = por %p43_p9, %p42_p8  ;;  %p10727_p12 = por %p49_p1, %p48_p10 }
  0x2a   : > { %p246_p0 = scmp.eq.s32.totalorder %s7825_s21, 1  ;;  %p9838_p2 = scmp.lt.s32.totalorder %s10566_s12, 2 }
  0x2b   : > { %s350_s28 = sand.u32 1, %s10562_s11   ;;  %p10734_p4 = por %p240_p13, %p42_p8 }
  0x2c   : > { %p10738_p6 = por %p246_p0, %p48_p10  ;;  %s7834_s13 = sshll.u32 %s350_s28, 9 }
  0x2d   : > { %s9390_s14 = sshll.u32 %s10566_s12, 9  ;;  %s354_s15 = scalar_lea.vmem [#allocation2], %s7834_s13 }
  0x2e   : > { %s360_s3 = scalar_lea.hbm %s14146_s0, %s9390_s14  ;;  %s363_s19 = sshll.u32 %s354_s15, 4  ;;  %s364_s19 = int_to_ptr.vmem [resolvable:$true] %s363_s19 }
  0x2f   : > { %s361_s26 = sshll.u32 %s360_s3, 4  ;;  %p10748_p7 = pnand %p9838_p2, %p10721_p11  ;;  %s362_s26 = int_to_ptr.hbm [resolvable:$true] %s361_s26 }
  0x30   : > { %s351_s27 = scalar_lea.sflag [#allocation3], %s350_s28  ;;  %s10458_s2 = sshra.s32 %s362_s26, 4  ;;  %s10459_s2 = int_to_ptr.hbm [resolvable:$true] %s10458_s2 }
  0x31   : > { %s10460_s5 = scalar_lea.hbm %s10459_s2, 512  ;;  %p10462_p9 = pneg %p10748_p7 }
  0x32   : > { %p10461_p8 = scmp.ne.s32.totalorder %s10459_s2, %s10460_s5  ;;  %s10465_s18 = scalar_lea.hbm %s14146_s0, 1024 }
  0x33   : > { %p10466_p11 = scmp.lt.s32.totalorder %s10459_s2, %s14146_s0  ;;  %p10467_p0 = scmp.lt.s32.totalorder %s10465_s18, %s10460_s5 }
  0x34   : > { %p10463_p10 = pnand %p10462_p9, %p10461_p8 }
  0x35   : > { %p10468_p2 = por %p10467_p0, %p10466_p11 }
  0x36   : > { %p10464_p13 = pneg %p10463_p10 }
  0x38   : > { %p10469_p5 = pnand %p10468_p2, %p10464_p13 }
  0x3a   : > { %10472 = shalt.err (!%p10469_p5)
}
  0x3b   : > { %s14199_s28 = smov 16   ;;  %s14200_s3 = smov 256  }
  0x3c   : > { %9827 = dma.hbm_to_vmem [thread:$0]  (!%p10748_p7), %s362_s26, 8192, %s364_s19, %s351_s27, %s14200_s3, %s14200_s3, %s14199_s28  }
  0x3d   : > { %375 = sbr.rel (%p10660_p3) target bundleno = 2202 (0x89a), region = 56 }
  0x42   : > { %s10768_s15 = sand.u32 1, %s10558_s10  }
  0x43   : > { %s7839_s2 = sshll.u32 %s10768_s15, 9  ;;  %s378_s5 = scalar_lea.sflag [#allocation3], %s10768_s15 }
  0x44   : > { %s10774_s13 = scalar_lea.vmem [#allocation2], %s7839_s2 }
  0x45   : > { %10533 = dma.done.wait (%p10727_p12), %s378_s5, 8192  }
  0x46   : > { %10535 = vsyncadd (%p10727_p12), %s378_s5, 4294959104 }
  0x47   : > { %10537 = dma.done.wait (%p49_p1), [#allocation6], 8256  }
  0x48   : > { %10539 = vsyncadd (%p49_p1), [#allocation6], 4294959040 }
  0x49   : > { %10541 = dma.done.wait (%p49_p1), [#allocation9], 8224  }
  0x4a   : > { %10543 = vsyncadd (%p49_p1), [#allocation9], 4294959072 }
  0x4b   : > { %10545 = dma.done.wait (%p49_p1), [#allocation12], 8224  }
  0x4c   : > { %10547 = vsyncadd (%p49_p1), [#allocation12], 4294959072  ;;  %v7961_v0 = vld [vmem:[#allocation5 + $0xe0] sm:$0xf]  ;;  %v9421_v1 = vld [vmem:[#allocation5 + $0xec] sm:$0xf0] }
  0x4d   : > { %v8089_v2 = vld [vmem:[#allocation5 + $0x1e0] sm:$0xf]  ;;  %v7962_v3 = vor.u32 %v9421_v1, %v7961_v0  ;;  %v9453_v4 = vld [vmem:[#allocation5 + $0x1ec] sm:$0xf0]  ;;  %v9419_v5 = vld [vmem:[#allocation5 + $0xe4] sm:$0xf] }
  0x4e   : > { %v7963_v6 = vld [vmem:[#allocation5 + $0xf0] sm:$0xf0]  ;;  %v8090_v7 = vor.u32 %v9453_v4, %v8089_v2  ;;  %v9451_v9 = vld [vmem:[#allocation5 + $0x1e4] sm:$0xf]  ;;  %v7945_v11 = vld [vmem:[#allocation5 + $0xc0] sm:$0xf] }
  0x4f   : > { %v7966_v8 = vor.u32 %v9419_v5, %v7963_v6  ;;  %v8091_v10 = vld [vmem:[#allocation5 + $0x1f0] sm:$0xf0]  ;;  %895 = vmatpush.bf16.msra.mxu0 %v7962_v3  ;;  %v9417_v13 = vld [vmem:[#allocation5 + $0xcc] sm:$0xf0]  ;;  %v8073_v14 = vld [vmem:[#allocation5 + $0x1c0] sm:$0xf] }
  0x50   : > { %v8094_v12 = vor.u32 %v9451_v9, %v8091_v10  ;;  %v9449_v15 = vld [vmem:[#allocation5 + $0x1cc] sm:$0xf0]  ;;  %944 = vmatpush.bf16.msra.mxu1 %v8090_v7  ;;  %v7946_v16 = vor.u32 %v9417_v13, %v7945_v11  ;;  %v9415_v18 = vld [vmem:[#allocation5 + $0xc4] sm:$0xf]  ;;  %v7947_v19 = vld [vmem:[#allocation5 + $0xd0] sm:$0xf0] }
  0x51   : > { %993 = vmatpush.bf16.msra.mxu2 %v7966_v8  ;;  %v8074_v17 = vor.u32 %v9449_v15, %v8073_v14  ;;  %v9447_v20 = vld [vmem:[#allocation5 + $0x1c4] sm:$0xf]  ;;  %v7950_v21 = vor.u32 %v9415_v18, %v7947_v19  ;;  %v8075_v22 = vld [vmem:[#allocation5 + $0x1d0] sm:$0xf0]  ;;  %v7929_v23 = vld [vmem:[#allocation5 + $0xa0] sm:$0xf] }
  0x52   : > { %1042 = vmatpush.bf16.msra.mxu3 %v8094_v12  ;;  %v9413_v24 = vld [vmem:[#allocation5 + $0xac] sm:$0xf0]  ;;  %v8078_v25 = vor.u32 %v9447_v20, %v8075_v22  ;;  %v8057_v26 = vld [vmem:[#allocation5 + $0x1a0] sm:$0xf]  ;;  %v9411_v28 = vld [vmem:[#allocation5 + $0xa4] sm:$0xf] }
  0x53   : > { %v9445_v27 = vld [vmem:[#allocation5 + $0x1ac] sm:$0xf0]  ;;  %896 = vmatpush.bf16.msra.mxu0 %v7946_v16  ;;  %v7930_v29 = vor.u32 %v9413_v24, %v7929_v23  ;;  %v7931_v30 = vld [vmem:[#allocation5 + $0xb0] sm:$0xf0]  ;;  %v9443_v31 = vld [vmem:[#allocation5 + $0x1a4] sm:$0xf] }
  0x54   : > { %v8059_v32 = vld [vmem:[#allocation5 + $0x1b0] sm:$0xf0]  ;;  %945 = vmatpush.bf16.msra.mxu1 %v8074_v17  ;;  %v8058_v33 = vor.u32 %v9445_v27, %v8057_v26  ;;  %v7934_v34 = vor.u32 %v9411_v28, %v7931_v30  ;;  %v7913_v35 = vld [vmem:[#allocation5 + $0x80] sm:$0xf]  ;;  %v9409_v36 = vld [vmem:[#allocation5 + $0x8c] sm:$0xf0] }
  0x55   : > { %994 = vmatpush.bf16.msra.mxu2 %v7950_v21  ;;  %v8041_v37 = vld [vmem:[#allocation5 + $0x180] sm:$0xf]  ;;  %v8062_v38 = vor.u32 %v9443_v31, %v8059_v32  ;;  %v9441_v39 = vld [vmem:[#allocation5 + $0x18c] sm:$0xf0]  ;;  %v9407_v40 = vld [vmem:[#allocation5 + $0x84] sm:$0xf]  ;;  %v7914_v44 = vor.u32 %v9409_v36, %v7913_v35 }
  0x56   : > { %1043 = vmatpush.bf16.msra.mxu3 %v8078_v25  ;;  %v7915_v41 = vld [vmem:[#allocation5 + $0x90] sm:$0xf0]  ;;  %v9439_v42 = vld [vmem:[#allocation5 + $0x184] sm:$0xf]  ;;  %v8042_v45 = vor.u32 %v9441_v39, %v8041_v37  ;;  %v7897_v47 = vld [vmem:[#allocation5 + $0x60] sm:$0xf] }
  0x57   : > { %v8043_v43 = vld [vmem:[#allocation5 + $0x190] sm:$0xf0]  ;;  %897 = vmatpush.bf16.msra.mxu0 %v7930_v29  ;;  %v7918_v46 = vor.u32 %v9407_v40, %v7915_v41  ;;  %v9405_v48 = vld [vmem:[#allocation5 + $0x6c] sm:$0xf0]  ;;  %v8025_v49 = vld [vmem:[#allocation5 + $0x160] sm:$0xf] }
  0x58   : > { %946 = vmatpush.bf16.msra.mxu1 %v8058_v33  ;;  %v8046_v50 = vor.u32 %v9439_v42, %v8043_v43  ;;  %v9437_v51 = vld [vmem:[#allocation5 + $0x16c] sm:$0xf0]  ;;  %v9403_v52 = vld [vmem:[#allocation5 + $0x64] sm:$0xf]  ;;  %v7899_v53 = vld [vmem:[#allocation5 + $0x70] sm:$0xf0]  ;;  %v7898_v56 = vor.u32 %v9405_v48, %v7897_v47 }
  0x59   : > { %995 = vmatpush.bf16.msra.mxu2 %v7934_v34  ;;  %v9435_v54 = vld [vmem:[#allocation5 + $0x164] sm:$0xf]  ;;  %v8027_v55 = vld [vmem:[#allocation5 + $0x170] sm:$0xf0]  ;;  %v8026_v57 = vor.u32 %v9437_v51, %v8025_v49  ;;  %v7902_v58 = vor.u32 %v9403_v52, %v7899_v53  ;;  %v7881_v59 = vld [vmem:[#allocation5 + $0x40] sm:$0xf] }
  0x5a   : > { %1044 = vmatpush.bf16.msra.mxu3 %v8062_v38  ;;  %v9401_v60 = vld [vmem:[#allocation5 + $0x4c] sm:$0xf0]  ;;  %v8009_v61 = vld [vmem:[#allocation5 + $0x140] sm:$0xf]  ;;  %v8030_v62 = vor.u32 %v9435_v54, %v8027_v55  ;;  %v9399_v0 = vld [vmem:[#allocation5 + $0x44] sm:$0xf] }
  0x5b   : > { %898 = vmatpush.bf16.msra.mxu0 %v7914_v44  ;;  %v9433_v63 = vld [vmem:[#allocation5 + $0x14c] sm:$0xf0]  ;;  %v7883_v1 = vld [vmem:[#allocation5 + $0x50] sm:$0xf0]  ;;  %v9431_v2 = vld [vmem:[#allocation5 + $0x144] sm:$0xf]  ;;  %v7882_v4 = vor.u32 %v9401_v60, %v7881_v59 }
  0x5c   : > { %947 = vmatpush.bf16.msra.mxu1 %v8042_v45  ;;  %v8011_v3 = vld [vmem:[#allocation5 + $0x150] sm:$0xf0]  ;;  %v8010_v5 = vor.u32 %v9433_v63, %v8009_v61  ;;  %v7886_v6 = vor.u32 %v9399_v0, %v7883_v1  ;;  %v7865_v7 = vld [vmem:[#allocation5 + $0x20] sm:$0xf]  ;;  %v9397_v8 = vld [vmem:[#allocation5 + $0x2c] sm:$0xf0] }
  0x5d   : > { %996 = vmatpush.bf16.msra.mxu2 %v7918_v46  ;;  %v7993_v9 = vld [vmem:[#allocation5 + $0x120] sm:$0xf]  ;;  %v8014_v10 = vor.u32 %v9431_v2, %v8011_v3  ;;  %v9429_v11 = vld [vmem:[#allocation5 + $0x12c] sm:$0xf0]  ;;  %v9395_v12 = vld [vmem:[#allocation5 + $0x24] sm:$0xf]  ;;  %v7866_v16 = vor.u32 %v9397_v8, %v7865_v7 }
  0x5e   : > { %1045 = vmatpush.bf16.msra.mxu3 %v8046_v50  ;;  %v7867_v13 = vld [vmem:[#allocation5 + $0x30] sm:$0xf0]  ;;  %v9427_v14 = vld [vmem:[#allocation5 + $0x124] sm:$0xf]  ;;  %v7849_v17 = vld [vmem:[#allocation5] sm:$0xf]  ;;  %v7994_v19 = vor.u32 %v9429_v11, %v7993_v9 }
  0x5f   : > { %899 = vmatpush.bf16.msra.mxu0 %v7898_v56  ;;  %v7995_v15 = vld [vmem:[#allocation5 + $0x130] sm:$0xf0]  ;;  %v9393_v18 = vld [vmem:[#allocation5 + $0xc] sm:$0xf0]  ;;  %v7870_v20 = vor.u32 %v9395_v12, %v7867_v13  ;;  %v7977_v21 = vld [vmem:[#allocation5 + $0x100] sm:$0xf] }
  0x60   : > { %948 = vmatpush.bf16.msra.mxu1 %v8026_v57  ;;  %v9425_v22 = vld [vmem:[#allocation5 + $0x10c] sm:$0xf0]  ;;  %v9391_v23 = vld [vmem:[#allocation5 + $0x4] sm:$0xf]  ;;  %v7998_v24 = vor.u32 %v9427_v14, %v7995_v15  ;;  %v7851_v25 = vld [vmem:[#allocation5 + $0x10] sm:$0xf0]  ;;  %v7850_v31 = vor.u32 %v9393_v18, %v7849_v17 }
  0x61   : > { %997 = vmatpush.bf16.msra.mxu2 %v7902_v58  ;;  %v9423_v26 = vld [vmem:[#allocation5 + $0x104] sm:$0xf]  ;;  %v7979_v27 = vld [vmem:[#allocation5 + $0x110] sm:$0xf0]  ;;  %v9420_v29 = vld [vmem:[#allocation5 + $0xec] sm:$0xf]  ;;  %v7978_v35 = vor.u32 %v9425_v22, %v7977_v21  ;;  %v7854_v36 = vor.u32 %v9391_v23, %v7851_v25 }
  0x62   : > { %1046 = vmatpush.bf16.msra.mxu3 %v8030_v62  ;;  %v454_v28 = vld [vmem:[%s10774_s13] sm:$0xff]  ;;  %v7971_v30 = vld [vmem:[#allocation5 + $0xf8] sm:$0xf0]  ;;  %v456_v32 = vld [vmem:[%s10774_s13 + $0x10] sm:$0xff]  ;;  %v7982_v39 = vor.u32 %v9423_v26, %v7979_v27  ;;  %s12350_s19 = scalar_lea.vmem [#allocation14], %s7839_s2  ;;  %s9776_s21 = sshll.u32 %s10655_s16, 9 }
  0x63   : > { %900 = vmatpush.bf16.msra.mxu0 %v7882_v4  ;;  %v9452_v33 = vld [vmem:[#allocation5 + $0x1ec] sm:$0xf]  ;;  %v8099_v34 = vld [vmem:[#allocation5 + $0x1f8] sm:$0xf0]  ;;  %v7974_v40 = vor.u32 %v9420_v29, %v7971_v30  ;;  %v7969_v41 = vld [vmem:[#allocation5 + $0xe8] sm:$0xf]  ;;  %v10796_v44 = vpack.c.bf16 %v456_v32, %v454_v28  ;;  %s7691_s20 = scalar_lea.hbm %s14155_s9, %s9776_s21 }
  0x64   : > { %949 = vmatpush.bf16.msra.mxu1 %v8010_v5  ;;  %v455_v37 = vld [vmem:[%s10774_s13 + $0x8] sm:$0xff]  ;;  %v457_v38 = vld [vmem:[%s10774_s13 + $0x18] sm:$0xff]  ;;  %v8102_v45 = vor.u32 %v9452_v33, %v8099_v34  ;;  %v460_v11 = vld [vmem:[%s10774_s13 + $0x30] sm:$0xff]  ;;  %s7692_s23 = sshll.u32 %s12350_s19, 4  ;;  %s7694_s28 = sshll.u32 %s7691_s20, 4  ;;  %s7693_s23 = int_to_ptr.vmem [resolvable:$true] %s7692_s23  ;;  %s7695_s28 = int_to_ptr.hbm [resolvable:$true] %s7694_s28 }
  0x65   : > { %998 = vmatpush.bf16.msra.mxu2 %v7886_v6  ;;  %v9422_v42 = vld [vmem:[#allocation5 + $0xf4] sm:$0xf0]  ;;  %v8097_v43 = vld [vmem:[#allocation5 + $0x1e8] sm:$0xf]  ;;  %v9416_v47 = vld [vmem:[#allocation5 + $0xcc] sm:$0xf]  ;;  %v10798_v49 = vpack.c.bf16 %v457_v38, %v455_v37 }
  0x66   : > { %1047 = vmatpush.bf16.msra.mxu3 %v8014_v10  ;;  %v9454_v46 = vld [vmem:[#allocation5 + $0x1f4] sm:$0xf0]  ;;  %v7955_v48 = vld [vmem:[#allocation5 + $0xd8] sm:$0xf0]  ;;  %v9448_v50 = vld [vmem:[#allocation5 + $0x1cc] sm:$0xf]  ;;  %v7970_v52 = vor.u32 %v9422_v42, %v7969_v41 }
  0x67   : > { %901 = vmatpush.bf16.msra.mxu0 %v7866_v16  ;;  %v8083_v51 = vld [vmem:[#allocation5 + $0x1d8] sm:$0xf0]  ;;  %v8098_v53 = vor.u32 %v9454_v46, %v8097_v43  ;;  %v7958_v54 = vor.u32 %v9416_v47, %v7955_v48  ;;  %v7953_v55 = vld [vmem:[#allocation5 + $0xc8] sm:$0xf]  ;;  %v9418_v56 = vld [vmem:[#allocation5 + $0xd4] sm:$0xf0] }
  0x68   : > { %950 = vmatpush.bf16.msra.mxu1 %v7994_v19  ;;  %v8086_v57 = vor.u32 %v9448_v50, %v8083_v51  ;;  %v8081_v58 = vld [vmem:[#allocation5 + $0x1c8] sm:$0xf]  ;;  %v9450_v59 = vld [vmem:[#allocation5 + $0x1d4] sm:$0xf0]  ;;  %v7954_v60 = vor.u32 %v9418_v56, %v7953_v55  ;;  %v9412_v61 = vld [vmem:[#allocation5 + $0xac] sm:$0xf] }
  0x69   : > { %999 = vmatpush.bf16.msra.mxu2 %v7870_v20  ;;  %v7939_v62 = vld [vmem:[#allocation5 + $0xb8] sm:$0xf0]  ;;  %v9444_v63 = vld [vmem:[#allocation5 + $0x1ac] sm:$0xf]  ;;  %v8082_v0 = vor.u32 %v9450_v59, %v8081_v58  ;;  %v7937_v3 = vld [vmem:[#allocation5 + $0xa8] sm:$0xf] }
  0x6a   : > { %1048 = vmatpush.bf16.msra.mxu3 %v7998_v24  ;;  %v7942_v1 = vor.u32 %v9412_v61, %v7939_v62  ;;  %v8067_v2 = vld [vmem:[#allocation5 + $0x1b8] sm:$0xf0]  ;;  %v9414_v4 = vld [vmem:[#allocation5 + $0xb4] sm:$0xf0]  ;;  %v8065_v6 = vld [vmem:[#allocation5 + $0x1a8] sm:$0xf] }
  0x6b   : > { %902 = vmatpush.bf16.msra.mxu0 %v7850_v31  ;;  %v8070_v5 = vor.u32 %v9444_v63, %v8067_v2  ;;  %v9446_v7 = vld [vmem:[#allocation5 + $0x1b4] sm:$0xf0]  ;;  %v7938_v8 = vor.u32 %v9414_v4, %v7937_v3  ;;  %v458_v10 = vld [vmem:[%s10774_s13 + $0x20] sm:$0xff]  ;;  %v459_v12 = vld [vmem:[%s10774_s13 + $0x28] sm:$0xff]  ;;  %s7679_s16 = scalar_lea.sflag [#allocation4], %s10768_s15  ;;  %s10502_s3 = sshra.s32 %s7695_s28, 4  ;;  %s10503_s3 = int_to_ptr.hbm [resolvable:$true] %s10502_s3 }
  0x6c   : > { %951 = vmatpush.bf16.msra.mxu1 %v7978_v35  ;;  %v8066_v9 = vor.u32 %v9446_v7, %v8065_v6  ;;  %v461_v13 = vld [vmem:[%s10774_s13 + $0x38] sm:$0xff]  ;;  %v10808_v14 = vpack.c.bf16 %v460_v11, %v458_v10  ;;  %v9408_v16 = vld [vmem:[#allocation5 + $0x8c] sm:$0xf]  ;;  %v7921_v21 = vld [vmem:[#allocation5 + $0x88] sm:$0xf]  ;;  %s10504_s2 = scalar_lea.hbm %s10503_s3, 512  ;;  %p10509_p12 = scmp.lt.s32.totalorder %s10503_s3, %s14155_s9 }
  0x6d   : > { %1000 = vmatpush.bf16.msra.mxu2 %v7854_v36  ;;  %v10810_v15 = vpack.c.bf16 %v461_v13, %v459_v12  ;;  %v7923_v17 = vld [vmem:[#allocation5 + $0x98] sm:$0xf0]  ;;  %v9440_v18 = vld [vmem:[#allocation5 + $0x18c] sm:$0xf]  ;;  %v9410_v22 = vld [vmem:[#allocation5 + $0x94] sm:$0xf0]  ;;  %p10505_p1 = scmp.ne.s32.totalorder %s10503_s3, %s10504_s2 }
  0x6e   : > { %1049 = vmatpush.bf16.msra.mxu3 %v7982_v39  ;;  %903 = vmatmul.bf16.vlgmr.msra.gmra.mxu0 %v10796_v44  ;;  %v7926_v19 = vor.u32 %v9408_v16, %v7923_v17  ;;  %v8051_v20 = vld [vmem:[#allocation5 + $0x198] sm:$0xf0]  ;;  %v7922_v24 = vor.u32 %v9410_v22, %v7921_v21  ;;  %v8049_v25 = vld [vmem:[#allocation5 + $0x188] sm:$0xf]  ;;  %v9442_v26 = vld [vmem:[#allocation5 + $0x194] sm:$0xf0] }
  0x6f   : > { %952 = vmatmul.bf16.vlgmr.msra.gmra.mxu1 %v10798_v49  ;;  %1091 = vmatpush.bf16.msrb.mxu0 %v7970_v52  ;;  %v8054_v23 = vor.u32 %v9440_v18, %v8051_v20  ;;  %v8050_v27 = vor.u32 %v9442_v26, %v8049_v25  ;;  %v462_v28 = vld [vmem:[%s10774_s13 + $0x40] sm:$0xff]  ;;  %v464_v29 = vld [vmem:[%s10774_s13 + $0x50] sm:$0xff]  ;;  %v463_v30 = vld [vmem:[%s10774_s13 + $0x48] sm:$0xff]  ;;  %p10506_p3 = pnand %p10505_p1, %p10734_p4  ;;  %s10508_s17 = scalar_lea.hbm %s14155_s9, 1024 }
  0x70   : > { %1001 = vmatmul.bf16.vlgmr.msra.gmra.mxu2 %v10796_v44  ;;  %1140 = vmatpush.bf16.msrb.mxu1 %v8098_v53  ;;  %v465_v31 = vld [vmem:[%s10774_s13 + $0x58] sm:$0xff]  ;;  %v10820_v32 = vpack.c.bf16 %v464_v29, %v462_v28  ;;  %v9404_v34 = vld [vmem:[#allocation5 + $0x6c] sm:$0xf]  ;;  %v7905_v39 = vld [vmem:[#allocation5 + $0x68] sm:$0xf]  ;;  %p10510_p7 = scmp.lt.s32.totalorder %s10508_s17, %s10504_s2 }
  0x71   : > { %1189 = vmatpush.bf16.msrb.mxu2 %v7974_v40  ;;  %1050 = vmatmul.bf16.vlgmr.msra.gmra.mxu3 %v10798_v49  ;;  %v10822_v33 = vpack.c.bf16 %v465_v31, %v463_v30  ;;  %v7907_v35 = vld [vmem:[#allocation5 + $0x78] sm:$0xf0]  ;;  %v9436_v36 = vld [vmem:[#allocation5 + $0x16c] sm:$0xf]  ;;  %v9406_v40 = vld [vmem:[#allocation5 + $0x74] sm:$0xf0]  ;;  %p10507_p5 = pneg %p10506_p3 }
  0x72   : > { %1238 = vmatpush.bf16.msrb.mxu3 %v8102_v45  ;;  %v7910_v37 = vor.u32 %v9404_v34, %v7907_v35  ;;  %v8035_v38 = vld [vmem:[#allocation5 + $0x178] sm:$0xf0]  ;;  %v7906_v42 = vor.u32 %v9406_v40, %v7905_v39  ;;  %v8033_v43 = vld [vmem:[#allocation5 + $0x168] sm:$0xf]  ;;  %v9438_v45 = vld [vmem:[#allocation5 + $0x174] sm:$0xf0]  ;;  %p10511_p8 = por %p10510_p7, %p10509_p12 }
  0x73   : > { %1092 = vmatpush.bf16.msrb.mxu0 %v7954_v60  ;;  %v8038_v41 = vor.u32 %v9436_v36, %v8035_v38  ;;  %v8034_v46 = vor.u32 %v9438_v45, %v8033_v43  ;;  %v466_v47 = vld [vmem:[%s10774_s13 + $0x60] sm:$0xff]  ;;  %v468_v48 = vld [vmem:[%s10774_s13 + $0x70] sm:$0xff]  ;;  %v467_v50 = vld [vmem:[%s10774_s13 + $0x68] sm:$0xff] }
  0x74   : > { %1141 = vmatpush.bf16.msrb.mxu1 %v8082_v0  ;;  %v469_v51 = vld [vmem:[%s10774_s13 + $0x78] sm:$0xff]  ;;  %v10832_v52 = vpack.c.bf16 %v468_v48, %v466_v47  ;;  %v9432_v56 = vld [vmem:[#allocation5 + $0x14c] sm:$0xf]  ;;  %v7889_v59 = vld [vmem:[#allocation5 + $0x48] sm:$0xf]  ;;  %p10512_p9 = pnand %p10511_p8, %p10507_p5 }
  0x75   : > { %1190 = vmatpush.bf16.msrb.mxu2 %v7958_v54  ;;  %v10834_v53 = vpack.c.bf16 %v469_v51, %v467_v50  ;;  %v9400_v54 = vld [vmem:[#allocation5 + $0x4c] sm:$0xf]  ;;  %v7891_v55 = vld [vmem:[#allocation5 + $0x58] sm:$0xf0]  ;;  %v9402_v60 = vld [vmem:[#allocation5 + $0x54] sm:$0xf0] }
  0x76   : > { %1239 = vmatpush.bf16.msrb.mxu3 %v8086_v57  ;;  %v7894_v57 = vor.u32 %v9400_v54, %v7891_v55  ;;  %v8019_v58 = vld [vmem:[#allocation5 + $0x158] sm:$0xf0]  ;;  %v7890_v62 = vor.u32 %v9402_v60, %v7889_v59  ;;  %v8017_v63 = vld [vmem:[#allocation5 + $0x148] sm:$0xf]  ;;  %v9434_v0 = vld [vmem:[#allocation5 + $0x154] sm:$0xf0] }
  0x77   : > { %1093 = vmatpush.bf16.msrb.mxu0 %v7938_v8  ;;  %v8022_v61 = vor.u32 %v9432_v56, %v8019_v58  ;;  %v470_v2 = vld [vmem:[%s10774_s13 + $0x80] sm:$0xff]  ;;  %v472_v3 = vld [vmem:[%s10774_s13 + $0x90] sm:$0xff]  ;;  %v471_v4 = vld [vmem:[%s10774_s13 + $0x88] sm:$0xff] }
  0x78   : > { %1142 = vmatpush.bf16.msrb.mxu1 %v8066_v9  ;;  %v10844_v6 = vpack.c.bf16 %v472_v3, %v470_v2  ;;  %v9396_v8 = vld [vmem:[#allocation5 + $0x2c] sm:$0xf]  ;;  %v7875_v9 = vld [vmem:[#allocation5 + $0x38] sm:$0xf0]  ;;  %v7873_v13 = vld [vmem:[#allocation5 + $0x28] sm:$0xf] }
  0x79   : > { %1191 = vmatpush.bf16.msrb.mxu2 %v7942_v1  ;;  %v8018_v1 = vor.u32 %v9434_v0, %v8017_v63  ;;  %v9428_v10 = vld [vmem:[#allocation5 + $0x12c] sm:$0xf]  ;;  %v7878_v11 = vor.u32 %v9396_v8, %v7875_v9  ;;  %v8003_v12 = vld [vmem:[#allocation5 + $0x138] sm:$0xf0]  ;;  %v9398_v16 = vld [vmem:[#allocation5 + $0x34] sm:$0xf0] }
  0x7a   : > { %1240 = vmatpush.bf16.msrb.mxu3 %v8070_v5  ;;  %v473_v5 = vld [vmem:[%s10774_s13 + $0x98] sm:$0xff]  ;;  %v8006_v17 = vor.u32 %v9428_v10, %v8003_v12  ;;  %v7874_v18 = vor.u32 %v9398_v16, %v7873_v13  ;;  %v474_v22 = vld [vmem:[%s10774_s13 + $0xa0] sm:$0xff]  ;;  %v9392_v28 = vld [vmem:[#allocation5 + $0xc] sm:$0xf] }
  0x7b   : > { %1094 = vmatpush.bf16.msrb.mxu0 %v7922_v24  ;;  %v10846_v7 = vpack.c.bf16 %v473_v5, %v471_v4  ;;  %v9430_v20 = vld [vmem:[#allocation5 + $0x134] sm:$0xf0]  ;;  %v475_v24 = vld [vmem:[%s10774_s13 + $0xa8] sm:$0xff]  ;;  %v7859_v29 = vld [vmem:[#allocation5 + $0x18] sm:$0xf0] }
  0x7c   : > { %1143 = vmatpush.bf16.msrb.mxu1 %v8050_v27  ;;  %v477_v25 = vld [vmem:[%s10774_s13 + $0xb8] sm:$0xff]  ;;  %v9424_v30 = vld [vmem:[#allocation5 + $0x10c] sm:$0xf]  ;;  %v7862_v31 = vor.u32 %v9392_v28, %v7859_v29  ;;  %v7857_v35 = vld [vmem:[#allocation5 + $0x8] sm:$0xf] }
  0x7d   : > { %1192 = vmatpush.bf16.msrb.mxu2 %v7926_v19  ;;  %v8001_v19 = vld [vmem:[#allocation5 + $0x128] sm:$0xf]  ;;  %v10858_v27 = vpack.c.bf16 %v477_v25, %v475_v24  ;;  %v7987_v34 = vld [vmem:[#allocation5 + $0x118] sm:$0xf0]  ;;  %v9394_v36 = vld [vmem:[#allocation5 + $0x14] sm:$0xf0] }
  0x7e   : > { %908 = vmatmul.bf16.gmra.mxu0 %v10808_v14  ;;  %1241 = vmatpush.bf16.msrb.mxu3 %v8054_v23  ;;  %v8002_v21 = vor.u32 %v9430_v20, %v8001_v19  ;;  %v476_v23 = vld [vmem:[%s10774_s13 + $0xb0] sm:$0xff]  ;;  %v7858_v38 = vor.u32 %v9394_v36, %v7857_v35  ;;  %v7985_v39 = vld [vmem:[#allocation5 + $0x108] sm:$0xf]  ;;  %v9426_v40 = vld [vmem:[#allocation5 + $0x114] sm:$0xf0] }
  0x7f   : > { %957 = vmatmul.bf16.gmra.mxu1 %v10810_v15  ;;  %1095 = vmatpush.bf16.msrb.mxu0 %v7906_v42  ;;  %v10856_v26 = vpack.c.bf16 %v476_v23, %v474_v22  ;;  %v478_v42 = vld [vmem:[%s10774_s13 + $0xc0] sm:$0xff]  ;;  %v480_v43 = vld [vmem:[%s10774_s13 + $0xd0] sm:$0xff]  ;;  %v479_v45 = vld [vmem:[%s10774_s13 + $0xc8] sm:$0xff] }
  0x80   : > { %1006 = vmatmul.bf16.gmra.mxu2 %v10808_v14  ;;  %1144 = vmatpush.bf16.msrb.mxu1 %v8034_v46  ;;  %v481_v46 = vld [vmem:[%s10774_s13 + $0xd8] sm:$0xff]  ;;  %v10868_v47 = vpack.c.bf16 %v480_v43, %v478_v42  ;;  %v482_v50 = vld [vmem:[%s10774_s13 + $0xe0] sm:$0xff]  ;;  %v484_v51 = vld [vmem:[%s10774_s13 + $0xf0] sm:$0xff] }
  0x81   : > { %1055 = vmatmul.bf16.gmra.mxu3 %v10810_v15  ;;  %1193 = vmatpush.bf16.msrb.mxu2 %v7910_v37  ;;  %v7990_v37 = vor.u32 %v9424_v30, %v7987_v34  ;;  %v10870_v48 = vpack.c.bf16 %v481_v46, %v479_v45  ;;  %v483_v54 = vld [vmem:[%s10774_s13 + $0xe8] sm:$0xff]  ;;  %v485_v55 = vld [vmem:[%s10774_s13 + $0xf8] sm:$0xff]  ;;  %v10880_v56 = vpack.c.bf16 %v484_v51, %v482_v50  ;;  %v10888_v58 = vld [vmem:[#allocation7] sm:$0xf] }
  0x82   : > { %1242 = vmatpush.bf16.msrb.mxu3 %v8038_v41  ;;  %v7986_v41 = vor.u32 %v9426_v40, %v7985_v39  ;;  %v10891_v59 = vperm.slane %v10888_v58, 0  ;;  %v10900_v0 = vperm.slane %v10888_v58, 1  ;;  %v8289_v42 = vld [vmem:[#allocation8 + $0x170] sm:$0xf]  ;;  %v9502_v43 = vld [vmem:[#allocation8 + $0x174] sm:$0xf0] }
  0x83   : > { %1096 = vmatpush.bf16.msrb.mxu0 %v7890_v62  ;;  %v8290_v50 = vor.u32 %v9502_v43, %v8289_v42  ;;  %v8161_v51 = vld [vmem:[#allocation8 + $0x70] sm:$0xf] }
  0x84   : > { %1145 = vmatpush.bf16.msrb.mxu1 %v8018_v1  ;;  %14201 = vst [vmem:[#allocation20_spill] sm:$0xff] %v10891_v59 }
  0x85   : > { %1194 = vmatpush.bf16.msrb.mxu2 %v7894_v57  ;;  %v10882_v57 = vpack.c.bf16 %v485_v55, %v483_v54  ;;  %14202 = vst [vmem:[#allocation21_spill] sm:$0xff] %v10900_v0  ;;  %v9470_v54 = vld [vmem:[#allocation8 + $0x74] sm:$0xf0] }
  0x86   : > { %1243 = vmatpush.bf16.msrb.mxu3 %v8022_v61 }
  0x87   : > { %1097 = vmatpush.bf16.msrb.mxu0 %v7874_v18 }
  0x88   : > { %1146 = vmatpush.bf16.msrb.mxu1 %v8002_v21 }
  0x89   : > { %1195 = vmatpush.bf16.msrb.mxu2 %v7878_v11 }
  0x8a   : > { %1244 = vmatpush.bf16.msrb.mxu3 %v8006_v17 }
  0x8b   : > { %1098 = vmatpush.bf16.msrb.mxu0 %v7858_v38 }
  0x8c   : > { %1147 = vmatpush.bf16.msrb.mxu1 %v7986_v41 }
  0x8d   : > { %1196 = vmatpush.bf16.msrb.mxu2 %v7862_v31 }
  0x8e   : > { %913 = vmatmul.bf16.gmra.mxu0 %v10820_v32  ;;  %1245 = vmatpush.bf16.msrb.mxu3 %v7990_v37 }
  0x8f   : > { %962 = vmatmul.bf16.gmra.mxu1 %v10822_v33 }
  0x90   : > { %1011 = vmatmul.bf16.gmra.mxu2 %v10820_v32 }
  0x91   : > { %1060 = vmatmul.bf16.gmra.mxu3 %v10822_v33  ;;  %2382 = vmatpush.bf16.msra.mxu2 %v8290_v50 }
  0x9e   : > { %918 = vmatmul.bf16.gmra.mxu0 %v10832_v52 }
  0x9f   : > { %967 = vmatmul.bf16.gmra.mxu1 %v10834_v53 }
  0xa0   : > { %1016 = vmatmul.bf16.gmra.mxu2 %v10832_v52 }
  0xa1   : > { %1065 = vmatmul.bf16.gmra.mxu3 %v10834_v53 }
  0xae   : > { %923 = vmatmul.bf16.gmra.mxu0 %v10844_v6 }
  0xaf   : > { %972 = vmatmul.bf16.gmra.mxu1 %v10846_v7 }
  0xb0   : > { %1021 = vmatmul.bf16.gmra.mxu2 %v10844_v6 }
  0xb1   : > { %1070 = vmatmul.bf16.gmra.mxu3 %v10846_v7 }
  0xbe   : > { %928 = vmatmul.bf16.gmra.mxu0 %v10856_v26 }
  0xbf   : > { %977 = vmatmul.bf16.gmra.mxu1 %v10858_v27 }
  0xc0   : > { %1026 = vmatmul.bf16.gmra.mxu2 %v10856_v26 }
  0xc1   : > { %1075 = vmatmul.bf16.gmra.mxu3 %v10858_v27 }
  0xce   : > { %933 = vmatmul.bf16.gmra.mxu0 %v10868_v47 }
  0xcf   : > { %982 = vmatmul.bf16.gmra.mxu1 %v10870_v48 }
  0xd0   : > { %1031 = vmatmul.bf16.gmra.mxu2 %v10868_v47 }
  0xd1   : > { %1080 = vmatmul.bf16.gmra.mxu3 %v10870_v48 }
  0xde   : > { %938 = vmatmul.bf16.gmra.mxu0 %v10880_v56 }
  0xdf   : > { %987 = vmatmul.bf16.gmra.mxu1 %v10882_v57 }
  0xe0   : > { %1036 = vmatmul.bf16.gmra.mxu2 %v10880_v56 }
  0xe1   : > { %1085 = vmatmul.bf16.gmra.mxu3 %v10882_v57 }
  0xeb   : > { %v904_v60 = vpop.f32.mrf.mxu0 }
  0xec   : > { %v905_v61 = vadd.f32 %v904_v60, %v10891_v59  ;;  %v953_v62 = vpop.f32.mrf.mxu1 }
  0xee   : > { %v10894_v63 = vadd.f32 %v953_v62, %v905_v61  ;;  %1099 = vmatmul.bf16.vlgmr.msrb.gmra.mxu0 %v10796_v44 }
  0xef   : > { %1148 = vmatmul.bf16.vlgmr.msrb.gmra.mxu1 %v10798_v49 }
  0xf0   : > { %1197 = vmatmul.bf16.vlgmr.msrb.gmra.mxu2 %v10796_v44  ;;  %v1287_v1 = vmul.f32 %v10894_v63, %v10894_v63 }
  0xf1   : > { %1246 = vmatmul.bf16.vlgmr.msrb.gmra.mxu3 %v10798_v49 }
  0xf2   : > { %v1351_v2 = vmul.f32 %v1287_v1, %v10894_v63  ;;  %v9518_v1 = vld [vmem:[#allocation8 + $0x1f4] sm:$0xf0] }
  0xf3   : > { %v1002_v3 = vpop.f32.mrf.mxu2  ;;  %v906_v8 = vpop.f32.mrf.mxu0 }
  0xf4   : > { %v1003_v4 = vadd.f32 %v1002_v3, %v10900_v0  ;;  %v1051_v5 = vpop.f32.mrf.mxu3  ;;  %v1415_v9 = vmul.f32 0.044715, %v1351_v2  ;;  %v907_v10 = vadd.f32 %v906_v8, %v10891_v59  ;;  %v955_v11 = vpop.f32.mrf.mxu1 }
  0xf6   : > { %v10908_v44 = vadd.f32 %v1051_v5, %v1003_v4  ;;  %v1479_v12 = vadd.f32 %v1415_v9, %v10894_v63  ;;  %v10911_v13 = vadd.f32 %v955_v11, %v907_v10 }
  0xf8   : > { %v1288_v49 = vmul.f32 %v10908_v44, %v10908_v44  ;;  %v1543_v16 = vmul.f32 0.7978846, %v1479_v12  ;;  %v1291_v17 = vmul.f32 %v10911_v13, %v10911_v13 }
  0xfa   : > { %v1352_v18 = vmul.f32 %v1288_v49, %v10908_v44  ;;  %v1355_v19 = vmul.f32 %v1291_v17, %v10911_v13  ;;  %9891 = vtanh.f32 %v1543_v16 }
  0xfb   : > { %v1004_v20 = vpop.f32.mrf.mxu2  ;;  %v909_v24 = vpop.f32.mrf.mxu0 }
  0xfc   : > { %v1416_v21 = vmul.f32 0.044715, %v1352_v18  ;;  %v1005_v22 = vadd.f32 %v1004_v20, %v10900_v0  ;;  %v1053_v23 = vpop.f32.mrf.mxu3  ;;  %v1419_v25 = vmul.f32 0.044715, %v1355_v19  ;;  %v910_v28 = vadd.f32 %v909_v24, %v10891_v59  ;;  %v958_v29 = vpop.f32.mrf.mxu1  ;;  %v8225_v18 = vld [vmem:[#allocation8 + $0xf0] sm:$0xf] }
  0xfd   : > { %v9486_v19 = vld [vmem:[#allocation8 + $0xf4] sm:$0xf0] }
  0xfe   : > { %v1480_v30 = vadd.f32 %v1416_v21, %v10908_v44  ;;  %v10922_v31 = vadd.f32 %v1053_v23, %v1005_v22  ;;  %v1483_v34 = vadd.f32 %v1419_v25, %v10911_v13  ;;  %v10925_v35 = vadd.f32 %v958_v29, %v910_v28  ;;  %1104 = vmatmul.bf16.gmra.mxu0 %v10808_v14 }
  0xff   : > { %1153 = vmatmul.bf16.gmra.mxu1 %v10810_v15  ;;  %v8226_v24 = vor.u32 %v9486_v19, %v8225_v18  ;;  %v8345_v18 = vld [vmem:[#allocation8 + $0x1e0] sm:$0xf] }
 0x100   : > { %v1544_v36 = vmul.f32 0.7978846, %v1480_v30  ;;  %v1292_v37 = vmul.f32 %v10922_v31, %v10922_v31  ;;  %1202 = vmatmul.bf16.gmra.mxu2 %v10808_v14  ;;  %v1547_v38 = vmul.f32 0.7978846, %v1483_v34  ;;  %v1295_v39 = vmul.f32 %v10925_v35, %v10925_v35  ;;  %v9892_v40 = vpop.eup %9891  ;;  %v8353_v14 = vld [vmem:[#allocation8 + $0x1f0] sm:$0xf] }
 0x101   : > { %1251 = vmatmul.bf16.gmra.mxu3 %v10810_v15  ;;  %v8162_v15 = vor.u32 %v9470_v54, %v8161_v51  ;;  %v1671_v2 = vadd.f32 1.0, %v9892_v40  ;;  %v8354_v8 = vor.u32 %v9518_v1, %v8353_v14  ;;  %2333 = vmatpush.bf16.msra.mxu1 %v8226_v24 }
 0x102   : > { %9893 = vtanh.f32 %v1544_v36  ;;  %v1356_v41 = vmul.f32 %v1292_v37, %v10922_v31  ;;  %v1359_v45 = vmul.f32 %v1295_v39, %v10925_v35 }
 0x103   : > { %9895 = vtanh.f32 %v1547_v38  ;;  %v1007_v46 = vpop.f32.mrf.mxu2  ;;  %v911_v62 = vpop.f32.mrf.mxu0  ;;  %2284 = vmatpush.bf16.msra.mxu0 %v8162_v15  ;;  %2431 = vmatpush.bf16.msra.mxu3 %v8354_v8  ;;  %v1735_v21 = vmul.f32 0.5, %v1671_v2  ;;  %v8153_v8 = vld [vmem:[#allocation8 + $0x60] sm:$0xf] }
 0x104   : > { %v1420_v55 = vmul.f32 0.044715, %v1356_v41  ;;  %v1008_v60 = vadd.f32 %v1007_v46, %v10900_v0  ;;  %v1056_v61 = vpop.f32.mrf.mxu3  ;;  %v1423_v3 = vmul.f32 0.044715, %v1359_v45  ;;  %v912_v4 = vadd.f32 %v911_v62, %v10891_v59  ;;  %v960_v5 = vpop.f32.mrf.mxu1 }
 0x105   : > { %v1799_v41 = vmul.f32 %v1735_v21, %v10894_v63 }
 0x106   : > { %v1484_v9 = vadd.f32 %v1420_v55, %v10922_v31  ;;  %v10940_v10 = vadd.f32 %v1056_v61, %v1008_v60  ;;  %v1487_v11 = vadd.f32 %v1423_v3, %v10925_v35  ;;  %v10943_v12 = vadd.f32 %v960_v5, %v912_v4  ;;  %v8281_v4 = vld [vmem:[#allocation8 + $0x160] sm:$0xf]  ;;  %v9500_v5 = vld [vmem:[#allocation8 + $0x164] sm:$0xf0] }
 0x108   : > { %v9894_v49 = vpop.eup %9893  ;;  %v1548_v16 = vmul.f32 0.7978846, %v1484_v9  ;;  %v1296_v17 = vmul.f32 %v10940_v10, %v10940_v10  ;;  %v1551_v22 = vmul.f32 0.7978846, %v1487_v11  ;;  %v1299_v23 = vmul.f32 %v10943_v12, %v10943_v12 }
 0x109   : > { %v9896_v20 = vpop.eup %9895  ;;  %v1672_v25 = vadd.f32 1.0, %v9894_v49 }
 0x10a   : > { %v1675_v28 = vadd.f32 1.0, %v9896_v20  ;;  %9897 = vtanh.f32 %v1548_v16  ;;  %v1360_v29 = vmul.f32 %v1296_v17, %v10940_v10  ;;  %v1363_v30 = vmul.f32 %v1299_v23, %v10943_v12  ;;  %v9468_v17 = vld [vmem:[#allocation8 + $0x64] sm:$0xf0] }
 0x10b   : > { %v1009_v34 = vpop.f32.mrf.mxu2  ;;  %v914_v40 = vpop.f32.mrf.mxu0  ;;  %9899 = vtanh.f32 %v1551_v22  ;;  %v1736_v46 = vmul.f32 0.5, %v1672_v25  ;;  %v8154_v21 = vor.u32 %v9468_v17, %v8153_v8  ;;  %v9516_v22 = vld [vmem:[#allocation8 + $0x1e4] sm:$0xf0] }
 0x10c   : > { %v1739_v36 = vmul.f32 0.5, %v1675_v28  ;;  %v1424_v37 = vmul.f32 0.044715, %v1360_v29  ;;  %v1010_v38 = vadd.f32 %v1009_v34, %v10900_v0  ;;  %v1058_v39 = vpop.f32.mrf.mxu3  ;;  %v1427_v42 = vmul.f32 0.044715, %v1363_v30  ;;  %v963_v45 = vpop.f32.mrf.mxu1 }
 0x10d   : > { %v915_v43 = vadd.f32 %v914_v40, %v10891_v59  ;;  %v1800_v2 = vmul.f32 %v1736_v46, %v10908_v44  ;;  %v8346_v29 = vor.u32 %v9516_v22, %v8345_v18  ;;  %2285 = vmatpush.bf16.msra.mxu0 %v8154_v21 }
 0x10e   : > { %v1803_v50 = vmul.f32 %v1739_v36, %v10911_v13  ;;  %v1488_v51 = vadd.f32 %v1424_v37, %v10940_v10  ;;  %v10956_v54 = vadd.f32 %v1058_v39, %v1010_v38  ;;  %v1491_v14 = vadd.f32 %v1427_v42, %v10943_v12  ;;  %1109 = vmatmul.bf16.gmra.mxu0 %v10820_v32  ;;  %v9484_v42 = vld [vmem:[#allocation8 + $0xe4] sm:$0xf0] }
 0x10f   : > { %v10959_v55 = vadd.f32 %v963_v45, %v915_v43  ;;  %1158 = vmatmul.bf16.gmra.mxu1 %v10822_v33  ;;  %2432 = vmatpush.bf16.msra.mxu3 %v8346_v29  ;;  %v8145_v29 = vld [vmem:[#allocation8 + $0x50] sm:$0xf] }
 0x110   : > { %v9898_v60 = vpop.eup %9897  ;;  %v10962_v63 = vpack.c.bf16 %v1803_v50, %v1799_v41  ;;  %v1552_v61 = vmul.f32 0.7978846, %v1488_v51  ;;  %v1300_v62 = vmul.f32 %v10956_v54, %v10956_v54  ;;  %1207 = vmatmul.bf16.gmra.mxu2 %v10820_v32  ;;  %v1555_v15 = vmul.f32 0.7978846, %v1491_v14  ;;  %v8217_v41 = vld [vmem:[#allocation8 + $0xe0] sm:$0xf] }
 0x111   : > { %v1676_v13 = vadd.f32 1.0, %v9898_v60  ;;  %v1303_v1 = vmul.f32 %v10959_v55, %v10959_v55  ;;  %1256 = vmatmul.bf16.gmra.mxu3 %v10822_v33  ;;  %v9900_v9 = vpop.eup %9899  ;;  %v8282_v32 = vor.u32 %v9500_v5, %v8281_v4  ;;  %v8218_v50 = vor.u32 %v9484_v42, %v8217_v41  ;;  %v9514_v41 = vld [vmem:[#allocation8 + $0x1d4] sm:$0xf0] }
 0x112   : > { %v1364_v3 = vmul.f32 %v1300_v62, %v10956_v54  ;;  %9901 = vtanh.f32 %v1555_v15  ;;  %v1679_v36 = vadd.f32 1.0, %v9900_v9 }
 0x113   : > { %v1740_v11 = vmul.f32 0.5, %v1676_v13  ;;  %v1367_v49 = vmul.f32 %v1303_v1, %v10959_v55  ;;  %v1012_v16 = vpop.f32.mrf.mxu2  ;;  %9903 = vtanh.f32 %v1552_v61  ;;  %v916_v44 = vpop.f32.mrf.mxu0  ;;  %2383 = vmatpush.bf16.msra.mxu2 %v8282_v32  ;;  %2334 = vmatpush.bf16.msra.mxu1 %v8218_v50 }
 0x114   : > { %v1428_v19 = vmul.f32 0.044715, %v1364_v3  ;;  %v1013_v33 = vadd.f32 %v1012_v16, %v10900_v0  ;;  %v1061_v20 = vpop.f32.mrf.mxu3  ;;  %v917_v25 = vadd.f32 %v916_v44, %v10891_v59  ;;  %v965_v28 = vpop.f32.mrf.mxu1  ;;  %v1743_v61 = vmul.f32 0.5, %v1679_v36 }
 0x115   : > { %v1804_v23 = vmul.f32 %v1740_v11, %v10922_v31  ;;  %v1431_v24 = vmul.f32 0.044715, %v1367_v49 }
 0x116   : > { %v1492_v30 = vadd.f32 %v1428_v19, %v10956_v54  ;;  %v10978_v34 = vadd.f32 %v1061_v20, %v1013_v33  ;;  %v10983_v39 = vadd.f32 %v965_v28, %v917_v25  ;;  %v1807_v32 = vmul.f32 %v1743_v61, %v10925_v35  ;;  %v8273_v25 = vld [vmem:[#allocation8 + $0x150] sm:$0xf]  ;;  %v9498_v28 = vld [vmem:[#allocation8 + $0x154] sm:$0xf0] }
 0x117   : > { %v10980_v37 = vpack.c.bf16 %v1804_v23, %v1800_v2  ;;  %v1495_v38 = vadd.f32 %v1431_v24, %v10959_v55 }
 0x118   : > { %v1556_v31 = vmul.f32 0.7978846, %v1492_v30  ;;  %v1304_v40 = vmul.f32 %v10978_v34, %v10978_v34  ;;  %v9902_v43 = vpop.eup %9901  ;;  %v1307_v46 = vmul.f32 %v10983_v39, %v10983_v39 }
 0x119   : > { %v1559_v45 = vmul.f32 0.7978846, %v1495_v38  ;;  %v9904_v51 = vpop.eup %9903  ;;  %v1683_v60 = vadd.f32 1.0, %v9902_v43  ;;  %v8274_v38 = vor.u32 %v9498_v28, %v8273_v25 }
 0x11a   : > { %v1368_v14 = vmul.f32 %v1304_v40, %v10978_v34  ;;  %9905 = vtanh.f32 %v1556_v31  ;;  %v1371_v62 = vmul.f32 %v1307_v46, %v10983_v39  ;;  %v1680_v11 = vadd.f32 1.0, %v9904_v51  ;;  %v9466_v31 = vld [vmem:[#allocation8 + $0x54] sm:$0xf0]  ;;  %v8337_v40 = vld [vmem:[#allocation8 + $0x1d0] sm:$0xf] }
 0x11b   : > { %v1014_v13 = vpop.f32.mrf.mxu2  ;;  %v919_v3 = vpop.f32.mrf.mxu0  ;;  %v1747_v4 = vmul.f32 0.5, %v1683_v60  ;;  %9907 = vtanh.f32 %v1559_v45  ;;  %v8146_v46 = vor.u32 %v9466_v31, %v8145_v29  ;;  %v8338_v50 = vor.u32 %v9514_v41, %v8337_v40  ;;  %2384 = vmatpush.bf16.msra.mxu2 %v8274_v38 }
 0x11c   : > { %v1432_v15 = vmul.f32 0.044715, %v1368_v14  ;;  %v1015_v1 = vadd.f32 %v1014_v13, %v10900_v0  ;;  %v1063_v2 = vpop.f32.mrf.mxu3  ;;  %v1435_v5 = vmul.f32 0.044715, %v1371_v62  ;;  %v920_v8 = vadd.f32 %v919_v3, %v10891_v59  ;;  %v968_v9 = vpop.f32.mrf.mxu1 }
 0x11d   : > { %v1811_v17 = vmul.f32 %v1747_v4, %v10943_v12  ;;  %v1744_v23 = vmul.f32 0.5, %v1680_v11  ;;  %2286 = vmatpush.bf16.msra.mxu0 %v8146_v46  ;;  %2433 = vmatpush.bf16.msra.mxu3 %v8338_v50  ;;  %v8209_v11 = vld [vmem:[#allocation8 + $0xd0] sm:$0xf] }
 0x11e   : > { %v1496_v49 = vadd.f32 %v1432_v15, %v10978_v34  ;;  %v10994_v16 = vadd.f32 %v1063_v2, %v1015_v1  ;;  %v1499_v18 = vadd.f32 %v1435_v5, %v10983_v39  ;;  %v10999_v19 = vadd.f32 %v968_v9, %v920_v8  ;;  %1114 = vmatmul.bf16.gmra.mxu0 %v10832_v52 }
 0x11f   : > { %1163 = vmatmul.bf16.gmra.mxu1 %v10834_v53  ;;  %v11006_v21 = vpack.c.bf16 %v1811_v17, %v1807_v32  ;;  %v1808_v3 = vmul.f32 %v1744_v23, %v10940_v10 }
 0x120   : > { %v9906_v33 = vpop.eup %9905  ;;  %v1560_v20 = vmul.f32 0.7978846, %v1496_v49  ;;  %v1308_v44 = vmul.f32 %v10994_v16, %v10994_v16  ;;  %1212 = vmatmul.bf16.gmra.mxu2 %v10832_v52  ;;  %v1563_v35 = vmul.f32 0.7978846, %v1499_v18  ;;  %v1311_v12 = vmul.f32 %v10999_v19, %v10999_v19  ;;  %v9482_v49 = vld [vmem:[#allocation8 + $0xd4] sm:$0xf0] }
 0x121   : > { %1261 = vmatmul.bf16.gmra.mxu3 %v10834_v53  ;;  %v1684_v22 = vadd.f32 1.0, %v9906_v33  ;;  %v9908_v30 = vpop.eup %9907  ;;  %v8210_v33 = vor.u32 %v9482_v49, %v8209_v11 }
 0x122   : > { %9909 = vtanh.f32 %v1560_v20  ;;  %v1372_v24 = vmul.f32 %v1308_v44, %v10994_v16  ;;  %v1375_v36 = vmul.f32 %v1311_v12, %v10999_v19  ;;  %v1687_v15 = vadd.f32 1.0, %v9908_v30 }
 0x123   : > { %v1017_v52 = vpop.f32.mrf.mxu2  ;;  %9911 = vtanh.f32 %v1563_v35  ;;  %v921_v45 = vpop.f32.mrf.mxu0  ;;  %v1748_v61 = vmul.f32 0.5, %v1684_v22  ;;  %2335 = vmatpush.bf16.msra.mxu1 %v8210_v33 }
 0x124   : > { %v1436_v42 = vmul.f32 0.044715, %v1372_v24  ;;  %v1018_v53 = vadd.f32 %v1017_v52, %v10900_v0  ;;  %v1066_v43 = vpop.f32.mrf.mxu3  ;;  %v1439_v51 = vmul.f32 0.044715, %v1375_v36  ;;  %v922_v14 = vadd.f32 %v921_v45, %v10891_v59  ;;  %v970_v60 = vpop.f32.mrf.mxu1 }
 0x125   : > { %v1812_v4 = vmul.f32 %v1748_v61, %v10956_v54  ;;  %v1751_v35 = vmul.f32 0.5, %v1687_v15  ;;  %v8265_v61 = vld [vmem:[#allocation8 + $0x140] sm:$0xf] }
 0x126   : > { %v1500_v62 = vadd.f32 %v1436_v42, %v10994_v16  ;;  %v11016_v13 = vadd.f32 %v1066_v43, %v1018_v53  ;;  %v1503_v1 = vadd.f32 %v1439_v51, %v10999_v19  ;;  %v11019_v2 = vadd.f32 %v970_v60, %v922_v14  ;;  %v8137_v15 = vld [vmem:[#allocation8 + $0x40] sm:$0xf] }
 0x127   : > { %v11027_v20 = vpack.c.bf16 %v1812_v4, %v1808_v3  ;;  %v1815_v40 = vmul.f32 %v1751_v35, %v10959_v55 }
 0x128   : > { %v9910_v5 = vpop.eup %9909  ;;  %v1564_v8 = vmul.f32 0.7978846, %v1500_v62  ;;  %v1312_v9 = vmul.f32 %v11016_v13, %v11016_v13  ;;  %v1567_v17 = vmul.f32 0.7978846, %v1503_v1  ;;  %v1315_v18 = vmul.f32 %v11019_v2, %v11019_v2  ;;  %v9496_v62 = vld [vmem:[#allocation8 + $0x144] sm:$0xf0] }
 0x129   : > { %v9912_v32 = vpop.eup %9911  ;;  %v1688_v52 = vadd.f32 1.0, %v9910_v5  ;;  %v8266_v4 = vor.u32 %v9496_v62, %v8265_v61  ;;  %v9464_v5 = vld [vmem:[#allocation8 + $0x44] sm:$0xf0] }
 0x12a   : > { %v1376_v44 = vmul.f32 %v1312_v9, %v11016_v13  ;;  %v1691_v10 = vadd.f32 1.0, %v9912_v32  ;;  %9913 = vtanh.f32 %v1564_v8  ;;  %v1379_v54 = vmul.f32 %v1315_v18, %v11019_v2  ;;  %v8329_v8 = vld [vmem:[#allocation8 + $0x1c0] sm:$0xf]  ;;  %v9512_v9 = vld [vmem:[#allocation8 + $0x1c4] sm:$0xf0] }
 0x12b   : > { %v1019_v12 = vpop.f32.mrf.mxu2  ;;  %v924_v25 = vpop.f32.mrf.mxu0  ;;  %9915 = vtanh.f32 %v1567_v17  ;;  %v1752_v14 = vmul.f32 0.5, %v1688_v52  ;;  %v8138_v17 = vor.u32 %v9464_v5, %v8137_v15  ;;  %v8330_v18 = vor.u32 %v9512_v9, %v8329_v8  ;;  %2385 = vmatpush.bf16.msra.mxu2 %v8266_v4  ;;  %v9480_v52 = vld [vmem:[#allocation8 + $0xc4] sm:$0xf0]  ;;  %v8129_v4 = vld [vmem:[#allocation8 + $0x30] sm:$0xf] }
 0x12c   : > { %v1440_v22 = vmul.f32 0.044715, %v1376_v44  ;;  %v1020_v23 = vadd.f32 %v1019_v12, %v10900_v0  ;;  %v1068_v24 = vpop.f32.mrf.mxu3  ;;  %v1755_v28 = vmul.f32 0.5, %v1691_v10  ;;  %v1443_v29 = vmul.f32 0.044715, %v1379_v54  ;;  %v973_v36 = vpop.f32.mrf.mxu1 }
 0x12d   : > { %v925_v30 = vadd.f32 %v924_v25, %v10891_v59  ;;  %2287 = vmatpush.bf16.msra.mxu0 %v8138_v17  ;;  %2434 = vmatpush.bf16.msra.mxu3 %v8330_v18  ;;  %v1816_v25 = vmul.f32 %v1752_v14, %v10978_v34  ;;  %v9462_v5 = vld [vmem:[#allocation8 + $0x34] sm:$0xf0]  ;;  %v8193_v8 = vld [vmem:[#allocation8 + $0xb0] sm:$0xf] }
 0x12e   : > { %v1504_v38 = vadd.f32 %v1440_v22, %v11016_v13  ;;  %v11034_v31 = vadd.f32 %v1068_v24, %v1020_v23  ;;  %v1819_v41 = vmul.f32 %v1755_v28, %v10983_v39  ;;  %v1507_v42 = vadd.f32 %v1443_v29, %v11019_v2  ;;  %1119 = vmatmul.bf16.gmra.mxu0 %v10844_v6 }
 0x12f   : > { %v11039_v53 = vadd.f32 %v973_v36, %v925_v30  ;;  %1168 = vmatmul.bf16.gmra.mxu1 %v10846_v7  ;;  %v8201_v36 = vld [vmem:[#allocation8 + $0xc0] sm:$0xf] }
 0x130   : > { %v9914_v43 = vpop.eup %9913  ;;  %v1568_v45 = vmul.f32 0.7978846, %v1504_v38  ;;  %v1316_v46 = vmul.f32 %v11034_v31, %v11034_v31  ;;  %1217 = vmatmul.bf16.gmra.mxu2 %v10844_v6  ;;  %v11046_v50 = vpack.c.bf16 %v1819_v41, %v1815_v40  ;;  %v1571_v55 = vmul.f32 0.7978846, %v1507_v42 }
 0x131   : > { %v1319_v39 = vmul.f32 %v11039_v53, %v11039_v53  ;;  %1266 = vmatmul.bf16.gmra.mxu3 %v10846_v7  ;;  %v1692_v51 = vadd.f32 1.0, %v9914_v43  ;;  %v9916_v1 = vpop.eup %9915  ;;  %v8202_v42 = vor.u32 %v9480_v52, %v8201_v36 }
 0x132   : > { %9917 = vtanh.f32 %v1568_v45  ;;  %v1380_v60 = vmul.f32 %v1316_v46, %v11034_v31  ;;  %v1695_v22 = vadd.f32 1.0, %v9916_v1 }
 0x133   : > { %v1383_v3 = vmul.f32 %v1319_v39, %v11039_v53  ;;  %v1022_v6 = vpop.f32.mrf.mxu2  ;;  %9919 = vtanh.f32 %v1571_v55  ;;  %v926_v32 = vpop.f32.mrf.mxu0  ;;  %v1756_v35 = vmul.f32 0.5, %v1692_v51  ;;  %2336 = vmatpush.bf16.msra.mxu1 %v8202_v42 }
 0x134   : > { %v1444_v11 = vmul.f32 0.044715, %v1380_v60  ;;  %v1023_v7 = vadd.f32 %v1022_v6, %v10900_v0  ;;  %v1071_v49 = vpop.f32.mrf.mxu3  ;;  %v927_v44 = vadd.f32 %v926_v32, %v10891_v59  ;;  %v975_v10 = vpop.f32.mrf.mxu1  ;;  %v1759_v46 = vmul.f32 0.5, %v1695_v22 }
 0x135   : > { %v1447_v33 = vmul.f32 0.044715, %v1383_v3  ;;  %v1820_v28 = vmul.f32 %v1756_v35, %v10994_v16 }
 0x136   : > { %v1508_v54 = vadd.f32 %v1444_v11, %v11034_v31  ;;  %v11056_v12 = vadd.f32 %v1071_v49, %v1023_v7  ;;  %v11059_v24 = vadd.f32 %v975_v10, %v927_v44  ;;  %v1823_v15 = vmul.f32 %v1759_v46, %v10999_v19  ;;  %v9478_v7 = vld [vmem:[#allocation8 + $0xb4] sm:$0xf0]  ;;  %v8321_v10 = vld [vmem:[#allocation8 + $0x1b0] sm:$0xf] }
 0x137   : > { %v1511_v23 = vadd.f32 %v1447_v33, %v11039_v53  ;;  %v11065_v43 = vpack.c.bf16 %v1820_v28, %v1816_v25  ;;  %v8130_v11 = vor.u32 %v9462_v5, %v8129_v4  ;;  %v8194_v17 = vor.u32 %v9478_v7, %v8193_v8  ;;  %v8257_v33 = vld [vmem:[#allocation8 + $0x130] sm:$0xf]  ;;  %v9494_v44 = vld [vmem:[#allocation8 + $0x134] sm:$0xf0]  ;;  %v8121_v25 = vld [vmem:[#allocation8 + $0x20] sm:$0xf] }
 0x138   : > { %v9918_v29 = vpop.eup %9917  ;;  %v1572_v30 = vmul.f32 0.7978846, %v1508_v54  ;;  %v1323_v41 = vmul.f32 %v11059_v24, %v11059_v24  ;;  %v8258_v22 = vor.u32 %v9494_v44, %v8257_v33  ;;  %v9460_v28 = vld [vmem:[#allocation8 + $0x24] sm:$0xf0]  ;;  %v9474_v5 = vld [vmem:[#allocation8 + $0x94] sm:$0xf0] }
 0x139   : > { %v9920_v38 = vpop.eup %9919  ;;  %v1575_v40 = vmul.f32 0.7978846, %v1511_v23  ;;  %v1696_v14 = vadd.f32 1.0, %v9918_v29  ;;  %2288 = vmatpush.bf16.msra.mxu0 %v8130_v11  ;;  %v9510_v23 = vld [vmem:[#allocation8 + $0x1b4] sm:$0xf0]  ;;  %2337 = vmatpush.bf16.msra.mxu1 %v8194_v17  ;;  %v8122_v52 = vor.u32 %v9460_v28, %v8121_v25 }
 0x13a   : > { %v1699_v45 = vadd.f32 1.0, %v9920_v38  ;;  %9921 = vtanh.f32 %v1572_v30  ;;  %v1387_v55 = vmul.f32 %v1323_v41, %v11059_v24  ;;  %v8322_v36 = vor.u32 %v9510_v23, %v8321_v10  ;;  %v8185_v38 = vld [vmem:[#allocation8 + $0xa0] sm:$0xf]  ;;  %2386 = vmatpush.bf16.msra.mxu2 %v8258_v22 }
 0x13b   : > { %v11068_v34 = vpop.f32.mrf.mxu2  ;;  %v929_v39 = vpop.f32.mrf.mxu0  ;;  %9923 = vtanh.f32 %v1575_v40  ;;  %v1760_v19 = vmul.f32 0.5, %v1696_v14  ;;  %v9476_v40 = vld [vmem:[#allocation8 + $0xa4] sm:$0xf0] }
 0x13c   : > { %v11070_v16 = vpop.f32.mrf.mxu3  ;;  %v1763_v51 = vmul.f32 0.5, %v1699_v45  ;;  %v1451_v60 = vmul.f32 0.044715, %v1387_v55  ;;  %v930_v61 = vadd.f32 %v929_v39, %v10891_v59  ;;  %v978_v62 = vpop.f32.mrf.mxu1  ;;  %v8186_v46 = vor.u32 %v9476_v40, %v8185_v38  ;;  %2435 = vmatpush.bf16.msra.mxu3 %v8322_v36 }
 0x13d   : > { %2289 = vmatpush.bf16.msra.mxu0 %v8122_v52 }
 0x13e   : > { %v1827_v1 = vmul.f32 %v1763_v51, %v11019_v2  ;;  %v1515_v3 = vadd.f32 %v1451_v60, %v11059_v24  ;;  %v11076_v6 = vadd.f32 %v978_v62, %v930_v61  ;;  %1124 = vmatmul.bf16.gmra.mxu0 %v10856_v26  ;;  %2338 = vmatpush.bf16.msra.mxu1 %v8186_v46  ;;  %v8113_v61 = vld [vmem:[#allocation8 + $0x10] sm:$0xf]  ;;  %v9458_v62 = vld [vmem:[#allocation8 + $0x14] sm:$0xf0] }
 0x13f   : > { %1173 = vmatmul.bf16.gmra.mxu1 %v10858_v27  ;;  %v8114_v4 = vor.u32 %v9458_v62, %v8113_v61 }
 0x140   : > { %v9922_v9 = vpop.eup %9921  ;;  %1222 = vmatmul.bf16.gmra.mxu2 %v10856_v26  ;;  %v11081_v49 = vpack.c.bf16 %v1827_v1, %v1823_v15  ;;  %v1579_v2 = vmul.f32 0.7978846, %v1515_v3  ;;  %v1327_v32 = vmul.f32 %v11076_v6, %v11076_v6  ;;  %v8177_v15 = vld [vmem:[#allocation8 + $0x90] sm:$0xf]  ;;  %v1824_v1 = vmul.f32 %v1760_v19, %v11016_v13  ;;  %v8105_v13 = vld [vmem:[#allocation8] sm:$0xf] }
 0x141   : > { %1271 = vmatmul.bf16.gmra.mxu3 %v10858_v27  ;;  %v1700_v18 = vadd.f32 1.0, %v9922_v9  ;;  %v9924_v35 = vpop.eup %9923  ;;  %v8178_v11 = vor.u32 %v9474_v5, %v8177_v15  ;;  %2290 = vmatpush.bf16.msra.mxu0 %v8114_v4  ;;  %v8169_v19 = vld [vmem:[#allocation8 + $0x80] sm:$0xf] }
 0x142   : > { %v1391_v26 = vmul.f32 %v1327_v32, %v11076_v6  ;;  %9925 = vtanh.f32 %v1579_v2  ;;  %v1703_v51 = vadd.f32 1.0, %v9924_v35 }
 0x143   : > { %v1027_v54 = vpop.f32.mrf.mxu2  ;;  %v931_v27 = vpop.f32.mrf.mxu0  ;;  %v1764_v55 = vmul.f32 0.5, %v1700_v18  ;;  %2339 = vmatpush.bf16.msra.mxu1 %v8178_v11 }
 0x144   : > { %v1028_v29 = vadd.f32 %v1027_v54, %v10900_v0  ;;  %v1076_v30 = vpop.f32.mrf.mxu3  ;;  %v1455_v41 = vmul.f32 0.044715, %v1391_v26  ;;  %v932_v42 = vadd.f32 %v931_v27, %v10891_v59  ;;  %v980_v45 = vpop.f32.mrf.mxu1  ;;  %v1767_v17 = vmul.f32 0.5, %v1703_v51  ;;  %v9472_v26 = vld [vmem:[#allocation8 + $0x84] sm:$0xf0] }
 0x145   : > { %v1828_v3 = vmul.f32 %v1764_v55, %v11034_v31  ;;  %v9456_v31 = vld [vmem:[#allocation8 + $0x4] sm:$0xf0]  ;;  %v8170_v28 = vor.u32 %v9472_v26, %v8169_v19 }
 0x146   : > { %v11089_v39 = vadd.f32 %v1076_v30, %v1028_v29  ;;  %v1519_v14 = vadd.f32 %v1455_v41, %v11076_v6  ;;  %v11092_v60 = vadd.f32 %v980_v45, %v932_v42  ;;  %v8106_v35 = vor.u32 %v9456_v31, %v8105_v13  ;;  %v8313_v41 = vld [vmem:[#allocation8 + $0x1a0] sm:$0xf]  ;;  %v9508_v55 = vld [vmem:[#allocation8 + $0x1a4] sm:$0xf0] }
 0x147   : > { %v11098_v7 = vpack.c.bf16 %v1828_v3, %v1824_v1  ;;  %v1831_v29 = vmul.f32 %v1767_v17, %v11039_v53  ;;  %2340 = vmatpush.bf16.msra.mxu1 %v8170_v28  ;;  %v8249_v53 = vld [vmem:[#allocation8 + $0x120] sm:$0xf]  ;;  %v8314_v62 = vor.u32 %v9508_v55, %v8313_v41  ;;  %v1320_v55 = vmul.f32 %v11056_v12, %v11056_v12 }
 0x148   : > { %v9926_v8 = vpop.eup %9925  ;;  %v1331_v9 = vmul.f32 %v11092_v60, %v11092_v60  ;;  %v1583_v2 = vmul.f32 0.7978846, %v1519_v14  ;;  %2291 = vmatpush.bf16.msra.mxu0 %v8106_v35 }
 0x149   : > { %v1707_v32 = vadd.f32 1.0, %v9926_v8  ;;  %2436 = vmatpush.bf16.msra.mxu3 %v8314_v62 }
 0x14a   : > { %v1395_v18 = vmul.f32 %v1331_v9, %v11092_v60  ;;  %9927 = vtanh.f32 %v1583_v2 }
 0x14b   : > { %v11101_v33 = vpop.f32.mrf.mxu2  ;;  %v934_v10 = vpop.f32.mrf.mxu0  ;;  %v1771_v54 = vmul.f32 0.5, %v1707_v32 }
 0x14c   : > { %v11103_v44 = vpop.f32.mrf.mxu3  ;;  %v1459_v22 = vmul.f32 0.044715, %v1395_v18  ;;  %v935_v23 = vadd.f32 %v934_v10, %v10891_v59  ;;  %v983_v25 = vpop.f32.mrf.mxu1 }
 0x14d   : > { %v1835_v30 = vmul.f32 %v1771_v54, %v11059_v24  ;;  %v9492_v24 = vld [vmem:[#allocation8 + $0x124] sm:$0xf0] }
 0x14e   : > { %v1523_v27 = vadd.f32 %v1459_v22, %v11092_v60  ;;  %v11109_v36 = vadd.f32 %v983_v25, %v935_v23  ;;  %1129 = vmatmul.bf16.gmra.mxu0 %v10868_v47  ;;  %v8250_v46 = vor.u32 %v9492_v24, %v8249_v53 }
 0x14f   : > { %1178 = vmatmul.bf16.gmra.mxu1 %v10870_v48  ;;  %v11114_v52 = vpack.c.bf16 %v1835_v30, %v1831_v29 }
 0x150   : > { %1227 = vmatmul.bf16.gmra.mxu2 %v10868_v47  ;;  %v1587_v38 = vmul.f32 0.7978846, %v1523_v27  ;;  %v1335_v40 = vmul.f32 %v11109_v36, %v11109_v36  ;;  %v9928_v51 = vpop.eup %9927 }
 0x151   : > { %1276 = vmatmul.bf16.gmra.mxu3 %v10870_v48  ;;  %2387 = vmatpush.bf16.msra.mxu2 %v8250_v46  ;;  %v1711_v8 = vadd.f32 1.0, %v9928_v51 }
 0x152   : > { %v1399_v42 = vmul.f32 %v1335_v40, %v11109_v36  ;;  %9929 = vtanh.f32 %v1587_v38  ;;  %v1025_v40 = vadd.f32 %v11068_v34, %v10900_v0 }
 0x153   : > { %v1032_v45 = vpop.f32.mrf.mxu2  ;;  %v936_v61 = vpop.f32.mrf.mxu0  ;;  %v1775_v13 = vmul.f32 0.5, %v1711_v8 }
 0x154   : > { %v1033_v14 = vadd.f32 %v1032_v45, %v10900_v0  ;;  %v1081_v47 = vpop.f32.mrf.mxu3  ;;  %v1463_v15 = vmul.f32 0.044715, %v1399_v42  ;;  %v937_v1 = vadd.f32 %v936_v61, %v10891_v59  ;;  %v985_v3 = vpop.f32.mrf.mxu1  ;;  %v11158_v34 = vadd.f32 %v11070_v16, %v1025_v40  ;;  %v10213_v40 = vld [vmem:[#allocation7] sm:$0xf] }
 0x155   : > { %v1839_v25 = vmul.f32 %v1775_v13, %v11076_v6 }
 0x156   : > { %v11122_v48 = vadd.f32 %v1081_v47, %v1033_v14  ;;  %v1527_v4 = vadd.f32 %v1463_v15, %v11109_v36  ;;  %v11125_v5 = vadd.f32 %v985_v3, %v937_v1  ;;  %v11166_v15 = vperm.slane %v10888_v58, 2  ;;  %v8241_v1 = vld [vmem:[#allocation8 + $0x110] sm:$0xf]  ;;  %v9490_v3 = vld [vmem:[#allocation8 + $0x114] sm:$0xf0] }
 0x157   : > { %v1324_v16 = vmul.f32 %v11158_v34, %v11158_v34 }
 0x158   : > { %v1591_v9 = vmul.f32 0.7978846, %v1527_v4  ;;  %v1339_v11 = vmul.f32 %v11125_v5, %v11125_v5  ;;  %v9930_v2 = vpop.eup %9929  ;;  %14203 = vst [vmem:[#allocation22_spill] sm:$0xff] %v11166_v15 }
 0x159   : > { %v1715_v18 = vadd.f32 1.0, %v9930_v2 }
 0x15a   : > { %v1403_v32 = vmul.f32 %v1339_v11, %v11125_v5  ;;  %9931 = vtanh.f32 %v1591_v9  ;;  %v1384_v9 = vmul.f32 %v1320_v55, %v11056_v12 }
 0x15b   : > { %v11130_v17 = vpop.f32.mrf.mxu2  ;;  %v939_v19 = vpop.f32.mrf.mxu0  ;;  %v1779_v54 = vmul.f32 0.5, %v1715_v18 }
 0x15c   : > { %v11132_v31 = vpop.f32.mrf.mxu3  ;;  %v1467_v10 = vmul.f32 0.044715, %v1403_v32  ;;  %v940_v35 = vadd.f32 %v939_v19, %v10891_v59  ;;  %v988_v26 = vpop.f32.mrf.mxu1  ;;  %v8242_v32 = vor.u32 %v9490_v3, %v8241_v1 }
 0x15d   : > { %v1843_v28 = vmul.f32 %v1779_v54, %v11092_v60 }
 0x15e   : > { %v1531_v22 = vadd.f32 %v1467_v10, %v11125_v5  ;;  %v11136_v23 = vadd.f32 %v988_v26, %v940_v35  ;;  %1134 = vmatmul.bf16.gmra.mxu0 %v10880_v56  ;;  %2388 = vmatpush.bf16.msra.mxu2 %v8242_v32 }
 0x15f   : > { %1183 = vmatmul.bf16.gmra.mxu1 %v10882_v57  ;;  %v11146_v27 = vpack.c.bf16 %v1843_v28, %v1839_v25  ;;  %v1388_v25 = vmul.f32 %v1324_v16, %v11158_v34  ;;  %v9504_v16 = vld [vmem:[#allocation8 + $0x184] sm:$0xf0] }
 0x160   : > { %1232 = vmatmul.bf16.gmra.mxu2 %v10880_v56  ;;  %v1595_v29 = vmul.f32 0.7978846, %v1531_v22  ;;  %v1343_v30 = vmul.f32 %v11136_v23, %v11136_v23  ;;  %v9932_v38 = vpop.eup %9931  ;;  %v1448_v22 = vmul.f32 0.044715, %v1384_v9  ;;  %v8297_v9 = vld [vmem:[#allocation8 + $0x180] sm:$0xf] }
 0x161   : > { %1281 = vmatmul.bf16.gmra.mxu3 %v10882_v57  ;;  %v1719_v57 = vadd.f32 1.0, %v9932_v38  ;;  %v9488_v38 = vld [vmem:[#allocation8 + $0x104] sm:$0xf0]  ;;  %v1452_v55 = vmul.f32 0.044715, %v1388_v25  ;;  %v8298_v32 = vor.u32 %v9504_v16, %v8297_v9 }
 0x162   : > { %v1407_v6 = vmul.f32 %v1343_v30, %v11136_v23  ;;  %9933 = vtanh.f32 %v1595_v29  ;;  %v8233_v30 = vld [vmem:[#allocation8 + $0x100] sm:$0xf] }
 0x163   : > { %v1037_v53 = vpop.f32.mrf.mxu2  ;;  %v941_v56 = vpop.f32.mrf.mxu0  ;;  %v1783_v8 = vmul.f32 0.5, %v1719_v57  ;;  %v1512_v57 = vadd.f32 %v1448_v22, %v11056_v12 }
 0x164   : > { %v1038_v60 = vadd.f32 %v1037_v53, %v10900_v0  ;;  %v1086_v24 = vpop.f32.mrf.mxu3  ;;  %v1471_v41 = vmul.f32 0.044715, %v1407_v6  ;;  %v942_v42 = vadd.f32 %v941_v56, %v10891_v59  ;;  %v990_v45 = vpop.f32.mrf.mxu1  ;;  %v11185_v6 = vperm.slane %v10213_v40, 3  ;;  %v8305_v53 = vld [vmem:[#allocation8 + $0x190] sm:$0xf] }
 0x165   : > { %v1847_v26 = vmul.f32 %v1783_v8, %v11109_v36  ;;  %v9506_v36 = vld [vmem:[#allocation8 + $0x194] sm:$0xf0] }
 0x166   : > { %v11153_v46 = vadd.f32 %v1086_v24, %v1038_v60  ;;  %v1535_v51 = vadd.f32 %v1471_v41, %v11136_v23  ;;  %v11161_v14 = vadd.f32 %v990_v45, %v942_v42  ;;  %14204 = vst [vmem:[#allocation23_spill] sm:$0xff] %v11185_v6  ;;  %v8234_v60 = vor.u32 %v9488_v38, %v8233_v30 }
 0x167   : > { %v1030_v24 = vadd.f32 %v11101_v33, %v10900_v0  ;;  %v8306_v42 = vor.u32 %v9506_v36, %v8305_v53 }
 0x168   : > { %v9934_v47 = vpop.eup %9933  ;;  %v1599_v61 = vmul.f32 0.7978846, %v1535_v51  ;;  %v1347_v62 = vmul.f32 %v11161_v14, %v11161_v14  ;;  %2389 = vmatpush.bf16.msra.mxu2 %v8234_v60 }
 0x169   : > { %v1723_v4 = vadd.f32 1.0, %v9934_v47  ;;  %2437 = vmatpush.bf16.msra.mxu3 %v8306_v42  ;;  %v11197_v33 = vadd.f32 %v11103_v44, %v1030_v24  ;;  %v1328_v44 = vmul.f32 %v11089_v39, %v11089_v39 }
 0x16a   : > { %v1411_v11 = vmul.f32 %v1347_v62, %v11161_v14  ;;  %9935 = vtanh.f32 %v1599_v61 }
 0x16b   : > { %v11172_v2 = vpop.f32.mrf.mxu2  ;;  %v1100_v13 = vpop.f32.mrf.mxu0  ;;  %v1787_v19 = vmul.f32 0.5, %v1723_v4  ;;  %v1332_v22 = vmul.f32 %v11197_v33, %v11197_v33  ;;  %v1392_v24 = vmul.f32 %v1328_v44, %v11089_v39 }
 0x16c   : > { %v11174_v18 = vpop.f32.mrf.mxu3  ;;  %v1475_v58 = vmul.f32 0.044715, %v1411_v11  ;;  %v1101_v10 = vadd.f32 %v1100_v13, %v11166_v15  ;;  %v1149_v35 = vpop.f32.mrf.mxu1 }
 0x16d   : > { %v1851_v54 = vmul.f32 %v1787_v19, %v11125_v5  ;;  %v1576_v19 = vmul.f32 0.7978846, %v1512_v57  ;;  %2438 = vmatpush.bf16.msra.mxu3 %v8298_v32 }
 0x16e   : > { %v1539_v28 = vadd.f32 %v1475_v58, %v11161_v14  ;;  %v11181_v29 = vadd.f32 %v1149_v35, %v1101_v10  ;;  %2292 = vmatmul.bf16.vlgmr.msra.gmra.mxu0 %v10962_v63  ;;  %v1516_v58 = vadd.f32 %v1452_v55, %v11158_v34  ;;  %v1396_v55 = vmul.f32 %v1332_v22, %v11197_v33 }
 0x16f   : > { %2341 = vmatmul.bf16.vlgmr.msra.gmra.mxu1 %v10980_v37  ;;  %v11187_v5 = vpack.c.bf16 %v1851_v54, %v1847_v26 }
 0x170   : > { %v1603_v56 = vmul.f32 0.7978846, %v1539_v28  ;;  %v1289_v41 = vmul.f32 %v11181_v29, %v11181_v29  ;;  %v9936_v45 = vpop.eup %9935  ;;  %v1580_v53 = vmul.f32 0.7978846, %v1516_v58  ;;  %v1456_v58 = vmul.f32 0.044715, %v1392_v24 }
 0x171   : > { %v1727_v13 = vadd.f32 1.0, %v9936_v45 }
 0x172   : > { %v1353_v51 = vmul.f32 %v1289_v41, %v11181_v29  ;;  %9937 = vtanh.f32 %v1603_v56 }
 0x173   : > { %v1198_v47 = vpop.f32.mrf.mxu2  ;;  %v1102_v1 = vpop.f32.mrf.mxu0  ;;  %v1791_v40 = vmul.f32 0.5, %v1727_v13  ;;  %9939 = vtanh.f32 %v1576_v19 }
 0x174   : > { %v1199_v61 = vadd.f32 %v1198_v47, %v11185_v6  ;;  %v1247_v62 = vpop.f32.mrf.mxu3  ;;  %v1417_v3 = vmul.f32 0.044715, %v1353_v51  ;;  %v1103_v4 = vadd.f32 %v1102_v1, %v11166_v15  ;;  %v1151_v8 = vpop.f32.mrf.mxu1 }
 0x176   : > { %v11200_v11 = vadd.f32 %v1247_v62, %v1199_v61  ;;  %v1481_v10 = vadd.f32 %v1417_v3, %v11181_v29  ;;  %v11204_v35 = vadd.f32 %v1151_v8, %v1103_v4  ;;  %v1855_v3 = vmul.f32 %v1791_v40, %v11136_v23  ;;  %v9469_v40 = vld [vmem:[#allocation8 + $0x74] sm:$0xf] }
 0x178   : > { %v1290_v26 = vmul.f32 %v11200_v11, %v11200_v11  ;;  %v9938_v54 = vpop.eup %9937  ;;  %v1545_v25 = vmul.f32 0.7978846, %v1481_v10  ;;  %v1293_v28 = vmul.f32 %v11204_v35, %v11204_v35 }
 0x179   : > { %v1731_v38 = vadd.f32 1.0, %v9938_v54  ;;  %v9940_v19 = vpop.eup %9939  ;;  %v8291_v54 = vld [vmem:[#allocation8 + $0x178] sm:$0xf0] }
 0x17a   : > { %v1354_v30 = vmul.f32 %v1290_v26, %v11200_v11  ;;  %v1357_v36 = vmul.f32 %v1293_v28, %v11204_v35  ;;  %9941 = vtanh.f32 %v1545_v25  ;;  %v9501_v26 = vld [vmem:[#allocation8 + $0x174] sm:$0xf]  ;;  %v1035_v25 = vadd.f32 %v11130_v17, %v10900_v0 }
 0x17b   : > { %v1200_v60 = vpop.f32.mrf.mxu2  ;;  %v1105_v45 = vpop.f32.mrf.mxu0  ;;  %v1795_v57 = vmul.f32 0.5, %v1731_v38  ;;  %9943 = vtanh.f32 %v1580_v53  ;;  %v8294_v38 = vor.u32 %v9501_v26, %v8291_v54  ;;  %v8355_v53 = vld [vmem:[#allocation8 + $0x1f8] sm:$0xf0]  ;;  %v9485_v26 = vld [vmem:[#allocation8 + $0xf4] sm:$0xf] }
 0x17c   : > { %v1418_v56 = vmul.f32 0.044715, %v1354_v30  ;;  %v1201_v41 = vadd.f32 %v1200_v60, %v11185_v6  ;;  %v1249_v42 = vpop.f32.mrf.mxu3  ;;  %v1421_v51 = vmul.f32 0.044715, %v1357_v36  ;;  %v1106_v47 = vadd.f32 %v1105_v45, %v11166_v15  ;;  %v1154_v61 = vpop.f32.mrf.mxu1  ;;  %v8163_v36 = vld [vmem:[#allocation8 + $0x78] sm:$0xf0] }
 0x17d   : > { %v1859_v4 = vmul.f32 %v1795_v57, %v11161_v14  ;;  %v1460_v14 = vmul.f32 0.044715, %v1396_v55  ;;  %v9517_v60 = vld [vmem:[#allocation8 + $0x1f4] sm:$0xf]  ;;  %v8166_v45 = vor.u32 %v9469_v40, %v8163_v36  ;;  %v1520_v57 = vadd.f32 %v1456_v58, %v11089_v39  ;;  %2578 = vmatpush.bf16.msrb.mxu2 %v8294_v38  ;;  %v8227_v54 = vld [vmem:[#allocation8 + $0xf8] sm:$0xf0] }
 0x17e   : > { %v1482_v62 = vadd.f32 %v1418_v56, %v11200_v11  ;;  %v11221_v1 = vadd.f32 %v1249_v42, %v1201_v41  ;;  %v1485_v8 = vadd.f32 %v1421_v51, %v11204_v35  ;;  %v11226_v9 = vadd.f32 %v1154_v61, %v1106_v47  ;;  %2297 = vmatmul.bf16.gmra.mxu0 %v11006_v21 }
 0x17f   : > { %2346 = vmatmul.bf16.gmra.mxu1 %v11027_v20  ;;  %v11232_v13 = vpack.c.bf16 %v1859_v4, %v1855_v3  ;;  %v8358_v47 = vor.u32 %v9517_v60, %v8355_v53  ;;  %2480 = vmatpush.bf16.msrb.mxu0 %v8166_v45  ;;  %v1524_v4 = vadd.f32 %v1460_v14, %v11197_v33 }
 0x180   : > { %v1546_v16 = vmul.f32 0.7978846, %v1482_v62  ;;  %v1294_v32 = vmul.f32 %v11221_v1, %v11221_v1  ;;  %v1549_v10 = vmul.f32 0.7978846, %v1485_v8  ;;  %v1297_v23 = vmul.f32 %v11226_v9, %v11226_v9  ;;  %v9942_v22 = vpop.eup %9941 }
 0x181   : > { %v1673_v61 = vadd.f32 1.0, %v9942_v22  ;;  %2627 = vmatpush.bf16.msrb.mxu3 %v8358_v47  ;;  %v9944_v58 = vpop.eup %9943  ;;  %v8230_v38 = vor.u32 %v9485_v26, %v8227_v54  ;;  %v1336_v60 = vmul.f32 %v11122_v48, %v11122_v48 }
 0x182   : > { %v1358_v44 = vmul.f32 %v1294_v32, %v11221_v1  ;;  %9945 = vtanh.f32 %v1549_v10  ;;  %v1361_v28 = vmul.f32 %v1297_v23, %v11226_v9  ;;  %v1704_v32 = vadd.f32 1.0, %v9940_v19 }
 0x183   : > { %v1203_v30 = vpop.f32.mrf.mxu2  ;;  %9947 = vtanh.f32 %v1546_v16  ;;  %v1107_v42 = vpop.f32.mrf.mxu0  ;;  %v11251_v10 = vadd.f32 %v11132_v31, %v1035_v25  ;;  %v1737_v36 = vmul.f32 0.5, %v1673_v61  ;;  %v1588_v25 = vmul.f32 0.7978846, %v1524_v4  ;;  %2529 = vmatpush.bf16.msrb.mxu1 %v8230_v38 }
 0x184   : > { %v1422_v24 = vmul.f32 0.044715, %v1358_v44  ;;  %v1204_v56 = vadd.f32 %v1203_v30, %v11185_v6  ;;  %v1252_v41 = vpop.f32.mrf.mxu3  ;;  %v1425_v55 = vmul.f32 0.044715, %v1361_v28  ;;  %v1108_v17 = vadd.f32 %v1107_v42, %v11166_v15  ;;  %v1156_v51 = vpop.f32.mrf.mxu1 }
 0x185   : > { %v1584_v28 = vmul.f32 0.7978846, %v1520_v57  ;;  %v1340_v42 = vmul.f32 %v11251_v10, %v11251_v10  ;;  %v1801_v4 = vmul.f32 %v1737_v36, %v11181_v29  ;;  %v1768_v54 = vmul.f32 0.5, %v1704_v32 }
 0x186   : > { %v1486_v62 = vadd.f32 %v1422_v24, %v11221_v1  ;;  %v11244_v3 = vadd.f32 %v1252_v41, %v1204_v56  ;;  %v1489_v8 = vadd.f32 %v1425_v55, %v11226_v9  ;;  %v11248_v16 = vadd.f32 %v1156_v51, %v1108_v17 }
 0x187   : > { %v1708_v41 = vadd.f32 1.0, %v9944_v58  ;;  %v1404_v32 = vmul.f32 %v1340_v42, %v11251_v10 }
 0x188   : > { %v1550_v23 = vmul.f32 0.7978846, %v1486_v62  ;;  %v1298_v44 = vmul.f32 %v11244_v3, %v11244_v3  ;;  %v9946_v22 = vpop.eup %9945  ;;  %v1553_v30 = vmul.f32 0.7978846, %v1489_v8  ;;  %v1301_v14 = vmul.f32 %v11248_v16, %v11248_v16 }
 0x189   : > { %v9948_v40 = vpop.eup %9947  ;;  %v1677_v19 = vadd.f32 1.0, %v9946_v22 }
 0x18a   : > { %9949 = vtanh.f32 %v1550_v23  ;;  %v1362_v31 = vmul.f32 %v1298_v44, %v11244_v3  ;;  %v1365_v24 = vmul.f32 %v1301_v14, %v11248_v16  ;;  %v1674_v51 = vadd.f32 1.0, %v9948_v40 }
 0x18b   : > { %v1205_v56 = vpop.f32.mrf.mxu2  ;;  %v1741_v45 = vmul.f32 0.5, %v1677_v19  ;;  %v1110_v17 = vpop.f32.mrf.mxu0  ;;  %9951 = vtanh.f32 %v1553_v30  ;;  %v1400_v19 = vmul.f32 %v1336_v60, %v11122_v48 }
 0x18c   : > { %v1426_v53 = vmul.f32 0.044715, %v1362_v31  ;;  %v1206_v57 = vadd.f32 %v1205_v56, %v11185_v6  ;;  %v1254_v55 = vpop.f32.mrf.mxu3  ;;  %v1429_v47 = vmul.f32 0.044715, %v1365_v24  ;;  %v1111_v61 = vadd.f32 %v1110_v17, %v11166_v15  ;;  %v1159_v62 = vpop.f32.mrf.mxu1  ;;  %v9499_v24 = vld [vmem:[#allocation8 + $0x164] sm:$0xf] }
 0x18d   : > { %v1805_v8 = vmul.f32 %v1741_v45, %v11204_v35  ;;  %9953 = vtanh.f32 %v1584_v28  ;;  %v1772_v35 = vmul.f32 0.5, %v1708_v41  ;;  %v1738_v38 = vmul.f32 0.5, %v1674_v51  ;;  %v8283_v56 = vld [vmem:[#allocation8 + $0x168] sm:$0xf0]  ;;  %v9467_v17 = vld [vmem:[#allocation8 + $0x64] sm:$0xf] }
 0x18e   : > { %v1490_v58 = vadd.f32 %v1426_v53, %v11244_v3  ;;  %v11268_v23 = vadd.f32 %v1254_v55, %v1206_v57  ;;  %v1493_v44 = vadd.f32 %v1429_v47, %v11248_v16  ;;  %v11271_v26 = vadd.f32 %v1159_v62, %v1111_v61  ;;  %2302 = vmatmul.bf16.gmra.mxu0 %v11046_v50  ;;  %v8155_v51 = vld [vmem:[#allocation8 + $0x68] sm:$0xf0] }
 0x18f   : > { %v11274_v30 = vpack.c.bf16 %v1805_v8, %v1801_v4  ;;  %2351 = vmatmul.bf16.gmra.mxu1 %v11065_v43  ;;  %9955 = vtanh.f32 %v1588_v25  ;;  %v8286_v55 = vor.u32 %v9499_v24, %v8283_v56  ;;  %v8158_v62 = vor.u32 %v9467_v17, %v8155_v51  ;;  %v9515_v4 = vld [vmem:[#allocation8 + $0x1e4] sm:$0xf] }
 0x190   : > { %v9950_v22 = vpop.eup %9949  ;;  %v1554_v14 = vmul.f32 0.7978846, %v1490_v58  ;;  %v1302_v29 = vmul.f32 %v11268_v23, %v11268_v23  ;;  %v1557_v28 = vmul.f32 0.7978846, %v1493_v44  ;;  %v1305_v36 = vmul.f32 %v11271_v26, %v11271_v26 }
 0x191   : > { %v1678_v40 = vadd.f32 1.0, %v9950_v22  ;;  %2390 = vmatmul.bf16.vlgmr.msra.gmra.mxu2 %v11274_v30  ;;  %v9952_v45 = vpop.eup %9951  ;;  %v1802_v25 = vmul.f32 %v1738_v38, %v11200_v11  ;;  %2481 = vmatpush.bf16.msrb.mxu0 %v8158_v62  ;;  %v1468_v24 = vmul.f32 0.044715, %v1404_v32  ;;  %v11301_v17 = vmul.f32 %v1768_v54, %v11056_v12 }
 0x192   : > { %v1366_v31 = vmul.f32 %v1302_v29, %v11268_v23  ;;  %v1369_v41 = vmul.f32 %v1305_v36, %v11271_v26  ;;  %9957 = vtanh.f32 %v1557_v28  ;;  %2579 = vmatpush.bf16.msrb.mxu2 %v8286_v55  ;;  %v1681_v36 = vadd.f32 1.0, %v9952_v45  ;;  %v8219_v55 = vld [vmem:[#allocation8 + $0xe8] sm:$0xf0] }
 0x193   : > { %v1742_v53 = vmul.f32 0.5, %v1678_v40  ;;  %v1208_v57 = vpop.f32.mrf.mxu2  ;;  %9959 = vtanh.f32 %v1554_v14  ;;  %v1112_v61 = vpop.f32.mrf.mxu0  ;;  %v8347_v40 = vld [vmem:[#allocation8 + $0x1e8] sm:$0xf0]  ;;  %v1532_v12 = vadd.f32 %v1468_v24, %v11251_v10 }
 0x194   : > { %v1430_v60 = vmul.f32 0.044715, %v1366_v31  ;;  %v1209_v42 = vadd.f32 %v1208_v57, %v11185_v6  ;;  %v1257_v47 = vpop.f32.mrf.mxu3  ;;  %v9954_v8 = vpop.eup %9953  ;;  %v1433_v44 = vmul.f32 0.044715, %v1369_v41  ;;  %v1113_v22 = vadd.f32 %v1112_v61, %v11166_v15  ;;  %v9483_v57 = vld [vmem:[#allocation8 + $0xe4] sm:$0xf] }
 0x195   : > { %v1806_v58 = vmul.f32 %v1742_v53, %v11221_v1  ;;  %v1161_v29 = vpop.f32.mrf.mxu1  ;;  %v8350_v31 = vor.u32 %v9515_v4, %v8347_v40  ;;  %v9956_v1 = vpop.eup %9955  ;;  %v1745_v4 = vmul.f32 0.5, %v1681_v36 }
 0x196   : > { %v1494_v14 = vadd.f32 %v1430_v60, %v11268_v23  ;;  %v11291_v28 = vadd.f32 %v1257_v47, %v1209_v42  ;;  %v1497_v11 = vadd.f32 %v1433_v44, %v11271_v26  ;;  %v11296_v38 = vadd.f32 %v1161_v29, %v1113_v22 }
 0x197   : > { %v11293_v56 = vpack.c.bf16 %v1806_v58, %v1802_v25  ;;  %2628 = vmatpush.bf16.msrb.mxu3 %v8350_v31  ;;  %v8222_v60 = vor.u32 %v9483_v57, %v8219_v55  ;;  %v11307_v42 = vmul.f32 %v1772_v35, %v11158_v34  ;;  %v1464_v25 = vmul.f32 0.044715, %v1400_v19 }
 0x198   : > { %v1558_v53 = vmul.f32 0.7978846, %v1494_v14  ;;  %v1306_v41 = vmul.f32 %v11291_v28, %v11291_v28  ;;  %v9958_v45 = vpop.eup %9957  ;;  %v1561_v51 = vmul.f32 0.7978846, %v1497_v11  ;;  %v1309_v32 = vmul.f32 %v11296_v38, %v11296_v38 }
 0x199   : > { %2439 = vmatmul.bf16.vlgmr.msra.gmra.mxu3 %v11293_v56  ;;  %v9960_v47 = vpop.eup %9959  ;;  %v1685_v62 = vadd.f32 1.0, %v9958_v45  ;;  %2530 = vmatpush.bf16.msrb.mxu1 %v8222_v60  ;;  %v1712_v44 = vadd.f32 1.0, %v9954_v8  ;;  %v1040_v22 = vadd.f32 %v11172_v2, %v10900_v0  ;;  %v1809_v8 = vmul.f32 %v1745_v4, %v11226_v9 }
 0x19a   : > { %v1370_v61 = vmul.f32 %v1306_v41, %v11291_v28  ;;  %9961 = vtanh.f32 %v1558_v53  ;;  %v1373_v54 = vmul.f32 %v1309_v32, %v11296_v38  ;;  %v1682_v24 = vadd.f32 1.0, %v9960_v47 }
 0x19b   : > { %v1210_v58 = vpop.f32.mrf.mxu2  ;;  %v1115_v40 = vpop.f32.mrf.mxu0  ;;  %v1749_v14 = vmul.f32 0.5, %v1685_v62  ;;  %9963 = vtanh.f32 %v1561_v51  ;;  %v1528_v41 = vadd.f32 %v1464_v25, %v11122_v48  ;;  %v11326_v45 = vmul.f32 0.5, %v1712_v44 }
 0x19c   : > { %v1434_v29 = vmul.f32 0.044715, %v1370_v61  ;;  %v1211_v34 = vadd.f32 %v1210_v58, %v11185_v6  ;;  %v1259_v35 = vpop.f32.mrf.mxu3  ;;  %v1437_v36 = vmul.f32 0.044715, %v1373_v54  ;;  %v1116_v19 = vadd.f32 %v1115_v40, %v11166_v15 }
 0x19d   : > { %v1164_v31 = vpop.f32.mrf.mxu1  ;;  %v1813_v2 = vmul.f32 %v1749_v14, %v11248_v16  ;;  %v11333_v16 = vadd.f32 1.0, %v9956_v1  ;;  %v1746_v4 = vmul.f32 0.5, %v1682_v24  ;;  %v1596_v25 = vmul.f32 0.7978846, %v1532_v12  ;;  %v8275_v1 = vld [vmem:[#allocation8 + $0x158] sm:$0xf0] }
 0x19e   : > { %v1498_v11 = vadd.f32 %v1434_v29, %v11291_v28  ;;  %v11317_v53 = vadd.f32 %v1259_v35, %v1211_v34  ;;  %v1501_v57 = vadd.f32 %v1437_v36, %v11296_v38  ;;  %v11323_v55 = vadd.f32 %v1164_v31, %v1116_v19  ;;  %2307 = vmatmul.bf16.gmra.mxu0 %v11081_v49  ;;  %v9497_v29 = vld [vmem:[#allocation8 + $0x154] sm:$0xf]  ;;  %v8147_v19 = vld [vmem:[#allocation8 + $0x58] sm:$0xf0] }
 0x19f   : > { %2356 = vmatmul.bf16.gmra.mxu1 %v11098_v7  ;;  %v11331_v9 = vpack.c.bf16 %v1813_v2, %v1809_v8  ;;  %v1344_v54 = vmul.f32 %v11153_v46, %v11153_v46  ;;  %v11340_v58 = vadd.f32 %v11174_v18, %v1040_v22  ;;  %v8278_v36 = vor.u32 %v9497_v29, %v8275_v1  ;;  %v9465_v12 = vld [vmem:[#allocation8 + $0x54] sm:$0xf] }
 0x1a0   : > { %v9962_v51 = vpop.eup %9961  ;;  %v1562_v32 = vmul.f32 0.7978846, %v1498_v11  ;;  %v1310_v60 = vmul.f32 %v11317_v53, %v11317_v53  ;;  %v1565_v47 = vmul.f32 0.7978846, %v1501_v57  ;;  %v1313_v61 = vmul.f32 %v11323_v55, %v11323_v55  ;;  %v9513_v8 = vld [vmem:[#allocation8 + $0x1d4] sm:$0xf] }
 0x1a1   : > { %v1686_v62 = vadd.f32 1.0, %v9962_v51  ;;  %2395 = vmatmul.bf16.gmra.mxu2 %v11331_v9  ;;  %v9964_v34 = vpop.eup %9963  ;;  %v8150_v11 = vor.u32 %v9465_v12, %v8147_v19  ;;  %v1408_v1 = vmul.f32 %v1344_v54, %v11153_v46  ;;  %v8211_v54 = vld [vmem:[#allocation8 + $0xd8] sm:$0xf0]  ;;  %v1592_v19 = vmul.f32 0.7978846, %v1528_v41 }
 0x1a2   : > { %v1374_v44 = vmul.f32 %v1310_v60, %v11317_v53  ;;  %v1377_v35 = vmul.f32 %v1313_v61, %v11323_v55  ;;  %9965 = vtanh.f32 %v1565_v47  ;;  %v1810_v60 = vmul.f32 %v1746_v4, %v11244_v3  ;;  %2580 = vmatpush.bf16.msrb.mxu2 %v8278_v36  ;;  %v8339_v47 = vld [vmem:[#allocation8 + $0x1d8] sm:$0xf0] }
 0x1a3   : > { %v1213_v40 = vpop.f32.mrf.mxu2  ;;  %v1750_v14 = vmul.f32 0.5, %v1686_v62  ;;  %9967 = vtanh.f32 %v1562_v32  ;;  %v1117_v24 = vpop.f32.mrf.mxu0  ;;  %2482 = vmatpush.bf16.msrb.mxu0 %v8150_v11  ;;  %v8342_v29 = vor.u32 %v9513_v8, %v8339_v47  ;;  %v1348_v3 = vmul.f32 %v11340_v58, %v11340_v58 }
 0x1a4   : > { %v1438_v31 = vmul.f32 0.044715, %v1374_v44  ;;  %v1214_v18 = vadd.f32 %v1213_v40, %v11185_v6  ;;  %v1262_v22 = vpop.f32.mrf.mxu3  ;;  %v1441_v2 = vmul.f32 0.044715, %v1377_v35  ;;  %v1118_v57 = vadd.f32 %v1117_v24, %v11166_v15 }
 0x1a5   : > { %v1166_v51 = vpop.f32.mrf.mxu1  ;;  %v1814_v61 = vmul.f32 %v1750_v14, %v11268_v23  ;;  %v1689_v44 = vadd.f32 1.0, %v9964_v34  ;;  %v11364_v34 = vpack.c.bf16 %v11307_v42, %v11301_v17  ;;  %2629 = vmatpush.bf16.msrb.mxu3 %v8342_v29  ;;  %v9481_v14 = vld [vmem:[#allocation8 + $0xd4] sm:$0xf]  ;;  %v1472_v17 = vmul.f32 0.044715, %v1408_v1 }
 0x1a6   : > { %v1502_v62 = vadd.f32 %v1438_v31, %v11317_v53  ;;  %v11350_v32 = vadd.f32 %v1262_v22, %v1214_v18  ;;  %v1505_v35 = vadd.f32 %v1441_v2, %v11323_v55  ;;  %v11354_v40 = vadd.f32 %v1166_v51, %v1118_v57 }
 0x1a7   : > { %v11356_v12 = vpack.c.bf16 %v1814_v61, %v1810_v60  ;;  %v8214_v22 = vor.u32 %v9481_v14, %v8211_v54  ;;  %v1753_v2 = vmul.f32 0.5, %v1689_v44  ;;  %v1780_v41 = vmul.f32 0.5, %v11333_v16 }
 0x1a8   : > { %v1566_v23 = vmul.f32 0.7978846, %v1502_v62  ;;  %v1314_v4 = vmul.f32 %v11350_v32, %v11350_v32  ;;  %v9966_v36 = vpop.eup %9965  ;;  %v1569_v31 = vmul.f32 0.7978846, %v1505_v35  ;;  %v1317_v18 = vmul.f32 %v11354_v40, %v11354_v40 }
 0x1a9   : > { %2444 = vmatmul.bf16.gmra.mxu3 %v11356_v12  ;;  %v9968_v24 = vpop.eup %9967  ;;  %v1693_v8 = vadd.f32 1.0, %v9966_v36  ;;  %2531 = vmatpush.bf16.msrb.mxu1 %v8214_v22  ;;  %v1412_v51 = vmul.f32 %v1348_v3, %v11340_v58  ;;  %v1817_v16 = vmul.f32 %v1753_v2, %v11271_v26  ;;  %v1840_v36 = vmul.f32 %v11326_v45, %v11089_v39 }
 0x1aa   : > { %v1378_v11 = vmul.f32 %v1314_v4, %v11350_v32  ;;  %9969 = vtanh.f32 %v1566_v23  ;;  %v1381_v42 = vmul.f32 %v1317_v18, %v11354_v40  ;;  %v1690_v23 = vadd.f32 1.0, %v9968_v24 }
 0x1ab   : > { %v1215_v57 = vpop.f32.mrf.mxu2  ;;  %9971 = vtanh.f32 %v1596_v25  ;;  %v1120_v62 = vpop.f32.mrf.mxu0  ;;  %v1757_v29 = vmul.f32 0.5, %v1693_v8  ;;  %v1476_v39 = vmul.f32 0.044715, %v1412_v51 }
 0x1ac   : > { %v1442_v60 = vmul.f32 0.044715, %v1378_v11  ;;  %v1216_v61 = vadd.f32 %v1215_v57, %v11185_v6  ;;  %v1264_v47 = vpop.f32.mrf.mxu3  ;;  %9973 = vtanh.f32 %v1569_v31  ;;  %v1445_v35 = vmul.f32 0.044715, %v1381_v42  ;;  %v9495_v57 = vld [vmem:[#allocation8 + $0x144] sm:$0xf] }
 0x1ad   : > { %v1121_v44 = vadd.f32 %v1120_v62, %v11166_v15  ;;  %v1169_v1 = vpop.f32.mrf.mxu1  ;;  %v1821_v25 = vmul.f32 %v1757_v29, %v11296_v38  ;;  %9975 = vtanh.f32 %v1592_v19  ;;  %v1754_v2 = vmul.f32 0.5, %v1690_v23 }
 0x1ae   : > { %v1506_v4 = vadd.f32 %v1442_v60, %v11350_v32  ;;  %v11376_v14 = vadd.f32 %v1264_v47, %v1216_v61  ;;  %v1509_v3 = vadd.f32 %v1445_v35, %v11354_v40  ;;  %2312 = vmatmul.bf16.gmra.mxu0 %v11114_v52  ;;  %v1536_v42 = vadd.f32 %v1472_v17, %v11153_v46  ;;  %v8267_v60 = vld [vmem:[#allocation8 + $0x148] sm:$0xf0] }
 0x1af   : > { %v11381_v54 = vadd.f32 %v1169_v1, %v1121_v44  ;;  %2361 = vmatmul.bf16.gmra.mxu1 %v11364_v34  ;;  %v11389_v26 = vpack.c.bf16 %v1821_v25, %v1817_v16  ;;  %v1844_v19 = vmul.f32 %v1780_v41, %v11197_v33  ;;  %v8270_v35 = vor.u32 %v9495_v57, %v8267_v60  ;;  %v9463_v44 = vld [vmem:[#allocation8 + $0x44] sm:$0xf]  ;;  %v8139_v1 = vld [vmem:[#allocation8 + $0x48] sm:$0xf0] }
 0x1b0   : > { %v9970_v31 = vpop.eup %9969  ;;  %v1570_v18 = vmul.f32 0.7978846, %v1506_v4  ;;  %v1318_v22 = vmul.f32 %v11376_v14, %v11376_v14  ;;  %v1573_v24 = vmul.f32 0.7978846, %v1509_v3  ;;  %v8142_v16 = vor.u32 %v9463_v44, %v8139_v1  ;;  %v9511_v25 = vld [vmem:[#allocation8 + $0x1c4] sm:$0xf] }
 0x1b1   : > { %v9972_v38 = vpop.eup %9971  ;;  %v1321_v11 = vmul.f32 %v11381_v54, %v11381_v54  ;;  %v1694_v8 = vadd.f32 1.0, %v9970_v31  ;;  %2400 = vmatmul.bf16.gmra.mxu2 %v11389_v26  ;;  %v1818_v31 = vmul.f32 %v1754_v2, %v11291_v28  ;;  %v11412_v2 = vpack.c.bf16 %v1844_v19, %v1840_v36 }
 0x1b2   : > { %v1382_v45 = vmul.f32 %v1318_v22, %v11376_v14  ;;  %v9974_v61 = vpop.eup %9973  ;;  %9977 = vtanh.f32 %v1573_v24  ;;  %2581 = vmatpush.bf16.msrb.mxu2 %v8270_v35  ;;  %v8331_v24 = vld [vmem:[#allocation8 + $0x1c8] sm:$0xf0]  ;;  %2483 = vmatpush.bf16.msrb.mxu0 %v8142_v16  ;;  %v1724_v44 = vadd.f32 1.0, %v9972_v38  ;;  %v1600_v36 = vmul.f32 0.7978846, %v1536_v42 }
 0x1b3   : > { %v1385_v47 = vmul.f32 %v1321_v11, %v11381_v54  ;;  %v1218_v62 = vpop.f32.mrf.mxu2  ;;  %v1758_v29 = vmul.f32 0.5, %v1694_v8  ;;  %9979 = vtanh.f32 %v1570_v18  ;;  %v1122_v4 = vpop.f32.mrf.mxu0  ;;  %v8334_v57 = vor.u32 %v9511_v25, %v8331_v24  ;;  %v8203_v35 = vld [vmem:[#allocation8 + $0xc8] sm:$0xf0] }
 0x1b4   : > { %v1446_v17 = vmul.f32 0.044715, %v1382_v45  ;;  %v1219_v51 = vadd.f32 %v1218_v62, %v11185_v6  ;;  %v1267_v23 = vpop.f32.mrf.mxu3  ;;  %v1123_v41 = vadd.f32 %v1122_v4, %v11166_v15  ;;  %v9976_v11 = vpop.eup %9975  ;;  %v1697_v45 = vadd.f32 1.0, %v9974_v61 }
 0x1b5   : > { %v1449_v33 = vmul.f32 0.044715, %v1385_v47  ;;  %v1171_v3 = vpop.f32.mrf.mxu1  ;;  %v1822_v22 = vmul.f32 %v1758_v29, %v11317_v53  ;;  %2630 = vmatpush.bf16.msrb.mxu3 %v8334_v57  ;;  %v9479_v29 = vld [vmem:[#allocation8 + $0xc4] sm:$0xf]  ;;  %v1540_v61 = vadd.f32 %v1476_v39, %v11340_v58  ;;  %v1720_v39 = vadd.f32 1.0, %v9976_v11 }
 0x1b6   : > { %v1510_v18 = vadd.f32 %v1446_v17, %v11376_v14  ;;  %v11403_v8 = vadd.f32 %v1267_v23, %v1219_v51  ;;  %v11406_v47 = vadd.f32 %v1171_v3, %v1123_v41  ;;  %v8206_v23 = vor.u32 %v9479_v29, %v8203_v35 }
 0x1b7   : > { %v1513_v60 = vadd.f32 %v1449_v33, %v11381_v54  ;;  %v11408_v62 = vpack.c.bf16 %v1822_v22, %v1818_v31  ;;  %v1761_v25 = vmul.f32 0.5, %v1697_v45  ;;  %v1604_v57 = vmul.f32 0.7978846, %v1540_v61 }
 0x1b8   : > { %v1574_v28 = vmul.f32 0.7978846, %v1510_v18  ;;  %v1322_v53 = vmul.f32 %v11403_v8, %v11403_v8  ;;  %v9978_v1 = vpop.eup %9977  ;;  %v1325_v51 = vmul.f32 %v11406_v47, %v11406_v47  ;;  %2532 = vmatpush.bf16.msrb.mxu1 %v8206_v23  ;;  %v1788_v18 = vmul.f32 0.5, %v1724_v44 }
 0x1b9   : > { %v1577_v17 = vmul.f32 0.7978846, %v1513_v60  ;;  %2449 = vmatmul.bf16.gmra.mxu3 %v11408_v62  ;;  %v9980_v38 = vpop.eup %9979  ;;  %v1701_v16 = vadd.f32 1.0, %v9978_v1  ;;  %v1825_v35 = vmul.f32 %v1761_v25, %v11323_v55  ;;  %v1784_v44 = vmul.f32 0.5, %v1720_v39  ;;  %v9493_v39 = vld [vmem:[#allocation8 + $0x134] sm:$0xf] }
 0x1ba   : > { %v1386_v4 = vmul.f32 %v1322_v53, %v11403_v8  ;;  %9981 = vtanh.f32 %v1574_v28  ;;  %v1389_v19 = vmul.f32 %v1325_v51, %v11406_v47  ;;  %v1698_v28 = vadd.f32 1.0, %v9980_v38 }
 0x1bb   : > { %9983 = vtanh.f32 %v1577_v17  ;;  %v1220_v33 = vpop.f32.mrf.mxu2  ;;  %v1125_v22 = vpop.f32.mrf.mxu0  ;;  %v1765_v24 = vmul.f32 0.5, %v1701_v16 }
 0x1bc   : > { %v1450_v41 = vmul.f32 0.044715, %v1386_v4  ;;  %v1221_v3 = vadd.f32 %v1220_v33, %v11185_v6  ;;  %v1269_v31 = vpop.f32.mrf.mxu3  ;;  %v1453_v60 = vmul.f32 0.044715, %v1389_v19  ;;  %v1126_v53 = vadd.f32 %v1125_v22, %v11166_v15 }
 0x1bd   : > { %v1174_v45 = vpop.f32.mrf.mxu1  ;;  %v1829_v11 = vmul.f32 %v1765_v24, %v11354_v40  ;;  %9985 = vtanh.f32 %v1600_v36  ;;  %v1762_v25 = vmul.f32 0.5, %v1698_v28  ;;  %v1852_v36 = vmul.f32 %v1788_v18, %v11251_v10  ;;  %v9509_v10 = vld [vmem:[#allocation8 + $0x1b4] sm:$0xf] }
 0x1be   : > { %v1514_v42 = vadd.f32 %v1450_v41, %v11403_v8  ;;  %v11423_v29 = vadd.f32 %v1269_v31, %v1221_v3  ;;  %v1517_v1 = vadd.f32 %v1453_v60, %v11406_v47  ;;  %v11428_v17 = vadd.f32 %v1174_v45, %v1126_v53  ;;  %2317 = vmatmul.bf16.gmra.mxu0 %v11146_v27  ;;  %v8259_v41 = vld [vmem:[#allocation8 + $0x138] sm:$0xf0]  ;;  %v9461_v60 = vld [vmem:[#allocation8 + $0x34] sm:$0xf] }
 0x1bf   : > { %2366 = vmatmul.bf16.gmra.mxu1 %v11412_v2  ;;  %v11434_v38 = vpack.c.bf16 %v1829_v11, %v1825_v35  ;;  %9987 = vtanh.f32 %v1604_v57  ;;  %v8262_v24 = vor.u32 %v9493_v39, %v8259_v41  ;;  %v8131_v53 = vld [vmem:[#allocation8 + $0x38] sm:$0xf0] }
 0x1c0   : > { %v9982_v61 = vpop.eup %9981  ;;  %v1578_v51 = vmul.f32 0.7978846, %v1514_v42  ;;  %v1326_v23 = vmul.f32 %v11423_v29, %v11423_v29  ;;  %v1581_v4 = vmul.f32 0.7978846, %v1517_v1  ;;  %v1329_v40 = vmul.f32 %v11428_v17, %v11428_v17  ;;  %v8195_v41 = vld [vmem:[#allocation8 + $0xb8] sm:$0xf0] }
 0x1c1   : > { %v9984_v55 = vpop.eup %9983  ;;  %v1702_v16 = vadd.f32 1.0, %v9982_v61  ;;  %2405 = vmatmul.bf16.gmra.mxu2 %v11434_v38  ;;  %v8134_v11 = vor.u32 %v9461_v60, %v8131_v53  ;;  %v1826_v61 = vmul.f32 %v1762_v25, %v11350_v32  ;;  %v8123_v25 = vld [vmem:[#allocation8 + $0x28] sm:$0xf0] }
 0x1c2   : > { %v1390_v19 = vmul.f32 %v1326_v23, %v11423_v29  ;;  %v1705_v33 = vadd.f32 1.0, %v9984_v55  ;;  %v1393_v3 = vmul.f32 %v1329_v40, %v11428_v17  ;;  %9989 = vtanh.f32 %v1581_v4  ;;  %2582 = vmatpush.bf16.msrb.mxu2 %v8262_v24  ;;  %v8323_v55 = vld [vmem:[#allocation8 + $0x1b8] sm:$0xf0]  ;;  %v9477_v4 = vld [vmem:[#allocation8 + $0xb4] sm:$0xf] }
 0x1c3   : > { %v1223_v31 = vpop.f32.mrf.mxu2  ;;  %v1766_v22 = vmul.f32 0.5, %v1702_v16  ;;  %9991 = vtanh.f32 %v1578_v51  ;;  %v1127_v35 = vpop.f32.mrf.mxu0  ;;  %2484 = vmatpush.bf16.msrb.mxu0 %v8134_v11  ;;  %v8326_v39 = vor.u32 %v9509_v10, %v8323_v55  ;;  %v8198_v32 = vor.u32 %v9477_v4, %v8195_v41  ;;  %v8115_v41 = vld [vmem:[#allocation8 + $0x18] sm:$0xf0] }
 0x1c4   : > { %v1454_v45 = vmul.f32 0.044715, %v1390_v19  ;;  %v1224_v28 = vadd.f32 %v1223_v31, %v11185_v6  ;;  %v1272_v42 = vpop.f32.mrf.mxu3  ;;  %v1457_v18 = vmul.f32 0.044715, %v1393_v3  ;;  %v1128_v1 = vadd.f32 %v1127_v35, %v11166_v15  ;;  %v9986_v40 = vpop.eup %9985 }
 0x1c5   : > { %v1176_v57 = vpop.f32.mrf.mxu1  ;;  %v1830_v23 = vmul.f32 %v1766_v22, %v11376_v14  ;;  %v1769_v19 = vmul.f32 0.5, %v1705_v33  ;;  %v9459_v14 = vld [vmem:[#allocation8 + $0x24] sm:$0xf]  ;;  %v9988_v24 = vpop.eup %9987  ;;  %v1848_v33 = vmul.f32 %v1784_v44, %v11122_v48  ;;  %2631 = vmatpush.bf16.msrb.mxu3 %v8326_v39  ;;  %2533 = vmatpush.bf16.msrb.mxu1 %v8198_v32  ;;  %v1728_v4 = vadd.f32 1.0, %v9986_v40  ;;  %v9457_v39 = vld [vmem:[#allocation8 + $0x14] sm:$0xf] }
 0x1c6   : > { %v1518_v51 = vadd.f32 %v1454_v45, %v11423_v29  ;;  %v11447_v16 = vadd.f32 %v1272_v42, %v1224_v28  ;;  %v1521_v3 = vadd.f32 %v1457_v18, %v11428_v17  ;;  %v11450_v31 = vadd.f32 %v1176_v57, %v1128_v1  ;;  %v9475_v22 = vld [vmem:[#allocation8 + $0xa4] sm:$0xf]  ;;  %v8187_v42 = vld [vmem:[#allocation8 + $0xa8] sm:$0xf0] }
 0x1c7   : > { %v11452_v60 = vpack.c.bf16 %v1830_v23, %v1826_v61  ;;  %v8126_v28 = vor.u32 %v9459_v14, %v8123_v25  ;;  %v8190_v18 = vor.u32 %v9475_v22, %v8187_v42  ;;  %v11461_v61 = vpack.c.bf16 %v1852_v36, %v1848_v33 }
 0x1c8   : > { %v1582_v53 = vmul.f32 0.7978846, %v1518_v51  ;;  %v1330_v45 = vmul.f32 %v11447_v16, %v11447_v16  ;;  %v9990_v35 = vpop.eup %9989  ;;  %v1585_v11 = vmul.f32 0.7978846, %v1521_v3  ;;  %v1333_v10 = vmul.f32 %v11450_v31, %v11450_v31 }
 0x1c9   : > { %2454 = vmatmul.bf16.gmra.mxu3 %v11452_v60  ;;  %v9992_v1 = vpop.eup %9991  ;;  %v1709_v23 = vadd.f32 1.0, %v9990_v35  ;;  %2485 = vmatpush.bf16.msrb.mxu0 %v8126_v28  ;;  %v1833_v55 = vmul.f32 %v1769_v19, %v11381_v54  ;;  %v1732_v51 = vadd.f32 1.0, %v9988_v24  ;;  %v8118_v36 = vor.u32 %v9457_v39, %v8115_v41  ;;  %v8179_v54 = vld [vmem:[#allocation8 + $0x98] sm:$0xf0]  ;;  %v8171_v41 = vld [vmem:[#allocation8 + $0x88] sm:$0xf0] }
 0x1ca   : > { %v1394_v57 = vmul.f32 %v1330_v45, %v11447_v16  ;;  %9993 = vtanh.f32 %v1582_v53  ;;  %v1397_v48 = vmul.f32 %v1333_v10, %v11450_v31  ;;  %v9473_v45 = vld [vmem:[#allocation8 + $0x94] sm:$0xf]  ;;  %v1706_v42 = vadd.f32 1.0, %v9992_v1  ;;  %2534 = vmatpush.bf16.msrb.mxu1 %v8190_v18 }
 0x1cb   : > { %v1225_v44 = vpop.f32.mrf.mxu2  ;;  %v1130_v25 = vpop.f32.mrf.mxu0  ;;  %v1773_v22 = vmul.f32 0.5, %v1709_v23  ;;  %9995 = vtanh.f32 %v1585_v11  ;;  %v8182_v35 = vor.u32 %v9473_v45, %v8179_v54  ;;  %v9455_v11 = vld [vmem:[#allocation8 + $0x4] sm:$0xf]  ;;  %v8107_v23 = vld [vmem:[#allocation8 + $0x8] sm:$0xf0]  ;;  %v1796_v45 = vmul.f32 0.5, %v1732_v51 }
 0x1cc   : > { %v1458_v3 = vmul.f32 0.044715, %v1394_v57  ;;  %v1226_v32 = vadd.f32 %v1225_v44, %v11185_v6  ;;  %v1274_v14 = vpop.f32.mrf.mxu3  ;;  %v1461_v53 = vmul.f32 0.044715, %v1397_v48  ;;  %v1131_v33 = vadd.f32 %v1130_v25, %v11166_v15  ;;  %v9471_v48 = vld [vmem:[#allocation8 + $0x84] sm:$0xf] }
 0x1cd   : > { %v1179_v28 = vpop.f32.mrf.mxu1  ;;  %v1837_v24 = vmul.f32 %v1773_v22, %v11406_v47  ;;  %2486 = vmatpush.bf16.msrb.mxu0 %v8118_v36  ;;  %v8110_v47 = vor.u32 %v9455_v11, %v8107_v23  ;;  %v1770_v25 = vmul.f32 0.5, %v1706_v42  ;;  %v1792_v36 = vmul.f32 0.5, %v1728_v4  ;;  %v9507_v11 = vld [vmem:[#allocation8 + $0x1a4] sm:$0xf]  ;;  %v8315_v42 = vld [vmem:[#allocation8 + $0x1a8] sm:$0xf0] }
 0x1ce   : > { %v1522_v40 = vadd.f32 %v1458_v3, %v11447_v16  ;;  %v11468_v19 = vadd.f32 %v1274_v14, %v1226_v32  ;;  %v1525_v10 = vadd.f32 %v1461_v53, %v11450_v31  ;;  %v11472_v57 = vadd.f32 %v1179_v28, %v1131_v33  ;;  %2322 = vmatmul.bf16.gmra.mxu0 %v11187_v5  ;;  %v9491_v53 = vld [vmem:[#allocation8 + $0x124] sm:$0xf]  ;;  %v8251_v33 = vld [vmem:[#allocation8 + $0x128] sm:$0xf0] }
 0x1cf   : > { %2371 = vmatmul.bf16.gmra.mxu1 %v11461_v61  ;;  %v11478_v39 = vpack.c.bf16 %v1837_v24, %v1833_v55  ;;  %v8174_v55 = vor.u32 %v9471_v48, %v8171_v41  ;;  %v8318_v51 = vor.u32 %v9507_v11, %v8315_v42  ;;  %v1834_v41 = vmul.f32 %v1770_v25, %v11403_v8  ;;  %v9489_v25 = vld [vmem:[#allocation8 + $0x114] sm:$0xf] }
 0x1d0   : > { %v9994_v1 = vpop.eup %9993  ;;  %v1586_v18 = vmul.f32 0.7978846, %v1522_v40  ;;  %v1334_v44 = vmul.f32 %v11468_v19, %v11468_v19  ;;  %v1589_v3 = vmul.f32 0.7978846, %v1525_v10  ;;  %v1337_v32 = vmul.f32 %v11472_v57, %v11472_v57  ;;  %2535 = vmatpush.bf16.msrb.mxu1 %v8182_v35  ;;  %v9505_v42 = vld [vmem:[#allocation8 + $0x194] sm:$0xf] }
 0x1d1   : > { %v1710_v14 = vadd.f32 1.0, %v9994_v1  ;;  %2410 = vmatmul.bf16.gmra.mxu2 %v11478_v39  ;;  %2487 = vmatpush.bf16.msrb.mxu0 %v8110_v47  ;;  %v9996_v28 = vpop.eup %9995  ;;  %v8254_v10 = vor.u32 %v9491_v53, %v8251_v33 }
 0x1d2   : > { %v1398_v22 = vmul.f32 %v1334_v44, %v11468_v19  ;;  %v1401_v54 = vmul.f32 %v1337_v32, %v11472_v57  ;;  %9997 = vtanh.f32 %v1589_v3  ;;  %2632 = vmatpush.bf16.msrb.mxu3 %v8318_v51 }
 0x1d3   : > { %v1228_v40 = vpop.f32.mrf.mxu2  ;;  %v1774_v24 = vmul.f32 0.5, %v1710_v14  ;;  %9999 = vtanh.f32 %v1586_v18  ;;  %v1132_v4 = vpop.f32.mrf.mxu0  ;;  %2583 = vmatpush.bf16.msrb.mxu2 %v8254_v10  ;;  %v1713_v18 = vadd.f32 1.0, %v9996_v28  ;;  %v1856_v10 = vmul.f32 %v1792_v36, %v11153_v46 }
 0x1d4   : > { %v1462_v35 = vmul.f32 0.044715, %v1398_v22  ;;  %v1229_v23 = vadd.f32 %v1228_v40, %v11185_v6  ;;  %v1277_v1 = vpop.f32.mrf.mxu3  ;;  %v1465_v44 = vmul.f32 0.044715, %v1401_v54  ;;  %v1133_v47 = vadd.f32 %v1132_v4, %v11166_v15  ;;  %2536 = vmatpush.bf16.msrb.mxu1 %v8174_v55  ;;  %v8243_v55 = vld [vmem:[#allocation8 + $0x118] sm:$0xf0] }
 0x1d5   : > { %v1181_v48 = vpop.f32.mrf.mxu1  ;;  %v1838_v32 = vmul.f32 %v1774_v24, %v11423_v29  ;;  %v1860_v29 = vmul.f32 %v1796_v45, %v11340_v58  ;;  %v8246_v11 = vor.u32 %v9489_v25, %v8243_v55  ;;  %v1777_v4 = vmul.f32 0.5, %v1713_v18  ;;  %v8307_v58 = vld [vmem:[#allocation8 + $0x198] sm:$0xf0] }
 0x1d6   : > { %v1526_v3 = vadd.f32 %v1462_v35, %v11468_v19  ;;  %v11490_v14 = vadd.f32 %v1277_v1, %v1229_v23  ;;  %v1529_v22 = vadd.f32 %v1465_v44, %v11472_v57  ;;  %v11493_v53 = vadd.f32 %v1181_v48, %v1133_v47 }
 0x1d7   : > { %v11495_v33 = vpack.c.bf16 %v1838_v32, %v1834_v41  ;;  %2584 = vmatpush.bf16.msrb.mxu2 %v8246_v11  ;;  %v8310_v44 = vor.u32 %v9505_v42, %v8307_v58  ;;  %v11507_v46 = vpack.c.bf16 %v1860_v29, %v1856_v10  ;;  %v1841_v55 = vmul.f32 %v1777_v4, %v11428_v17 }
 0x1d8   : > { %v1590_v54 = vmul.f32 0.7978846, %v1526_v3  ;;  %v1338_v8 = vmul.f32 %v11490_v14, %v11490_v14  ;;  %v9998_v40 = vpop.eup %9997  ;;  %v1593_v24 = vmul.f32 0.7978846, %v1529_v22  ;;  %v1341_v28 = vmul.f32 %v11493_v53, %v11493_v53 }
 0x1d9   : > { %2459 = vmatmul.bf16.gmra.mxu3 %v11495_v33  ;;  %v10000_v35 = vpop.eup %9999  ;;  %v1717_v1 = vadd.f32 1.0, %v9998_v40 }
 0x1da   : > { %v1402_v23 = vmul.f32 %v1338_v8, %v11490_v14  ;;  %10001 = vtanh.f32 %v1590_v54  ;;  %v1405_v45 = vmul.f32 %v1341_v28, %v11493_v53  ;;  %v1714_v54 = vadd.f32 1.0, %v10000_v35  ;;  %2633 = vmatpush.bf16.msrb.mxu3 %v8310_v44 }
 0x1db   : > { %v1230_v51 = vpop.f32.mrf.mxu2  ;;  %v1135_v32 = vpop.f32.mrf.mxu0  ;;  %v1781_v36 = vmul.f32 0.5, %v1717_v1  ;;  %10003 = vtanh.f32 %v1593_v24 }
 0x1dc   : > { %v1466_v47 = vmul.f32 0.044715, %v1402_v23  ;;  %v1231_v48 = vadd.f32 %v1230_v51, %v11185_v6  ;;  %v1279_v41 = vpop.f32.mrf.mxu3  ;;  %v1469_v3 = vmul.f32 0.044715, %v1405_v45  ;;  %v1136_v22 = vadd.f32 %v1135_v32, %v11166_v15 }
 0x1dd   : > { %v1184_v18 = vpop.f32.mrf.mxu1  ;;  %v1845_v40 = vmul.f32 %v1781_v36, %v11450_v31  ;;  %v1778_v23 = vmul.f32 0.5, %v1714_v54 }
 0x1de   : > { %v1530_v8 = vadd.f32 %v1466_v47, %v11490_v14  ;;  %v11511_v25 = vadd.f32 %v1279_v41, %v1231_v48  ;;  %v1533_v28 = vadd.f32 %v1469_v3, %v11493_v53  ;;  %v11516_v29 = vadd.f32 %v1184_v18, %v1136_v22  ;;  %2327 = vmatmul.bf16.gmra.mxu0 %v11232_v13 }
 0x1df   : > { %2376 = vmatmul.bf16.gmra.mxu1 %v11507_v46  ;;  %v11522_v42 = vpack.c.bf16 %v1845_v40, %v1841_v55  ;;  %v1842_v22 = vmul.f32 %v1778_v23, %v11447_v16  ;;  %v11539_v55 = vld [vmem:[%s14150_s4] sm:$0x3]  ;;  %v8235_v16 = vld [vmem:[#allocation8 + $0x108] sm:$0xf0] }
 0x1e0   : > { %v10002_v24 = vpop.eup %10001  ;;  %v1594_v10 = vmul.f32 0.7978846, %v1530_v8  ;;  %v1342_v11 = vmul.f32 %v11511_v25, %v11511_v25  ;;  %v1597_v35 = vmul.f32 0.7978846, %v1533_v28  ;;  %v1345_v17 = vmul.f32 %v11516_v29, %v11516_v29 }
 0x1e1   : > { %v1718_v31 = vadd.f32 1.0, %v10002_v24  ;;  %2415 = vmatmul.bf16.gmra.mxu2 %v11522_v42  ;;  %v10004_v4 = vpop.eup %10003 }
 0x1e2   : > { %v1406_v1 = vmul.f32 %v1342_v11, %v11511_v25  ;;  %v1409_v58 = vmul.f32 %v1345_v17, %v11516_v29  ;;  %10005 = vtanh.f32 %v1597_v35  ;;  %v1721_v40 = vadd.f32 1.0, %v10004_v4  ;;  %v9487_v11 = vld [vmem:[#allocation8 + $0x104] sm:$0xf] }
 0x1e3   : > { %v1233_v45 = vpop.f32.mrf.mxu2  ;;  %v1782_v51 = vmul.f32 0.5, %v1718_v31  ;;  %10007 = vtanh.f32 %v1594_v10  ;;  %v1137_v41 = vpop.f32.mrf.mxu0  ;;  %v8238_v17 = vor.u32 %v9487_v11, %v8235_v16  ;;  %v11552_v4 = vperm.slane %v11539_v55, 0 }
 0x1e4   : > { %v1470_v44 = vmul.f32 0.044715, %v1406_v1  ;;  %v1234_v47 = vadd.f32 %v1233_v45, %v11185_v6  ;;  %v1282_v48 = vpop.f32.mrf.mxu3  ;;  %v1473_v32 = vmul.f32 0.044715, %v1409_v58  ;;  %v1138_v36 = vadd.f32 %v1137_v41, %v11166_v15  ;;  %v9503_v58 = vld [vmem:[#allocation8 + $0x184] sm:$0xf] }
 0x1e5   : > { %v1186_v3 = vpop.f32.mrf.mxu1  ;;  %v1846_v18 = vmul.f32 %v1782_v51, %v11468_v19  ;;  %14205 = vst [vmem:[#allocation24_spill] sm:$0xff] %v11552_v4  ;;  %2585 = vmatpush.bf16.msrb.mxu2 %v8238_v17  ;;  %v9582_v15 = vld [vmem:[#allocation13 + $0x1f4] sm:$0xf0] }
 0x1e6   : > { %v1534_v54 = vadd.f32 %v1470_v44, %v11511_v25  ;;  %v11534_v8 = vadd.f32 %v1282_v48, %v1234_v47  ;;  %v1537_v28 = vadd.f32 %v1473_v32, %v11516_v29  ;;  %v11542_v24 = vadd.f32 %v1186_v3, %v1138_v36  ;;  %v8299_v48 = vld [vmem:[#allocation8 + $0x188] sm:$0xf0] }
 0x1e7   : > { %v11544_v10 = vpack.c.bf16 %v1846_v18, %v1842_v22  ;;  %v1785_v47 = vmul.f32 0.5, %v1721_v40  ;;  %v8302_v36 = vor.u32 %v9503_v58, %v8299_v48 }
 0x1e8   : > { %v1598_v35 = vmul.f32 0.7978846, %v1534_v54  ;;  %v1346_v19 = vmul.f32 %v11534_v8, %v11534_v8  ;;  %v10006_v31 = vpop.eup %10005  ;;  %v1601_v23 = vmul.f32 0.7978846, %v1537_v28  ;;  %v1349_v1 = vmul.f32 %v11542_v24, %v11542_v24 }
 0x1e9   : > { %2464 = vmatmul.bf16.gmra.mxu3 %v11544_v10  ;;  %v10008_v45 = vpop.eup %10007  ;;  %v1725_v44 = vadd.f32 1.0, %v10006_v31  ;;  %v1849_v17 = vmul.f32 %v1785_v47, %v11472_v57 }
 0x1ea   : > { %v1410_v51 = vmul.f32 %v1346_v19, %v11534_v8  ;;  %10009 = vtanh.f32 %v1598_v35  ;;  %v1413_v41 = vmul.f32 %v1349_v1, %v11542_v24  ;;  %v1722_v31 = vadd.f32 1.0, %v10008_v45  ;;  %2634 = vmatpush.bf16.msrb.mxu3 %v8302_v36 }
 0x1eb   : > { %v1235_v32 = vpop.f32.mrf.mxu2  ;;  %v2293_v18 = vpop.f32.mrf.mxu0  ;;  %v1789_v54 = vmul.f32 0.5, %v1725_v44  ;;  %10011 = vtanh.f32 %v1601_v23 }
 0x1ec   : > { %v1474_v3 = vmul.f32 0.044715, %v1410_v51  ;;  %v1236_v22 = vadd.f32 %v1235_v32, %v11185_v6  ;;  %v1477_v28 = vmul.f32 0.044715, %v1413_v41  ;;  %v1284_v11 = vpop.f32.mrf.mxu3  ;;  %v2294_v16 = vadd.f32 %v2293_v18, %v11552_v4 }
 0x1ed   : > { %v2342_v19 = vpop.f32.mrf.mxu1  ;;  %v1853_v1 = vmul.f32 %v1789_v54, %v11493_v53  ;;  %v1786_v36 = vmul.f32 0.5, %v1722_v31 }
 0x1ee   : > { %v1538_v40 = vadd.f32 %v1474_v3, %v11534_v8  ;;  %v1285_v35 = vadd.f32 %v1284_v11, %v1236_v22  ;;  %v1541_v58 = vadd.f32 %v1477_v28, %v11542_v24  ;;  %v11562_v51 = vadd.f32 %v2342_v19, %v2294_v16  ;;  %2488 = vmatmul.bf16.vlgmr.msrb.gmra.mxu0 %v10962_v63 }
 0x1ef   : > { %2537 = vmatmul.bf16.vlgmr.msrb.gmra.mxu1 %v10980_v37  ;;  %v11566_v45 = vpack.c.bf16 %v1853_v1, %v1849_v17  ;;  %v1850_v54 = vmul.f32 %v1786_v36, %v11490_v14 }
 0x1f0   : > { %v10010_v23 = vpop.eup %10009  ;;  %v1602_v44 = vmul.f32 0.7978846, %v1538_v40  ;;  %v1350_v48 = vmul.f32 %v1285_v35, %v1285_v35  ;;  %v1605_v41 = vmul.f32 0.7978846, %v1541_v58 }
 0x1f1   : > { %v1726_v32 = vadd.f32 1.0, %v10010_v23  ;;  %2420 = vmatmul.bf16.gmra.mxu2 %v11566_v45  ;;  %v10012_v57 = vpop.eup %10011 }
 0x1f2   : > { %v1414_v3 = vmul.f32 %v1350_v48, %v1285_v35  ;;  %10013 = vtanh.f32 %v1605_v41  ;;  %v1729_v11 = vadd.f32 1.0, %v10012_v57 }
 0x1f3   : > { %v1790_v53 = vmul.f32 0.5, %v1726_v32  ;;  %10015 = vtanh.f32 %v1602_v44  ;;  %v2295_v22 = vpop.f32.mrf.mxu0 }
 0x1f4   : > { %v1478_v47 = vmul.f32 0.044715, %v1414_v3  ;;  %v2296_v63 = vadd.f32 %v2295_v22, %v11552_v4  ;;  %v1793_v58 = vmul.f32 0.5, %v1729_v11 }
 0x1f5   : > { %v2344_v18 = vpop.f32.mrf.mxu1  ;;  %v1854_v37 = vmul.f32 %v1790_v53, %v11511_v25 }
 0x1f6   : > { %v1542_v28 = vadd.f32 %v1478_v47, %v1285_v35  ;;  %v2345_v16 = vadd.f32 %v2344_v18, %v2296_v63  ;;  %v1857_v25 = vmul.f32 %v1793_v58, %v11516_v29 }
 0x1f7   : > { %v11572_v19 = vpack.c.bf16 %v1854_v37, %v1850_v54 }
 0x1f8   : > { %v1606_v31 = vmul.f32 0.7978846, %v1542_v28  ;;  %v10014_v40 = vpop.eup %10013 }
 0x1f9   : > { %2469 = vmatmul.bf16.gmra.mxu3 %v11572_v19  ;;  %v10016_v17 = vpop.eup %10015  ;;  %v1733_v1 = vadd.f32 1.0, %v10014_v40 }
 0x1fa   : > { %10017 = vtanh.f32 %v1606_v31  ;;  %v1730_v41 = vadd.f32 1.0, %v10016_v17 }
 0x1fb   : > { %v2298_v23 = vpop.f32.mrf.mxu0  ;;  %v1797_v44 = vmul.f32 0.5, %v1733_v1 }
 0x1fc   : > { %v2299_v48 = vadd.f32 %v2298_v23, %v11552_v4  ;;  %v1794_v47 = vmul.f32 0.5, %v1730_v41 }
 0x1fd   : > { %v2347_v14 = vpop.f32.mrf.mxu1  ;;  %v1861_v32 = vmul.f32 %v1797_v44, %v11542_v24 }
 0x1fe   : > { %v2348_v36 = vadd.f32 %v2347_v14, %v2299_v48  ;;  %2493 = vmatmul.bf16.gmra.mxu0 %v11006_v21  ;;  %v1858_v29 = vmul.f32 %v1794_v47, %v11534_v8 }
 0x1ff   : > { %2542 = vmatmul.bf16.gmra.mxu1 %v11027_v20  ;;  %v11580_v57 = vpack.c.bf16 %v1861_v32, %v1857_v25 }
 0x200   : > { %v10018_v3 = vpop.eup %10017 }
 0x201   : > { %v1734_v53 = vadd.f32 1.0, %v10018_v3  ;;  %2425 = vmatmul.bf16.gmra.mxu2 %v11580_v57 }
 0x203   : > { %v1798_v22 = vmul.f32 0.5, %v1734_v53  ;;  %v2300_v63 = vpop.f32.mrf.mxu0 }
 0x204   : > { %v2301_v18 = vadd.f32 %v2300_v63, %v11552_v4 }
 0x205   : > { %v2349_v54 = vpop.f32.mrf.mxu1  ;;  %v1862_v24 = vmul.f32 %v1798_v22, %v1285_v35 }
 0x206   : > { %v2350_v37 = vadd.f32 %v2349_v54, %v2301_v18 }
 0x207   : > { %v11585_v28 = vpack.c.bf16 %v1862_v24, %v1858_v29 }
 0x209   : > { %2474 = vmatmul.bf16.gmra.mxu3 %v11585_v28 }
 0x20b   : > { %v2303_v21 = vpop.f32.mrf.mxu0 }
 0x20c   : > { %v2304_v20 = vadd.f32 %v2303_v21, %v11552_v4 }
 0x20d   : > { %v2352_v11 = vpop.f32.mrf.mxu1 }
 0x20e   : > { %v2353_v31 = vadd.f32 %v2352_v11, %v2304_v20  ;;  %2498 = vmatmul.bf16.gmra.mxu0 %v11046_v50 }
 0x20f   : > { %2547 = vmatmul.bf16.gmra.mxu1 %v11065_v43 }
 0x211   : > { %2586 = vmatmul.bf16.vlgmr.msrb.gmra.mxu2 %v11274_v30 }
 0x213   : > { %v2305_v40 = vpop.f32.mrf.mxu0 }
 0x214   : > { %v2306_v8 = vadd.f32 %v2305_v40, %v11552_v4  ;;  %v2391_v17 = vpop.f32.mrf.mxu2 }
 0x215   : > { %v2354_v35 = vpop.f32.mrf.mxu1  ;;  %v2392_v1 = vadd.f32 %v2391_v17, %v11562_v51 }
 0x216   : > { %v2355_v58 = vadd.f32 %v2354_v35, %v2306_v8 }
 0x219   : > { %2635 = vmatmul.bf16.vlgmr.msrb.gmra.mxu3 %v11293_v56 }
 0x21b   : > { %v2308_v44 = vpop.f32.mrf.mxu0 }
 0x21c   : > { %v2440_v23 = vpop.f32.mrf.mxu3  ;;  %v2309_v50 = vadd.f32 %v2308_v44, %v11552_v4  ;;  %v2393_v43 = vpop.f32.mrf.mxu2 }
 0x21d   : > { %v11595_v48 = vadd.f32 %v2440_v23, %v2392_v1  ;;  %v2357_v14 = vpop.f32.mrf.mxu1  ;;  %v2394_v41 = vadd.f32 %v2393_v43, %v2345_v16 }
 0x21e   : > { %v2358_v30 = vadd.f32 %v2357_v14, %v2309_v50  ;;  %2503 = vmatmul.bf16.gmra.mxu0 %v11081_v49 }
 0x21f   : > { %2552 = vmatmul.bf16.gmra.mxu1 %v11098_v7 }
 0x221   : > { %2591 = vmatmul.bf16.gmra.mxu2 %v11331_v9 }
 0x223   : > { %v2310_v25 = vpop.f32.mrf.mxu0 }
 0x224   : > { %v2442_v51 = vpop.f32.mrf.mxu3  ;;  %v2311_v56 = vadd.f32 %v2310_v25, %v11552_v4  ;;  %v2396_v53 = vpop.f32.mrf.mxu2 }
 0x225   : > { %v11601_v32 = vadd.f32 %v2442_v51, %v2394_v41  ;;  %v2359_v3 = vpop.f32.mrf.mxu1  ;;  %v2397_v47 = vadd.f32 %v2396_v53, %v2348_v36 }
 0x226   : > { %v2360_v22 = vadd.f32 %v2359_v3, %v2311_v56 }
 0x229   : > { %2640 = vmatmul.bf16.gmra.mxu3 %v11356_v12 }
 0x22b   : > { %v2313_v63 = vpop.f32.mrf.mxu0 }
 0x22c   : > { %v2445_v16 = vpop.f32.mrf.mxu3  ;;  %v2314_v49 = vadd.f32 %v2313_v63, %v11552_v4  ;;  %v2398_v9 = vpop.f32.mrf.mxu2 }
 0x22d   : > { %v11605_v18 = vadd.f32 %v2445_v16, %v2397_v47  ;;  %v2362_v7 = vpop.f32.mrf.mxu1  ;;  %v2399_v54 = vadd.f32 %v2398_v9, %v2350_v37 }
 0x22e   : > { %v2363_v29 = vadd.f32 %v2362_v7, %v2314_v49  ;;  %2508 = vmatmul.bf16.gmra.mxu0 %v11114_v52 }
 0x22f   : > { %2557 = vmatmul.bf16.gmra.mxu1 %v11364_v34 }
 0x231   : > { %2596 = vmatmul.bf16.gmra.mxu2 %v11389_v26 }
 0x233   : > { %v11611_v24 = vpop.f32.mrf.mxu0 }
 0x234   : > { %v2447_v36 = vpop.f32.mrf.mxu3  ;;  %v2401_v20 = vpop.f32.mrf.mxu2 }
 0x235   : > { %v11613_v12 = vadd.f32 %v2447_v36, %v2399_v54  ;;  %v11615_v21 = vpop.f32.mrf.mxu1  ;;  %v2402_v11 = vadd.f32 %v2401_v20, %v2353_v31 }
 0x239   : > { %2645 = vmatmul.bf16.gmra.mxu3 %v11408_v62 }
 0x23b   : > { %v2318_v37 = vpop.f32.mrf.mxu0 }
 0x23c   : > { %v2450_v40 = vpop.f32.mrf.mxu3  ;;  %v2319_v52 = vadd.f32 %v2318_v37, %v11552_v4  ;;  %v2403_v35 = vpop.f32.mrf.mxu2 }
 0x23d   : > { %v11618_v8 = vadd.f32 %v2450_v40, %v2402_v11  ;;  %v2367_v34 = vpop.f32.mrf.mxu1  ;;  %v2404_v26 = vadd.f32 %v2403_v35, %v2355_v58 }
 0x23e   : > { %v2368_v17 = vadd.f32 %v2367_v34, %v2319_v52  ;;  %2513 = vmatmul.bf16.gmra.mxu0 %v11146_v27 }
 0x23f   : > { %2562 = vmatmul.bf16.gmra.mxu1 %v11412_v2 }
 0x241   : > { %2601 = vmatmul.bf16.gmra.mxu2 %v11434_v38 }
 0x243   : > { %v11624_v31 = vpop.f32.mrf.mxu0 }
 0x244   : > { %v2452_v1 = vpop.f32.mrf.mxu3  ;;  %v2406_v44 = vpop.f32.mrf.mxu2 }
 0x245   : > { %v11626_v62 = vadd.f32 %v2452_v1, %v2404_v26  ;;  %v11628_v23 = vpop.f32.mrf.mxu1  ;;  %v2407_v50 = vadd.f32 %v2406_v44, %v2358_v30 }
 0x249   : > { %2650 = vmatmul.bf16.gmra.mxu3 %v11452_v60 }
 0x24b   : > { %v2323_v58 = vpop.f32.mrf.mxu0 }
 0x24c   : > { %v2455_v14 = vpop.f32.mrf.mxu3  ;;  %v2324_v27 = vadd.f32 %v2323_v58, %v11552_v4  ;;  %v2408_v41 = vpop.f32.mrf.mxu2  ;;  %v11680_v58 = vperm.slane %v11539_v55, 1 }
 0x24d   : > { %v11631_v43 = vadd.f32 %v2455_v14, %v2407_v50  ;;  %v2372_v2 = vpop.f32.mrf.mxu1  ;;  %v2409_v38 = vadd.f32 %v2408_v41, %v2360_v22 }
 0x24e   : > { %v2373_v51 = vadd.f32 %v2372_v2, %v2324_v27  ;;  %2518 = vmatmul.bf16.gmra.mxu0 %v11187_v5  ;;  %14206 = vst [vmem:[#allocation25_spill] sm:$0xff] %v11680_v58 }
 0x24f   : > { %2567 = vmatmul.bf16.gmra.mxu1 %v11461_v61 }
 0x251   : > { %2606 = vmatmul.bf16.gmra.mxu2 %v11478_v39 }
 0x253   : > { %v11637_v30 = vpop.f32.mrf.mxu0 }
 0x254   : > { %v2457_v25 = vpop.f32.mrf.mxu3  ;;  %v2411_v3 = vpop.f32.mrf.mxu2 }
 0x255   : > { %v11639_v60 = vadd.f32 %v2457_v25, %v2409_v38  ;;  %v11641_v56 = vpop.f32.mrf.mxu1  ;;  %v2412_v53 = vadd.f32 %v2411_v3, %v2363_v29  ;;  %v10214_v25 = vld [vmem:[%s10774_s13] sm:$0xff] }
 0x256   : > { %v11689_v3 = vadd.f32 %v10214_v25, %v11595_v48  ;;  %v8603_v48 = vld [vmem:[#allocation13 + $0x1f0] sm:$0xf0] }
 0x259   : > { %2655 = vmatmul.bf16.gmra.mxu3 %v11495_v33 }
 0x25b   : > { %v2328_v22 = vpop.f32.mrf.mxu0 }
 0x25c   : > { %v2460_v47 = vpop.f32.mrf.mxu3  ;;  %v2329_v5 = vadd.f32 %v2328_v22, %v11552_v4  ;;  %v11647_v61 = vpop.f32.mrf.mxu2 }
 0x25d   : > { %v11644_v16 = vadd.f32 %v2460_v47, %v2412_v53  ;;  %v2377_v39 = vpop.f32.mrf.mxu1 }
 0x25e   : > { %v2378_v63 = vadd.f32 %v2377_v39, %v2329_v5  ;;  %2523 = vmatmul.bf16.gmra.mxu0 %v11232_v13  ;;  %v10215_v39 = vld [vmem:[%s10774_s13 + $0x8] sm:$0xff] }
 0x25f   : > { %2572 = vmatmul.bf16.gmra.mxu1 %v11507_v46 }
 0x261   : > { %2611 = vmatmul.bf16.gmra.mxu2 %v11522_v42 }
 0x263   : > { %v11655_v9 = vpop.f32.mrf.mxu0 }
 0x264   : > { %v11652_v49 = vpop.f32.mrf.mxu3  ;;  %v2416_v7 = vpop.f32.mrf.mxu2 }
 0x265   : > { %v2417_v33 = vadd.f32 %v2416_v7, %v2368_v17  ;;  %v11661_v20 = vpop.f32.mrf.mxu1  ;;  %v9547_v7 = vld [vmem:[#allocation13 + $0xe4] sm:$0xf] }
 0x269   : > { %2660 = vmatmul.bf16.gmra.mxu3 %v11544_v10 }
 0x26b   : > { %v2489_v13 = vpop.f32.mrf.mxu0 }
 0x26c   : > { %v2465_v54 = vpop.f32.mrf.mxu3  ;;  %v11659_v36 = vpop.f32.mrf.mxu2  ;;  %v2490_v2 = vadd.f32 %v2489_v13, %v11680_v58  ;;  %v2779_v13 = vmul.f32 %v11689_v3, %v11689_v3 }
 0x26d   : > { %v11657_v29 = vadd.f32 %v2465_v54, %v2417_v33  ;;  %v2538_v40 = vpop.f32.mrf.mxu1  ;;  %v8475_v33 = vld [vmem:[#allocation13 + $0xf0] sm:$0xf0]  ;;  %v9579_v54 = vld [vmem:[#allocation13 + $0x1e4] sm:$0xf] }
 0x271   : > { %2616 = vmatmul.bf16.gmra.mxu2 %v11566_v45 }
 0x273   : > { %v2491_v34 = vpop.f32.mrf.mxu0 }
 0x274   : > { %v11664_v46 = vpop.f32.mrf.mxu3  ;;  %v2421_v42 = vpop.f32.mrf.mxu2  ;;  %v2492_v55 = vadd.f32 %v2491_v34, %v11680_v58  ;;  %v8606_v34 = vor.u32 %v9579_v54, %v8603_v48  ;;  %v9581_v54 = vld [vmem:[#allocation13 + $0x1ec] sm:$0xf0] }
 0x275   : > { %v2422_v11 = vadd.f32 %v2421_v42, %v2373_v51  ;;  %v2540_v35 = vpop.f32.mrf.mxu1  ;;  %v2539_v51 = vadd.f32 %v2538_v40, %v2490_v2  ;;  %v8478_v42 = vor.u32 %v9547_v7, %v8475_v33  ;;  %v10216_v2 = vld [vmem:[%s10774_s13 + $0x10] sm:$0xff]  ;;  %v8601_v7 = vld [vmem:[#allocation13 + $0x1e0] sm:$0xf] }
 0x276   : > { %3777 = vmatpush.bf16.msra.mxu3 %v8606_v34  ;;  %v8602_v48 = vor.u32 %v9581_v54, %v8601_v7 }
 0x277   : > { %3728 = vmatpush.bf16.msra.mxu2 %v8478_v42 }
 0x278   : > { %3679 = vmatpush.bf16.msra.mxu1 %v8602_v48  ;;  %v10220_v48 = vld [vmem:[%s10774_s13 + $0x30] sm:$0xff] }
 0x279   : > { %2665 = vmatmul.bf16.gmra.mxu3 %v11572_v19 }
 0x27b   : > { %v2494_v1 = vpop.f32.mrf.mxu0 }
 0x27c   : > { %v2470_v10 = vpop.f32.mrf.mxu3  ;;  %v11669_v52 = vpop.f32.mrf.mxu2 }
 0x27d   : > { %v11667_v37 = vadd.f32 %v2470_v10, %v2422_v11  ;;  %v2543_v14 = vpop.f32.mrf.mxu1  ;;  %v2541_v11 = vadd.f32 %v2540_v35, %v2492_v55  ;;  %v10217_v55 = vld [vmem:[%s10774_s13 + $0x18] sm:$0xff] }
 0x281   : > { %2621 = vmatmul.bf16.gmra.mxu2 %v11580_v57 }
 0x283   : > { %v2496_v57 = vpop.f32.mrf.mxu0 }
 0x284   : > { %v11672_v26 = vpop.f32.mrf.mxu3  ;;  %v2426_v45 = vpop.f32.mrf.mxu2 }
 0x285   : > { %v2427_v17 = vadd.f32 %v2426_v45, %v2378_v63  ;;  %v11685_v38 = vpop.f32.mrf.mxu1 }
 0x289   : > { %2670 = vmatmul.bf16.gmra.mxu3 %v11585_v28 }
 0x28b   : > { %v11691_v53 = vpop.f32.mrf.mxu0 }
 0x28c   : > { %v2475_v44 = vpop.f32.mrf.mxu3  ;;  %v11677_v50 = vpop.f32.mrf.mxu2 }
 0x28d   : > { %v11675_v19 = vadd.f32 %v2475_v44, %v2427_v17  ;;  %v11703_v45 = vpop.f32.mrf.mxu1 }
 0x294   : > { %v11682_v27 = vpop.f32.mrf.mxu3  ;;  %v2587_v41 = vpop.f32.mrf.mxu2 }
 0x295   : > { %v2588_v28 = vadd.f32 %v2587_v41, %v2539_v51  ;;  %v11707_v41 = vadd.f32 %v10216_v2, %v11601_v32  ;;  %v2495_v51 = vadd.f32 %v2494_v1, %v11680_v58 }
 0x297   : > { %v2781_v33 = vmul.f32 %v11707_v41, %v11707_v41 }
 0x29c   : > { %v2636_v47 = vpop.f32.mrf.mxu3  ;;  %v2589_v5 = vpop.f32.mrf.mxu2 }
 0x29d   : > { %v2637_v22 = vadd.f32 %v2636_v47, %v2588_v28  ;;  %v2590_v17 = vadd.f32 %v2589_v5, %v2541_v11  ;;  %v11710_v47 = vpop.f32.mrf.mxu0  ;;  %v8473_v5 = vld [vmem:[#allocation13 + $0xe0] sm:$0xf] }
 0x29f   : > { %v11695_v63 = vadd.f32 %v10215_v39, %v2637_v22  ;;  %v9549_v39 = vld [vmem:[#allocation13 + $0xec] sm:$0xf0] }
 0x2a0   : > { %v8474_v32 = vor.u32 %v9549_v39, %v8473_v5  ;;  %v9575_v5 = vld [vmem:[#allocation13 + $0x1c4] sm:$0xf] }
 0x2a1   : > { %v2708_v40 = vadd.f32 %v11695_v63, %v11689_v3  ;;  %v2780_v10 = vmul.f32 %v11695_v63, %v11695_v63 }
 0x2a2   : > { %3630 = vmatpush.bf16.msra.mxu0 %v8474_v32 }
 0x2a3   : > { %2709 = vadd.xlane.f32.xlu0 %v2708_v40  ;;  %v2811_v44 = vadd.f32 %v2780_v10, %v2779_v13  ;;  %v2544_v13 = vadd.f32 %v2543_v14, %v2495_v51  ;;  %v10218_v10 = vld [vmem:[%s10774_s13 + $0x20] sm:$0xff]  ;;  %v10219_v51 = vld [vmem:[%s10774_s13 + $0x28] sm:$0xff] }
 0x2a4   : > { %v2638_v35 = vpop.f32.mrf.mxu3  ;;  %v2592_v25 = vpop.f32.mrf.mxu2  ;;  %v11723_v34 = vadd.f32 %v10218_v10, %v11605_v18 }
 0x2a5   : > { %v2639_v28 = vadd.f32 %v2638_v35, %v2590_v17  ;;  %2812 = vadd.xlane.f32.xlu1 %v2811_v44  ;;  %v2593_v11 = vadd.f32 %v2592_v25, %v2544_v13  ;;  %v11725_v17 = vpop.f32.mrf.mxu1  ;;  %v2497_v44 = vadd.f32 %v2496_v57, %v11680_v58  ;;  %v8459_v25 = vld [vmem:[#allocation13 + $0xd0] sm:$0xf0]  ;;  %v11731_v39 = vpop.f32.mrf.mxu0 }
 0x2a6   : > { %v2783_v18 = vmul.f32 %v11723_v34, %v11723_v34 }
 0x2a7   : > { %v11713_v22 = vadd.f32 %v10217_v55, %v2639_v28  ;;  %v9543_v55 = vld [vmem:[#allocation13 + $0xc4] sm:$0xf]  ;;  %v2546_v32 = vadd.f32 %v11685_v38, %v2497_v44  ;;  %v2500_v38 = vadd.f32 %v11691_v53, %v11680_v58 }
 0x2a8   : > { %v8462_v7 = vor.u32 %v9543_v55, %v8459_v25  ;;  %v8457_v55 = vld [vmem:[#allocation13 + $0xc0] sm:$0xf] }
 0x2a9   : > { %v2711_v1 = vadd.f32 %v11713_v22, %v11707_v41  ;;  %v2782_v42 = vmul.f32 %v11713_v22, %v11713_v22  ;;  %v8585_v25 = vld [vmem:[#allocation13 + $0x1c0] sm:$0xf] }
 0x2aa   : > { %3729 = vmatpush.bf16.msra.mxu2 %v8462_v7  ;;  %v2549_v7 = vadd.f32 %v11703_v45, %v2500_v38  ;;  %v2502_v45 = vadd.f32 %v11710_v47, %v11680_v58 }
 0x2ab   : > { %2712 = vadd.xlane.f32.xlu0 %v2711_v1  ;;  %v2814_v40 = vadd.f32 %v2782_v42, %v2781_v33  ;;  %v8587_v33 = vld [vmem:[#allocation13 + $0x1d0] sm:$0xf0] }
 0x2ac   : > { %v2641_v14 = vpop.f32.mrf.mxu3  ;;  %v2594_v35 = vpop.f32.mrf.mxu2  ;;  %v8590_v13 = vor.u32 %v9575_v5, %v8587_v33 }
 0x2ad   : > { %v2642_v2 = vadd.f32 %v2641_v14, %v2593_v11  ;;  %2815 = vadd.xlane.f32.xlu1 %v2814_v40  ;;  %v2595_v1 = vadd.f32 %v2594_v35, %v2546_v32  ;;  %v11742_v11 = vadd.f32 %v10220_v48, %v11613_v12  ;;  %v2553_v44 = vpop.f32.mrf.mxu1  ;;  %v9545_v35 = vld [vmem:[#allocation13 + $0xcc] sm:$0xf0] }
 0x2ae   : > { %3778 = vmatpush.bf16.msra.mxu3 %v8590_v13  ;;  %v8458_v12 = vor.u32 %v9545_v35, %v8457_v55  ;;  %v9539_v55 = vld [vmem:[#allocation13 + $0xa4] sm:$0xf] }
 0x2af   : > { %v11729_v28 = vadd.f32 %v10219_v51, %v2642_v2  ;;  %v10221_v2 = vld [vmem:[%s10774_s13 + $0x38] sm:$0xff]  ;;  %v2785_v5 = vmul.f32 %v11742_v11, %v11742_v11  ;;  %v9571_v35 = vld [vmem:[#allocation13 + $0x1a4] sm:$0xf] }
 0x2b0   : > { %3631 = vmatpush.bf16.msra.mxu0 %v8458_v12  ;;  %v8571_v12 = vld [vmem:[#allocation13 + $0x1b0] sm:$0xf0] }
 0x2b1   : > { %v2714_v57 = vadd.f32 %v11729_v28, %v11723_v34  ;;  %v2784_v54 = vmul.f32 %v11729_v28, %v11729_v28 }
 0x2b3   : > { %2715 = vadd.xlane.f32.xlu2 %v2714_v57  ;;  %v2817_v42 = vadd.f32 %v2784_v54, %v2783_v18  ;;  %v9577_v18 = vld [vmem:[#allocation13 + $0x1cc] sm:$0xf0]  ;;  %v2506_v57 = vpop.f32.mrf.mxu0 }
 0x2b4   : > { %v2643_v40 = vpop.f32.mrf.mxu3  ;;  %v2597_v14 = vpop.f32.mrf.mxu2  ;;  %v8586_v32 = vor.u32 %v9577_v18, %v8585_v25  ;;  %v2551_v18 = vadd.f32 %v11725_v17, %v2502_v45  ;;  %v2505_v17 = vadd.f32 %v11731_v39, %v11680_v58 }
 0x2b5   : > { %v2644_v10 = vadd.f32 %v2643_v40, %v2595_v1  ;;  %2818 = vadd.xlane.f32.xlu0 %v2817_v42  ;;  %v2598_v54 = vadd.f32 %v2597_v14, %v2549_v7  ;;  %v10222_v1 = vld [vmem:[%s10774_s13 + $0x40] sm:$0xff]  ;;  %v8443_v14 = vld [vmem:[#allocation13 + $0xb0] sm:$0xf0]  ;;  %v2555_v25 = vpop.f32.mrf.mxu1 }
 0x2b6   : > { %3680 = vmatpush.bf16.msra.mxu1 %v8586_v32  ;;  %v11758_v42 = vadd.f32 %v10222_v1, %v11618_v8  ;;  %v8446_v8 = vor.u32 %v9539_v55, %v8443_v14  ;;  %v8441_v14 = vld [vmem:[#allocation13 + $0xa0] sm:$0xf] }
 0x2b7   : > { %v11747_v51 = vadd.f32 %v10221_v2, %v2644_v10  ;;  %v10223_v10 = vld [vmem:[%s10774_s13 + $0x48] sm:$0xff] }
 0x2b8   : > { %3730 = vmatpush.bf16.msra.mxu2 %v8446_v8  ;;  %v9573_v8 = vld [vmem:[#allocation13 + $0x1ac] sm:$0xf0] }
 0x2b9   : > { %v2717_v53 = vadd.f32 %v11747_v51, %v11742_v11  ;;  %v2786_v33 = vmul.f32 %v11747_v51, %v11747_v51 }
 0x2bb   : > { %2718 = vadd.xlane.f32.xlu2 %v2717_v53  ;;  %v2820_v13 = vadd.f32 %v2786_v33, %v2785_v5  ;;  %v2787_v5 = vmul.f32 %v11758_v42, %v11758_v42  ;;  %v8574_v53 = vor.u32 %v9571_v35, %v8571_v12  ;;  %v2509_v1 = vpop.f32.mrf.mxu0  ;;  %v8569_v35 = vld [vmem:[#allocation13 + $0x1a0] sm:$0xf]  ;;  %v2554_v12 = vadd.f32 %v2553_v44, %v2505_v17 }
 0x2bc   : > { %v2646_v48 = vpop.f32.mrf.mxu3  ;;  %v2599_v38 = vpop.f32.mrf.mxu2  ;;  %v2507_v44 = vadd.f32 %v2506_v57, %v11680_v58 }
 0x2bd   : > { %v2647_v40 = vadd.f32 %v2646_v48, %v2598_v54  ;;  %2821 = vadd.xlane.f32.xlu1 %v2820_v13  ;;  %v2600_v33 = vadd.f32 %v2599_v38, %v2551_v18  ;;  %3779 = vmatpush.bf16.msra.mxu3 %v8574_v53  ;;  %v10224_v54 = vld [vmem:[%s10774_s13 + $0x50] sm:$0xff]  ;;  %v9541_v38 = vld [vmem:[#allocation13 + $0xac] sm:$0xf0] }
 0x2be   : > { %v11774_v13 = vadd.f32 %v10224_v54, %v11626_v62  ;;  %v8442_v62 = vor.u32 %v9541_v38, %v8441_v14  ;;  %v10227_v14 = vld [vmem:[%s10774_s13 + $0x68] sm:$0xff] }
 0x2bf   : > { %v11763_v2 = vadd.f32 %v10223_v10, %v2647_v40  ;;  %v10225_v10 = vld [vmem:[%s10774_s13 + $0x58] sm:$0xff] }
 0x2c0   : > { %3632 = vmatpush.bf16.msra.mxu0 %v8442_v62  ;;  %v9567_v62 = vld [vmem:[#allocation13 + $0x184] sm:$0xf] }
 0x2c1   : > { %v2720_v47 = vadd.f32 %v11763_v2, %v11758_v42  ;;  %v2788_v7 = vmul.f32 %v11763_v2, %v11763_v2 }
 0x2c3   : > { %2721 = vadd.xlane.f32.xlu2 %v2720_v47  ;;  %v2823_v32 = vadd.f32 %v2788_v7, %v2787_v5  ;;  %v2789_v5 = vmul.f32 %v11774_v13, %v11774_v13  ;;  %v8570_v47 = vor.u32 %v9573_v8, %v8569_v35  ;;  %v2558_v7 = vpop.f32.mrf.mxu1  ;;  %v9535_v35 = vld [vmem:[#allocation13 + $0x84] sm:$0xf] }
 0x2c4   : > { %v2648_v48 = vpop.f32.mrf.mxu3  ;;  %v2602_v40 = vpop.f32.mrf.mxu2 }
 0x2c5   : > { %v2649_v45 = vadd.f32 %v2648_v48, %v2600_v33  ;;  %2824 = vadd.xlane.f32.xlu1 %v2823_v32  ;;  %v2603_v53 = vadd.f32 %v2602_v40, %v2554_v12  ;;  %3681 = vmatpush.bf16.msra.mxu1 %v8570_v47  ;;  %v10226_v32 = vld [vmem:[%s10774_s13 + $0x60] sm:$0xff]  ;;  %v8427_v40 = vld [vmem:[#allocation13 + $0x90] sm:$0xf0]  ;;  %v2556_v12 = vadd.f32 %v2555_v25, %v2507_v44 }
 0x2c6   : > { %v11789_v54 = vadd.f32 %v10226_v32, %v11631_v43  ;;  %v8430_v8 = vor.u32 %v9535_v35, %v8427_v40  ;;  %v8555_v43 = vld [vmem:[#allocation13 + $0x190] sm:$0xf0]  ;;  %v2510_v25 = vadd.f32 %v2509_v1, %v11680_v58 }
 0x2c7   : > { %v11779_v55 = vadd.f32 %v10225_v10, %v2649_v45  ;;  %v2511_v10 = vpop.f32.mrf.mxu0  ;;  %v10229_v35 = vld [vmem:[%s10774_s13 + $0x78] sm:$0xff] }
 0x2c8   : > { %3731 = vmatpush.bf16.msra.mxu2 %v8430_v8  ;;  %v9537_v8 = vld [vmem:[#allocation13 + $0x8c] sm:$0xf0]  ;;  %v2559_v1 = vadd.f32 %v2558_v7, %v2510_v25  ;;  %v2512_v25 = vadd.f32 %v2511_v10, %v11680_v58  ;;  %v8539_v10 = vld [vmem:[#allocation13 + $0x170] sm:$0xf0] }
 0x2c9   : > { %v2723_v18 = vadd.f32 %v11779_v55, %v11774_v13  ;;  %v2790_v39 = vmul.f32 %v11779_v55, %v11779_v55 }
 0x2cb   : > { %2724 = vadd.xlane.f32.xlu0 %v2723_v18  ;;  %v2826_v33 = vadd.f32 %v2790_v39, %v2789_v5  ;;  %v2791_v5 = vmul.f32 %v11789_v54, %v11789_v54  ;;  %v8558_v39 = vor.u32 %v9567_v62, %v8555_v43  ;;  %v8425_v62 = vld [vmem:[#allocation13 + $0x80] sm:$0xf] }
 0x2cc   : > { %v2651_v48 = vpop.f32.mrf.mxu3  ;;  %v2604_v45 = vpop.f32.mrf.mxu2 }
 0x2cd   : > { %v2652_v17 = vadd.f32 %v2651_v48, %v2603_v53  ;;  %2827 = vadd.xlane.f32.xlu2 %v2826_v33  ;;  %v2605_v47 = vadd.f32 %v2604_v45, %v2556_v12  ;;  %3780 = vmatpush.bf16.msra.mxu3 %v8558_v39  ;;  %v10228_v33 = vld [vmem:[%s10774_s13 + $0x70] sm:$0xff]  ;;  %v2560_v48 = vpop.f32.mrf.mxu1  ;;  %v8553_v45 = vld [vmem:[#allocation13 + $0x180] sm:$0xf]  ;;  %v8426_v12 = vor.u32 %v9537_v8, %v8425_v62 }
 0x2ce   : > { %v11803_v32 = vadd.f32 %v10228_v33, %v11639_v60 }
 0x2cf   : > { %v11793_v38 = vadd.f32 %v10227_v14, %v2652_v17  ;;  %v2514_v43 = vpop.f32.mrf.mxu0  ;;  %3633 = vmatpush.bf16.msra.mxu0 %v8426_v12  ;;  %v10231_v12 = vld [vmem:[%s10774_s13 + $0x88] sm:$0xff] }
 0x2d0   : > { %v2793_v60 = vmul.f32 %v11803_v32, %v11803_v32 }
 0x2d1   : > { %v2726_v57 = vadd.f32 %v11793_v38, %v11789_v54  ;;  %v2792_v18 = vmul.f32 %v11793_v38, %v11793_v38 }
 0x2d3   : > { %2727 = vadd.xlane.f32.xlu0 %v2726_v57  ;;  %v2829_v53 = vadd.f32 %v2792_v18, %v2791_v5  ;;  %v2316_v5 = vadd.f32 %v11611_v24, %v11552_v4  ;;  %v9569_v57 = vld [vmem:[#allocation13 + $0x18c] sm:$0xf0] }
 0x2d4   : > { %v2653_v17 = vpop.f32.mrf.mxu3  ;;  %v2607_v14 = vpop.f32.mrf.mxu2 }
 0x2d5   : > { %v2654_v44 = vadd.f32 %v2653_v17, %v2605_v47  ;;  %2830 = vadd.xlane.f32.xlu2 %v2829_v53  ;;  %v8554_v47 = vor.u32 %v9569_v57, %v8553_v45  ;;  %v2608_v53 = vadd.f32 %v2607_v14, %v2559_v1  ;;  %v2365_v24 = vadd.f32 %v11615_v21, %v2316_v5  ;;  %v10230_v17 = vld [vmem:[%s10774_s13 + $0x80] sm:$0xff]  ;;  %v2563_v45 = vpop.f32.mrf.mxu1  ;;  %v8411_v57 = vld [vmem:[#allocation13 + $0x70] sm:$0xf0]  ;;  %v9563_v21 = vld [vmem:[#allocation13 + $0x164] sm:$0xf] }
 0x2d7   : > { %v11807_v40 = vadd.f32 %v10229_v35, %v2654_v44  ;;  %3682 = vmatpush.bf16.msra.mxu1 %v8554_v47  ;;  %v11820_v44 = vadd.f32 %v10230_v17, %v11644_v16  ;;  %v2414_v8 = vadd.f32 %v11647_v61, %v2365_v24  ;;  %v8542_v47 = vor.u32 %v9563_v21, %v8539_v10  ;;  %v8537_v21 = vld [vmem:[#allocation13 + $0x160] sm:$0xf]  ;;  %v9565_v10 = vld [vmem:[#allocation13 + $0x16c] sm:$0xf0] }
 0x2d9   : > { %v2729_v18 = vadd.f32 %v11807_v40, %v11803_v32  ;;  %v2794_v39 = vmul.f32 %v11807_v40, %v11807_v40  ;;  %v2463_v5 = vadd.f32 %v11652_v49, %v2414_v8  ;;  %v2795_v16 = vmul.f32 %v11820_v44, %v11820_v44  ;;  %3781 = vmatpush.bf16.msra.mxu3 %v8542_v47  ;;  %v10232_v49 = vld [vmem:[%s10774_s13 + $0x90] sm:$0xff]  ;;  %v10233_v8 = vld [vmem:[%s10774_s13 + $0x98] sm:$0xff] }
 0x2db   : > { %2730 = vadd.xlane.f32.xlu1 %v2729_v18  ;;  %v2832_v33 = vadd.f32 %v2794_v39, %v2793_v60  ;;  %v9531_v60 = vld [vmem:[#allocation13 + $0x64] sm:$0xf]  ;;  %v2561_v18 = vadd.f32 %v2560_v48, %v2512_v25  ;;  %v11835_v17 = vadd.f32 %v10232_v49, %v2463_v5  ;;  %v2515_v48 = vadd.f32 %v2514_v43, %v11680_v58 }
 0x2dc   : > { %v2656_v7 = vpop.f32.mrf.mxu3  ;;  %v2609_v62 = vpop.f32.mrf.mxu2  ;;  %v8414_v1 = vor.u32 %v9531_v60, %v8411_v57  ;;  %v8409_v60 = vld [vmem:[#allocation13 + $0x60] sm:$0xf]  ;;  %v9533_v57 = vld [vmem:[#allocation13 + $0x6c] sm:$0xf0] }
 0x2dd   : > { %v2657_v35 = vadd.f32 %v2656_v7, %v2608_v53  ;;  %2833 = vadd.xlane.f32.xlu0 %v2832_v33  ;;  %v2516_v53 = vpop.f32.mrf.mxu0  ;;  %v2610_v33 = vadd.f32 %v2609_v62, %v2561_v18  ;;  %v2321_v62 = vadd.f32 %v11624_v31, %v11552_v4  ;;  %v2797_v5 = vmul.f32 %v11835_v17, %v11835_v17 }
 0x2de   : > { %3732 = vmatpush.bf16.msra.mxu2 %v8414_v1  ;;  %v8410_v1 = vor.u32 %v9533_v57, %v8409_v60  ;;  %v2564_v43 = vadd.f32 %v2563_v45, %v2515_v48  ;;  %v2517_v48 = vadd.f32 %v2516_v53, %v11680_v58  ;;  %v10235_v57 = vld [vmem:[%s10774_s13 + $0xa8] sm:$0xff] }
 0x2df   : > { %v11825_v14 = vadd.f32 %v10231_v12, %v2657_v35  ;;  %v2370_v31 = vadd.f32 %v11628_v23, %v2321_v62 }
 0x2e0   : > { %3634 = vmatpush.bf16.msra.mxu0 %v8410_v1  ;;  %v9559_v1 = vld [vmem:[#allocation13 + $0x144] sm:$0xf] }
 0x2e1   : > { %v2732_v39 = vadd.f32 %v11825_v14, %v11820_v44  ;;  %v2796_v61 = vmul.f32 %v11825_v14, %v11825_v14  ;;  %v2419_v60 = vadd.f32 %v11659_v36, %v2370_v31 }
 0x2e3   : > { %2733 = vadd.xlane.f32.xlu1 %v2732_v39  ;;  %v2835_v24 = vadd.f32 %v2796_v61, %v2795_v16  ;;  %v2565_v16 = vpop.f32.mrf.mxu1  ;;  %v8538_v61 = vor.u32 %v9565_v10, %v8537_v21  ;;  %v9527_v21 = vld [vmem:[#allocation13 + $0x44] sm:$0xf]  ;;  %v2468_v23 = vadd.f32 %v11664_v46, %v2419_v60  ;;  %v8523_v10 = vld [vmem:[#allocation13 + $0x150] sm:$0xf0] }
 0x2e4   : > { %v2658_v7 = vpop.f32.mrf.mxu3  ;;  %v2612_v35 = vpop.f32.mrf.mxu2  ;;  %v2566_v53 = vadd.f32 %v2565_v16, %v2517_v48 }
 0x2e5   : > { %v2659_v25 = vadd.f32 %v2658_v7, %v2610_v33  ;;  %2836 = vadd.xlane.f32.xlu0 %v2835_v24  ;;  %v2613_v47 = vadd.f32 %v2612_v35, %v2564_v43  ;;  %3683 = vmatpush.bf16.msra.mxu1 %v8538_v61  ;;  %v10234_v24 = vld [vmem:[%s10774_s13 + $0xa0] sm:$0xff]  ;;  %v2519_v45 = vpop.f32.mrf.mxu0 }
 0x2e6   : > { %v11852_v49 = vadd.f32 %v10234_v24, %v11657_v29  ;;  %v2520_v16 = vadd.f32 %v2519_v45, %v11680_v58 }
 0x2e7   : > { %v11839_v12 = vadd.f32 %v10233_v8, %v2659_v25 }
 0x2e8   : > { %v2799_v29 = vmul.f32 %v11852_v49, %v11852_v49 }
 0x2e9   : > { %v2735_v18 = vadd.f32 %v11839_v12, %v11835_v17  ;;  %v2798_v39 = vmul.f32 %v11839_v12, %v11839_v12 }
 0x2eb   : > { %2736 = vadd.xlane.f32.xlu2 %v2735_v18  ;;  %v2838_v33 = vadd.f32 %v2798_v39, %v2797_v5  ;;  %v8395_v5 = vld [vmem:[#allocation13 + $0x50] sm:$0xf0]  ;;  %v8526_v18 = vor.u32 %v9559_v1, %v8523_v10  ;;  %v2568_v39 = vpop.f32.mrf.mxu1  ;;  %v9561_v10 = vld [vmem:[#allocation13 + $0x14c] sm:$0xf0] }
 0x2ec   : > { %v2661_v7 = vpop.f32.mrf.mxu3  ;;  %v2614_v8 = vpop.f32.mrf.mxu2  ;;  %v8398_v62 = vor.u32 %v9527_v21, %v8395_v5  ;;  %v9529_v21 = vld [vmem:[#allocation13 + $0x4c] sm:$0xf0]  ;;  %v2569_v1 = vadd.f32 %v2568_v39, %v2520_v16 }
 0x2ed   : > { %v2662_v25 = vadd.f32 %v2661_v7, %v2613_v47  ;;  %2839 = vadd.xlane.f32.xlu1 %v2838_v33  ;;  %v2615_v61 = vadd.f32 %v2614_v8, %v2566_v53  ;;  %3782 = vmatpush.bf16.msra.mxu3 %v8526_v18  ;;  %v10236_v33 = vld [vmem:[%s10774_s13 + $0xb0] sm:$0xff]  ;;  %v2521_v48 = vpop.f32.mrf.mxu0  ;;  %v2326_v8 = vadd.f32 %v11637_v30, %v11552_v4  ;;  %v10578_v30 = vmov 256.0   ;;  %v10238_v18 = vld [vmem:[%s10774_s13 + $0xc0] sm:$0xff] }
 0x2ee   : > { %3733 = vmatpush.bf16.msra.mxu2 %v8398_v62  ;;  %v11867_v31 = vadd.f32 %v10236_v33, %v2468_v23  ;;  %v8521_v62 = vld [vmem:[#allocation13 + $0x140] sm:$0xf]  ;;  %10019 = vrcp.f32 %v10578_v30  ;;  %v11883_v39 = vadd.f32 %v10238_v18, %v11667_v37  ;;  %v2522_v33 = vadd.f32 %v2521_v48, %v11680_v58  ;;  %v10241_v30 = vld [vmem:[%s10774_s13 + $0xd8] sm:$0xff] }
 0x2ef   : > { %v11857_v35 = vadd.f32 %v10235_v57, %v2662_v25  ;;  %v10237_v25 = vld [vmem:[%s10774_s13 + $0xb8] sm:$0xff]  ;;  %v8393_v57 = vld [vmem:[#allocation13 + $0x40] sm:$0xf]  ;;  %v8522_v53 = vor.u32 %v9561_v10, %v8521_v62  ;;  %v10240_v62 = vld [vmem:[%s10774_s13 + $0xd0] sm:$0xff] }
 0x2f0   : > { %v8394_v5 = vor.u32 %v9529_v21, %v8393_v57  ;;  %v2801_v45 = vmul.f32 %v11867_v31, %v11867_v31  ;;  %v2803_v37 = vmul.f32 %v11883_v39, %v11883_v39 }
 0x2f1   : > { %v2738_v43 = vadd.f32 %v11857_v35, %v11852_v49  ;;  %v2800_v36 = vmul.f32 %v11857_v35, %v11857_v35  ;;  %3684 = vmatpush.bf16.msra.mxu1 %v8522_v53 }
 0x2f2   : > { %3635 = vmatpush.bf16.msra.mxu0 %v8394_v5 }
 0x2f3   : > { %2739 = vadd.xlane.f32.xlu2 %v2738_v43  ;;  %v2841_v47 = vadd.f32 %v2800_v36, %v2799_v29 }
 0x2f4   : > { %v2663_v46 = vpop.f32.mrf.mxu3  ;;  %v2617_v7 = vpop.f32.mrf.mxu2 }
 0x2f5   : > { %v2664_v24 = vadd.f32 %v2663_v46, %v2615_v61  ;;  %2842 = vadd.xlane.f32.xlu1 %v2841_v47  ;;  %v2618_v43 = vadd.f32 %v2617_v7, %v2569_v1  ;;  %v2570_v61 = vpop.f32.mrf.mxu1  ;;  %v2375_v46 = vadd.f32 %v11641_v56, %v2326_v8  ;;  %v2524_v21 = vpop.f32.mrf.mxu0 }
 0x2f6   : > { %v10020_v5 = vpop.eup %10019  ;;  %v2571_v56 = vadd.f32 %v2570_v61, %v2522_v33  ;;  %v2525_v53 = vadd.f32 %v2524_v21, %v11680_v58 }
 0x2f7   : > { %v11871_v60 = vadd.f32 %v10237_v25, %v2664_v24  ;;  %v2424_v7 = vadd.f32 %v11669_v52, %v2375_v46  ;;  %v10239_v25 = vld [vmem:[%s10774_s13 + $0xc8] sm:$0xff]  ;;  %vm2761_vm0 = vweird.f32 %v10020_v5 }
 0x2f9   : > { %v2741_v23 = vadd.f32 %v11871_v60, %v11867_v31  ;;  %v2802_v29 = vmul.f32 %v11871_v60, %v11871_v60  ;;  %v2473_v1 = vadd.f32 %v11672_v26, %v2424_v7 }
 0x2fb   : > { %2742 = vadd.xlane.f32.xlu0 %v2741_v23  ;;  %v2844_v36 = vadd.f32 %v2802_v29, %v2801_v45  ;;  %v2757_v29 = vmul.f32 256.0, %v10020_v5  ;;  %v11899_v10 = vadd.f32 %v10240_v62, %v2473_v1 }
 0x2fc   : > { %v2666_v47 = vpop.f32.mrf.mxu3  ;;  %v2619_v24 = vpop.f32.mrf.mxu2 }
 0x2fd   : > { %v2667_v16 = vadd.f32 %v2666_v47, %v2618_v43  ;;  %2845 = vadd.xlane.f32.xlu2 %v2844_v36  ;;  %v2620_v23 = vadd.f32 %v2619_v24, %v2571_v56  ;;  %v2573_v26 = vpop.f32.mrf.mxu1  ;;  %v2758_v61 = vsub.f32 1.0, %v2757_v29  ;;  %v2805_v33 = vmul.f32 %v11899_v10, %v11899_v10  ;;  %v2526_v7 = vpop.f32.mrf.mxu0 }
 0x2fe   : > { %v2574_v47 = vadd.f32 %v2573_v26, %v2525_v53  ;;  %v2331_v24 = vadd.f32 %v11655_v9, %v11552_v4  ;;  %v8609_v4 = vld [vmem:[#allocation13 + $0x1e8] sm:$0xf] }
 0x2ff   : > { %v11889_v57 = vadd.f32 %v10239_v25, %v2667_v16 }
 0x301   : > { %v2744_v48 = vadd.f32 %v11889_v57, %v11883_v39  ;;  %v2804_v8 = vmul.f32 %v11889_v57, %v11889_v57 }
 0x303   : > { %2745 = vadd.xlane.f32.xlu0 %v2744_v48  ;;  %v2847_v52 = vadd.f32 %v2804_v8, %v2803_v37  ;;  %v10242_v37 = vld [vmem:[%s10774_s13 + $0xe0] sm:$0xff]  ;;  %v2759_v48 = vmul.f32 %v10020_v5, %v2758_v61  ;;  %v2527_v8 = vadd.f32 %v2526_v7, %v11680_v58 }
 0x304   : > { %v2668_v45 = vpop.f32.mrf.mxu3  ;;  %v2622_v36 = vpop.f32.mrf.mxu2  ;;  %v11915_v1 = vadd.f32 %v10242_v37, %v11675_v19  ;;  %v9550_v58 = vld [vmem:[#allocation13 + $0xf4] sm:$0xf0] }
 0x305   : > { %v2669_v43 = vadd.f32 %v2668_v45, %v2620_v23  ;;  %2848 = vadd.xlane.f32.xlu2 %v2847_v52  ;;  %v2623_v25 = vadd.f32 %v2622_v36, %v2574_v47  ;;  %v2380_v52 = vadd.f32 %v11661_v20, %v2331_v24  ;;  %v10243_v45 = vld [vmem:[%s10774_s13 + $0xe8] sm:$0xff]  ;;  %v2575_v62 = vpop.f32.mrf.mxu1 }
 0x306   : > { %v2807_v19 = vmul.f32 %v11915_v1, %v11915_v1  ;;  %v2576_v26 = vadd.f32 %v2575_v62, %v2527_v8  ;;  %v9555_v62 = vld [vmem:[#allocation13 + $0x124] sm:$0xf] }
 0x307   : > { %v11903_v18 = vadd.f32 %v10241_v30, %v2669_v43  ;;  %v2429_v9 = vadd.f32 %v11677_v50, %v2380_v52  ;;  %v2760_v43 = vadd.f32 %v10020_v5, %v2759_v48 }
 0x309   : > { %v2747_v46 = vadd.f32 %v11903_v18, %v11899_v10  ;;  %v2806_v16 = vmul.f32 %v11903_v18, %v11903_v18  ;;  %v2478_v30 = vadd.f32 %v11682_v27, %v2429_v9  ;;  %v8379_v9 = vld [vmem:[#allocation13 + $0x30] sm:$0xf0] }
 0x30b   : > { %2748 = vadd.xlane.f32.xlu1 %v2747_v46  ;;  %v2850_v21 = vadd.f32 %v2806_v16, %v2805_v33  ;;  %v11930_v46 = vsel %vm2761_vm0, %v10020_v5, %v2760_v43  ;;  %v10244_v16 = vld [vmem:[%s10774_s13 + $0xf0] sm:$0xff]  ;;  %v8507_v43 = vld [vmem:[#allocation13 + $0x130] sm:$0xf0] }
 0x30c   : > { %v2671_v56 = vpop.f32.mrf.mxu3  ;;  %v2624_v53 = vpop.f32.mrf.mxu2  ;;  %v11933_v24 = vadd.f32 %v10244_v16, %v2478_v30  ;;  %v8510_v30 = vor.u32 %v9555_v62, %v8507_v43  ;;  %v9553_v43 = vld [vmem:[#allocation13 + $0x10c] sm:$0xf0] }
 0x30d   : > { %v2672_v23 = vadd.f32 %v2671_v56, %v2623_v25  ;;  %2851 = vadd.xlane.f32.xlu0 %v2850_v21  ;;  %v2625_v61 = vadd.f32 %v2624_v53, %v2576_v26  ;;  %v10245_v25 = vld [vmem:[%s10774_s13 + $0xf8] sm:$0xff]  ;;  %v8377_v26 = vld [vmem:[#allocation13 + $0x20] sm:$0xf] }
 0x30e   : > { %v2809_v8 = vmul.f32 %v11933_v24, %v11933_v24  ;;  %3783 = vmatpush.bf16.msra.mxu3 %v8510_v30 }
 0x30f   : > { %v11920_v29 = vadd.f32 %v10243_v45, %v2672_v23  ;;  %v9523_v45 = vld [vmem:[#allocation13 + $0x24] sm:$0xf] }
 0x311   : > { %v2750_v36 = vadd.f32 %v11920_v29, %v11915_v1  ;;  %v2808_v20 = vmul.f32 %v11920_v29, %v11920_v29 }
 0x313   : > { %2751 = vadd.xlane.f32.xlu1 %v2750_v36  ;;  %v2853_v50 = vadd.f32 %v2808_v20, %v2807_v19  ;;  %v8382_v19 = vor.u32 %v9523_v45, %v8379_v9  ;;  %v9525_v36 = vld [vmem:[#allocation13 + $0x2c] sm:$0xf0] }
 0x314   : > { %v2673_v47 = vpop.f32.mrf.mxu3  ;;  %v9521_v45 = vld [vmem:[#allocation13 + $0xc] sm:$0xf0] }
 0x315   : > { %v2674_v33 = vadd.f32 %v2673_v47, %v2625_v61  ;;  %2854 = vadd.xlane.f32.xlu0 %v2853_v50  ;;  %v8378_v61 = vor.u32 %v9525_v36, %v8377_v26  ;;  %v8505_v50 = vld [vmem:[#allocation13 + $0x120] sm:$0xf]  ;;  %v9557_v47 = vld [vmem:[#allocation13 + $0x12c] sm:$0xf0]  ;;  %3734 = vmatpush.bf16.msra.mxu2 %v8382_v19 }
 0x316   : > { %v2710_v7 = vpop.xlane.xlu0 %2709  ;;  %v8506_v16 = vor.u32 %v9557_v47, %v8505_v50  ;;  %v8489_v19 = vld [vmem:[#allocation13 + $0x100] sm:$0xf] }
 0x317   : > { %v11936_v21 = vadd.f32 %v10245_v25, %v2674_v33  ;;  %v11939_v37 = vmul.f32 %v11930_v46, %v2710_v7  ;;  %3636 = vmatpush.bf16.msra.mxu0 %v8378_v61  ;;  %v8490_v36 = vor.u32 %v9553_v43, %v8489_v19 }
 0x318   : > { %v2813_v56 = vpop.xlane.xlu1 %2812  ;;  %3685 = vmatpush.bf16.msra.mxu1 %v8506_v16 }
 0x319   : > { %v2859_v27 = vmul.f32 %v2813_v56, %v11930_v46  ;;  %v2875_v48 = vmul.f32 %v11939_v37, %v11939_v37  ;;  %v2753_v5 = vadd.f32 %v11936_v21, %v11933_v24  ;;  %v2810_v23 = vmul.f32 %v11936_v21, %v11936_v21  ;;  %v9519_v56 = vld [vmem:[#allocation13 + $0x4] sm:$0xf] }
 0x31b   : > { %v2891_v52 = vsub.f32 %v2859_v27, %v2875_v48  ;;  %2754 = vadd.xlane.f32.xlu2 %v2753_v5  ;;  %v2856_v53 = vadd.f32 %v2810_v23, %v2809_v8  ;;  %v8363_v27 = vld [vmem:[#allocation13 + $0x10] sm:$0xf0]  ;;  %v9551_v48 = vld [vmem:[#allocation13 + $0x104] sm:$0xf] }
 0x31c   : > { %v8491_v23 = vld [vmem:[#allocation13 + $0x110] sm:$0xf0]  ;;  %v8366_v9 = vor.u32 %v9519_v56, %v8363_v27  ;;  %3686 = vmatpush.bf16.msra.mxu1 %v8490_v36 }
 0x31d   : > { %v2939_v20 = vadd.f32 1e-05, %v2891_v52  ;;  %2857 = vadd.xlane.f32.xlu1 %v2856_v53  ;;  %v8361_v52 = vld [vmem:[#allocation13] sm:$0xf]  ;;  %v8494_v62 = vor.u32 %v9551_v48, %v8491_v23 }
 0x31e   : > { %v2713_v33 = vpop.xlane.xlu0 %2712  ;;  %v8362_v53 = vor.u32 %v9521_v45, %v8361_v52  ;;  %3735 = vmatpush.bf16.msra.mxu2 %v8366_v9 }
 0x31f   : > { %10021 = vrsqrt.f32 %v2939_v20  ;;  %v11951_v7 = vmul.f32 %v11930_v46, %v2713_v33  ;;  %3784 = vmatpush.bf16.msra.mxu3 %v8494_v62  ;;  %vm2961_vm2 = vweird.f32 %v2939_v20 }
 0x320   : > { %v2816_v25 = vpop.xlane.xlu1 %2815  ;;  %3637 = vmatpush.bf16.msra.mxu0 %v8362_v53 }
 0x321   : > { %v2860_v5 = vmul.f32 %v2816_v25, %v11930_v46  ;;  %v2876_v8 = vmul.f32 %v11951_v7, %v11951_v7 }
 0x323   : > { %v2892_v26 = vsub.f32 %v2860_v5, %v2876_v8 }
 0x325   : > { %v10022_v30 = vpop.eup %10021  ;;  %v2940_v61 = vadd.f32 1e-05, %v2892_v26  ;;  %v452_v26 = vld [vmem:[#allocation10] sm:$0x3] }
 0x326   : > { %v2956_v50 = vmul.f32 %v10022_v30, %v2939_v20  ;;  %v2716_v47 = vpop.xlane.xlu2 %2715  ;;  %vm2962_vm1 = vweird.f32 %v10022_v30 }
 0x327   : > { %10023 = vrsqrt.f32 %v2940_v61  ;;  %v11957_v33 = vmul.f32 %v11930_v46, %v2716_v47  ;;  %vm2963_vm3 = vmor %vm2961_vm2, %vm2962_vm1  ;;  %vm2971_vm5 = vweird.f32 %v2940_v61 }
 0x328   : > { %v2957_v16 = vmul.f32 %v10022_v30, %v2956_v50  ;;  %v2819_v25 = vpop.xlane.xlu0 %2818 }
 0x329   : > { %v2877_v56 = vmul.f32 %v11957_v33, %v11957_v33  ;;  %v2861_v27 = vmul.f32 %v2819_v25, %v11930_v46  ;;  %v2907_v25 = vsub.f32 %v11689_v3, %v11939_v37 }
 0x32a   : > { %v2958_v48 = vmul.f32 0.5, %v2957_v16 }
 0x32b   : > { %v2893_v5 = vsub.f32 %v2861_v27, %v2877_v56  ;;  %v2908_v56 = vsub.f32 %v11695_v63, %v11939_v37  ;;  %v2909_v63 = vsub.f32 %v11707_v41, %v11951_v7  ;;  %v2910_v37 = vsub.f32 %v11713_v22, %v11951_v7 }
 0x32c   : > { %v2959_v8 = vsub.f32 1.5, %v2958_v48 }
 0x32d   : > { %v10024_v23 = vpop.eup %10023  ;;  %v11962_v52 = vadd.f32 1e-05, %v2893_v5  ;;  %v11975_v5 = vperm.slane %v452_v26, 0 }
 0x32e   : > { %v2960_v45 = vmul.f32 %v10022_v30, %v2959_v8  ;;  %v2966_v9 = vmul.f32 %v10024_v23, %v2940_v61  ;;  %v2719_v62 = vpop.xlane.xlu2 %2718  ;;  %vm2972_vm4 = vweird.f32 %v10024_v23  ;;  %v11977_v8 = vperm.slane %v452_v26, 1 }
 0x32f   : > { %10025 = vrsqrt.f32 %v11962_v52  ;;  %v11966_v53 = vmul.f32 %v11930_v46, %v2719_v62  ;;  %vm2973_vm6 = vmor %vm2971_vm5, %vm2972_vm4  ;;  %vm2981_vm7 = vweird.f32 %v11962_v52 }
 0x330   : > { %v2967_v19 = vmul.f32 %v10024_v23, %v2966_v9  ;;  %v2822_v43 = vpop.xlane.xlu1 %2821  ;;  %v2964_v36 = vsel %vm2963_vm3, %v10022_v30, %v2960_v45  ;;  %14207 = vst [vmem:[#allocation26_spill] sm:$0xff] %v11977_v8  ;;  %v453_v45 = vld [vmem:[#allocation11] sm:$0x3] }
 0x331   : > { %v2878_v47 = vmul.f32 %v11966_v53, %v11966_v53  ;;  %v2862_v16 = vmul.f32 %v2822_v43, %v11930_v46  ;;  %v3115_v30 = vmul.f32 %v2964_v36, %v2907_v25  ;;  %v3116_v9 = vmul.f32 %v2964_v36, %v2908_v56 }
 0x332   : > { %v2968_v50 = vmul.f32 0.5, %v2967_v19  ;;  %v11994_v41 = vperm.slane %v453_v45, 1 }
 0x333   : > { %v2894_v20 = vsub.f32 %v2862_v16, %v2878_v47  ;;  %v11991_v47 = vperm.slane %v453_v45, 0  ;;  %v3152_v16 = vmul.f32 %v11975_v5, %v3115_v30  ;;  %v3153_v22 = vmul.f32 %v11977_v8, %v3116_v9  ;;  %v8611_v45 = vld [vmem:[#allocation13 + $0x1f8] sm:$0xf0] }
 0x334   : > { %v2969_v27 = vsub.f32 1.5, %v2968_v50  ;;  %14209 = vst [vmem:[#allocation28_spill] sm:$0xff] %v11994_v41 }
 0x335   : > { %v10026_v48 = vpop.eup %10025  ;;  %v11980_v43 = vadd.f32 1e-05, %v2894_v20  ;;  %14208 = vst [vmem:[#allocation27_spill] sm:$0xff] %v11991_v47  ;;  %v9548_v20 = vld [vmem:[#allocation13 + $0xec] sm:$0xf] }
 0x336   : > { %v2970_v62 = vmul.f32 %v10024_v23, %v2969_v27  ;;  %v2976_v19 = vmul.f32 %v10026_v48, %v11962_v52  ;;  %v2722_v3 = vpop.xlane.xlu2 %2721  ;;  %vm2982_vm8 = vweird.f32 %v10026_v48 }
 0x337   : > { %v11988_v26 = vmul.f32 %v11930_v46, %v2722_v3  ;;  %10027 = vrsqrt.f32 %v11980_v43  ;;  %vm2983_vm9 = vmor %vm2981_vm7, %vm2982_vm8  ;;  %vm2991_vm11 = vweird.f32 %v11980_v43 }
 0x338   : > { %v2974_v61 = vsel %vm2973_vm6, %v10024_v23, %v2970_v62  ;;  %v2977_v50 = vmul.f32 %v10026_v48, %v2976_v19  ;;  %v2825_v36 = vpop.xlane.xlu1 %2824  ;;  %v8483_v62 = vld [vmem:[#allocation13 + $0xf8] sm:$0xf0] }
 0x339   : > { %v3117_v25 = vmul.f32 %v2974_v61, %v2909_v63  ;;  %v3118_v56 = vmul.f32 %v2974_v61, %v2910_v37  ;;  %v2879_v27 = vmul.f32 %v11988_v26, %v11988_v26  ;;  %v2863_v23 = vmul.f32 %v2825_v36, %v11930_v46  ;;  %v9580_v63 = vld [vmem:[#allocation13 + $0x1ec] sm:$0xf]  ;;  %v8481_v37 = vld [vmem:[#allocation13 + $0xe8] sm:$0xf] }
 0x33a   : > { %v2978_v7 = vmul.f32 0.5, %v2977_v50  ;;  %v8486_v30 = vor.u32 %v9548_v20, %v8483_v62  ;;  %v8614_v50 = vor.u32 %v9580_v63, %v8611_v45  ;;  %v3189_v36 = vadd.f32 %v11991_v47, %v3152_v16 }
 0x33b   : > { %v3154_v19 = vmul.f32 %v11975_v5, %v3117_v25  ;;  %v3155_v3 = vmul.f32 %v11977_v8, %v3118_v56  ;;  %v2895_v9 = vsub.f32 %v2863_v23, %v2879_v27  ;;  %v8482_v56 = vor.u32 %v9550_v58, %v8481_v37 }
 0x33c   : > { %v2979_v61 = vsub.f32 1.5, %v2978_v7  ;;  %3924 = vmatpush.bf16.msrb.mxu2 %v8486_v30  ;;  %v3190_v7 = vadd.f32 %v11994_v41, %v3153_v22  ;;  %3973 = vmatpush.bf16.msrb.mxu3 %v8614_v50  ;;  %v8610_v27 = vor.u32 %v9582_v15, %v8609_v4  ;;  %v2911_v15 = vsub.f32 %v11723_v34, %v11957_v33 }
 0x33d   : > { %v3191_v6 = vadd.f32 %v11991_v47, %v3154_v19  ;;  %v3192_v25 = vadd.f32 %v11994_v41, %v3155_v3  ;;  %v10028_v0 = vpop.eup %10027  ;;  %v12006_v62 = vadd.f32 1e-05, %v2895_v9  ;;  %3826 = vmatpush.bf16.msrb.mxu0 %v8482_v56  ;;  %v2914_v56 = vsub.f32 %v11747_v51, %v11966_v53 }
 0x33e   : > { %v2980_v20 = vmul.f32 %v10026_v48, %v2979_v61  ;;  %v2725_v59 = vpop.xlane.xlu0 %2724  ;;  %v2986_v16 = vmul.f32 %v10028_v0, %v11980_v43  ;;  %3875 = vmatpush.bf16.msrb.mxu1 %v8610_v27  ;;  %vm2992_vm10 = vweird.f32 %v10028_v0 }
 0x33f   : > { %v12014_v23 = vmul.f32 %v11930_v46, %v2725_v59  ;;  %v12016_v58 = vpack.c.bf16 %v3191_v6, %v3189_v36  ;;  %10029 = vrsqrt.f32 %v12006_v62  ;;  %v12019_v30 = vpack.c.bf16 %v3192_v25, %v3190_v7  ;;  %vm2993_vm12 = vmor %vm2991_vm11, %vm2992_vm10 }
 0x340   : > { %v2984_v19 = vsel %vm2983_vm9, %v10026_v48, %v2980_v20  ;;  %v2828_v3 = vpop.xlane.xlu2 %2827  ;;  %v2987_v4 = vmul.f32 %v10028_v0, %v2986_v16  ;;  %v2912_v6 = vsub.f32 %v11729_v28, %v11957_v33  ;;  %v2913_v33 = vsub.f32 %v11742_v11, %v11966_v53  ;;  %v8467_v11 = vld [vmem:[#allocation13 + $0xd8] sm:$0xf0] }
 0x341   : > { %3638 = vmatmul.bf16.vlgmr.msra.gmra.mxu0 %v12016_v58  ;;  %v2864_v52 = vmul.f32 %v2828_v3, %v11930_v46  ;;  %v2880_v59 = vmul.f32 %v12014_v23, %v12014_v23  ;;  %3687 = vmatmul.bf16.vlgmr.msra.gmra.mxu1 %v12019_v30  ;;  %v3119_v48 = vmul.f32 %v2984_v19, %v2911_v15  ;;  %vm3001_vm14 = vweird.f32 %v12006_v62 }
 0x342   : > { %3736 = vmatmul.bf16.vlgmr.msra.gmra.mxu2 %v12016_v58  ;;  %v2988_v22 = vmul.f32 0.5, %v2987_v4  ;;  %3785 = vmatmul.bf16.vlgmr.msra.gmra.mxu3 %v12019_v30  ;;  %v3120_v63 = vmul.f32 %v2984_v19, %v2912_v6  ;;  %v9544_v4 = vld [vmem:[#allocation13 + $0xcc] sm:$0xf]  ;;  %v8595_v6 = vld [vmem:[#allocation13 + $0x1d8] sm:$0xf0] }
 0x343   : > { %v2896_v34 = vsub.f32 %v2864_v52, %v2880_v59  ;;  %v3156_v28 = vmul.f32 %v11975_v5, %v3119_v48  ;;  %v9576_v52 = vld [vmem:[#allocation13 + $0x1cc] sm:$0xf]  ;;  %v8470_v53 = vor.u32 %v9544_v4, %v8467_v11  ;;  %v8465_v48 = vld [vmem:[#allocation13 + $0xc8] sm:$0xf] }
 0x344   : > { %v2989_v45 = vsub.f32 1.5, %v2988_v22  ;;  %v3157_v27 = vmul.f32 %v11977_v8, %v3120_v63  ;;  %v8598_v63 = vor.u32 %v9576_v52, %v8595_v6 }
 0x345   : > { %v10030_v37 = vpop.eup %10029  ;;  %v12033_v61 = vadd.f32 1e-05, %v2896_v34  ;;  %v3193_v51 = vadd.f32 %v11991_v47, %v3156_v28  ;;  %3925 = vmatpush.bf16.msrb.mxu2 %v8470_v53 }
 0x346   : > { %v2728_v9 = vpop.xlane.xlu0 %2727  ;;  %v2990_v50 = vmul.f32 %v10028_v0, %v2989_v45  ;;  %v2996_v36 = vmul.f32 %v10030_v37, %v12006_v62  ;;  %v9546_v45 = vld [vmem:[#allocation13 + $0xd4] sm:$0xf0]  ;;  %vm3002_vm13 = vweird.f32 %v10030_v37  ;;  %3974 = vmatpush.bf16.msrb.mxu3 %v8598_v63 }
 0x347   : > { %v12037_v25 = vmul.f32 %v11930_v46, %v2728_v9  ;;  %10031 = vrsqrt.f32 %v12033_v61  ;;  %v8593_v9 = vld [vmem:[#allocation13 + $0x1c8] sm:$0xf]  ;;  %vm3003_vm15 = vmor %vm3001_vm14, %vm3002_vm13  ;;  %vm3011_vm1 = vweird.f32 %v12033_v61 }
 0x348   : > { %v2831_v43 = vpop.xlane.xlu2 %2830  ;;  %v2994_v20 = vsel %vm2993_vm12, %v10028_v0, %v2990_v50  ;;  %v2997_v7 = vmul.f32 %v10030_v37, %v2996_v36  ;;  %v9578_v50 = vld [vmem:[#allocation13 + $0x1d4] sm:$0xf0] }
 0x349   : > { %v3121_v16 = vmul.f32 %v2994_v20, %v2913_v33  ;;  %v3122_v19 = vmul.f32 %v2994_v20, %v2914_v56  ;;  %v2865_v3 = vmul.f32 %v2831_v43, %v11930_v46  ;;  %v2881_v15 = vmul.f32 %v12037_v25, %v12037_v25 }
 0x34a   : > { %v2998_v59 = vmul.f32 0.5, %v2997_v7  ;;  %v8466_v33 = vor.u32 %v9546_v45, %v8465_v48  ;;  %v8594_v56 = vor.u32 %v9578_v50, %v8593_v9 }
 0x34b   : > { %v2897_v0 = vsub.f32 %v2865_v3, %v2881_v15  ;;  %v3158_v22 = vmul.f32 %v11975_v5, %v3121_v16  ;;  %v3159_v34 = vmul.f32 %v11977_v8, %v3122_v19  ;;  %v3194_v3 = vadd.f32 %v11994_v41, %v3157_v27 }
 0x34c   : > { %v2999_v36 = vsub.f32 1.5, %v2998_v59  ;;  %3827 = vmatpush.bf16.msrb.mxu0 %v8466_v33  ;;  %3876 = vmatpush.bf16.msrb.mxu1 %v8594_v56  ;;  %v2915_v59 = vsub.f32 %v11758_v42, %v11988_v26  ;;  %v2917_v33 = vsub.f32 %v11774_v13, %v12014_v23  ;;  %v2918_v56 = vsub.f32 %v11779_v55, %v12014_v23  ;;  %v8451_v13 = vld [vmem:[#allocation13 + $0xb8] sm:$0xf0] }
 0x34d   : > { %v10032_v43 = vpop.eup %10031  ;;  %v12052_v20 = vadd.f32 1e-05, %v2897_v0  ;;  %v3195_v7 = vadd.f32 %v11991_v47, %v3158_v22  ;;  %v3196_v16 = vadd.f32 %v11994_v41, %v3159_v34  ;;  %v2916_v0 = vsub.f32 %v11763_v2, %v11988_v26 }
 0x34e   : > { %v2731_v28 = vpop.xlane.xlu1 %2730  ;;  %v3000_v19 = vmul.f32 %v10030_v37, %v2999_v36  ;;  %v3006_v15 = vmul.f32 %v10032_v43, %v12033_v61  ;;  %vm3012_vm0 = vweird.f32 %v10032_v43 }
 0x34f   : > { %v12060_v4 = vmul.f32 %v11930_v46, %v2731_v28  ;;  %10033 = vrsqrt.f32 %v12052_v20  ;;  %v12064_v52 = vpack.c.bf16 %v3195_v7, %v3193_v51  ;;  %v12066_v27 = vpack.c.bf16 %v3196_v16, %v3194_v3  ;;  %vm3013_vm2 = vmor %vm3011_vm1, %vm3012_vm0 }
 0x350   : > { %v2834_v11 = vpop.xlane.xlu0 %2833  ;;  %v3004_v62 = vsel %vm3003_vm15, %v10030_v37, %v3000_v19  ;;  %v3007_v53 = vmul.f32 %v10032_v43, %v3006_v15  ;;  %vm3021_vm4 = vweird.f32 %v12052_v20 }
 0x351   : > { %v2882_v6 = vmul.f32 %v12060_v4, %v12060_v4  ;;  %v2866_v48 = vmul.f32 %v2834_v11, %v11930_v46  ;;  %3643 = vmatmul.bf16.gmra.mxu0 %v12064_v52  ;;  %v3123_v22 = vmul.f32 %v3004_v62, %v2915_v59  ;;  %3692 = vmatmul.bf16.gmra.mxu1 %v12066_v27  ;;  %v9540_v59 = vld [vmem:[#allocation13 + $0xac] sm:$0xf] }
 0x352   : > { %v3008_v51 = vmul.f32 0.5, %v3007_v53  ;;  %3741 = vmatmul.bf16.gmra.mxu2 %v12064_v52  ;;  %3790 = vmatmul.bf16.gmra.mxu3 %v12066_v27  ;;  %v3124_v42 = vmul.f32 %v3004_v62, %v2916_v0  ;;  %v9572_v62 = vld [vmem:[#allocation13 + $0x1ac] sm:$0xf]  ;;  %v8454_v23 = vor.u32 %v9540_v59, %v8451_v13  ;;  %v2919_v13 = vsub.f32 %v11789_v54, %v12037_v25 }
 0x353   : > { %v2898_v34 = vsub.f32 %v2866_v48, %v2882_v6  ;;  %v3160_v36 = vmul.f32 %v11975_v5, %v3123_v22  ;;  %v8579_v6 = vld [vmem:[#allocation13 + $0x1b8] sm:$0xf0]  ;;  %v8449_v48 = vld [vmem:[#allocation13 + $0xa8] sm:$0xf] }
 0x354   : > { %v3009_v37 = vsub.f32 1.5, %v3008_v51  ;;  %v3161_v3 = vmul.f32 %v11977_v8, %v3124_v42  ;;  %v8582_v51 = vor.u32 %v9572_v62, %v8579_v6  ;;  %v8577_v42 = vld [vmem:[#allocation13 + $0x1a8] sm:$0xf]  ;;  %3926 = vmatpush.bf16.msrb.mxu2 %v8454_v23  ;;  %v2920_v6 = vsub.f32 %v11793_v38, %v12037_v25 }
 0x355   : > { %v10034_v63 = vpop.eup %10033  ;;  %v12080_v45 = vadd.f32 1e-05, %v2898_v34  ;;  %v3197_v55 = vadd.f32 %v11991_v47, %v3160_v36  ;;  %v9542_v34 = vld [vmem:[#allocation13 + $0xb4] sm:$0xf0] }
 0x356   : > { %v2734_v9 = vpop.xlane.xlu1 %2733  ;;  %v3010_v50 = vmul.f32 %v10032_v43, %v3009_v37  ;;  %v3016_v2 = vmul.f32 %v10034_v63, %v12052_v20  ;;  %v9574_v37 = vld [vmem:[#allocation13 + $0x1b4] sm:$0xf0]  ;;  %vm3022_vm3 = vweird.f32 %v10034_v63  ;;  %3975 = vmatpush.bf16.msrb.mxu3 %v8582_v51 }
 0x357   : > { %v12084_v26 = vmul.f32 %v11930_v46, %v2734_v9  ;;  %10035 = vrsqrt.f32 %v12080_v45  ;;  %vm3023_vm5 = vmor %vm3021_vm4, %vm3022_vm3  ;;  %vm3031_vm7 = vweird.f32 %v12080_v45 }
 0x358   : > { %v2837_v61 = vpop.xlane.xlu0 %2836  ;;  %v3014_v28 = vsel %vm3013_vm2, %v10032_v43, %v3010_v50  ;;  %v3017_v7 = vmul.f32 %v10034_v63, %v3016_v2  ;;  %v8450_v50 = vor.u32 %v9542_v34, %v8449_v48  ;;  %v8578_v2 = vor.u32 %v9574_v37, %v8577_v42 }
 0x359   : > { %v3125_v16 = vmul.f32 %v3014_v28, %v2917_v33  ;;  %v3126_v19 = vmul.f32 %v3014_v28, %v2918_v56  ;;  %v2883_v15 = vmul.f32 %v12084_v26, %v12084_v26  ;;  %v2867_v11 = vmul.f32 %v2837_v61, %v11930_v46 }
 0x35a   : > { %v3018_v53 = vmul.f32 0.5, %v3017_v7  ;;  %v3198_v28 = vadd.f32 %v11994_v41, %v3161_v3  ;;  %3828 = vmatpush.bf16.msrb.mxu0 %v8450_v50  ;;  %3877 = vmatpush.bf16.msrb.mxu1 %v8578_v2  ;;  %v2921_v37 = vsub.f32 %v11803_v32, %v12060_v4  ;;  %v8435_v32 = vld [vmem:[#allocation13 + $0x98] sm:$0xf0] }
 0x35b   : > { %v2899_v43 = vsub.f32 %v2867_v11, %v2883_v15  ;;  %v3162_v0 = vmul.f32 %v11975_v5, %v3125_v16  ;;  %v3163_v22 = vmul.f32 %v11977_v8, %v3126_v19 }
 0x35c   : > { %v3019_v9 = vsub.f32 1.5, %v3018_v53 }
 0x35d   : > { %v10036_v33 = vpop.eup %10035  ;;  %v12099_v56 = vadd.f32 1e-05, %v2899_v43  ;;  %v3199_v61 = vadd.f32 %v11991_v47, %v3162_v0  ;;  %v3200_v7 = vadd.f32 %v11994_v41, %v3163_v22 }
 0x35e   : > { %v2737_v36 = vpop.xlane.xlu2 %2736  ;;  %v3020_v16 = vmul.f32 %v10034_v63, %v3019_v9  ;;  %v3026_v19 = vmul.f32 %v10036_v33, %v12080_v45  ;;  %vm3032_vm6 = vweird.f32 %v10036_v33  ;;  %v2922_v9 = vsub.f32 %v11807_v40, %v12060_v4 }
 0x35f   : > { %v12107_v15 = vmul.f32 %v11930_v46, %v2737_v36  ;;  %10037 = vrsqrt.f32 %v12099_v56  ;;  %v12111_v59 = vpack.c.bf16 %v3199_v61, %v3197_v55  ;;  %v12113_v3 = vpack.c.bf16 %v3200_v7, %v3198_v28  ;;  %vm3033_vm8 = vmor %vm3031_vm7, %vm3032_vm6 }
 0x360   : > { %v2840_v11 = vpop.xlane.xlu1 %2839  ;;  %v3024_v20 = vsel %vm3023_vm5, %v10034_v63, %v3020_v16  ;;  %v3027_v62 = vmul.f32 %v10036_v33, %v3026_v19  ;;  %v9536_v19 = vld [vmem:[#allocation13 + $0x8c] sm:$0xf]  ;;  %vm3041_vm10 = vweird.f32 %v12099_v56 }
 0x361   : > { %v2884_v53 = vmul.f32 %v12107_v15, %v12107_v15  ;;  %v2868_v23 = vmul.f32 %v2840_v11, %v11930_v46  ;;  %3648 = vmatmul.bf16.gmra.mxu0 %v12111_v59  ;;  %v3127_v48 = vmul.f32 %v3024_v20, %v2919_v13  ;;  %3697 = vmatmul.bf16.gmra.mxu1 %v12113_v3  ;;  %v9568_v11 = vld [vmem:[#allocation13 + $0x18c] sm:$0xf] }
 0x362   : > { %v3028_v55 = vmul.f32 0.5, %v3027_v62  ;;  %3746 = vmatmul.bf16.gmra.mxu2 %v12111_v59  ;;  %3795 = vmatmul.bf16.gmra.mxu3 %v12113_v3  ;;  %v3128_v54 = vmul.f32 %v3024_v20, %v2920_v6  ;;  %v8438_v4 = vor.u32 %v9536_v19, %v8435_v32  ;;  %v8563_v20 = vld [vmem:[#allocation13 + $0x198] sm:$0xf0]  ;;  %v8433_v62 = vld [vmem:[#allocation13 + $0x88] sm:$0xf] }
 0x363   : > { %v2900_v43 = vsub.f32 %v2868_v23, %v2884_v53  ;;  %v3164_v42 = vmul.f32 %v11975_v5, %v3127_v48  ;;  %v8566_v6 = vor.u32 %v9568_v11, %v8563_v20  ;;  %v9538_v48 = vld [vmem:[#allocation13 + $0x94] sm:$0xf0] }
 0x364   : > { %v3029_v63 = vsub.f32 1.5, %v3028_v55  ;;  %v3165_v36 = vmul.f32 %v11977_v8, %v3128_v54  ;;  %v8561_v55 = vld [vmem:[#allocation13 + $0x188] sm:$0xf]  ;;  %3927 = vmatpush.bf16.msrb.mxu2 %v8438_v4 }
 0x365   : > { %v10038_v0 = vpop.eup %10037  ;;  %v12127_v22 = vadd.f32 1e-05, %v2900_v43  ;;  %v3201_v40 = vadd.f32 %v11991_v47, %v3164_v42  ;;  %v9570_v43 = vld [vmem:[#allocation13 + $0x194] sm:$0xf0]  ;;  %3976 = vmatpush.bf16.msrb.mxu3 %v8566_v6 }
 0x366   : > { %v2740_v51 = vpop.xlane.xlu2 %2739  ;;  %v3030_v34 = vmul.f32 %v10036_v33, %v3029_v63  ;;  %v3036_v38 = vmul.f32 %v10038_v0, %v12099_v56  ;;  %vm3042_vm9 = vweird.f32 %v10038_v0  ;;  %v8434_v63 = vor.u32 %v9538_v48, %v8433_v62 }
 0x367   : > { %v12131_v25 = vmul.f32 %v11930_v46, %v2740_v51  ;;  %10039 = vrsqrt.f32 %v12127_v22  ;;  %v8562_v51 = vor.u32 %v9570_v43, %v8561_v55  ;;  %vm3043_vm11 = vmor %vm3041_vm10, %vm3042_vm9  ;;  %vm3051_vm13 = vweird.f32 %v12127_v22 }
 0x368   : > { %v2843_v45 = vpop.xlane.xlu1 %2842  ;;  %v3034_v50 = vsel %vm3033_vm8, %v10036_v33, %v3030_v34  ;;  %v3037_v2 = vmul.f32 %v10038_v0, %v3036_v38  ;;  %3829 = vmatpush.bf16.msrb.mxu0 %v8434_v63  ;;  %v2925_v48 = vsub.f32 %v11835_v17, %v12107_v15  ;;  %v2926_v55 = vsub.f32 %v11839_v12, %v12107_v15  ;;  %v8419_v17 = vld [vmem:[#allocation13 + $0x78] sm:$0xf0] }
 0x369   : > { %v3129_v61 = vmul.f32 %v3034_v50, %v2921_v37  ;;  %v3130_v28 = vmul.f32 %v3034_v50, %v2922_v9  ;;  %v2885_v7 = vmul.f32 %v12131_v25, %v12131_v25  ;;  %v2869_v16 = vmul.f32 %v2843_v45, %v11930_v46  ;;  %3878 = vmatpush.bf16.msrb.mxu1 %v8562_v51 }
 0x36a   : > { %v3038_v13 = vmul.f32 0.5, %v3037_v2  ;;  %v3202_v9 = vadd.f32 %v11994_v41, %v3165_v36 }
 0x36b   : > { %v2901_v33 = vsub.f32 %v2869_v16, %v2885_v7  ;;  %v3166_v53 = vmul.f32 %v11975_v5, %v3129_v61  ;;  %v3167_v23 = vmul.f32 %v11977_v8, %v3130_v28  ;;  %v2923_v16 = vsub.f32 %v11820_v44, %v12084_v26 }
 0x36c   : > { %v3039_v54 = vsub.f32 1.5, %v3038_v13  ;;  %v2924_v13 = vsub.f32 %v11825_v14, %v12084_v26 }
 0x36d   : > { %v10040_v34 = vpop.eup %10039  ;;  %v12146_v38 = vadd.f32 1e-05, %v2901_v33  ;;  %v3203_v37 = vadd.f32 %v11991_v47, %v3166_v53  ;;  %v3204_v45 = vadd.f32 %v11994_v41, %v3167_v23 }
 0x36e   : > { %v2743_v42 = vpop.xlane.xlu0 %2742  ;;  %v3040_v50 = vmul.f32 %v10038_v0, %v3039_v54  ;;  %v3046_v2 = vmul.f32 %v10040_v34, %v12127_v22  ;;  %vm3052_vm12 = vweird.f32 %v10040_v34 }
 0x36f   : > { %v12154_v61 = vmul.f32 %v11930_v46, %v2743_v42  ;;  %10041 = vrsqrt.f32 %v12146_v38  ;;  %v12158_v7 = vpack.c.bf16 %v3203_v37, %v3201_v40  ;;  %v12160_v36 = vpack.c.bf16 %v3204_v45, %v3202_v9  ;;  %vm3053_vm14 = vmor %vm3051_vm13, %vm3052_vm12  ;;  %v9532_v45 = vld [vmem:[#allocation13 + $0x6c] sm:$0xf] }
 0x370   : > { %v2846_v28 = vpop.xlane.xlu2 %2845  ;;  %v3044_v56 = vsel %vm3043_vm11, %v10038_v0, %v3040_v50  ;;  %v3047_v19 = vmul.f32 %v10040_v34, %v3046_v2  ;;  %v9564_v50 = vld [vmem:[#allocation13 + $0x16c] sm:$0xf]  ;;  %v8422_v15 = vor.u32 %v9532_v45, %v8419_v17  ;;  %vm3061_vm0 = vweird.f32 %v12146_v38 }
 0x371   : > { %v2870_v32 = vmul.f32 %v2846_v28, %v11930_v46  ;;  %v2886_v11 = vmul.f32 %v12154_v61, %v12154_v61  ;;  %3653 = vmatmul.bf16.gmra.mxu0 %v12158_v7  ;;  %v3131_v4 = vmul.f32 %v3044_v56, %v2923_v16  ;;  %3702 = vmatmul.bf16.gmra.mxu1 %v12160_v36  ;;  %v8547_v28 = vld [vmem:[#allocation13 + $0x178] sm:$0xf0]  ;;  %v8417_v16 = vld [vmem:[#allocation13 + $0x68] sm:$0xf] }
 0x372   : > { %v3048_v40 = vmul.f32 0.5, %v3047_v19  ;;  %3751 = vmatmul.bf16.gmra.mxu2 %v12158_v7  ;;  %3800 = vmatmul.bf16.gmra.mxu3 %v12160_v36  ;;  %v3132_v44 = vmul.f32 %v3044_v56, %v2924_v13  ;;  %v8545_v13 = vld [vmem:[#allocation13 + $0x168] sm:$0xf] }
 0x373   : > { %v2902_v20 = vsub.f32 %v2870_v32, %v2886_v11  ;;  %v3168_v6 = vmul.f32 %v11975_v5, %v3131_v4  ;;  %v8550_v32 = vor.u32 %v9564_v50, %v8547_v28  ;;  %v9534_v11 = vld [vmem:[#allocation13 + $0x74] sm:$0xf0]  ;;  %3928 = vmatpush.bf16.msrb.mxu2 %v8422_v15 }
 0x374   : > { %v3049_v0 = vsub.f32 1.5, %v3048_v40  ;;  %v3169_v63 = vmul.f32 %v11977_v8, %v3132_v44  ;;  %v9566_v4 = vld [vmem:[#allocation13 + $0x174] sm:$0xf0]  ;;  %v8418_v44 = vor.u32 %v9534_v11, %v8417_v16 }
 0x375   : > { %v10042_v62 = vpop.eup %10041  ;;  %v12174_v33 = vadd.f32 1e-05, %v2902_v20  ;;  %v3205_v12 = vadd.f32 %v11991_v47, %v3168_v6  ;;  %3977 = vmatpush.bf16.msrb.mxu3 %v8550_v32 }
 0x376   : > { %v2746_v53 = vpop.xlane.xlu0 %2745  ;;  %v3050_v23 = vmul.f32 %v10040_v34, %v3049_v0  ;;  %v3056_v14 = vmul.f32 %v10042_v62, %v12146_v38  ;;  %v3206_v20 = vadd.f32 %v11994_v41, %v3169_v63  ;;  %v8546_v0 = vor.u32 %v9566_v4, %v8545_v13  ;;  %3830 = vmatpush.bf16.msrb.mxu0 %v8418_v44 }
 0x377   : > { %v12178_v26 = vmul.f32 %v11930_v46, %v2746_v53  ;;  %10043 = vrsqrt.f32 %v12174_v33  ;;  %vm3062_vm15 = vweird.f32 %v10042_v62  ;;  %v2927_v38 = vsub.f32 %v11852_v49, %v12131_v25 }
 0x378   : > { %v2849_v22 = vpop.xlane.xlu2 %2848  ;;  %v3054_v43 = vsel %vm3053_vm14, %v10040_v34, %v3050_v23  ;;  %v3057_v54 = vmul.f32 %v10042_v62, %v3056_v14  ;;  %3879 = vmatpush.bf16.msrb.mxu1 %v8546_v0  ;;  %vm3063_vm1 = vmor %vm3061_vm0, %vm3062_vm15  ;;  %vm3071_vm3 = vweird.f32 %v12174_v33 }
 0x379   : > { %v3133_v51 = vmul.f32 %v3054_v43, %v2925_v48  ;;  %v3134_v42 = vmul.f32 %v3054_v43, %v2926_v55  ;;  %v2871_v37 = vmul.f32 %v2849_v22, %v11930_v46  ;;  %v2887_v9 = vmul.f32 %v12178_v26, %v12178_v26 }
 0x37a   : > { %v3058_v2 = vmul.f32 0.5, %v3057_v54 }
 0x37b   : > { %v2903_v34 = vsub.f32 %v2871_v37, %v2887_v9  ;;  %v3170_v56 = vmul.f32 %v11975_v5, %v3133_v51  ;;  %v3171_v19 = vmul.f32 %v11977_v8, %v3134_v42 }
 0x37c   : > { %v3059_v40 = vsub.f32 1.5, %v3058_v2 }
 0x37d   : > { %v10044_v53 = vpop.eup %10043  ;;  %v12194_v23 = vadd.f32 1e-05, %v2903_v34  ;;  %v3207_v6 = vadd.f32 %v11991_v47, %v3170_v56  ;;  %v3208_v48 = vadd.f32 %v11994_v41, %v3171_v19 }
 0x37e   : > { %v2749_v14 = vpop.xlane.xlu1 %2748  ;;  %v3060_v55 = vmul.f32 %v10042_v62, %v3059_v40  ;;  %v3066_v22 = vmul.f32 %v10044_v53, %v12174_v33  ;;  %vm3072_vm2 = vweird.f32 %v10044_v53 }
 0x37f   : > { %v12200_v43 = vmul.f32 %v11930_v46, %v2749_v14  ;;  %10045 = vrsqrt.f32 %v12194_v23  ;;  %v12204_v63 = vpack.c.bf16 %v3207_v6, %v3205_v12  ;;  %v12206_v51 = vpack.c.bf16 %v3208_v48, %v3206_v20  ;;  %vm3073_vm4 = vmor %vm3071_vm3, %vm3072_vm2 }
 0x380   : > { %v2852_v54 = vpop.xlane.xlu0 %2851  ;;  %v3067_v42 = vmul.f32 %v10044_v53, %v3066_v22  ;;  %v3064_v37 = vsel %vm3063_vm1, %v10042_v62, %v3060_v55  ;;  %v2928_v62 = vsub.f32 %v11857_v35, %v12131_v25  ;;  %v2929_v35 = vsub.f32 %v11867_v31, %v12154_v61  ;;  %v9560_v55 = vld [vmem:[#allocation13 + $0x14c] sm:$0xf]  ;;  %v8531_v22 = vld [vmem:[#allocation13 + $0x158] sm:$0xf0] }
 0x381   : > { %v2888_v9 = vmul.f32 %v12200_v43, %v12200_v43  ;;  %v2872_v45 = vmul.f32 %v2852_v54, %v11930_v46  ;;  %3658 = vmatmul.bf16.gmra.mxu0 %v12204_v63  ;;  %3707 = vmatmul.bf16.gmra.mxu1 %v12206_v51  ;;  %v3135_v2 = vmul.f32 %v3064_v37, %v2927_v38  ;;  %v8401_v54 = vld [vmem:[#allocation13 + $0x48] sm:$0xf]  ;;  %vm3081_vm6 = vweird.f32 %v12194_v23 }
 0x382   : > { %v3068_v17 = vmul.f32 0.5, %v3067_v42  ;;  %3756 = vmatmul.bf16.gmra.mxu2 %v12204_v63  ;;  %3805 = vmatmul.bf16.gmra.mxu3 %v12206_v51  ;;  %v3136_v16 = vmul.f32 %v3064_v37, %v2928_v62  ;;  %v2930_v25 = vsub.f32 %v11871_v60, %v12154_v61  ;;  %v9528_v60 = vld [vmem:[#allocation13 + $0x4c] sm:$0xf]  ;;  %v8403_v61 = vld [vmem:[#allocation13 + $0x58] sm:$0xf0] }
 0x383   : > { %v2904_v50 = vsub.f32 %v2872_v45, %v2888_v9  ;;  %v3172_v13 = vmul.f32 %v11975_v5, %v3135_v2  ;;  %v8406_v48 = vor.u32 %v9528_v60, %v8403_v61  ;;  %v8534_v9 = vor.u32 %v9560_v55, %v8531_v22  ;;  %v9530_v45 = vld [vmem:[#allocation13 + $0x54] sm:$0xf0]  ;;  %v8529_v38 = vld [vmem:[#allocation13 + $0x148] sm:$0xf] }
 0x384   : > { %v3069_v12 = vsub.f32 1.5, %v3068_v17  ;;  %v3173_v0 = vmul.f32 %v11977_v8, %v3136_v16  ;;  %v9524_v16 = vld [vmem:[#allocation13 + $0x2c] sm:$0xf]  ;;  %v9526_v60 = vld [vmem:[#allocation13 + $0x34] sm:$0xf0] }
 0x385   : > { %v12220_v15 = vpop.eup %10045  ;;  %v12223_v28 = vadd.f32 1e-05, %v2904_v50  ;;  %v3209_v37 = vadd.f32 %v11991_v47, %v3172_v13  ;;  %3929 = vmatpush.bf16.msrb.mxu2 %v8406_v48  ;;  %3978 = vmatpush.bf16.msrb.mxu3 %v8534_v9  ;;  %v8371_v9 = vld [vmem:[#allocation13 + $0x18] sm:$0xf0] }
 0x386   : > { %v2752_v49 = vpop.xlane.xlu1 %2751  ;;  %v3070_v34 = vmul.f32 %v10044_v53, %v3069_v12  ;;  %v3076_v56 = vmul.f32 %v12220_v15, %v12194_v23  ;;  %vm3082_vm5 = vweird.f32 %v12220_v15  ;;  %v8402_v12 = vor.u32 %v9530_v45, %v8401_v54  ;;  %v9552_v45 = vld [vmem:[#allocation13 + $0x10c] sm:$0xf] }
 0x387   : > { %v12228_v19 = vmul.f32 %v11930_v46, %v2752_v49  ;;  %10047 = vrsqrt.f32 %v12223_v28  ;;  %v9562_v49 = vld [vmem:[#allocation13 + $0x154] sm:$0xf0]  ;;  %vm3083_vm7 = vmor %vm3081_vm6, %vm3082_vm5  ;;  %v2931_v54 = vsub.f32 %v11883_v39, %v12178_v26  ;;  %vm3091_vm9 = vweird.f32 %v12223_v28 }
 0x388   : > { %v2855_v33 = vpop.xlane.xlu0 %2854  ;;  %v3074_v32 = vsel %vm3073_vm4, %v10044_v53, %v3070_v34  ;;  %v3077_v11 = vmul.f32 %v12220_v15, %v3076_v56  ;;  %3831 = vmatpush.bf16.msrb.mxu0 %v8402_v12 }
 0x389   : > { %v3137_v4 = vmul.f32 %v3074_v32, %v2929_v35  ;;  %v3138_v40 = vmul.f32 %v3074_v32, %v2930_v25  ;;  %v2889_v20 = vmul.f32 %v12228_v19, %v12228_v19  ;;  %v2873_v44 = vmul.f32 %v2855_v33, %v11930_v46  ;;  %v8387_v32 = vld [vmem:[#allocation13 + $0x38] sm:$0xf0] }
 0x38a   : > { %v3078_v31 = vmul.f32 0.5, %v3077_v11  ;;  %v3210_v25 = vadd.f32 %v11994_v41, %v3173_v0  ;;  %v8530_v33 = vor.u32 %v9562_v49, %v8529_v38  ;;  %v8390_v23 = vor.u32 %v9524_v16, %v8387_v32  ;;  %v8385_v0 = vld [vmem:[#allocation13 + $0x28] sm:$0xf]  ;;  %v8499_v49 = vld [vmem:[#allocation13 + $0x118] sm:$0xf0] }
 0x38b   : > { %v2905_v14 = vsub.f32 %v2873_v44, %v2889_v20  ;;  %v3174_v6 = vmul.f32 %v11975_v5, %v3137_v4  ;;  %v3175_v53 = vmul.f32 %v11977_v8, %v3138_v40  ;;  %v9556_v4 = vld [vmem:[#allocation13 + $0x12c] sm:$0xf]  ;;  %v8515_v40 = vld [vmem:[#allocation13 + $0x138] sm:$0xf0]  ;;  %v8369_v16 = vld [vmem:[#allocation13 + $0x8] sm:$0xf] }
 0x38c   : > { %v3079_v42 = vsub.f32 1.5, %v3078_v31  ;;  %3880 = vmatpush.bf16.msrb.mxu1 %v8530_v33  ;;  %v8518_v22 = vor.u32 %v9556_v4, %v8515_v40  ;;  %3930 = vmatpush.bf16.msrb.mxu2 %v8390_v23  ;;  %v2933_v40 = vsub.f32 %v11899_v10, %v12200_v43 }
 0x38d   : > { %v12245_v17 = vpop.eup %10047  ;;  %v12247_v50 = vadd.f32 1e-05, %v2905_v14  ;;  %v3211_v62 = vadd.f32 %v11991_v47, %v3174_v6  ;;  %v3212_v2 = vadd.f32 %v11994_v41, %v3175_v53  ;;  %v8513_v14 = vld [vmem:[#allocation13 + $0x128] sm:$0xf]  ;;  %v9558_v6 = vld [vmem:[#allocation13 + $0x134] sm:$0xf0] }
 0x38e   : > { %v3080_v34 = vmul.f32 %v12220_v15, %v3079_v42  ;;  %v3086_v56 = vmul.f32 %v12245_v17, %v12223_v28  ;;  %v2755_v35 = vpop.xlane.xlu2 %2754  ;;  %vm3092_vm8 = vweird.f32 %v12245_v17  ;;  %v8386_v42 = vor.u32 %v9526_v60, %v8385_v0  ;;  %3979 = vmatpush.bf16.msrb.mxu3 %v8518_v22 }
 0x38f   : > { %10049 = vrsqrt.f32 %v12247_v50  ;;  %v12258_v11 = vmul.f32 %v11930_v46, %v2755_v35  ;;  %v12260_v13 = vpack.c.bf16 %v3211_v62, %v3209_v37  ;;  %v12265_v31 = vpack.c.bf16 %v3212_v2, %v3210_v25  ;;  %v9520_v37 = vld [vmem:[#allocation13 + $0xc] sm:$0xf]  ;;  %v8497_v35 = vld [vmem:[#allocation13 + $0x108] sm:$0xf]  ;;  %v9554_v25 = vld [vmem:[#allocation13 + $0x114] sm:$0xf0] }
 0x390   : > { %v3087_v20 = vmul.f32 %v12245_v17, %v3086_v56  ;;  %v2858_v44 = vpop.xlane.xlu1 %2857  ;;  %v3084_v61 = vsel %vm3083_vm7, %v12220_v15, %v3080_v34  ;;  %v2932_v15 = vsub.f32 %v11889_v57, %v12178_v26  ;;  %v8514_v2 = vor.u32 %v9558_v6, %v8513_v14  ;;  %3832 = vmatpush.bf16.msrb.mxu0 %v8386_v42  ;;  %v9522_v26 = vld [vmem:[#allocation13 + $0x14] sm:$0xf0]  ;;  %vm3093_vm10 = vmor %vm3091_vm9, %vm3092_vm8 }
 0x391   : > { %3663 = vmatmul.bf16.gmra.mxu0 %v12260_v13  ;;  %v2890_v48 = vmul.f32 %v12258_v11, %v12258_v11  ;;  %v2874_v55 = vmul.f32 %v2858_v44, %v11930_v46  ;;  %3712 = vmatmul.bf16.gmra.mxu1 %v12265_v31  ;;  %v8374_v12 = vor.u32 %v9520_v37, %v8371_v9  ;;  %vm3101_vm12 = vweird.f32 %v12247_v50 }
 0x392   : > { %v3088_v53 = vmul.f32 0.5, %v3087_v20  ;;  %3761 = vmatmul.bf16.gmra.mxu2 %v12260_v13  ;;  %3810 = vmatmul.bf16.gmra.mxu3 %v12265_v31  ;;  %v3139_v34 = vmul.f32 %v3084_v61, %v2931_v54  ;;  %v3140_v56 = vmul.f32 %v3084_v61, %v2932_v15  ;;  %v8502_v57 = vor.u32 %v9552_v45, %v8499_v49 }
 0x393   : > { %v2906_v62 = vsub.f32 %v2874_v55, %v2890_v48  ;;  %3881 = vmatpush.bf16.msrb.mxu1 %v8514_v2  ;;  %v2934_v20 = vsub.f32 %v11903_v18, %v12200_v43  ;;  %3931 = vmatpush.bf16.msrb.mxu2 %v8374_v12  ;;  %v8370_v44 = vor.u32 %v9522_v26, %v8369_v16  ;;  %v9611_v2 = vld [vmem:[#allocation5 + $0xe4] sm:$0xf]  ;;  %v8731_v12 = vld [vmem:[#allocation5 + $0xf0] sm:$0xf0] }
 0x394   : > { %v3089_v38 = vsub.f32 1.5, %v3088_v53  ;;  %v8498_v23 = vor.u32 %v9554_v25, %v8497_v35  ;;  %3980 = vmatpush.bf16.msrb.mxu3 %v8502_v57  ;;  %v3176_v14 = vmul.f32 %v11975_v5, %v3139_v34  ;;  %v3177_v10 = vmul.f32 %v11977_v8, %v3140_v56  ;;  %v9643_v34 = vld [vmem:[#allocation5 + $0x1e4] sm:$0xf]  ;;  %v8859_v56 = vld [vmem:[#allocation5 + $0x1f0] sm:$0xf0] }
 0x395   : > { %v10050_v39 = vpop.eup %10049  ;;  %v2954_v4 = vadd.f32 1e-05, %v2906_v62  ;;  %3833 = vmatpush.bf16.msrb.mxu0 %v8370_v44  ;;  %v2935_v49 = vsub.f32 %v11915_v1, %v12228_v19  ;;  %v8734_v16 = vor.u32 %v9611_v2, %v8731_v12  ;;  %v8862_v26 = vor.u32 %v9643_v34, %v8859_v56  ;;  %v8729_v44 = vld [vmem:[#allocation5 + $0xe0] sm:$0xf]  ;;  %v9641_v2 = vld [vmem:[#allocation5 + $0x1cc] sm:$0xf0] }
 0x396   : > { %v3090_v33 = vmul.f32 %v12245_v17, %v3089_v38  ;;  %v3096_v32 = vmul.f32 %v10050_v39, %v12247_v50  ;;  %v3213_v48 = vadd.f32 %v11991_v47, %v3176_v14  ;;  %v3214_v55 = vadd.f32 %v11994_v41, %v3177_v10 }
 0x397   : > { %10051 = vrsqrt.f32 %v2954_v4  ;;  %3882 = vmatpush.bf16.msrb.mxu1 %v8498_v23  ;;  %vm3102_vm11 = vweird.f32 %v10050_v39  ;;  %v2936_v50 = vsub.f32 %v11920_v29, %v12228_v19  ;;  %4616 = vmatpush.bf16.msra.mxu2 %v8734_v16  ;;  %vm3111_vm15 = vweird.f32 %v2954_v4  ;;  %v9613_v23 = vld [vmem:[#allocation5 + $0xec] sm:$0xf0] }
 0x398   : > { %v3094_v0 = vsel %vm3093_vm10, %v12245_v17, %v3090_v33  ;;  %v3097_v60 = vmul.f32 %v10050_v39, %v3096_v32  ;;  %vm3103_vm13 = vmor %vm3101_vm12, %vm3102_vm11  ;;  %4665 = vmatpush.bf16.msra.mxu3 %v8862_v26  ;;  %v2937_v33 = vsub.f32 %v11933_v24, %v12258_v11  ;;  %v2938_v1 = vsub.f32 %v11936_v21, %v12258_v11  ;;  %v9645_v24 = vld [vmem:[#allocation5 + $0x1ec] sm:$0xf0]  ;;  %v8699_v26 = vld [vmem:[#allocation5 + $0xb0] sm:$0xf0] }
 0x399   : > { %v3141_v28 = vmul.f32 %v3094_v0, %v2933_v40  ;;  %v3142_v61 = vmul.f32 %v3094_v0, %v2934_v20  ;;  %v8857_v0 = vld [vmem:[#allocation5 + $0x1e0] sm:$0xf] }
 0x39a   : > { %v3098_v6 = vmul.f32 0.5, %v3097_v60 }
 0x39b   : > { %v3178_v18 = vmul.f32 %v11975_v5, %v3141_v28  ;;  %v3179_v43 = vmul.f32 %v11977_v8, %v3142_v61  ;;  %v8730_v28 = vor.u32 %v9613_v23, %v8729_v44  ;;  %v8858_v61 = vor.u32 %v9645_v24, %v8857_v0  ;;  %v8697_v23 = vld [vmem:[#allocation5 + $0xa0] sm:$0xf]  ;;  %v9605_v0 = vld [vmem:[#allocation5 + $0xac] sm:$0xf0] }
 0x39c   : > { %v3099_v53 = vsub.f32 1.5, %v3098_v6  ;;  %v8698_v24 = vor.u32 %v9605_v0, %v8697_v23  ;;  %v9595_v23 = vld [vmem:[#allocation5 + $0x64] sm:$0xf]  ;;  %v8667_v0 = vld [vmem:[#allocation5 + $0x70] sm:$0xf0] }
 0x39d   : > { %v3215_v17 = vadd.f32 %v11991_v47, %v3178_v18  ;;  %v3216_v22 = vadd.f32 %v11994_v41, %v3179_v43  ;;  %v10052_v54 = vpop.eup %10051  ;;  %4518 = vmatpush.bf16.msra.mxu0 %v8730_v28  ;;  %4567 = vmatpush.bf16.msra.mxu1 %v8858_v61  ;;  %v9607_v43 = vld [vmem:[#allocation5 + $0xc4] sm:$0xf]  ;;  %v9637_v61 = vld [vmem:[#allocation5 + $0x1ac] sm:$0xf0] }
 0x39e   : > { %v3100_v15 = vmul.f32 %v10050_v39, %v3099_v53  ;;  %v3106_v42 = vmul.f32 %v10052_v54, %v2954_v4  ;;  %vm3112_vm14 = vweird.f32 %v10052_v54  ;;  %v8715_v53 = vld [vmem:[#allocation5 + $0xd0] sm:$0xf0] }
 0x39f   : > { %v12298_v37 = vpack.c.bf16 %v3215_v17, %v3213_v48  ;;  %v12300_v9 = vpack.c.bf16 %v3216_v22, %v3214_v55  ;;  %vm3113_vm0 = vmor %vm3111_vm15, %vm3112_vm14  ;;  %v9639_v48 = vld [vmem:[#allocation5 + $0x1c4] sm:$0xf]  ;;  %v8718_v17 = vor.u32 %v9607_v43, %v8715_v53  ;;  %v8843_v55 = vld [vmem:[#allocation5 + $0x1d0] sm:$0xf0] }
 0x3a0   : > { %v3107_v45 = vmul.f32 %v10052_v54, %v3106_v42  ;;  %v3104_v38 = vsel %vm3103_vm13, %v10050_v39, %v3100_v15  ;;  %v8846_v22 = vor.u32 %v9639_v48, %v8843_v55  ;;  %v8713_v15 = vld [vmem:[#allocation5 + $0xc0] sm:$0xf]  ;;  %v9609_v42 = vld [vmem:[#allocation5 + $0xcc] sm:$0xf0]  ;;  %v8683_v55 = vld [vmem:[#allocation5 + $0x90] sm:$0xf0] }
 0x3a1   : > { %3668 = vmatmul.bf16.gmra.mxu0 %v12298_v37  ;;  %3717 = vmatmul.bf16.gmra.mxu1 %v12300_v9  ;;  %v3143_v35 = vmul.f32 %v3104_v38, %v2935_v49  ;;  %v3144_v25 = vmul.f32 %v3104_v38, %v2936_v50 }
 0x3a2   : > { %3766 = vmatmul.bf16.gmra.mxu2 %v12298_v37  ;;  %v3108_v62 = vmul.f32 0.5, %v3107_v45  ;;  %3815 = vmatmul.bf16.gmra.mxu3 %v12300_v9  ;;  %v8841_v45 = vld [vmem:[#allocation5 + $0x1c0] sm:$0xf] }
 0x3a3   : > { %v3180_v40 = vmul.f32 %v11975_v5, %v3143_v35  ;;  %v3181_v20 = vmul.f32 %v11977_v8, %v3144_v25  ;;  %4617 = vmatpush.bf16.msra.mxu2 %v8718_v17  ;;  %4666 = vmatpush.bf16.msra.mxu3 %v8846_v22  ;;  %v8842_v49 = vor.u32 %v9641_v2, %v8841_v45  ;;  %v9635_v35 = vld [vmem:[#allocation5 + $0x1a4] sm:$0xf]  ;;  %v8811_v45 = vld [vmem:[#allocation5 + $0x190] sm:$0xf0] }
 0x3a4   : > { %v3109_v57 = vsub.f32 1.5, %v3108_v62  ;;  %v8714_v62 = vor.u32 %v9609_v42, %v8713_v15  ;;  %v9599_v17 = vld [vmem:[#allocation5 + $0x84] sm:$0xf] }
 0x3a5   : > { %v3217_v21 = vadd.f32 %v11991_v47, %v3180_v40  ;;  %v3218_v14 = vadd.f32 %v11994_v41, %v3181_v20  ;;  %4568 = vmatpush.bf16.msra.mxu1 %v8842_v49  ;;  %v9631_v22 = vld [vmem:[#allocation5 + $0x184] sm:$0xf]  ;;  %v8686_v42 = vor.u32 %v9599_v17, %v8683_v55  ;;  %v9597_v17 = vld [vmem:[#allocation5 + $0x6c] sm:$0xf0] }
 0x3a6   : > { %v3110_v39 = vmul.f32 %v10052_v54, %v3109_v57  ;;  %4519 = vmatpush.bf16.msra.mxu0 %v8714_v62  ;;  %v9603_v57 = vld [vmem:[#allocation5 + $0xa4] sm:$0xf] }
 0x3a8   : > { %v3114_v29 = vsel %vm3113_vm0, %v10052_v54, %v3110_v39  ;;  %v12334_v54 = vld [vmem:[%s14154_s8] sm:$0xf] }
 0x3a9   : > { %v3145_v19 = vmul.f32 %v3114_v29, %v2937_v33  ;;  %v3146_v32 = vmul.f32 %v3114_v29, %v2938_v1  ;;  %v12337_v50 = vperm.slane %v12334_v54, 0  ;;  %v12340_v16 = vperm.slane %v12334_v54, 1  ;;  %v8827_v29 = vld [vmem:[#allocation5 + $0x1b0] sm:$0xf0] }
 0x3aa   : > { %v8702_v1 = vor.u32 %v9603_v57, %v8699_v26  ;;  %4520 = vmatpush.bf16.msra.mxu0 %v8698_v24  ;;  %v8681_v57 = vld [vmem:[#allocation5 + $0x80] sm:$0xf]  ;;  %v9601_v26 = vld [vmem:[#allocation5 + $0x8c] sm:$0xf0]  ;;  %v8795_v24 = vld [vmem:[#allocation5 + $0x170] sm:$0xf0] }
 0x3ab   : > { %v3182_v4 = vmul.f32 %v11975_v5, %v3145_v19  ;;  %v3183_v60 = vmul.f32 %v11977_v8, %v3146_v32  ;;  %14210 = vst [vmem:[#allocation29_spill] sm:$0xff] %v12337_v50  ;;  %v8830_v32 = vor.u32 %v9635_v35, %v8827_v29 }
 0x3ac   : > { %14211 = vst [vmem:[#allocation30_spill] sm:$0xff] %v12340_v16  ;;  %4618 = vmatpush.bf16.msra.mxu2 %v8702_v1 }
 0x3ad   : > { %v3219_v11 = vadd.f32 %v11991_v47, %v3182_v4  ;;  %v3220_v10 = vadd.f32 %v11994_v41, %v3183_v60  ;;  %4667 = vmatpush.bf16.msra.mxu3 %v8830_v32  ;;  %v8825_v4 = vld [vmem:[#allocation5 + $0x1a0] sm:$0xf] }
 0x3af   : > { %v12323_v6 = vpack.c.bf16 %v3219_v11, %v3217_v21  ;;  %v12325_v18 = vpack.c.bf16 %v3220_v10, %v3218_v14  ;;  %v8826_v11 = vor.u32 %v9637_v61, %v8825_v4 }
 0x3b0   : > { %4619 = vmatpush.bf16.msra.mxu2 %v8686_v42  ;;  %v9629_v42 = vld [vmem:[#allocation5 + $0x16c] sm:$0xf0] }
 0x3b1   : > { %3673 = vmatmul.bf16.gmra.mxu0 %v12323_v6  ;;  %3722 = vmatmul.bf16.gmra.mxu1 %v12325_v18 }
 0x3b2   : > { %3771 = vmatmul.bf16.gmra.mxu2 %v12323_v6  ;;  %3820 = vmatmul.bf16.gmra.mxu3 %v12325_v18 }
 0x3b3   : > { %4569 = vmatpush.bf16.msra.mxu1 %v8826_v11 }
 0x3be   : > { %v3639_v38 = vpop.f32.mrf.mxu0  ;;  %v3688_v12 = vpop.f32.mrf.mxu1 }
 0x3bf   : > { %v3640_v34 = vadd.f32 %v3639_v38, %v12337_v50 }
 0x3c1   : > { %3834 = vmatmul.bf16.vlgmr.msrb.gmra.mxu0 %v12016_v58  ;;  %3883 = vmatmul.bf16.vlgmr.msrb.gmra.mxu1 %v12019_v30  ;;  %v3689_v40 = vadd.f32 %v3688_v12, %v3640_v34  ;;  %v8814_v12 = vor.u32 %v9631_v22, %v8811_v45 }
 0x3c2   : > { %3932 = vmatmul.bf16.vlgmr.msrb.gmra.mxu2 %v12016_v58  ;;  %3981 = vmatmul.bf16.vlgmr.msrb.gmra.mxu3 %v12019_v30 }
 0x3c3   : > { %4668 = vmatpush.bf16.msra.mxu3 %v8814_v12 }
 0x3c5   : > { %v3737_v56 = vpop.f32.mrf.mxu2  ;;  %v3786_v39 = vpop.f32.mrf.mxu3 }
 0x3c6   : > { %v3738_v25 = vadd.f32 %v3737_v56, %v12340_v16  ;;  %v3641_v33 = vpop.f32.mrf.mxu0  ;;  %v3690_v19 = vpop.f32.mrf.mxu1 }
 0x3c7   : > { %v3642_v30 = vadd.f32 %v3641_v33, %v12337_v50  ;;  %v9633_v33 = vld [vmem:[#allocation5 + $0x18c] sm:$0xf0] }
 0x3c8   : > { %v3787_v20 = vadd.f32 %v3786_v39, %v3738_v25  ;;  %v8682_v25 = vor.u32 %v9601_v26, %v8681_v57  ;;  %v8809_v39 = vld [vmem:[#allocation5 + $0x180] sm:$0xf]  ;;  %v8651_v57 = vld [vmem:[#allocation5 + $0x50] sm:$0xf0] }
 0x3c9   : > { %v3691_v14 = vadd.f32 %v3690_v19, %v3642_v30  ;;  %v8810_v32 = vor.u32 %v9633_v33, %v8809_v39  ;;  %v8779_v39 = vld [vmem:[#allocation5 + $0x150] sm:$0xf0] }
 0x3ca   : > { %v4022_v58 = vpack.c.bf16 %v3787_v20, %v3689_v40  ;;  %4521 = vmatpush.bf16.msra.mxu0 %v8682_v25  ;;  %v9623_v25 = vld [vmem:[#allocation5 + $0x144] sm:$0xf] }
 0x3cb   : > { %4570 = vmatpush.bf16.msra.mxu1 %v8810_v32 }
 0x3cc   : > { %4054 = vst [vmem:[%s12350_s19] sm:$0xff] %v4022_v58 }
 0x3cd   : > { %v3739_v44 = vpop.f32.mrf.mxu2  ;;  %v3788_v28 = vpop.f32.mrf.mxu3 }
 0x3ce   : > { %v3740_v60 = vadd.f32 %v3739_v44, %v12340_v16  ;;  %v3644_v21 = vpop.f32.mrf.mxu0  ;;  %v3693_v43 = vpop.f32.mrf.mxu1 }
 0x3cf   : > { %v3645_v48 = vadd.f32 %v3644_v21, %v12337_v50 }
 0x3d0   : > { %v3789_v10 = vadd.f32 %v3788_v28, %v3740_v60  ;;  %v8670_v60 = vor.u32 %v9595_v23, %v8667_v0  ;;  %v9627_v28 = vld [vmem:[#allocation5 + $0x164] sm:$0xf]  ;;  %v8777_v0 = vld [vmem:[#allocation5 + $0x140] sm:$0xf] }
 0x3d1   : > { %3839 = vmatmul.bf16.gmra.mxu0 %v12064_v52  ;;  %3888 = vmatmul.bf16.gmra.mxu1 %v12066_v27  ;;  %v3694_v34 = vadd.f32 %v3693_v43, %v3645_v48  ;;  %v8665_v48 = vld [vmem:[#allocation5 + $0x60] sm:$0xf] }
 0x3d2   : > { %v4024_v53 = vpack.c.bf16 %v3789_v10, %v3691_v14  ;;  %3937 = vmatmul.bf16.gmra.mxu2 %v12064_v52  ;;  %3986 = vmatmul.bf16.gmra.mxu3 %v12066_v27  ;;  %v8798_v14 = vor.u32 %v9627_v28, %v8795_v24  ;;  %v8666_v22 = vor.u32 %v9597_v17, %v8665_v48  ;;  %v9619_v17 = vld [vmem:[#allocation5 + $0x124] sm:$0xf] }
 0x3d3   : > { %4620 = vmatpush.bf16.msra.mxu2 %v8670_v60 }
 0x3d4   : > { %4056 = vst [vmem:[%s12350_s19 + $0x10] sm:$0xff] %v4024_v53  ;;  %4669 = vmatpush.bf16.msra.mxu3 %v8798_v14  ;;  %4522 = vmatpush.bf16.msra.mxu0 %v8666_v22 }
 0x3d5   : > { %v3742_v15 = vpop.f32.mrf.mxu2  ;;  %v3791_v62 = vpop.f32.mrf.mxu3 }
 0x3d6   : > { %v3743_v38 = vadd.f32 %v3742_v15, %v12340_v16  ;;  %v3646_v2 = vpop.f32.mrf.mxu0  ;;  %v3695_v49 = vpop.f32.mrf.mxu1  ;;  %v8793_v15 = vld [vmem:[#allocation5 + $0x160] sm:$0xf] }
 0x3d7   : > { %v3647_v56 = vadd.f32 %v3646_v2, %v12337_v50  ;;  %v8794_v2 = vor.u32 %v9629_v42, %v8793_v15 }
 0x3d8   : > { %v3792_v52 = vadd.f32 %v3791_v62, %v3743_v38 }
 0x3d9   : > { %v3696_v20 = vadd.f32 %v3695_v49, %v3647_v56  ;;  %4571 = vmatpush.bf16.msra.mxu1 %v8794_v2  ;;  %v9591_v56 = vld [vmem:[#allocation5 + $0x44] sm:$0xf] }
 0x3da   : > { %v4026_v27 = vpack.c.bf16 %v3792_v52, %v3694_v34 }
 0x3dc   : > { %4058 = vst [vmem:[%s12350_s19 + $0x20] sm:$0xff] %v4026_v27 }
 0x3dd   : > { %v3744_v35 = vpop.f32.mrf.mxu2  ;;  %v3793_v29 = vpop.f32.mrf.mxu3 }
 0x3de   : > { %v3745_v1 = vadd.f32 %v3744_v35, %v12340_v16  ;;  %v3649_v19 = vpop.f32.mrf.mxu0  ;;  %v3698_v40 = vpop.f32.mrf.mxu1  ;;  %v8654_v35 = vor.u32 %v9591_v56, %v8651_v57  ;;  %v9621_v56 = vld [vmem:[#allocation5 + $0x12c] sm:$0xf0] }
 0x3df   : > { %v3650_v44 = vadd.f32 %v3649_v19, %v12337_v50  ;;  %v8782_v19 = vor.u32 %v9623_v25, %v8779_v39 }
 0x3e0   : > { %v3794_v58 = vadd.f32 %v3793_v29, %v3745_v1  ;;  %4621 = vmatpush.bf16.msra.mxu2 %v8654_v35 }
 0x3e1   : > { %3844 = vmatmul.bf16.gmra.mxu0 %v12111_v59  ;;  %3893 = vmatmul.bf16.gmra.mxu1 %v12113_v3 }
 0x3e2   : > { %v4028_v30 = vpack.c.bf16 %v3794_v58, %v3696_v20  ;;  %3942 = vmatmul.bf16.gmra.mxu2 %v12111_v59  ;;  %3991 = vmatmul.bf16.gmra.mxu3 %v12113_v3  ;;  %v3699_v59 = vadd.f32 %v3698_v40, %v3650_v44  ;;  %v8649_v58 = vld [vmem:[#allocation5 + $0x40] sm:$0xf] }
 0x3e3   : > { %4670 = vmatpush.bf16.msra.mxu3 %v8782_v19 }
 0x3e4   : > { %4060 = vst [vmem:[%s12350_s19 + $0x30] sm:$0xff] %v4028_v30  ;;  %v9593_v30 = vld [vmem:[#allocation5 + $0x4c] sm:$0xf0] }
 0x3e5   : > { %v3747_v4 = vpop.f32.mrf.mxu2  ;;  %v3796_v21 = vpop.f32.mrf.mxu3  ;;  %v8650_v23 = vor.u32 %v9593_v30, %v8649_v58  ;;  %v8747_v58 = vld [vmem:[#allocation5 + $0x110] sm:$0xf0] }
 0x3e6   : > { %v3748_v61 = vadd.f32 %v3747_v4, %v12340_v16  ;;  %v3651_v11 = vpop.f32.mrf.mxu0  ;;  %v3700_v10 = vpop.f32.mrf.mxu1  ;;  %v9625_v4 = vld [vmem:[#allocation5 + $0x14c] sm:$0xf0] }
 0x3e7   : > { %v3652_v53 = vadd.f32 %v3651_v11, %v12337_v50  ;;  %4523 = vmatpush.bf16.msra.mxu0 %v8650_v23 }
 0x3e8   : > { %v3797_v43 = vadd.f32 %v3796_v21, %v3748_v61  ;;  %v8778_v61 = vor.u32 %v9625_v4, %v8777_v0 }
 0x3e9   : > { %v3701_v49 = vadd.f32 %v3700_v10, %v3652_v53 }
 0x3ea   : > { %v4030_v3 = vpack.c.bf16 %v3797_v43, %v3699_v59  ;;  %4572 = vmatpush.bf16.msra.mxu1 %v8778_v61  ;;  %v9587_v43 = vld [vmem:[#allocation5 + $0x24] sm:$0xf]  ;;  %v8617_v61 = vld [vmem:[#allocation5] sm:$0xf] }
 0x3ec   : > { %4062 = vst [vmem:[%s12350_s19 + $0x40] sm:$0xff] %v4030_v3  ;;  %v8635_v3 = vld [vmem:[#allocation5 + $0x30] sm:$0xf0] }
 0x3ed   : > { %v3749_v55 = vpop.f32.mrf.mxu2  ;;  %v3798_v38 = vpop.f32.mrf.mxu3  ;;  %v8638_v48 = vor.u32 %v9587_v43, %v8635_v3  ;;  %v9617_v3 = vld [vmem:[#allocation5 + $0x10c] sm:$0xf0] }
 0x3ee   : > { %v3750_v45 = vadd.f32 %v3749_v55, %v12340_v16  ;;  %v3654_v62 = vpop.f32.mrf.mxu0  ;;  %v3703_v12 = vpop.f32.mrf.mxu1  ;;  %v8763_v55 = vld [vmem:[#allocation5 + $0x130] sm:$0xf0] }
 0x3ef   : > { %v3655_v27 = vadd.f32 %v3654_v62, %v12337_v50  ;;  %4622 = vmatpush.bf16.msra.mxu2 %v8638_v48 }
 0x3f0   : > { %v3799_v34 = vadd.f32 %v3798_v38, %v3750_v45  ;;  %v8766_v45 = vor.u32 %v9619_v17, %v8763_v55 }
 0x3f1   : > { %3849 = vmatmul.bf16.gmra.mxu0 %v12158_v7  ;;  %3898 = vmatmul.bf16.gmra.mxu1 %v12160_v36 }
 0x3f2   : > { %v4032_v52 = vpack.c.bf16 %v3799_v34, %v3701_v49  ;;  %3947 = vmatmul.bf16.gmra.mxu2 %v12158_v7  ;;  %3996 = vmatmul.bf16.gmra.mxu3 %v12160_v36  ;;  %v3704_v7 = vadd.f32 %v3703_v12, %v3655_v27  ;;  %v8633_v12 = vld [vmem:[#allocation5 + $0x20] sm:$0xf]  ;;  %v9589_v49 = vld [vmem:[#allocation5 + $0x2c] sm:$0xf0] }
 0x3f3   : > { %4671 = vmatpush.bf16.msra.mxu3 %v8766_v45  ;;  %v8761_v27 = vld [vmem:[#allocation5 + $0x120] sm:$0xf]  ;;  %v9612_v45 = vld [vmem:[#allocation5 + $0xec] sm:$0xf] }
 0x3f4   : > { %4064 = vst [vmem:[%s12350_s19 + $0x50] sm:$0xff] %v4032_v52  ;;  %v8634_v52 = vor.u32 %v9589_v49, %v8633_v12  ;;  %v8762_v25 = vor.u32 %v9621_v56, %v8761_v27  ;;  %v8867_v49 = vld [vmem:[#allocation5 + $0x1f8] sm:$0xf0] }
 0x3f5   : > { %v3752_v26 = vpop.f32.mrf.mxu2  ;;  %v3801_v1 = vpop.f32.mrf.mxu3 }
 0x3f6   : > { %v3753_v33 = vadd.f32 %v3752_v26, %v12340_v16  ;;  %v3656_v29 = vpop.f32.mrf.mxu0  ;;  %v3705_v32 = vpop.f32.mrf.mxu1  ;;  %4524 = vmatpush.bf16.msra.mxu0 %v8634_v52  ;;  %4573 = vmatpush.bf16.msra.mxu1 %v8762_v25  ;;  %v8865_v25 = vld [vmem:[#allocation5 + $0x1e8] sm:$0xf] }
 0x3f7   : > { %v3657_v20 = vadd.f32 %v3656_v29, %v12337_v50 }
 0x3f8   : > { %v3802_v40 = vadd.f32 %v3801_v1, %v3753_v33 }
 0x3f9   : > { %v3706_v11 = vadd.f32 %v3705_v32, %v3657_v20  ;;  %v9583_v32 = vld [vmem:[#allocation5 + $0x4] sm:$0xf] }
 0x3fa   : > { %v4034_v36 = vpack.c.bf16 %v3802_v40, %v3704_v7  ;;  %v8619_v7 = vld [vmem:[#allocation5 + $0x10] sm:$0xf0]  ;;  %v9615_v20 = vld [vmem:[#allocation5 + $0x104] sm:$0xf] }
 0x3fb   : > { %v8750_v0 = vor.u32 %v9615_v20, %v8747_v58 }
 0x3fc   : > { %4066 = vst [vmem:[%s12350_s19 + $0x60] sm:$0xff] %v4034_v36  ;;  %v8622_v36 = vor.u32 %v9583_v32, %v8619_v7 }
 0x3fd   : > { %v3754_v44 = vpop.f32.mrf.mxu2  ;;  %v3803_v28 = vpop.f32.mrf.mxu3  ;;  %4672 = vmatpush.bf16.msra.mxu3 %v8750_v0 }
 0x3fe   : > { %v3755_v60 = vadd.f32 %v3754_v44, %v12340_v16  ;;  %v3659_v24 = vpop.f32.mrf.mxu0  ;;  %v3708_v21 = vpop.f32.mrf.mxu1  ;;  %4623 = vmatpush.bf16.msra.mxu2 %v8622_v36 }
 0x3ff   : > { %v3660_v59 = vadd.f32 %v3659_v24, %v12337_v50 }
 0x400   : > { %v3804_v14 = vadd.f32 %v3803_v28, %v3755_v60 }
 0x401   : > { %3854 = vmatmul.bf16.gmra.mxu0 %v12204_v63  ;;  %3903 = vmatmul.bf16.gmra.mxu1 %v12206_v51 }
 0x402   : > { %v4036_v10 = vpack.c.bf16 %v3804_v14, %v3706_v11  ;;  %3952 = vmatmul.bf16.gmra.mxu2 %v12204_v63  ;;  %4001 = vmatmul.bf16.gmra.mxu3 %v12206_v51  ;;  %v3709_v63 = vadd.f32 %v3708_v21, %v3660_v59  ;;  %v9585_v21 = vld [vmem:[#allocation5 + $0xc] sm:$0xf0]  ;;  %v8745_v11 = vld [vmem:[#allocation5 + $0x100] sm:$0xf] }
 0x403   : > { %v8618_v43 = vor.u32 %v9585_v21, %v8617_v61  ;;  %v8746_v48 = vor.u32 %v9617_v3, %v8745_v11  ;;  %v4086_v21 = vld [vmem:[%s10774_s13 + $0x100] sm:$0xff]  ;;  %v8721_v3 = vld [vmem:[#allocation5 + $0xc8] sm:$0xf] }
 0x404   : > { %4068 = vst [vmem:[%s12350_s19 + $0x70] sm:$0xff] %v4036_v10 }
 0x405   : > { %v3757_v53 = vpop.f32.mrf.mxu2  ;;  %v3806_v15 = vpop.f32.mrf.mxu3  ;;  %4525 = vmatpush.bf16.msra.mxu0 %v8618_v43  ;;  %4574 = vmatpush.bf16.msra.mxu1 %v8746_v48 }
 0x406   : > { %v3758_v22 = vadd.f32 %v3757_v53, %v12340_v16  ;;  %v3661_v42 = vpop.f32.mrf.mxu0  ;;  %v3710_v38 = vpop.f32.mrf.mxu1 }
 0x407   : > { %v3662_v2 = vadd.f32 %v3661_v42, %v12337_v50 }
 0x408   : > { %v3807_v62 = vadd.f32 %v3806_v15, %v3758_v22 }
 0x409   : > { %v3711_v33 = vadd.f32 %v3710_v38, %v3662_v2  ;;  %v8739_v38 = vld [vmem:[#allocation5 + $0xf8] sm:$0xf0] }
 0x40a   : > { %v4038_v51 = vpack.c.bf16 %v3807_v62, %v3709_v63  ;;  %v9644_v63 = vld [vmem:[#allocation5 + $0x1ec] sm:$0xf]  ;;  %v8742_v12 = vor.u32 %v9612_v45, %v8739_v38  ;;  %v9642_v45 = vld [vmem:[#allocation5 + $0x1d4] sm:$0xf0] }
 0x40b   : > { %v8870_v52 = vor.u32 %v9644_v63, %v8867_v49  ;;  %v12434_v49 = vperm.slane %v12334_v54, 2 }
 0x40c   : > { %4070 = vst [vmem:[%s12350_s19 + $0x80] sm:$0xff] %v4038_v51  ;;  %4812 = vmatpush.bf16.msrb.mxu2 %v8742_v12 }
 0x40d   : > { %v3759_v34 = vpop.f32.mrf.mxu2  ;;  %v3808_v26 = vpop.f32.mrf.mxu3  ;;  %4861 = vmatpush.bf16.msrb.mxu3 %v8870_v52  ;;  %14212 = vst [vmem:[#allocation31_spill] sm:$0xff] %v12434_v49  ;;  %v12441_v52 = vperm.slane %v12334_v54, 3 }
 0x40e   : > { %v3760_v57 = vadd.f32 %v3759_v34, %v12340_v16  ;;  %v3664_v35 = vpop.f32.mrf.mxu0  ;;  %v3713_v39 = vpop.f32.mrf.mxu1 }
 0x40f   : > { %v3665_v19 = vadd.f32 %v3664_v35, %v12337_v50  ;;  %v9614_v35 = vld [vmem:[#allocation5 + $0xf4] sm:$0xf0]  ;;  %14213 = vst [vmem:[#allocation32_spill] sm:$0xff] %v12441_v52 }
 0x410   : > { %v3809_v1 = vadd.f32 %v3808_v26, %v3760_v57  ;;  %v8737_v26 = vld [vmem:[#allocation5 + $0xe8] sm:$0xf] }
 0x411   : > { %3859 = vmatmul.bf16.gmra.mxu0 %v12260_v13  ;;  %3908 = vmatmul.bf16.gmra.mxu1 %v12265_v31 }
 0x412   : > { %v4040_v29 = vpack.c.bf16 %v3809_v1, %v3711_v33  ;;  %3957 = vmatmul.bf16.gmra.mxu2 %v12260_v13  ;;  %4006 = vmatmul.bf16.gmra.mxu3 %v12265_v31  ;;  %v3714_v13 = vadd.f32 %v3713_v39, %v3665_v19  ;;  %v8738_v1 = vor.u32 %v9614_v35, %v8737_v26  ;;  %v9636_v35 = vld [vmem:[#allocation5 + $0x1ac] sm:$0xf] }
 0x414   : > { %4072 = vst [vmem:[%s12350_s19 + $0x90] sm:$0xff] %v4040_v29  ;;  %v9646_v29 = vld [vmem:[#allocation5 + $0x1f4] sm:$0xf0]  ;;  %4714 = vmatpush.bf16.msrb.mxu0 %v8738_v1 }
 0x415   : > { %v3762_v40 = vpop.f32.mrf.mxu2  ;;  %v3811_v44 = vpop.f32.mrf.mxu3  ;;  %v8866_v7 = vor.u32 %v9646_v29, %v8865_v25  ;;  %v8835_v25 = vld [vmem:[#allocation5 + $0x1b8] sm:$0xf0] }
 0x416   : > { %v3763_v30 = vadd.f32 %v3762_v40, %v12340_v16  ;;  %v3666_v23 = vpop.f32.mrf.mxu0  ;;  %v3715_v4 = vpop.f32.mrf.mxu1  ;;  %v8838_v1 = vor.u32 %v9636_v35, %v8835_v25 }
 0x417   : > { %v3667_v28 = vadd.f32 %v3666_v23, %v12337_v50  ;;  %4763 = vmatpush.bf16.msrb.mxu1 %v8866_v7  ;;  %v9640_v23 = vld [vmem:[#allocation5 + $0x1cc] sm:$0xf] }
 0x418   : > { %v3812_v60 = vadd.f32 %v3811_v44, %v3763_v30  ;;  %v9608_v30 = vld [vmem:[#allocation5 + $0xcc] sm:$0xf]  ;;  %v8723_v44 = vld [vmem:[#allocation5 + $0xd8] sm:$0xf0] }
 0x419   : > { %v3716_v17 = vadd.f32 %v3715_v4, %v3667_v28 }
 0x41a   : > { %v4042_v31 = vpack.c.bf16 %v3812_v60, %v3714_v13  ;;  %v8726_v13 = vor.u32 %v9608_v30, %v8723_v44  ;;  %v8851_v60 = vld [vmem:[#allocation5 + $0x1d8] sm:$0xf0]  ;;  %v8705_v30 = vld [vmem:[#allocation5 + $0xa8] sm:$0xf]  ;;  %v9606_v44 = vld [vmem:[#allocation5 + $0xb4] sm:$0xf0] }
 0x41c   : > { %4074 = vst [vmem:[%s12350_s19 + $0xa0] sm:$0xff] %v4042_v31  ;;  %4813 = vmatpush.bf16.msrb.mxu2 %v8726_v13 }
 0x41d   : > { %v3764_v24 = vpop.f32.mrf.mxu2  ;;  %v3813_v10 = vpop.f32.mrf.mxu3 }
 0x41e   : > { %v3765_v14 = vadd.f32 %v3764_v24, %v12340_v16  ;;  %v3669_v59 = vpop.f32.mrf.mxu0  ;;  %v3718_v53 = vpop.f32.mrf.mxu1 }
 0x41f   : > { %v3670_v15 = vadd.f32 %v3669_v59, %v12337_v50  ;;  %v4089_v59 = vld [vmem:[%s10774_s13 + $0x118] sm:$0xff] }
 0x420   : > { %v3814_v55 = vadd.f32 %v3813_v10, %v3765_v14  ;;  %v4088_v14 = vld [vmem:[%s10774_s13 + $0x110] sm:$0xff]  ;;  %v4087_v10 = vld [vmem:[%s10774_s13 + $0x108] sm:$0xff] }
 0x421   : > { %3864 = vmatmul.bf16.gmra.mxu0 %v12298_v37  ;;  %3913 = vmatmul.bf16.gmra.mxu1 %v12300_v9  ;;  %v3719_v27 = vadd.f32 %v3718_v53, %v3670_v15  ;;  %v9610_v53 = vld [vmem:[#allocation5 + $0xd4] sm:$0xf0] }
 0x422   : > { %v4044_v22 = vpack.c.bf16 %v3814_v55, %v3716_v17  ;;  %3962 = vmatmul.bf16.gmra.mxu2 %v12298_v37  ;;  %4011 = vmatmul.bf16.gmra.mxu3 %v12300_v9  ;;  %v12428_v55 = vpack.c.bf16 %v4088_v14, %v4086_v21  ;;  %v8722_v15 = vor.u32 %v9610_v53, %v8721_v3 }
 0x424   : > { %4076 = vst [vmem:[%s12350_s19 + $0xb0] sm:$0xff] %v4044_v22  ;;  %v12430_v22 = vpack.c.bf16 %v4089_v59, %v4087_v10  ;;  %4715 = vmatpush.bf16.msrb.mxu0 %v8722_v15  ;;  %v9600_v59 = vld [vmem:[#allocation5 + $0x8c] sm:$0xf]  ;;  %v8819_v15 = vld [vmem:[#allocation5 + $0x198] sm:$0xf0] }
 0x425   : > { %v3767_v42 = vpop.f32.mrf.mxu2  ;;  %v3816_v51 = vpop.f32.mrf.mxu3 }
 0x426   : > { %v3768_v62 = vadd.f32 %v3767_v42, %v12340_v16  ;;  %v3671_v2 = vpop.f32.mrf.mxu0  ;;  %v3720_v34 = vpop.f32.mrf.mxu1  ;;  %v8849_v42 = vld [vmem:[#allocation5 + $0x1c8] sm:$0xf] }
 0x427   : > { %v3672_v56 = vadd.f32 %v3671_v2, %v12337_v50 }
 0x428   : > { %v3817_v37 = vadd.f32 %v3816_v51, %v3768_v62  ;;  %v8850_v51 = vor.u32 %v9642_v45, %v8849_v42 }
 0x429   : > { %v3721_v40 = vadd.f32 %v3720_v34, %v3672_v56 }
 0x42a   : > { %v4046_v9 = vpack.c.bf16 %v3817_v37, %v3719_v27  ;;  %4764 = vmatpush.bf16.msrb.mxu1 %v8850_v51  ;;  %v9604_v37 = vld [vmem:[#allocation5 + $0xac] sm:$0xf] }
 0x42c   : > { %4078 = vst [vmem:[%s12350_s19 + $0xc0] sm:$0xff] %v4046_v9  ;;  %v8707_v9 = vld [vmem:[#allocation5 + $0xb8] sm:$0xf0] }
 0x42d   : > { %v3769_v57 = vpop.f32.mrf.mxu2  ;;  %v3818_v33 = vpop.f32.mrf.mxu3  ;;  %v8710_v26 = vor.u32 %v9604_v37, %v8707_v9  ;;  %v4097_v37 = vld [vmem:[%s10774_s13 + $0x158] sm:$0xff] }
 0x42e   : > { %v3770_v39 = vadd.f32 %v3769_v57, %v12340_v16  ;;  %v3674_v19 = vpop.f32.mrf.mxu0  ;;  %v3723_v32 = vpop.f32.mrf.mxu1 }
 0x42f   : > { %v3675_v58 = vadd.f32 %v3674_v19, %v12337_v50  ;;  %4814 = vmatpush.bf16.msrb.mxu2 %v8710_v26 }
 0x430   : > { %v3819_v36 = vadd.f32 %v3818_v33, %v3770_v39 }
 0x431   : > { %3869 = vmatmul.bf16.gmra.mxu0 %v12323_v6  ;;  %3918 = vmatmul.bf16.gmra.mxu1 %v12325_v18  ;;  %v3724_v24 = vadd.f32 %v3723_v32, %v3675_v58  ;;  %v4090_v32 = vld [vmem:[%s10774_s13 + $0x120] sm:$0xff] }
 0x432   : > { %v4048_v20 = vpack.c.bf16 %v3819_v36, %v3721_v40  ;;  %3967 = vmatmul.bf16.gmra.mxu2 %v12323_v6  ;;  %4016 = vmatmul.bf16.gmra.mxu3 %v12325_v18  ;;  %v8854_v18 = vor.u32 %v9640_v23, %v8851_v60  ;;  %v4092_v40 = vld [vmem:[%s10774_s13 + $0x130] sm:$0xff]  ;;  %v4091_v36 = vld [vmem:[%s10774_s13 + $0x128] sm:$0xff]  ;;  %v8706_v60 = vor.u32 %v9606_v44, %v8705_v30  ;;  %v8675_v44 = vld [vmem:[#allocation5 + $0x78] sm:$0xf0] }
 0x433   : > { %v9596_v30 = vld [vmem:[#allocation5 + $0x6c] sm:$0xf] }
 0x434   : > { %4080 = vst [vmem:[%s12350_s19 + $0xd0] sm:$0xff] %v4048_v20  ;;  %4862 = vmatpush.bf16.msrb.mxu3 %v8854_v18  ;;  %v4093_v20 = vld [vmem:[%s10774_s13 + $0x138] sm:$0xff]  ;;  %4716 = vmatpush.bf16.msrb.mxu0 %v8706_v60  ;;  %v8678_v60 = vor.u32 %v9596_v30, %v8675_v44  ;;  %v4102_v30 = vld [vmem:[%s10774_s13 + $0x180] sm:$0xff] }
 0x435   : > { %v3772_v0 = vpop.f32.mrf.mxu2  ;;  %v3821_v4 = vpop.f32.mrf.mxu3  ;;  %v12454_v13 = vpack.c.bf16 %v4093_v20, %v4091_v36 }
 0x436   : > { %v3773_v31 = vadd.f32 %v3772_v0, %v12340_v16  ;;  %v3676_v6 = vpop.f32.mrf.mxu0  ;;  %v3725_v28 = vpop.f32.mrf.mxu1 }
 0x437   : > { %v3677_v43 = vadd.f32 %v3676_v6, %v12337_v50  ;;  %v9638_v6 = vld [vmem:[#allocation5 + $0x1b4] sm:$0xf0]  ;;  %v9707_v50 = vld [vmem:[#allocation8 + $0x1e4] sm:$0xf] }
 0x438   : > { %v3822_v61 = vadd.f32 %v3821_v4, %v3773_v31  ;;  %4863 = vmatpush.bf16.msrb.mxu3 %v8838_v1  ;;  %v12452_v4 = vpack.c.bf16 %v4092_v40, %v4090_v32  ;;  %v8833_v31 = vld [vmem:[#allocation5 + $0x1a8] sm:$0xf]  ;;  %v9634_v1 = vld [vmem:[#allocation5 + $0x194] sm:$0xf0] }
 0x439   : > { %v3726_v2 = vadd.f32 %v3725_v28, %v3677_v43  ;;  %v8691_v43 = vld [vmem:[#allocation5 + $0x98] sm:$0xf0] }
 0x43a   : > { %v4050_v11 = vpack.c.bf16 %v3822_v61, %v3724_v24  ;;  %v8834_v61 = vor.u32 %v9638_v6, %v8833_v31  ;;  %v9628_v31 = vld [vmem:[#allocation5 + $0x16c] sm:$0xf]  ;;  %v8803_v6 = vld [vmem:[#allocation5 + $0x178] sm:$0xf0] }
 0x43c   : > { %4082 = vst [vmem:[%s12350_s19 + $0xe0] sm:$0xff] %v4050_v11  ;;  %4765 = vmatpush.bf16.msrb.mxu1 %v8834_v61  ;;  %v8806_v61 = vor.u32 %v9628_v31, %v8803_v6  ;;  %v8657_v6 = vld [vmem:[#allocation5 + $0x48] sm:$0xf] }
 0x43d   : > { %v3774_v48 = vpop.f32.mrf.mxu2  ;;  %v3823_v17 = vpop.f32.mrf.mxu3 }
 0x43e   : > { %v3775_v38 = vadd.f32 %v3774_v48, %v12340_v16  ;;  %v3835_v63 = vpop.f32.mrf.mxu0  ;;  %v3884_v62 = vpop.f32.mrf.mxu1  ;;  %v8694_v48 = vor.u32 %v9600_v59, %v8691_v43  ;;  %v4100_v59 = vld [vmem:[%s10774_s13 + $0x170] sm:$0xff]  ;;  %v4099_v43 = vld [vmem:[%s10774_s13 + $0x168] sm:$0xff] }
 0x43f   : > { %v3836_v27 = vadd.f32 %v3835_v63, %v12434_v49 }
 0x440   : > { %v3824_v12 = vadd.f32 %v3823_v17, %v3775_v38  ;;  %v9632_v17 = vld [vmem:[#allocation5 + $0x18c] sm:$0xf]  ;;  %4815 = vmatpush.bf16.msrb.mxu2 %v8694_v48  ;;  %v8673_v48 = vld [vmem:[#allocation5 + $0x68] sm:$0xf] }
 0x441   : > { %4526 = vmatmul.bf16.vlgmr.msra.gmra.mxu0 %v12428_v55  ;;  %4575 = vmatmul.bf16.vlgmr.msra.gmra.mxu1 %v12430_v22  ;;  %v3885_v29 = vadd.f32 %v3884_v62, %v3836_v27  ;;  %v8822_v63 = vor.u32 %v9632_v17, %v8819_v15  ;;  %v4095_v27 = vld [vmem:[%s10774_s13 + $0x148] sm:$0xff]  ;;  %v9598_v17 = vld [vmem:[#allocation5 + $0x74] sm:$0xf0] }
 0x442   : > { %v4052_v34 = vpack.c.bf16 %v3824_v12, %v3726_v2  ;;  %4624 = vmatmul.bf16.vlgmr.msra.gmra.mxu2 %v12428_v55  ;;  %4673 = vmatmul.bf16.vlgmr.msra.gmra.mxu3 %v12430_v22  ;;  %v4094_v2 = vld [vmem:[%s10774_s13 + $0x140] sm:$0xff] }
 0x443   : > { %4864 = vmatpush.bf16.msrb.mxu3 %v8822_v63  ;;  %v8674_v63 = vor.u32 %v9598_v17, %v8673_v48 }
 0x444   : > { %4084 = vst [vmem:[%s12350_s19 + $0xf0] sm:$0xff] %v4052_v34  ;;  %v4096_v34 = vld [vmem:[%s10774_s13 + $0x150] sm:$0xff]  ;;  %4816 = vmatpush.bf16.msrb.mxu2 %v8678_v60  ;;  %v4105_v60 = vld [vmem:[%s10774_s13 + $0x198] sm:$0xff] }
 0x445   : > { %v3933_v56 = vpop.f32.mrf.mxu2  ;;  %v3982_v57 = vpop.f32.mrf.mxu3  ;;  %v12470_v25 = vpack.c.bf16 %v4096_v34, %v4094_v2 }
 0x446   : > { %v3934_v39 = vadd.f32 %v3933_v56, %v12441_v52  ;;  %v3837_v33 = vpop.f32.mrf.mxu0  ;;  %v3886_v54 = vpop.f32.mrf.mxu1  ;;  %v8689_v56 = vld [vmem:[#allocation5 + $0x88] sm:$0xf] }
 0x447   : > { %v3838_v58 = vadd.f32 %v3837_v33, %v12434_v49  ;;  %4865 = vmatpush.bf16.msrb.mxu3 %v8806_v61 }
 0x448   : > { %v3983_v19 = vadd.f32 %v3982_v57, %v3934_v39  ;;  %v9602_v57 = vld [vmem:[#allocation5 + $0x94] sm:$0xf0]  ;;  %v12472_v39 = vpack.c.bf16 %v4097_v37, %v4095_v27 }
 0x449   : > { %v3887_v21 = vadd.f32 %v3886_v54, %v3838_v58  ;;  %v8690_v33 = vor.u32 %v9602_v57, %v8689_v56  ;;  %v8817_v54 = vld [vmem:[#allocation5 + $0x188] sm:$0xf] }
 0x44a   : > { %v4023_v7 = vpack.c.bf16 %v3983_v19, %v3885_v29 }
 0x44b   : > { %4717 = vmatpush.bf16.msrb.mxu0 %v8690_v33 }
 0x44c   : > { %4055 = vst [vmem:[%s12350_s19 + $0x8] sm:$0xff] %v4023_v7  ;;  %v8818_v7 = vor.u32 %v9634_v1, %v8817_v54 }
 0x44d   : > { %v3935_v23 = vpop.f32.mrf.mxu2  ;;  %v3984_v0 = vpop.f32.mrf.mxu3 }
 0x44e   : > { %v3936_v28 = vadd.f32 %v3935_v23, %v12441_v52  ;;  %v3840_v18 = vpop.f32.mrf.mxu0  ;;  %v3889_v24 = vpop.f32.mrf.mxu1  ;;  %4766 = vmatpush.bf16.msrb.mxu1 %v8818_v7 }
 0x44f   : > { %v3841_v10 = vadd.f32 %v3840_v18, %v12434_v49  ;;  %4718 = vmatpush.bf16.msrb.mxu0 %v8674_v63  ;;  %v9588_v63 = vld [vmem:[#allocation5 + $0x2c] sm:$0xf] }
 0x450   : > { %v3985_v11 = vadd.f32 %v3984_v0, %v3936_v28 }
 0x451   : > { %4531 = vmatmul.bf16.gmra.mxu0 %v12452_v4  ;;  %4580 = vmatmul.bf16.gmra.mxu1 %v12454_v13  ;;  %v3890_v62 = vadd.f32 %v3889_v24, %v3841_v10 }
 0x452   : > { %v4025_v14 = vpack.c.bf16 %v3985_v11, %v3887_v21  ;;  %4629 = vmatmul.bf16.gmra.mxu2 %v12452_v4  ;;  %4678 = vmatmul.bf16.gmra.mxu3 %v12454_v13 }
 0x454   : > { %4057 = vst [vmem:[%s12350_s19 + $0x18] sm:$0xff] %v4025_v14  ;;  %v4098_v14 = vld [vmem:[%s10774_s13 + $0x160] sm:$0xff] }
 0x455   : > { %v3938_v3 = vpop.f32.mrf.mxu2  ;;  %v3987_v53 = vpop.f32.mrf.mxu3 }
 0x456   : > { %v3939_v42 = vadd.f32 %v3938_v3, %v12441_v52  ;;  %v3842_v45 = vpop.f32.mrf.mxu0  ;;  %v3891_v38 = vpop.f32.mrf.mxu1  ;;  %v4101_v3 = vld [vmem:[%s10774_s13 + $0x178] sm:$0xff] }
 0x457   : > { %v3843_v9 = vadd.f32 %v3842_v45, %v12434_v49  ;;  %v12488_v45 = vpack.c.bf16 %v4100_v59, %v4098_v14  ;;  %v8785_v14 = vld [vmem:[#allocation5 + $0x148] sm:$0xf] }
 0x458   : > { %v3988_v51 = vadd.f32 %v3987_v53, %v3939_v42 }
 0x459   : > { %v3892_v40 = vadd.f32 %v3891_v38, %v3843_v9  ;;  %v12490_v38 = vpack.c.bf16 %v4101_v3, %v4099_v43 }
 0x45a   : > { %v4027_v12 = vpack.c.bf16 %v3988_v51, %v3890_v62  ;;  %v8801_v62 = vld [vmem:[#allocation5 + $0x168] sm:$0xf]  ;;  %v9630_v51 = vld [vmem:[#allocation5 + $0x174] sm:$0xf0] }
 0x45b   : > { %v8802_v27 = vor.u32 %v9630_v51, %v8801_v62  ;;  %v8643_v62 = vld [vmem:[#allocation5 + $0x38] sm:$0xf0] }
 0x45c   : > { %4059 = vst [vmem:[%s12350_s19 + $0x28] sm:$0xff] %v4027_v12 }
 0x45d   : > { %v3940_v26 = vpop.f32.mrf.mxu2  ;;  %v3989_v35 = vpop.f32.mrf.mxu3  ;;  %4767 = vmatpush.bf16.msrb.mxu1 %v8802_v27  ;;  %v8771_v27 = vld [vmem:[#allocation5 + $0x138] sm:$0xf0] }
 0x45e   : > { %v3941_v29 = vadd.f32 %v3940_v26, %v12441_v52  ;;  %v3845_v19 = vpop.f32.mrf.mxu0  ;;  %v3894_v32 = vpop.f32.mrf.mxu1  ;;  %v9592_v26 = vld [vmem:[#allocation5 + $0x4c] sm:$0xf] }
 0x45f   : > { %v3846_v58 = vadd.f32 %v3845_v19, %v12434_v49  ;;  %v8787_v19 = vld [vmem:[#allocation5 + $0x158] sm:$0xf0] }
 0x460   : > { %v3990_v36 = vadd.f32 %v3989_v35, %v3941_v29  ;;  %v8659_v35 = vld [vmem:[#allocation5 + $0x58] sm:$0xf0]  ;;  %v9624_v29 = vld [vmem:[#allocation5 + $0x14c] sm:$0xf] }
 0x461   : > { %4536 = vmatmul.bf16.gmra.mxu0 %v12470_v25  ;;  %4585 = vmatmul.bf16.gmra.mxu1 %v12472_v39  ;;  %v3895_v21 = vadd.f32 %v3894_v32, %v3846_v58  ;;  %v8662_v1 = vor.u32 %v9592_v26, %v8659_v35 }
 0x462   : > { %v4029_v20 = vpack.c.bf16 %v3990_v36, %v3892_v40  ;;  %4634 = vmatmul.bf16.gmra.mxu2 %v12470_v25  ;;  %4683 = vmatmul.bf16.gmra.mxu3 %v12472_v39  ;;  %v8790_v36 = vor.u32 %v9624_v29, %v8787_v19  ;;  %v4107_v29 = vld [vmem:[%s10774_s13 + $0x1a8] sm:$0xff]  ;;  %v4109_v19 = vld [vmem:[%s10774_s13 + $0x1b8] sm:$0xff] }
 0x463   : > { %4817 = vmatpush.bf16.msrb.mxu2 %v8662_v1  ;;  %v4108_v1 = vld [vmem:[%s10774_s13 + $0x1b0] sm:$0xff] }
 0x464   : > { %4061 = vst [vmem:[%s12350_s19 + $0x38] sm:$0xff] %v4029_v20  ;;  %4866 = vmatpush.bf16.msrb.mxu3 %v8790_v36 }
 0x465   : > { %v3943_v23 = vpop.f32.mrf.mxu2  ;;  %v3992_v0 = vpop.f32.mrf.mxu3 }
 0x466   : > { %v3944_v28 = vadd.f32 %v3943_v23, %v12441_v52  ;;  %v3847_v18 = vpop.f32.mrf.mxu0  ;;  %v3896_v24 = vpop.f32.mrf.mxu1  ;;  %v4104_v23 = vld [vmem:[%s10774_s13 + $0x190] sm:$0xff] }
 0x467   : > { %v3848_v53 = vadd.f32 %v3847_v18, %v12434_v49  ;;  %v12506_v61 = vpack.c.bf16 %v4104_v23, %v4102_v30  ;;  %v12526_v30 = vpack.c.bf16 %v4109_v19, %v4107_v29  ;;  %v8769_v23 = vld [vmem:[#allocation5 + $0x128] sm:$0xf] }
 0x468   : > { %v3993_v11 = vadd.f32 %v3992_v0, %v3944_v28  ;;  %v4103_v0 = vld [vmem:[%s10774_s13 + $0x188] sm:$0xff]  ;;  %v9594_v28 = vld [vmem:[#allocation5 + $0x54] sm:$0xf0] }
 0x469   : > { %v3897_v37 = vadd.f32 %v3896_v24, %v3848_v53  ;;  %v8753_v19 = vld [vmem:[#allocation5 + $0x108] sm:$0xf] }
 0x46a   : > { %v4031_v10 = vpack.c.bf16 %v3993_v11, %v3895_v21  ;;  %v12508_v21 = vpack.c.bf16 %v4105_v60, %v4103_v0  ;;  %v8658_v11 = vor.u32 %v9594_v28, %v8657_v6  ;;  %v9622_v0 = vld [vmem:[#allocation5 + $0x134] sm:$0xf0] }
 0x46b   : > { %v8770_v28 = vor.u32 %v9622_v0, %v8769_v23 }
 0x46c   : > { %4063 = vst [vmem:[%s12350_s19 + $0x48] sm:$0xff] %v4031_v10  ;;  %v9626_v10 = vld [vmem:[#allocation5 + $0x154] sm:$0xf0]  ;;  %4719 = vmatpush.bf16.msrb.mxu0 %v8658_v11 }
 0x46d   : > { %v3945_v15 = vpop.f32.mrf.mxu2  ;;  %v3994_v42 = vpop.f32.mrf.mxu3  ;;  %v8786_v53 = vor.u32 %v9626_v10, %v8785_v14  ;;  %v9584_v10 = vld [vmem:[#allocation5 + $0xc] sm:$0xf] }
 0x46e   : > { %v3946_v2 = vadd.f32 %v3945_v15, %v12441_v52  ;;  %v3850_v12 = vpop.f32.mrf.mxu0  ;;  %v3899_v34 = vpop.f32.mrf.mxu1 }
 0x46f   : > { %v3851_v57 = vadd.f32 %v3850_v12, %v12434_v49  ;;  %4768 = vmatpush.bf16.msrb.mxu1 %v8786_v53  ;;  %v8646_v12 = vor.u32 %v9588_v63, %v8643_v62 }
 0x470   : > { %v3995_v9 = vadd.f32 %v3994_v42, %v3946_v2 }
 0x471   : > { %4541 = vmatmul.bf16.gmra.mxu0 %v12488_v45  ;;  %4590 = vmatmul.bf16.gmra.mxu1 %v12490_v38  ;;  %v3900_v20 = vadd.f32 %v3899_v34, %v3851_v57  ;;  %v9620_v34 = vld [vmem:[#allocation5 + $0x12c] sm:$0xf] }
 0x472   : > { %v4033_v56 = vpack.c.bf16 %v3995_v9, %v3897_v37  ;;  %4639 = vmatmul.bf16.gmra.mxu2 %v12488_v45  ;;  %4688 = vmatmul.bf16.gmra.mxu3 %v12490_v38  ;;  %v8774_v57 = vor.u32 %v9620_v34, %v8771_v27  ;;  %v4112_v27 = vld [vmem:[%s10774_s13 + $0x1d0] sm:$0xff] }
 0x473   : > { %4818 = vmatpush.bf16.msrb.mxu2 %v8646_v12  ;;  %4769 = vmatpush.bf16.msrb.mxu1 %v8770_v28  ;;  %v4110_v12 = vld [vmem:[%s10774_s13 + $0x1c0] sm:$0xff] }
 0x474   : > { %4065 = vst [vmem:[%s12350_s19 + $0x58] sm:$0xff] %v4033_v56  ;;  %4867 = vmatpush.bf16.msrb.mxu3 %v8774_v57  ;;  %v8625_v57 = vld [vmem:[#allocation5 + $0x8] sm:$0xf] }
 0x475   : > { %v3948_v33 = vpop.f32.mrf.mxu2  ;;  %v3997_v54 = vpop.f32.mrf.mxu3 }
 0x476   : > { %v3949_v32 = vadd.f32 %v3948_v33, %v12441_v52  ;;  %v3852_v7 = vpop.f32.mrf.mxu0  ;;  %v3901_v40 = vpop.f32.mrf.mxu1  ;;  %v4106_v33 = vld [vmem:[%s10774_s13 + $0x1a0] sm:$0xff] }
 0x477   : > { %v3853_v31 = vadd.f32 %v3852_v7, %v12434_v49  ;;  %v8641_v7 = vld [vmem:[#allocation5 + $0x28] sm:$0xf] }
 0x478   : > { %v3998_v58 = vadd.f32 %v3997_v54, %v3949_v32 }
 0x479   : > { %v3902_v48 = vadd.f32 %v3901_v40, %v3853_v31  ;;  %v9590_v40 = vld [vmem:[#allocation5 + $0x34] sm:$0xf0] }
 0x47a   : > { %v4035_v44 = vpack.c.bf16 %v3998_v58, %v3900_v20  ;;  %v12524_v58 = vpack.c.bf16 %v4108_v1, %v4106_v33 }
 0x47c   : > { %4067 = vst [vmem:[%s12350_s19 + $0x68] sm:$0xff] %v4035_v44  ;;  %v8642_v44 = vor.u32 %v9590_v40, %v8641_v7 }
 0x47d   : > { %v3950_v18 = vpop.f32.mrf.mxu2  ;;  %v3999_v24 = vpop.f32.mrf.mxu3 }
 0x47e   : > { %v3951_v59 = vadd.f32 %v3950_v18, %v12441_v52  ;;  %v3855_v43 = vpop.f32.mrf.mxu0  ;;  %v3904_v3 = vpop.f32.mrf.mxu1  ;;  %4720 = vmatpush.bf16.msrb.mxu0 %v8642_v44 }
 0x47f   : > { %v3856_v42 = vadd.f32 %v3855_v43, %v12434_v49 }
 0x480   : > { %v4000_v17 = vadd.f32 %v3999_v24, %v3951_v59  ;;  %v8627_v59 = vld [vmem:[#allocation5 + $0x18] sm:$0xf0] }
 0x481   : > { %4546 = vmatmul.bf16.gmra.mxu0 %v12506_v61  ;;  %4595 = vmatmul.bf16.gmra.mxu1 %v12508_v21  ;;  %v3905_v26 = vadd.f32 %v3904_v3, %v3856_v42  ;;  %v8630_v53 = vor.u32 %v9584_v10, %v8627_v59  ;;  %v4114_v10 = vld [vmem:[%s10774_s13 + $0x1e0] sm:$0xff] }
 0x482   : > { %v4037_v15 = vpack.c.bf16 %v4000_v17, %v3902_v48  ;;  %4644 = vmatmul.bf16.gmra.mxu2 %v12506_v61  ;;  %4693 = vmatmul.bf16.gmra.mxu3 %v12508_v21  ;;  %v9616_v48 = vld [vmem:[#allocation5 + $0x10c] sm:$0xf]  ;;  %v8755_v17 = vld [vmem:[#allocation5 + $0x118] sm:$0xf0] }
 0x483   : > { %v8758_v62 = vor.u32 %v9616_v48, %v8755_v17  ;;  %4819 = vmatpush.bf16.msrb.mxu2 %v8630_v53  ;;  %v4117_v53 = vld [vmem:[%s10774_s13 + $0x1f8] sm:$0xff] }
 0x484   : > { %4069 = vst [vmem:[%s12350_s19 + $0x78] sm:$0xff] %v4037_v15 }
 0x485   : > { %v3953_v51 = vpop.f32.mrf.mxu2  ;;  %v4002_v2 = vpop.f32.mrf.mxu3  ;;  %4868 = vmatpush.bf16.msrb.mxu3 %v8758_v62 }
 0x486   : > { %v3954_v37 = vadd.f32 %v3953_v51, %v12441_v52  ;;  %v3857_v9 = vpop.f32.mrf.mxu0  ;;  %v3906_v56 = vpop.f32.mrf.mxu1 }
 0x487   : > { %v3858_v32 = vadd.f32 %v3857_v9, %v12434_v49  ;;  %v4113_v9 = vld [vmem:[%s10774_s13 + $0x1d8] sm:$0xff] }
 0x488   : > { %v4003_v35 = vadd.f32 %v4002_v2, %v3954_v37  ;;  %v4111_v37 = vld [vmem:[%s10774_s13 + $0x1c8] sm:$0xff] }
 0x489   : > { %v3907_v18 = vadd.f32 %v3906_v56, %v3858_v32  ;;  %v12544_v1 = vpack.c.bf16 %v4113_v9, %v4111_v37  ;;  %v9618_v32 = vld [vmem:[#allocation5 + $0x114] sm:$0xf0] }
 0x48a   : > { %v4039_v54 = vpack.c.bf16 %v4003_v35, %v3905_v26  ;;  %v9586_v26 = vld [vmem:[#allocation5 + $0x14] sm:$0xf0] }
 0x48b   : > { %v8626_v29 = vor.u32 %v9586_v26, %v8625_v57 }
 0x48c   : > { %4071 = vst [vmem:[%s12350_s19 + $0x88] sm:$0xff] %v4039_v54  ;;  %v12542_v54 = vpack.c.bf16 %v4112_v27, %v4110_v12 }
 0x48d   : > { %v3955_v36 = vpop.f32.mrf.mxu2  ;;  %v4004_v20 = vpop.f32.mrf.mxu3  ;;  %4721 = vmatpush.bf16.msrb.mxu0 %v8626_v29 }
 0x48e   : > { %v3956_v60 = vadd.f32 %v3955_v36, %v12441_v52  ;;  %v3860_v31 = vpop.f32.mrf.mxu0  ;;  %v3909_v6 = vpop.f32.mrf.mxu1 }
 0x48f   : > { %v3861_v14 = vadd.f32 %v3860_v31, %v12434_v49 }
 0x490   : > { %v4005_v24 = vadd.f32 %v4004_v20, %v3956_v60  ;;  %v8754_v20 = vor.u32 %v9618_v32, %v8753_v19 }
 0x491   : > { %4551 = vmatmul.bf16.gmra.mxu0 %v12524_v58  ;;  %4600 = vmatmul.bf16.gmra.mxu1 %v12526_v30  ;;  %v3910_v51 = vadd.f32 %v3909_v6, %v3861_v14 }
 0x492   : > { %v4041_v11 = vpack.c.bf16 %v4005_v24, %v3907_v18  ;;  %4649 = vmatmul.bf16.gmra.mxu2 %v12524_v58  ;;  %4698 = vmatmul.bf16.gmra.mxu3 %v12526_v30 }
 0x493   : > { %4770 = vmatpush.bf16.msrb.mxu1 %v8754_v20 }
 0x494   : > { %4073 = vst [vmem:[%s12350_s19 + $0x98] sm:$0xff] %v4041_v11 }
 0x495   : > { %v3958_v43 = vpop.f32.mrf.mxu2  ;;  %v4007_v3 = vpop.f32.mrf.mxu3 }
 0x496   : > { %v3959_v15 = vadd.f32 %v3958_v43, %v12441_v52  ;;  %v3862_v42 = vpop.f32.mrf.mxu0  ;;  %v3911_v63 = vpop.f32.mrf.mxu1  ;;  %v4116_v43 = vld [vmem:[%s10774_s13 + $0x1f0] sm:$0xff] }
 0x497   : > { %v3863_v56 = vadd.f32 %v3862_v42, %v12434_v49  ;;  %v12560_v42 = vpack.c.bf16 %v4116_v43, %v4114_v10  ;;  %v14215_v10 = vld [vmem:[#allocation21_spill] sm:$0xff] }
 0x498   : > { %v4008_v2 = vadd.f32 %v4007_v3, %v3959_v15  ;;  %v4115_v3 = vld [vmem:[%s10774_s13 + $0x1e8] sm:$0xff] }
 0x499   : > { %v3912_v44 = vadd.f32 %v3911_v63, %v3863_v56  ;;  %v12562_v63 = vpack.c.bf16 %v4117_v53, %v4115_v3 }
 0x49a   : > { %v4043_v34 = vpack.c.bf16 %v4008_v2, %v3910_v51 }
 0x49c   : > { %4075 = vst [vmem:[%s12350_s19 + $0xa8] sm:$0xff] %v4043_v34 }
 0x49d   : > { %v3960_v35 = vpop.f32.mrf.mxu2  ;;  %v4009_v33 = vpop.f32.mrf.mxu3 }
 0x49e   : > { %v3961_v7 = vadd.f32 %v3960_v35, %v12441_v52  ;;  %v3865_v40 = vpop.f32.mrf.mxu0  ;;  %v3914_v36 = vpop.f32.mrf.mxu1 }
 0x49f   : > { %v3866_v60 = vadd.f32 %v3865_v40, %v12434_v49 }
 0x4a0   : > { %v4010_v23 = vadd.f32 %v4009_v33, %v3961_v7 }
 0x4a1   : > { %4556 = vmatmul.bf16.gmra.mxu0 %v12542_v54  ;;  %4605 = vmatmul.bf16.gmra.mxu1 %v12544_v1  ;;  %v3915_v11 = vadd.f32 %v3914_v36, %v3866_v60 }
 0x4a2   : > { %v4045_v0 = vpack.c.bf16 %v4010_v23, %v3912_v44  ;;  %4654 = vmatmul.bf16.gmra.mxu2 %v12542_v54  ;;  %4703 = vmatmul.bf16.gmra.mxu3 %v12544_v1  ;;  %v14214_v23 = vld [vmem:[#allocation20_spill] sm:$0xff] }
 0x4a4   : > { %4077 = vst [vmem:[%s12350_s19 + $0xb8] sm:$0xff] %v4045_v0 }
 0x4a5   : > { %v3963_v31 = vpop.f32.mrf.mxu2  ;;  %v4012_v6 = vpop.f32.mrf.mxu3 }
 0x4a6   : > { %v3964_v28 = vadd.f32 %v3963_v31, %v12441_v52  ;;  %v3867_v18 = vpop.f32.mrf.mxu0  ;;  %v3916_v24 = vpop.f32.mrf.mxu1 }
 0x4a7   : > { %v3868_v48 = vadd.f32 %v3867_v18, %v12434_v49 }
 0x4a8   : > { %v4013_v14 = vadd.f32 %v4012_v6, %v3964_v28 }
 0x4a9   : > { %v3917_v12 = vadd.f32 %v3916_v24, %v3868_v48 }
 0x4aa   : > { %v4047_v59 = vpack.c.bf16 %v4013_v14, %v3915_v11 }
 0x4ac   : > { %4079 = vst [vmem:[%s12350_s19 + $0xc8] sm:$0xff] %v4047_v59 }
 0x4ad   : > { %v3965_v17 = vpop.f32.mrf.mxu2  ;;  %v4014_v15 = vpop.f32.mrf.mxu3 }
 0x4ae   : > { %v3966_v62 = vadd.f32 %v3965_v17, %v12441_v52  ;;  %v3870_v51 = vpop.f32.mrf.mxu0  ;;  %v3919_v2 = vpop.f32.mrf.mxu1 }
 0x4af   : > { %v3871_v37 = vadd.f32 %v3870_v51, %v12434_v49 }
 0x4b0   : > { %v4015_v34 = vadd.f32 %v4014_v15, %v3966_v62 }
 0x4b1   : > { %4561 = vmatmul.bf16.gmra.mxu0 %v12560_v42  ;;  %4610 = vmatmul.bf16.gmra.mxu1 %v12562_v63  ;;  %v3920_v33 = vadd.f32 %v3919_v2, %v3871_v37 }
 0x4b2   : > { %v4049_v27 = vpack.c.bf16 %v4015_v34, %v3917_v12  ;;  %4659 = vmatmul.bf16.gmra.mxu2 %v12560_v42  ;;  %4708 = vmatmul.bf16.gmra.mxu3 %v12562_v63 }
 0x4b4   : > { %4081 = vst [vmem:[%s12350_s19 + $0xd8] sm:$0xff] %v4049_v27 }
 0x4b5   : > { %v3968_v9 = vpop.f32.mrf.mxu2  ;;  %v4017_v56 = vpop.f32.mrf.mxu3 }
 0x4b6   : > { %v3969_v57 = vadd.f32 %v3968_v9, %v12441_v52  ;;  %v3872_v26 = vpop.f32.mrf.mxu0  ;;  %v3921_v35 = vpop.f32.mrf.mxu1 }
 0x4b7   : > { %v3873_v32 = vadd.f32 %v3872_v26, %v12434_v49 }
 0x4b8   : > { %v4018_v29 = vadd.f32 %v4017_v56, %v3969_v57 }
 0x4b9   : > { %v3922_v60 = vadd.f32 %v3921_v35, %v3873_v32 }
 0x4ba   : > { %v4051_v19 = vpack.c.bf16 %v4018_v29, %v3920_v33 }
 0x4bc   : > { %4083 = vst [vmem:[%s12350_s19 + $0xe8] sm:$0xff] %v4051_v19 }
 0x4bd   : > { %v3970_v7 = vpop.f32.mrf.mxu2  ;;  %v4019_v40 = vpop.f32.mrf.mxu3 }
 0x4be   : > { %v3971_v36 = vadd.f32 %v3970_v7, %v12441_v52  ;;  %v4527_v20 = vpop.f32.mrf.mxu0  ;;  %v4576_v44 = vpop.f32.mrf.mxu1 }
 0x4bf   : > { %v4528_v0 = vadd.f32 %v4527_v20, %v14214_v23 }
 0x4c0   : > { %v4020_v31 = vadd.f32 %v4019_v40, %v3971_v36 }
 0x4c1   : > { %v12576_v6 = vadd.f32 %v4576_v44, %v4528_v0  ;;  %4722 = vmatmul.bf16.vlgmr.msrb.gmra.mxu0 %v12428_v55  ;;  %4771 = vmatmul.bf16.vlgmr.msrb.gmra.mxu1 %v12430_v22 }
 0x4c2   : > { %v4053_v28 = vpack.c.bf16 %v4020_v31, %v3922_v60  ;;  %4820 = vmatmul.bf16.vlgmr.msrb.gmra.mxu2 %v12428_v55  ;;  %4869 = vmatmul.bf16.vlgmr.msrb.gmra.mxu3 %v12430_v22  ;;  %v9057_v60 = vld [vmem:[#allocation8 + $0x170] sm:$0xf]  ;;  %v9694_v31 = vld [vmem:[#allocation8 + $0x174] sm:$0xf0] }
 0x4c3   : > { %v4910_v18 = vmul.f32 %v12576_v6, %v12576_v6 }
 0x4c4   : > { %4085 = vst [vmem:[%s12350_s19 + $0xf8] sm:$0xff] %v4053_v28 }
 0x4c5   : > { %v4974_v24 = vmul.f32 %v4910_v18, %v12576_v6  ;;  %v4625_v11 = vpop.f32.mrf.mxu2  ;;  %v4674_v14 = vpop.f32.mrf.mxu3 }
 0x4c6   : > { %v4626_v59 = vadd.f32 %v4625_v11, %v14215_v10  ;;  %v4529_v43 = vpop.f32.mrf.mxu0  ;;  %v4578_v3 = vpop.f32.mrf.mxu1  ;;  %v9058_v11 = vor.u32 %v9694_v31, %v9057_v60 }
 0x4c7   : > { %v5038_v53 = vmul.f32 0.044715, %v4974_v24  ;;  %v4530_v48 = vadd.f32 %v4529_v43, %v14214_v23 }
 0x4c8   : > { %v12588_v17 = vadd.f32 %v4674_v14, %v4626_v59  ;;  %v8929_v14 = vld [vmem:[#allocation8 + $0x70] sm:$0xf]  ;;  %6000 = vmatpush.bf16.msra.mxu2 %v9058_v11 }
 0x4c9   : > { %v5102_v55 = vadd.f32 %v5038_v53, %v12576_v6  ;;  %v12591_v22 = vadd.f32 %v4578_v3, %v4530_v48  ;;  %v9121_v59 = vld [vmem:[#allocation8 + $0x1f0] sm:$0xf] }
 0x4ca   : > { %v4911_v15 = vmul.f32 %v12588_v17, %v12588_v17 }
 0x4cb   : > { %v5166_v62 = vmul.f32 0.7978846, %v5102_v55  ;;  %v4914_v51 = vmul.f32 %v12591_v22, %v12591_v22  ;;  %v9710_v55 = vld [vmem:[#allocation8 + $0x1f4] sm:$0xf0] }
 0x4cc   : > { %v4975_v2 = vmul.f32 %v4911_v15, %v12588_v17 }
 0x4cd   : > { %v4978_v12 = vmul.f32 %v4914_v51, %v12591_v22  ;;  %v4627_v34 = vpop.f32.mrf.mxu2  ;;  %v4676_v27 = vpop.f32.mrf.mxu3  ;;  %10053 = vtanh.f32 %v5166_v62 }
 0x4ce   : > { %v5039_v37 = vmul.f32 0.044715, %v4975_v2  ;;  %v4628_v9 = vadd.f32 %v4627_v34, %v14215_v10  ;;  %v4532_v56 = vpop.f32.mrf.mxu0  ;;  %v4581_v57 = vpop.f32.mrf.mxu1  ;;  %v9122_v2 = vor.u32 %v9710_v55, %v9121_v59 }
 0x4cf   : > { %v5042_v26 = vmul.f32 0.044715, %v4978_v12  ;;  %v4533_v35 = vadd.f32 %v4532_v56, %v14214_v23 }
 0x4d0   : > { %v5103_v33 = vadd.f32 %v5039_v37, %v12588_v17  ;;  %v12602_v29 = vadd.f32 %v4676_v27, %v4628_v9  ;;  %6049 = vmatpush.bf16.msra.mxu3 %v9122_v2 }
 0x4d1   : > { %v5106_v19 = vadd.f32 %v5042_v26, %v12591_v22  ;;  %v12605_v32 = vadd.f32 %v4581_v57, %v4533_v35  ;;  %4727 = vmatmul.bf16.gmra.mxu0 %v12452_v4  ;;  %4776 = vmatmul.bf16.gmra.mxu1 %v12454_v13  ;;  %v8993_v26 = vld [vmem:[#allocation8 + $0xf0] sm:$0xf]  ;;  %v9678_v35 = vld [vmem:[#allocation8 + $0xf4] sm:$0xf0] }
 0x4d2   : > { %v5167_v7 = vmul.f32 0.7978846, %v5103_v33  ;;  %v4915_v40 = vmul.f32 %v12602_v29, %v12602_v29  ;;  %4825 = vmatmul.bf16.gmra.mxu2 %v12452_v4  ;;  %4874 = vmatmul.bf16.gmra.mxu3 %v12454_v13  ;;  %v9662_v4 = vld [vmem:[#allocation8 + $0x74] sm:$0xf0] }
 0x4d3   : > { %v5170_v36 = vmul.f32 0.7978846, %v5106_v19  ;;  %v4918_v20 = vmul.f32 %v12605_v32, %v12605_v32  ;;  %v10054_v44 = vpop.eup %10053  ;;  %v8930_v48 = vor.u32 %v9662_v4, %v8929_v14 }
 0x4d4   : > { %10055 = vtanh.f32 %v5167_v7  ;;  %v4979_v0 = vmul.f32 %v4915_v40, %v12602_v29  ;;  %v5294_v15 = vadd.f32 1.0, %v10054_v44 }
 0x4d5   : > { %10057 = vtanh.f32 %v5170_v36  ;;  %v4982_v28 = vmul.f32 %v4918_v20, %v12605_v32  ;;  %v4630_v18 = vpop.f32.mrf.mxu2  ;;  %v4679_v24 = vpop.f32.mrf.mxu3  ;;  %5902 = vmatpush.bf16.msra.mxu0 %v8930_v48  ;;  %v8994_v36 = vor.u32 %v9678_v35, %v8993_v26  ;;  %v9049_v26 = vld [vmem:[#allocation8 + $0x160] sm:$0xf]  ;;  %v9692_v35 = vld [vmem:[#allocation8 + $0x164] sm:$0xf0] }
 0x4d6   : > { %v5043_v13 = vmul.f32 0.044715, %v4979_v0  ;;  %v4631_v43 = vadd.f32 %v4630_v18, %v14215_v10  ;;  %v4534_v3 = vpop.f32.mrf.mxu0  ;;  %v4583_v53 = vpop.f32.mrf.mxu1  ;;  %v5358_v19 = vmul.f32 0.5, %v5294_v15 }
 0x4d7   : > { %v5046_v62 = vmul.f32 0.044715, %v4982_v28  ;;  %v4535_v51 = vadd.f32 %v4534_v3, %v14214_v23  ;;  %5951 = vmatpush.bf16.msra.mxu1 %v8994_v36 }
 0x4d8   : > { %v5107_v12 = vadd.f32 %v5043_v13, %v12602_v29  ;;  %v12620_v34 = vadd.f32 %v4679_v24, %v4631_v43  ;;  %v5422_v59 = vmul.f32 %v5358_v19, %v12576_v6 }
 0x4d9   : > { %v5110_v27 = vadd.f32 %v5046_v62, %v12605_v32  ;;  %v12623_v37 = vadd.f32 %v4583_v53, %v4535_v51 }
 0x4da   : > { %v10056_v9 = vpop.eup %10055  ;;  %v5171_v56 = vmul.f32 0.7978846, %v5107_v12  ;;  %v4919_v57 = vmul.f32 %v12620_v34, %v12620_v34 }
 0x4db   : > { %v10058_v33 = vpop.eup %10057  ;;  %v5174_v7 = vmul.f32 0.7978846, %v5110_v27  ;;  %v4922_v40 = vmul.f32 %v12623_v37, %v12623_v37  ;;  %v5295_v20 = vadd.f32 1.0, %v10056_v9 }
 0x4dc   : > { %v5298_v44 = vadd.f32 1.0, %v10058_v33  ;;  %10059 = vtanh.f32 %v5171_v56  ;;  %v4983_v0 = vmul.f32 %v4919_v57, %v12620_v34  ;;  %v8921_v33 = vld [vmem:[#allocation8 + $0x60] sm:$0xf] }
 0x4dd   : > { %v4986_v60 = vmul.f32 %v4922_v40, %v12623_v37  ;;  %v4632_v31 = vpop.f32.mrf.mxu2  ;;  %v4681_v28 = vpop.f32.mrf.mxu3  ;;  %10061 = vtanh.f32 %v5174_v7  ;;  %v5359_v3 = vmul.f32 0.5, %v5295_v20  ;;  %v9050_v20 = vor.u32 %v9692_v35, %v9049_v26 }
 0x4de   : > { %v5362_v18 = vmul.f32 0.5, %v5298_v44  ;;  %v5047_v24 = vmul.f32 0.044715, %v4983_v0  ;;  %v4633_v11 = vadd.f32 %v4632_v31, %v14215_v10  ;;  %v4537_v14 = vpop.f32.mrf.mxu0  ;;  %v4586_v4 = vpop.f32.mrf.mxu1  ;;  %v9113_v44 = vld [vmem:[#allocation8 + $0x1e0] sm:$0xf] }
 0x4df   : > { %v5050_v13 = vmul.f32 0.044715, %v4986_v60  ;;  %v4538_v43 = vadd.f32 %v4537_v14, %v14214_v23  ;;  %v5423_v56 = vmul.f32 %v5359_v3, %v12588_v17  ;;  %6001 = vmatpush.bf16.msra.mxu2 %v9050_v20 }
 0x4e0   : > { %v5426_v53 = vmul.f32 %v5362_v18, %v12591_v22  ;;  %v5111_v48 = vadd.f32 %v5047_v24, %v12620_v34  ;;  %v12636_v55 = vadd.f32 %v4681_v28, %v4633_v11  ;;  %v9708_v18 = vld [vmem:[#allocation8 + $0x1e4] sm:$0xf0] }
 0x4e1   : > { %v5114_v15 = vadd.f32 %v5050_v13, %v12623_v37  ;;  %v12639_v62 = vadd.f32 %v4586_v4, %v4538_v43  ;;  %4732 = vmatmul.bf16.gmra.mxu0 %v12470_v25  ;;  %4781 = vmatmul.bf16.gmra.mxu1 %v12472_v39  ;;  %v9114_v4 = vor.u32 %v9708_v18, %v9113_v44 }
 0x4e2   : > { %v10060_v6 = vpop.eup %10059  ;;  %v12643_v51 = vpack.c.bf16 %v5426_v53, %v5422_v59  ;;  %v5175_v2 = vmul.f32 0.7978846, %v5111_v48  ;;  %v4923_v12 = vmul.f32 %v12636_v55, %v12636_v55  ;;  %4830 = vmatmul.bf16.gmra.mxu2 %v12470_v25  ;;  %4879 = vmatmul.bf16.gmra.mxu3 %v12472_v39  ;;  %v9660_v39 = vld [vmem:[#allocation8 + $0x64] sm:$0xf0] }
 0x4e3   : > { %v5299_v22 = vadd.f32 1.0, %v10060_v6  ;;  %v5178_v27 = vmul.f32 0.7978846, %v5114_v15  ;;  %v4926_v9 = vmul.f32 %v12639_v62, %v12639_v62  ;;  %v10062_v19 = vpop.eup %10061  ;;  %v8922_v28 = vor.u32 %v9660_v39, %v8921_v33  ;;  %6050 = vmatpush.bf16.msra.mxu3 %v9114_v4  ;;  %v8985_v6 = vld [vmem:[#allocation8 + $0xe0] sm:$0xf] }
 0x4e4   : > { %v4987_v57 = vmul.f32 %v4923_v12, %v12636_v55  ;;  %v5302_v43 = vadd.f32 1.0, %v10062_v19 }
 0x4e5   : > { %v5363_v7 = vmul.f32 0.5, %v5299_v22  ;;  %v4990_v40 = vmul.f32 %v4926_v9, %v12639_v62  ;;  %v4635_v36 = vpop.f32.mrf.mxu2  ;;  %v4684_v25 = vpop.f32.mrf.mxu3  ;;  %10063 = vtanh.f32 %v5178_v27  ;;  %5903 = vmatpush.bf16.msra.mxu0 %v8922_v28 }
 0x4e6   : > { %10065 = vtanh.f32 %v5175_v2  ;;  %v5051_v0 = vmul.f32 0.044715, %v4987_v57  ;;  %v4636_v60 = vadd.f32 %v4635_v36, %v14215_v10  ;;  %v4539_v17 = vpop.f32.mrf.mxu0  ;;  %v4588_v31 = vpop.f32.mrf.mxu1  ;;  %v9676_v2 = vld [vmem:[#allocation8 + $0xe4] sm:$0xf0]  ;;  %v5366_v35 = vmul.f32 0.5, %v5302_v43 }
 0x4e7   : > { %v5427_v24 = vmul.f32 %v5363_v7, %v12602_v29  ;;  %v5054_v11 = vmul.f32 0.044715, %v4990_v40  ;;  %v4540_v14 = vadd.f32 %v4539_v17, %v14214_v23  ;;  %v8986_v9 = vor.u32 %v9676_v2, %v8985_v6  ;;  %v9041_v6 = vld [vmem:[#allocation8 + $0x150] sm:$0xf]  ;;  %v9690_v2 = vld [vmem:[#allocation8 + $0x154] sm:$0xf0] }
 0x4e8   : > { %v5115_v59 = vadd.f32 %v5051_v0, %v12636_v55  ;;  %v12658_v13 = vadd.f32 %v4684_v25, %v4636_v60  ;;  %v5430_v28 = vmul.f32 %v5366_v35, %v12605_v32 }
 0x4e9   : > { %v12660_v3 = vpack.c.bf16 %v5427_v24, %v5423_v56  ;;  %v5118_v53 = vadd.f32 %v5054_v11, %v12639_v62  ;;  %v12663_v48 = vadd.f32 %v4588_v31, %v4540_v14  ;;  %5952 = vmatpush.bf16.msra.mxu1 %v8986_v9 }
 0x4ea   : > { %v5179_v15 = vmul.f32 0.7978846, %v5115_v59  ;;  %v4927_v29 = vmul.f32 %v12658_v13, %v12658_v13 }
 0x4eb   : > { %v10064_v12 = vpop.eup %10063  ;;  %v5182_v22 = vmul.f32 0.7978846, %v5118_v53  ;;  %v4930_v27 = vmul.f32 %v12663_v48, %v12663_v48 }
 0x4ec   : > { %v10066_v57 = vpop.eup %10065  ;;  %v4991_v56 = vmul.f32 %v4927_v29, %v12658_v13  ;;  %v5306_v26 = vadd.f32 1.0, %v10064_v12  ;;  %10067 = vtanh.f32 %v5179_v15  ;;  %v8913_v12 = vld [vmem:[#allocation8 + $0x50] sm:$0xf] }
 0x4ed   : > { %v4994_v33 = vmul.f32 %v4930_v27, %v12663_v48  ;;  %v4637_v19 = vpop.f32.mrf.mxu2  ;;  %v4686_v7 = vpop.f32.mrf.mxu3  ;;  %10069 = vtanh.f32 %v5182_v22  ;;  %v5303_v60 = vadd.f32 1.0, %v10066_v57  ;;  %v9658_v57 = vld [vmem:[#allocation8 + $0x54] sm:$0xf0] }
 0x4ee   : > { %v5055_v40 = vmul.f32 0.044715, %v4991_v56  ;;  %v4638_v36 = vadd.f32 %v4637_v19, %v14215_v10  ;;  %v4542_v25 = vpop.f32.mrf.mxu0  ;;  %v4591_v20 = vpop.f32.mrf.mxu1  ;;  %v5370_v39 = vmul.f32 0.5, %v5306_v26  ;;  %v9105_v56 = vld [vmem:[#allocation8 + $0x1d0] sm:$0xf] }
 0x4ef   : > { %v5058_v44 = vmul.f32 0.044715, %v4994_v33  ;;  %v4543_v0 = vadd.f32 %v4542_v25, %v14214_v23  ;;  %v5367_v15 = vmul.f32 0.5, %v5303_v60  ;;  %v9706_v26 = vld [vmem:[#allocation8 + $0x1d4] sm:$0xf0] }
 0x4f0   : > { %v5119_v17 = vadd.f32 %v5055_v40, %v12658_v13  ;;  %v12674_v31 = vadd.f32 %v4686_v7, %v4638_v36  ;;  %v5434_v18 = vmul.f32 %v5370_v39, %v12623_v37  ;;  %v8914_v40 = vor.u32 %v9658_v57, %v8913_v12 }
 0x4f1   : > { %v5122_v24 = vadd.f32 %v5058_v44, %v12663_v48  ;;  %v12679_v11 = vadd.f32 %v4591_v20, %v4543_v0  ;;  %4737 = vmatmul.bf16.gmra.mxu0 %v12488_v45  ;;  %4786 = vmatmul.bf16.gmra.mxu1 %v12490_v38  ;;  %v9106_v36 = vor.u32 %v9706_v26, %v9105_v56 }
 0x4f2   : > { %v10068_v14 = vpop.eup %10067  ;;  %v5183_v4 = vmul.f32 0.7978846, %v5119_v17  ;;  %v4931_v59 = vmul.f32 %v12674_v31, %v12674_v31  ;;  %4835 = vmatmul.bf16.gmra.mxu2 %v12488_v45  ;;  %4884 = vmatmul.bf16.gmra.mxu3 %v12490_v38  ;;  %v12687_v32 = vpack.c.bf16 %v5434_v18, %v5430_v28  ;;  %v9042_v38 = vor.u32 %v9690_v2, %v9041_v6 }
 0x4f3   : > { %v5186_v37 = vmul.f32 0.7978846, %v5122_v24  ;;  %v4934_v43 = vmul.f32 %v12679_v11, %v12679_v11  ;;  %v5307_v53 = vadd.f32 1.0, %v10068_v14  ;;  %v10070_v22 = vpop.eup %10069  ;;  %5904 = vmatpush.bf16.msra.mxu0 %v8914_v40  ;;  %6051 = vmatpush.bf16.msra.mxu3 %v9106_v36  ;;  %v5431_v18 = vmul.f32 %v5367_v15, %v12620_v34 }
 0x4f4   : > { %10071 = vtanh.f32 %v5183_v4  ;;  %v4995_v29 = vmul.f32 %v4931_v59, %v12674_v31  ;;  %6002 = vmatpush.bf16.msra.mxu2 %v9042_v38  ;;  %v5310_v60 = vadd.f32 1.0, %v10070_v22 }
 0x4f5   : > { %v4998_v27 = vmul.f32 %v4934_v43, %v12679_v11  ;;  %v4640_v45 = vpop.f32.mrf.mxu2  ;;  %v4689_v9 = vpop.f32.mrf.mxu3  ;;  %10073 = vtanh.f32 %v5186_v37  ;;  %v5371_v39 = vmul.f32 0.5, %v5307_v53  ;;  %v8977_v37 = vld [vmem:[#allocation8 + $0xd0] sm:$0xf]  ;;  %v9674_v43 = vld [vmem:[#allocation8 + $0xd4] sm:$0xf0] }
 0x4f6   : > { %v5059_v35 = vmul.f32 0.044715, %v4995_v29  ;;  %v4641_v33 = vadd.f32 %v4640_v45, %v14215_v10  ;;  %v4544_v19 = vpop.f32.mrf.mxu0  ;;  %v4593_v7 = vpop.f32.mrf.mxu1  ;;  %v8978_v2 = vor.u32 %v9674_v43, %v8977_v37  ;;  %v5374_v15 = vmul.f32 0.5, %v5310_v60  ;;  %v9688_v37 = vld [vmem:[#allocation8 + $0x144] sm:$0xf0] }
 0x4f7   : > { %v5062_v25 = vmul.f32 0.044715, %v4998_v27  ;;  %v4545_v20 = vadd.f32 %v4544_v19, %v14214_v23  ;;  %v5435_v24 = vmul.f32 %v5371_v39, %v12636_v55  ;;  %v8905_v43 = vld [vmem:[#allocation8 + $0x40] sm:$0xf] }
 0x4f8   : > { %v5123_v44 = vadd.f32 %v5059_v35, %v12674_v31  ;;  %v12696_v0 = vadd.f32 %v4689_v9, %v4641_v33  ;;  %5953 = vmatpush.bf16.msra.mxu1 %v8978_v2  ;;  %v5438_v36 = vmul.f32 %v5374_v15, %v12639_v62  ;;  %v9656_v2 = vld [vmem:[#allocation8 + $0x44] sm:$0xf0] }
 0x4f9   : > { %v5126_v17 = vadd.f32 %v5062_v25, %v12679_v11  ;;  %v12699_v28 = vadd.f32 %v4593_v7, %v4545_v20  ;;  %v12707_v12 = vpack.c.bf16 %v5435_v24, %v5431_v18 }
 0x4fa   : > { %v10072_v14 = vpop.eup %10071  ;;  %v5187_v4 = vmul.f32 0.7978846, %v5123_v44  ;;  %v4935_v59 = vmul.f32 %v12696_v0, %v12696_v0 }
 0x4fb   : > { %v10074_v53 = vpop.eup %10073  ;;  %v5190_v29 = vmul.f32 0.7978846, %v5126_v17  ;;  %v4938_v6 = vmul.f32 %v12699_v28, %v12699_v28  ;;  %v5311_v35 = vadd.f32 1.0, %v10072_v14 }
 0x4fc   : > { %v4999_v22 = vmul.f32 %v4935_v59, %v12696_v0  ;;  %v5314_v34 = vadd.f32 1.0, %v10074_v53  ;;  %10075 = vtanh.f32 %v5187_v4  ;;  %v9033_v59 = vld [vmem:[#allocation8 + $0x140] sm:$0xf] }
 0x4fd   : > { %v5002_v55 = vmul.f32 %v4938_v6, %v12699_v28  ;;  %v4642_v27 = vpop.f32.mrf.mxu2  ;;  %v4691_v45 = vpop.f32.mrf.mxu3  ;;  %10077 = vtanh.f32 %v5190_v29  ;;  %v5375_v62 = vmul.f32 0.5, %v5311_v35 }
 0x4fe   : > { %v5063_v9 = vmul.f32 0.044715, %v4999_v22  ;;  %v4643_v38 = vadd.f32 %v4642_v27, %v14215_v10  ;;  %v4547_v57 = vpop.f32.mrf.mxu0  ;;  %v4596_v56 = vpop.f32.mrf.mxu1  ;;  %v5378_v26 = vmul.f32 0.5, %v5314_v34  ;;  %v9097_v22 = vld [vmem:[#allocation8 + $0x1c0] sm:$0xf] }
 0x4ff   : > { %v5066_v33 = vmul.f32 0.044715, %v5002_v55  ;;  %v4548_v19 = vadd.f32 %v4547_v57, %v14214_v23  ;;  %v9704_v34 = vld [vmem:[#allocation8 + $0x1c4] sm:$0xf0] }
 0x500   : > { %v5127_v7 = vadd.f32 %v5063_v9, %v12696_v0  ;;  %v12714_v40 = vadd.f32 %v4691_v45, %v4643_v38  ;;  %v5442_v25 = vmul.f32 %v5378_v26, %v12663_v48  ;;  %v8906_v9 = vor.u32 %v9656_v2, %v8905_v43 }
 0x501   : > { %v5130_v20 = vadd.f32 %v5066_v33, %v12699_v28  ;;  %v12719_v39 = vadd.f32 %v4596_v56, %v4548_v19  ;;  %4742 = vmatmul.bf16.gmra.mxu0 %v12506_v61  ;;  %4791 = vmatmul.bf16.gmra.mxu1 %v12508_v21  ;;  %v9098_v38 = vor.u32 %v9704_v34, %v9097_v22 }
 0x502   : > { %v10076_v44 = vpop.eup %10075  ;;  %v4939_v60 = vmul.f32 %v12714_v40, %v12714_v40  ;;  %4840 = vmatmul.bf16.gmra.mxu2 %v12506_v61  ;;  %4889 = vmatmul.bf16.gmra.mxu3 %v12508_v21  ;;  %v12727_v17 = vpack.c.bf16 %v5442_v25, %v5438_v36  ;;  %v5191_v48 = vmul.f32 0.7978846, %v5127_v7  ;;  %v9034_v21 = vor.u32 %v9688_v37, %v9033_v59 }
 0x503   : > { %v5194_v18 = vmul.f32 0.7978846, %v5130_v20  ;;  %v4942_v24 = vmul.f32 %v12719_v39, %v12719_v39  ;;  %v5315_v14 = vadd.f32 1.0, %v10076_v44  ;;  %v10078_v53 = vpop.eup %10077  ;;  %5905 = vmatpush.bf16.msra.mxu0 %v8906_v9  ;;  %6052 = vmatpush.bf16.msra.mxu3 %v9098_v38  ;;  %v5439_v19 = vmul.f32 %v5375_v62, %v12658_v13  ;;  %v9654_v9 = vld [vmem:[#allocation8 + $0x34] sm:$0xf0] }
 0x504   : > { %v5003_v4 = vmul.f32 %v4939_v60, %v12714_v40  ;;  %6003 = vmatpush.bf16.msra.mxu2 %v9034_v21  ;;  %v5318_v7 = vadd.f32 1.0, %v10078_v53  ;;  %v8969_v60 = vld [vmem:[#allocation8 + $0xc0] sm:$0xf] }
 0x505   : > { %v5006_v29 = vmul.f32 %v4942_v24, %v12719_v39  ;;  %v4645_v61 = vpop.f32.mrf.mxu2  ;;  %v4694_v6 = vpop.f32.mrf.mxu3  ;;  %10079 = vtanh.f32 %v5194_v18  ;;  %v5379_v26 = vmul.f32 0.5, %v5315_v14  ;;  %v9672_v18 = vld [vmem:[#allocation8 + $0xc4] sm:$0xf0] }
 0x506   : > { %v5067_v15 = vmul.f32 0.044715, %v5003_v4  ;;  %v4646_v55 = vadd.f32 %v4645_v61, %v14215_v10  ;;  %v4549_v27 = vpop.f32.mrf.mxu0  ;;  %v4598_v45 = vpop.f32.mrf.mxu1  ;;  %10081 = vtanh.f32 %v5191_v48  ;;  %v8970_v4 = vor.u32 %v9672_v18, %v8969_v60  ;;  %v9702_v18 = vld [vmem:[#allocation8 + $0x1b4] sm:$0xf0] }
 0x507   : > { %v5070_v57 = vmul.f32 0.044715, %v5006_v29  ;;  %v4550_v56 = vadd.f32 %v4549_v27, %v14214_v23  ;;  %v5443_v20 = vmul.f32 %v5379_v26, %v12674_v31  ;;  %v5382_v13 = vmul.f32 0.5, %v5318_v7  ;;  %v8961_v26 = vld [vmem:[#allocation8 + $0xb0] sm:$0xf] }
 0x508   : > { %v5131_v35 = vadd.f32 %v5067_v15, %v12714_v40  ;;  %v12736_v33 = vadd.f32 %v4694_v6, %v4646_v55  ;;  %5954 = vmatpush.bf16.msra.mxu1 %v8970_v4  ;;  %v9686_v7 = vld [vmem:[#allocation8 + $0x134] sm:$0xf0] }
 0x509   : > { %v5134_v36 = vadd.f32 %v5070_v57, %v12719_v39  ;;  %v12740_v25 = vadd.f32 %v4598_v45, %v4550_v56  ;;  %v12745_v59 = vpack.c.bf16 %v5443_v20, %v5439_v19  ;;  %v5446_v22 = vmul.f32 %v5382_v13, %v12679_v11  ;;  %v8897_v45 = vld [vmem:[#allocation8 + $0x30] sm:$0xf] }
 0x50a   : > { %v5195_v44 = vmul.f32 0.7978846, %v5131_v35  ;;  %v8898_v56 = vor.u32 %v9654_v9, %v8897_v45  ;;  %v9670_v35 = vld [vmem:[#allocation8 + $0xb4] sm:$0xf0]  ;;  %v9025_v19 = vld [vmem:[#allocation8 + $0x130] sm:$0xf] }
 0x50b   : > { %v10080_v24 = vpop.eup %10079  ;;  %v4946_v14 = vmul.f32 %v12740_v25, %v12740_v25  ;;  %v5198_v62 = vmul.f32 0.7978846, %v5134_v36  ;;  %v9089_v36 = vld [vmem:[#allocation8 + $0x1b0] sm:$0xf]  ;;  %v8962_v20 = vor.u32 %v9670_v35, %v8961_v26  ;;  %v9026_v60 = vor.u32 %v9686_v7, %v9025_v19 }
 0x50c   : > { %v5322_v37 = vadd.f32 1.0, %v10080_v24  ;;  %10083 = vtanh.f32 %v5195_v44  ;;  %v10082_v6 = vpop.eup %10081  ;;  %5906 = vmatpush.bf16.msra.mxu0 %v8898_v56  ;;  %v9090_v13 = vor.u32 %v9702_v18, %v9089_v36 }
 0x50d   : > { %v5010_v48 = vmul.f32 %v4946_v14, %v12740_v25  ;;  %v12748_v43 = vpop.f32.mrf.mxu2  ;;  %v12750_v53 = vpop.f32.mrf.mxu3  ;;  %10085 = vtanh.f32 %v5198_v62  ;;  %v5319_v11 = vadd.f32 1.0, %v10082_v6  ;;  %5955 = vmatpush.bf16.msra.mxu1 %v8962_v20  ;;  %v8889_v62 = vld [vmem:[#allocation8 + $0x20] sm:$0xf]  ;;  %6004 = vmatpush.bf16.msra.mxu2 %v9026_v60  ;;  %v8945_v20 = vld [vmem:[#allocation8 + $0x90] sm:$0xf] }
 0x50e   : > { %v4552_v31 = vpop.f32.mrf.mxu0  ;;  %v4601_v29 = vpop.f32.mrf.mxu1  ;;  %v5386_v61 = vmul.f32 0.5, %v5322_v37  ;;  %6053 = vmatpush.bf16.msra.mxu3 %v9090_v13 }
 0x50f   : > { %v5074_v21 = vmul.f32 0.044715, %v5010_v48  ;;  %v4553_v2 = vadd.f32 %v4552_v31, %v14214_v23  ;;  %v9652_v48 = vld [vmem:[#allocation8 + $0x24] sm:$0xf0]  ;;  %v5383_v31 = vmul.f32 0.5, %v5319_v11 }
 0x510   : > { %v5450_v34 = vmul.f32 %v5386_v61, %v12699_v28  ;;  %v8881_v11 = vld [vmem:[#allocation8 + $0x10] sm:$0xf] }
 0x511   : > { %v5138_v15 = vadd.f32 %v5074_v21, %v12740_v25  ;;  %v12756_v55 = vadd.f32 %v4601_v29, %v4553_v2  ;;  %4747 = vmatmul.bf16.gmra.mxu0 %v12524_v58  ;;  %4796 = vmatmul.bf16.gmra.mxu1 %v12526_v30  ;;  %v8890_v21 = vor.u32 %v9652_v48, %v8889_v62  ;;  %v8953_v2 = vld [vmem:[#allocation8 + $0xa0] sm:$0xf] }
 0x512   : > { %v10084_v27 = vpop.eup %10083  ;;  %4845 = vmatmul.bf16.gmra.mxu2 %v12524_v58  ;;  %4894 = vmatmul.bf16.gmra.mxu3 %v12526_v30  ;;  %v12762_v38 = vpack.c.bf16 %v5450_v34, %v5446_v22  ;;  %v9668_v22 = vld [vmem:[#allocation8 + $0xa4] sm:$0xf0] }
 0x513   : > { %v5202_v28 = vmul.f32 0.7978846, %v5138_v15  ;;  %v4950_v57 = vmul.f32 %v12756_v55, %v12756_v55  ;;  %v5323_v24 = vadd.f32 1.0, %v10084_v27  ;;  %v10086_v29 = vpop.eup %10085  ;;  %v8954_v15 = vor.u32 %v9668_v22, %v8953_v2  ;;  %5907 = vmatpush.bf16.msra.mxu0 %v8890_v21 }
 0x514   : > { %v5326_v26 = vadd.f32 1.0, %v10086_v29  ;;  %v8937_v29 = vld [vmem:[#allocation8 + $0x80] sm:$0xf] }
 0x515   : > { %v5014_v58 = vmul.f32 %v4950_v57, %v12756_v55  ;;  %v4650_v44 = vpop.f32.mrf.mxu2  ;;  %v4699_v30 = vpop.f32.mrf.mxu3  ;;  %10087 = vtanh.f32 %v5202_v28  ;;  %v5387_v27 = vmul.f32 0.5, %v5323_v24  ;;  %5956 = vmatpush.bf16.msra.mxu1 %v8954_v15  ;;  %v9650_v28 = vld [vmem:[#allocation8 + $0x14] sm:$0xf0]  ;;  %v5447_v57 = vmul.f32 %v5383_v31, %v12696_v0 }
 0x516   : > { %v4651_v14 = vadd.f32 %v4650_v44, %v14215_v10  ;;  %v4554_v4 = vpop.f32.mrf.mxu0  ;;  %v4603_v37 = vpop.f32.mrf.mxu1  ;;  %v8882_v36 = vor.u32 %v9650_v28, %v8881_v11  ;;  %v5390_v13 = vmul.f32 0.5, %v5326_v26  ;;  %v9017_v28 = vld [vmem:[#allocation8 + $0x120] sm:$0xf] }
 0x517   : > { %v5078_v61 = vmul.f32 0.044715, %v5014_v58  ;;  %v4555_v6 = vadd.f32 %v4554_v4, %v14214_v23  ;;  %v5451_v56 = vmul.f32 %v5387_v27, %v12714_v40  ;;  %v9666_v58 = vld [vmem:[#allocation8 + $0x94] sm:$0xf0]  ;;  %v8873_v4 = vld [vmem:[#allocation8] sm:$0xf] }
 0x518   : > { %v12769_v34 = vadd.f32 %v4699_v30, %v4651_v14  ;;  %v8946_v44 = vor.u32 %v9666_v58, %v8945_v20  ;;  %5908 = vmatpush.bf16.msra.mxu0 %v8882_v36  ;;  %v5454_v15 = vmul.f32 %v5390_v13, %v12719_v39  ;;  %v9700_v39 = vld [vmem:[#allocation8 + $0x1a4] sm:$0xf0] }
 0x519   : > { %v5142_v45 = vadd.f32 %v5078_v61, %v12756_v55  ;;  %v12772_v9 = vadd.f32 %v4603_v37, %v4555_v6  ;;  %v12778_v30 = vpack.c.bf16 %v5451_v56, %v5447_v57  ;;  %v9648_v37 = vld [vmem:[#allocation8 + $0x4] sm:$0xf0]  ;;  %v9081_v56 = vld [vmem:[#allocation8 + $0x1a0] sm:$0xf] }
 0x51a   : > { %5957 = vmatpush.bf16.msra.mxu1 %v8946_v44  ;;  %v8874_v31 = vor.u32 %v9648_v37, %v8873_v4  ;;  %v9664_v61 = vld [vmem:[#allocation8 + $0x84] sm:$0xf0]  ;;  %v9082_v58 = vor.u32 %v9700_v39, %v9081_v56 }
 0x51b   : > { %v10088_v35 = vpop.eup %10087  ;;  %v5206_v19 = vmul.f32 0.7978846, %v5142_v45  ;;  %v4954_v7 = vmul.f32 %v12772_v9, %v12772_v9  ;;  %v8938_v6 = vor.u32 %v9664_v61, %v8937_v29  ;;  %v9684_v57 = vld [vmem:[#allocation8 + $0x124] sm:$0xf0] }
 0x51c   : > { %v5330_v60 = vadd.f32 1.0, %v10088_v35  ;;  %5909 = vmatpush.bf16.msra.mxu0 %v8874_v31  ;;  %6054 = vmatpush.bf16.msra.mxu3 %v9082_v58 }
 0x51d   : > { %v5018_v18 = vmul.f32 %v4954_v7, %v12772_v9  ;;  %v12781_v24 = vpop.f32.mrf.mxu2  ;;  %v12783_v0 = vpop.f32.mrf.mxu3  ;;  %10089 = vtanh.f32 %v5206_v19  ;;  %v9018_v7 = vor.u32 %v9684_v57, %v9017_v28 }
 0x51e   : > { %v4557_v40 = vpop.f32.mrf.mxu0  ;;  %v4606_v14 = vpop.f32.mrf.mxu1  ;;  %v5394_v21 = vmul.f32 0.5, %v5330_v60  ;;  %5958 = vmatpush.bf16.msra.mxu1 %v8938_v6 }
 0x51f   : > { %v5082_v62 = vmul.f32 0.044715, %v5018_v18  ;;  %v4558_v48 = vadd.f32 %v4557_v40, %v14214_v23  ;;  %6005 = vmatpush.bf16.msra.mxu2 %v9018_v7 }
 0x520   : > { %v5458_v27 = vmul.f32 %v5394_v21, %v12740_v25 }
 0x521   : > { %v5146_v2 = vadd.f32 %v5082_v62, %v12772_v9  ;;  %v12787_v22 = vadd.f32 %v4606_v14, %v4558_v48  ;;  %4752 = vmatmul.bf16.gmra.mxu0 %v12542_v54  ;;  %4801 = vmatmul.bf16.gmra.mxu1 %v12544_v1 }
 0x522   : > { %4850 = vmatmul.bf16.gmra.mxu2 %v12542_v54  ;;  %4899 = vmatmul.bf16.gmra.mxu3 %v12544_v1  ;;  %v12797_v26 = vpack.c.bf16 %v5458_v27, %v5454_v15 }
 0x523   : > { %v5210_v45 = vmul.f32 0.7978846, %v5146_v2  ;;  %v4958_v11 = vmul.f32 %v12787_v22, %v12787_v22  ;;  %v10090_v35 = vpop.eup %10089 }
 0x524   : > { %v5334_v40 = vadd.f32 1.0, %v10090_v35 }
 0x525   : > { %v5022_v54 = vmul.f32 %v4958_v11, %v12787_v22  ;;  %v4655_v19 = vpop.f32.mrf.mxu2  ;;  %v4704_v1 = vpop.f32.mrf.mxu3  ;;  %10091 = vtanh.f32 %v5210_v45 }
 0x526   : > { %v4656_v25 = vadd.f32 %v4655_v19, %v14215_v10  ;;  %v4559_v36 = vpop.f32.mrf.mxu0  ;;  %v4608_v20 = vpop.f32.mrf.mxu1  ;;  %v5398_v31 = vmul.f32 0.5, %v5334_v40 }
 0x527   : > { %v5086_v44 = vmul.f32 0.044715, %v5022_v54  ;;  %v4560_v60 = vadd.f32 %v4559_v36, %v14214_v23 }
 0x528   : > { %v12802_v18 = vadd.f32 %v4704_v1, %v4656_v25  ;;  %v5462_v11 = vmul.f32 %v5398_v31, %v12756_v55 }
 0x529   : > { %v5150_v14 = vadd.f32 %v5086_v44, %v12787_v22  ;;  %v12805_v4 = vadd.f32 %v4608_v20, %v4560_v60  ;;  %v4943_v60 = vmul.f32 %v12736_v33, %v12736_v33 }
 0x52b   : > { %v10092_v37 = vpop.eup %10091  ;;  %v5214_v13 = vmul.f32 0.7978846, %v5150_v14  ;;  %v4962_v62 = vmul.f32 %v12805_v4, %v12805_v4  ;;  %v5007_v31 = vmul.f32 %v4943_v60, %v12736_v33 }
 0x52c   : > { %v5338_v48 = vadd.f32 1.0, %v10092_v37 }
 0x52d   : > { %v5026_v29 = vmul.f32 %v4962_v62, %v12805_v4  ;;  %v12810_v61 = vpop.f32.mrf.mxu2  ;;  %v12812_v6 = vpop.f32.mrf.mxu3  ;;  %10093 = vtanh.f32 %v5214_v13 }
 0x52e   : > { %v4562_v21 = vpop.f32.mrf.mxu0  ;;  %v4611_v2 = vpop.f32.mrf.mxu1  ;;  %v5402_v15 = vmul.f32 0.5, %v5338_v48 }
 0x52f   : > { %v5090_v27 = vmul.f32 0.044715, %v5026_v29  ;;  %v4563_v45 = vadd.f32 %v4562_v21, %v14214_v23 }
 0x530   : > { %v5466_v28 = vmul.f32 %v5402_v15, %v12772_v9  ;;  %v4648_v9 = vadd.f32 %v12748_v43, %v14215_v10  ;;  %v9009_v15 = vld [vmem:[#allocation8 + $0x110] sm:$0xf] }
 0x531   : > { %v5154_v57 = vadd.f32 %v5090_v27, %v12805_v4  ;;  %v12818_v56 = vadd.f32 %v4611_v2, %v4563_v45  ;;  %4757 = vmatmul.bf16.gmra.mxu0 %v12560_v42  ;;  %4806 = vmatmul.bf16.gmra.mxu1 %v12562_v63  ;;  %v9682_v27 = vld [vmem:[#allocation8 + $0x114] sm:$0xf0] }
 0x532   : > { %4855 = vmatmul.bf16.gmra.mxu2 %v12560_v42  ;;  %4904 = vmatmul.bf16.gmra.mxu3 %v12562_v63  ;;  %v12824_v35 = vpack.c.bf16 %v5466_v28, %v5462_v11  ;;  %v12838_v43 = vadd.f32 %v12750_v53, %v4648_v9  ;;  %v9010_v28 = vor.u32 %v9682_v27, %v9009_v15  ;;  %v14217_v15 = vld [vmem:[#allocation23_spill] sm:$0xff] }
 0x533   : > { %v5218_v54 = vmul.f32 0.7978846, %v5154_v57  ;;  %v4966_v55 = vmul.f32 %v12818_v56, %v12818_v56  ;;  %v10094_v19 = vpop.eup %10093 }
 0x534   : > { %v5342_v44 = vadd.f32 1.0, %v10094_v19  ;;  %v4947_v29 = vmul.f32 %v12838_v43, %v12838_v43  ;;  %6006 = vmatpush.bf16.msra.mxu2 %v9010_v28 }
 0x535   : > { %v5030_v1 = vmul.f32 %v4966_v55, %v12818_v56  ;;  %v4660_v7 = vpop.f32.mrf.mxu2  ;;  %v4709_v39 = vpop.f32.mrf.mxu3  ;;  %10095 = vtanh.f32 %v5218_v54  ;;  %v14216_v55 = vld [vmem:[#allocation22_spill] sm:$0xff] }
 0x536   : > { %v4661_v25 = vadd.f32 %v4660_v7, %v14215_v10  ;;  %v4564_v42 = vpop.f32.mrf.mxu0  ;;  %v4613_v36 = vpop.f32.mrf.mxu1  ;;  %v5071_v7 = vmul.f32 0.044715, %v5007_v31 }
 0x537   : > { %v5094_v63 = vmul.f32 0.044715, %v5030_v1  ;;  %v4565_v20 = vadd.f32 %v4564_v42, %v14214_v23  ;;  %v5406_v23 = vmul.f32 0.5, %v5342_v44  ;;  %v9698_v44 = vld [vmem:[#allocation8 + $0x194] sm:$0xf0] }
 0x538   : > { %v12833_v58 = vadd.f32 %v4709_v39, %v4661_v25  ;;  %v5011_v39 = vmul.f32 %v4947_v29, %v12838_v43 }
 0x539   : > { %v5158_v40 = vadd.f32 %v5094_v63, %v12818_v56  ;;  %v12841_v14 = vadd.f32 %v4613_v36, %v4565_v20  ;;  %v5470_v9 = vmul.f32 %v5406_v23, %v12787_v22  ;;  %v9001_v36 = vld [vmem:[#allocation8 + $0x100] sm:$0xf]  ;;  %v9680_v63 = vld [vmem:[#allocation8 + $0x104] sm:$0xf0]  ;;  %v9073_v20 = vld [vmem:[#allocation8 + $0x190] sm:$0xf]  ;;  %v4653_v22 = vadd.f32 %v12781_v24, %v14215_v10 }
 0x53a   : > { %v9002_v60 = vor.u32 %v9680_v63, %v9001_v36  ;;  %v5075_v23 = vmul.f32 0.044715, %v5011_v39 }
 0x53b   : > { %v10096_v37 = vpop.eup %10095  ;;  %v5222_v13 = vmul.f32 0.7978846, %v5158_v40  ;;  %v4970_v62 = vmul.f32 %v12841_v14, %v12841_v14 }
 0x53c   : > { %v5346_v48 = vadd.f32 1.0, %v10096_v37  ;;  %6007 = vmatpush.bf16.msra.mxu2 %v9002_v60 }
 0x53d   : > { %v5034_v21 = vmul.f32 %v4970_v62, %v12841_v14  ;;  %v12849_v53 = vpop.f32.mrf.mxu2  ;;  %v12851_v2 = vpop.f32.mrf.mxu3  ;;  %10097 = vtanh.f32 %v5222_v13  ;;  %v9074_v13 = vor.u32 %v9698_v44, %v9073_v20 }
 0x53e   : > { %v4723_v45 = vpop.f32.mrf.mxu0  ;;  %v4772_v11 = vpop.f32.mrf.mxu1  ;;  %v5410_v57 = vmul.f32 0.5, %v5346_v48  ;;  %v5135_v48 = vadd.f32 %v5071_v7, %v12736_v33 }
 0x53f   : > { %v5098_v54 = vmul.f32 0.044715, %v5034_v21  ;;  %v4724_v19 = vadd.f32 %v4723_v45, %v14216_v55  ;;  %6055 = vmatpush.bf16.msra.mxu3 %v9074_v13 }
 0x540   : > { %v5474_v1 = vmul.f32 %v5410_v57, %v12805_v4  ;;  %v5199_v39 = vmul.f32 0.7978846, %v5135_v48 }
 0x541   : > { %v5162_v25 = vadd.f32 %v5098_v54, %v12841_v14  ;;  %v12858_v42 = vadd.f32 %v4772_v11, %v4724_v19  ;;  %5910 = vmatmul.bf16.vlgmr.msra.gmra.mxu0 %v12643_v51  ;;  %5959 = vmatmul.bf16.vlgmr.msra.gmra.mxu1 %v12660_v3  ;;  %v12872_v11 = vadd.f32 %v12783_v0, %v4653_v22  ;;  %v9065_v54 = vld [vmem:[#allocation8 + $0x180] sm:$0xf]  ;;  %v9696_v19 = vld [vmem:[#allocation8 + $0x184] sm:$0xf0] }
 0x542   : > { %v12862_v40 = vpack.c.bf16 %v5474_v1, %v5470_v9  ;;  %v9066_v1 = vor.u32 %v9696_v19, %v9065_v54  ;;  %v4951_v0 = vmul.f32 %v12769_v34, %v12769_v34 }
 0x543   : > { %v5226_v4 = vmul.f32 0.7978846, %v5162_v25  ;;  %v4912_v37 = vmul.f32 %v12858_v42, %v12858_v42  ;;  %v10098_v62 = vpop.eup %10097  ;;  %v5139_v25 = vadd.f32 %v5075_v23, %v12838_v43  ;;  %v4955_v60 = vmul.f32 %v12872_v11, %v12872_v11 }
 0x544   : > { %v5350_v7 = vadd.f32 1.0, %v10098_v62  ;;  %6056 = vmatpush.bf16.msra.mxu3 %v9066_v1 }
 0x545   : > { %v4976_v31 = vmul.f32 %v4912_v37, %v12858_v42  ;;  %v4821_v29 = vpop.f32.mrf.mxu2  ;;  %v4870_v21 = vpop.f32.mrf.mxu3  ;;  %10099 = vtanh.f32 %v5226_v4  ;;  %v5203_v48 = vmul.f32 0.7978846, %v5139_v25  ;;  %v5019_v54 = vmul.f32 %v4955_v60, %v12872_v11 }
 0x546   : > { %v4822_v27 = vadd.f32 %v4821_v29, %v14217_v15  ;;  %v4725_v45 = vpop.f32.mrf.mxu0  ;;  %v4774_v24 = vpop.f32.mrf.mxu1  ;;  %v5414_v62 = vmul.f32 0.5, %v5350_v7  ;;  %10101 = vtanh.f32 %v5199_v39 }
 0x547   : > { %v5040_v28 = vmul.f32 0.044715, %v4976_v31  ;;  %v4726_v57 = vadd.f32 %v4725_v45, %v14216_v55 }
 0x548   : > { %v12875_v9 = vadd.f32 %v4870_v21, %v4822_v27  ;;  %v5015_v21 = vmul.f32 %v4951_v0, %v12769_v34  ;;  %v5478_v25 = vmul.f32 %v5414_v62, %v12818_v56 }
 0x549   : > { %v5104_v36 = vadd.f32 %v5040_v28, %v12858_v42  ;;  %v12879_v63 = vadd.f32 %v4774_v24, %v4726_v57 }
 0x54a   : > { %v4913_v20 = vmul.f32 %v12875_v9, %v12875_v9 }
 0x54b   : > { %v10100_v44 = vpop.eup %10099  ;;  %v5168_v22 = vmul.f32 0.7978846, %v5104_v36  ;;  %v4916_v4 = vmul.f32 %v12879_v63, %v12879_v63 }
 0x54c   : > { %v4977_v37 = vmul.f32 %v4913_v20, %v12875_v9  ;;  %v5354_v13 = vadd.f32 1.0, %v10100_v44 }
 0x54d   : > { %v4980_v23 = vmul.f32 %v4916_v4, %v12879_v63  ;;  %v4823_v31 = vpop.f32.mrf.mxu2  ;;  %v4872_v29 = vpop.f32.mrf.mxu3  ;;  %10103 = vtanh.f32 %v5168_v22 }
 0x54e   : > { %v5041_v27 = vmul.f32 0.044715, %v4977_v37  ;;  %v4824_v45 = vadd.f32 %v4823_v31, %v14217_v15  ;;  %v4728_v24 = vpop.f32.mrf.mxu0  ;;  %v4777_v28 = vpop.f32.mrf.mxu1  ;;  %v5418_v57 = vmul.f32 0.5, %v5354_v13  ;;  %v5079_v37 = vmul.f32 0.044715, %v5015_v21 }
 0x54f   : > { %v5044_v19 = vmul.f32 0.044715, %v4980_v23  ;;  %v4729_v1 = vadd.f32 %v4728_v24, %v14216_v55  ;;  %v10102_v4 = vpop.eup %10101  ;;  %v9693_v23 = vld [vmem:[#allocation8 + $0x174] sm:$0xf]  ;;  %v9059_v31 = vld [vmem:[#allocation8 + $0x178] sm:$0xf0]  ;;  %10105 = vtanh.f32 %v5203_v48 }
 0x550   : > { %v5105_v7 = vadd.f32 %v5041_v27, %v12875_v9  ;;  %v12896_v39 = vadd.f32 %v4872_v29, %v4824_v45  ;;  %v5482_v36 = vmul.f32 %v5418_v57, %v12841_v14  ;;  %v5083_v14 = vmul.f32 0.044715, %v5019_v54  ;;  %v9661_v57 = vld [vmem:[#allocation8 + $0x74] sm:$0xf] }
 0x551   : > { %v5108_v0 = vadd.f32 %v5044_v19, %v12879_v63  ;;  %v12901_v20 = vadd.f32 %v4777_v28, %v4729_v1  ;;  %5915 = vmatmul.bf16.gmra.mxu0 %v12687_v32  ;;  %5964 = vmatmul.bf16.gmra.mxu1 %v12707_v12  ;;  %v4658_v27 = vadd.f32 %v12810_v61, %v14215_v10  ;;  %v8931_v19 = vld [vmem:[#allocation8 + $0x78] sm:$0xf0]  ;;  %v9709_v1 = vld [vmem:[#allocation8 + $0x1f4] sm:$0xf] }
 0x552   : > { %v5169_v44 = vmul.f32 0.7978846, %v5105_v7  ;;  %v4917_v60 = vmul.f32 %v12896_v39, %v12896_v39  ;;  %v12907_v22 = vpack.c.bf16 %v5482_v36, %v5478_v25  ;;  %v9062_v21 = vor.u32 %v9693_v23, %v9059_v31 }
 0x553   : > { %v5172_v13 = vmul.f32 0.7978846, %v5108_v0  ;;  %v4920_v56 = vmul.f32 %v12901_v20, %v12901_v20  ;;  %v10104_v29 = vpop.eup %10103  ;;  %v8934_v48 = vor.u32 %v9661_v57, %v8931_v19  ;;  %v9123_v0 = vld [vmem:[#allocation8 + $0x1f8] sm:$0xf0]  ;;  %v5327_v57 = vadd.f32 1.0, %v10102_v4 }
 0x554   : > { %v4981_v62 = vmul.f32 %v4917_v60, %v12896_v39  ;;  %v5143_v60 = vadd.f32 %v5079_v37, %v12769_v34  ;;  %6196 = vmatpush.bf16.msrb.mxu2 %v9062_v21  ;;  %v5296_v52 = vadd.f32 1.0, %v10104_v29  ;;  %v9677_v19 = vld [vmem:[#allocation8 + $0xf4] sm:$0xf] }
 0x555   : > { %10107 = vtanh.f32 %v5172_v13  ;;  %v4984_v45 = vmul.f32 %v4920_v56, %v12901_v20  ;;  %v4826_v24 = vpop.f32.mrf.mxu2  ;;  %v4875_v28 = vpop.f32.mrf.mxu3  ;;  %v9126_v56 = vor.u32 %v9709_v1, %v9123_v0  ;;  %6098 = vmatpush.bf16.msrb.mxu0 %v8934_v48  ;;  %v4959_v0 = vmul.f32 %v12802_v18, %v12802_v18 }
 0x556   : > { %10109 = vtanh.f32 %v5169_v44  ;;  %v5045_v54 = vmul.f32 0.044715, %v4981_v62  ;;  %v4827_v7 = vadd.f32 %v4826_v24, %v14217_v15  ;;  %v4730_v25 = vpop.f32.mrf.mxu0  ;;  %v4779_v36 = vpop.f32.mrf.mxu1  ;;  %v5147_v44 = vadd.f32 %v5083_v14, %v12872_v11 }
 0x557   : > { %v5048_v61 = vmul.f32 0.044715, %v4984_v45  ;;  %v4731_v13 = vadd.f32 %v4730_v25, %v14216_v55  ;;  %6245 = vmatpush.bf16.msrb.mxu3 %v9126_v56  ;;  %v10106_v37 = vpop.eup %10105  ;;  %v12926_v45 = vadd.f32 %v12812_v6, %v4658_v27  ;;  %v5360_v48 = vmul.f32 0.5, %v5296_v52 }
 0x558   : > { %v5109_v23 = vadd.f32 %v5045_v54, %v12896_v39  ;;  %v12919_v31 = vadd.f32 %v4875_v28, %v4827_v7  ;;  %v8995_v28 = vld [vmem:[#allocation8 + $0xf8] sm:$0xf0]  ;;  %v5207_v54 = vmul.f32 0.7978846, %v5143_v60  ;;  %v5211_v27 = vmul.f32 0.7978846, %v5147_v44 }
 0x559   : > { %v5112_v62 = vadd.f32 %v5048_v61, %v12901_v20  ;;  %v12923_v24 = vadd.f32 %v4779_v36, %v4731_v13  ;;  %v8998_v25 = vor.u32 %v9677_v19, %v8995_v28  ;;  %v5331_v60 = vadd.f32 1.0, %v10106_v37 }
 0x55a   : > { %v5173_v21 = vmul.f32 0.7978846, %v5109_v23  ;;  %v4921_v29 = vmul.f32 %v12919_v31, %v12919_v31  ;;  %v4963_v23 = vmul.f32 %v12926_v45, %v12926_v45 }
 0x55b   : > { %v10108_v1 = vpop.eup %10107  ;;  %v5176_v7 = vmul.f32 0.7978846, %v5112_v62  ;;  %v4924_v14 = vmul.f32 %v12923_v24, %v12923_v24  ;;  %6147 = vmatpush.bf16.msrb.mxu1 %v8998_v25 }
 0x55c   : > { %v10110_v36 = vpop.eup %10109  ;;  %v5300_v4 = vadd.f32 1.0, %v10108_v1  ;;  %10111 = vtanh.f32 %v5173_v21  ;;  %v4985_v6 = vmul.f32 %v4921_v29, %v12919_v31 }
 0x55d   : > { %v4988_v61 = vmul.f32 %v4924_v14, %v12923_v24  ;;  %v4828_v13 = vpop.f32.mrf.mxu2  ;;  %v4877_v56 = vpop.f32.mrf.mxu3  ;;  %v5297_v29 = vadd.f32 1.0, %v10110_v36  ;;  %10113 = vtanh.f32 %v5176_v7  ;;  %v5424_v14 = vmul.f32 %v5360_v48, %v12858_v42 }
 0x55e   : > { %v5364_v62 = vmul.f32 0.5, %v5300_v4  ;;  %v5049_v19 = vmul.f32 0.044715, %v4985_v6  ;;  %v4829_v52 = vadd.f32 %v4828_v13, %v14217_v15  ;;  %v4733_v21 = vpop.f32.mrf.mxu0  ;;  %v4782_v28 = vpop.f32.mrf.mxu1  ;;  %10115 = vtanh.f32 %v5207_v54 }
 0x55f   : > { %v5052_v44 = vmul.f32 0.044715, %v4988_v61  ;;  %v4734_v1 = vadd.f32 %v4733_v21, %v14216_v55  ;;  %v5391_v7 = vmul.f32 0.5, %v5327_v57  ;;  %v5395_v48 = vmul.f32 0.5, %v5331_v60  ;;  %v9051_v21 = vld [vmem:[#allocation8 + $0x168] sm:$0xf0] }
 0x560   : > { %v5428_v49 = vmul.f32 %v5364_v62, %v12879_v63  ;;  %v5113_v37 = vadd.f32 %v5049_v19, %v12919_v31  ;;  %v12943_v25 = vadd.f32 %v4877_v56, %v4829_v52  ;;  %v5361_v13 = vmul.f32 0.5, %v5297_v29 }
 0x561   : > { %v5116_v4 = vadd.f32 %v5052_v44, %v12923_v24  ;;  %v12946_v6 = vadd.f32 %v4782_v28, %v4734_v1  ;;  %5920 = vmatmul.bf16.gmra.mxu0 %v12727_v17  ;;  %5969 = vmatmul.bf16.gmra.mxu1 %v12745_v59  ;;  %v5023_v19 = vmul.f32 %v4959_v0, %v12802_v18  ;;  %10117 = vtanh.f32 %v5211_v27 }
 0x562   : > { %v10112_v36 = vpop.eup %10111  ;;  %v12950_v61 = vpack.c.bf16 %v5428_v49, %v5424_v14  ;;  %v5177_v42 = vmul.f32 0.7978846, %v5113_v37  ;;  %v4925_v63 = vmul.f32 %v12943_v25, %v12943_v25  ;;  %v5027_v52 = vmul.f32 %v4963_v23, %v12926_v45  ;;  %v9691_v49 = vld [vmem:[#allocation8 + $0x164] sm:$0xf] }
 0x563   : > { %v5301_v56 = vadd.f32 1.0, %v10112_v36  ;;  %v5180_v54 = vmul.f32 0.7978846, %v5116_v4  ;;  %v4928_v62 = vmul.f32 %v12946_v6, %v12946_v6  ;;  %v10114_v28 = vpop.eup %10113  ;;  %v9054_v14 = vor.u32 %v9691_v49, %v9051_v21  ;;  %v9659_v37 = vld [vmem:[#allocation8 + $0x64] sm:$0xf] }
 0x564   : > { %v4989_v57 = vmul.f32 %v4925_v63, %v12943_v25  ;;  %6008 = vmatmul.bf16.vlgmr.msra.gmra.mxu2 %v12950_v61  ;;  %v8923_v4 = vld [vmem:[#allocation8 + $0x68] sm:$0xf0]  ;;  %v10116_v41 = vpop.eup %10115  ;;  %v5425_v27 = vmul.f32 %v5361_v13, %v12875_v9 }
 0x565   : > { %v5365_v44 = vmul.f32 0.5, %v5301_v56  ;;  %v4992_v60 = vmul.f32 %v4928_v62, %v12946_v6  ;;  %v4831_v29 = vpop.f32.mrf.mxu2  ;;  %v4880_v1 = vpop.f32.mrf.mxu3  ;;  %10119 = vtanh.f32 %v5180_v54  ;;  %v8926_v16 = vor.u32 %v9659_v37, %v8923_v4  ;;  %6197 = vmatpush.bf16.msrb.mxu2 %v9054_v14  ;;  %v9115_v54 = vld [vmem:[#allocation8 + $0x1e8] sm:$0xf0] }
 0x566   : > { %10121 = vtanh.f32 %v5177_v42  ;;  %v5053_v0 = vmul.f32 0.044715, %v4989_v57  ;;  %v4832_v23 = vadd.f32 %v4831_v29, %v14217_v15  ;;  %v4735_v36 = vpop.f32.mrf.mxu0  ;;  %v4784_v63 = vpop.f32.mrf.mxu1  ;;  %v5304_v57 = vadd.f32 1.0, %v10114_v28  ;;  %v8987_v14 = vld [vmem:[#allocation8 + $0xe8] sm:$0xf0] }
 0x567   : > { %v5429_v56 = vmul.f32 %v5365_v44, %v12896_v39  ;;  %v5056_v62 = vmul.f32 0.044715, %v4992_v60  ;;  %v4736_v47 = vadd.f32 %v4735_v36, %v14216_v55  ;;  %6099 = vmatpush.bf16.msrb.mxu0 %v8926_v16  ;;  %v9118_v21 = vor.u32 %v9707_v50, %v9115_v54  ;;  %v10118_v39 = vpop.eup %10117  ;;  %v9675_v60 = vld [vmem:[#allocation8 + $0xe4] sm:$0xf] }
 0x568   : > { %v5117_v49 = vadd.f32 %v5053_v0, %v12943_v25  ;;  %v12966_v42 = vadd.f32 %v4880_v1, %v4832_v23  ;;  %v5091_v29 = vmul.f32 0.044715, %v5027_v52  ;;  %v12976_v1 = vmul.f32 %v5391_v7, %v12736_v33 }
 0x569   : > { %v12968_v37 = vpack.c.bf16 %v5429_v56, %v5425_v27  ;;  %v5120_v4 = vadd.f32 %v5056_v62, %v12946_v6  ;;  %v12971_v9 = vadd.f32 %v4784_v63, %v4736_v47  ;;  %6246 = vmatpush.bf16.msrb.mxu3 %v9118_v21  ;;  %v8990_v47 = vor.u32 %v9675_v60, %v8987_v14 }
 0x56a   : > { %v5181_v13 = vmul.f32 0.7978846, %v5117_v49  ;;  %v4929_v44 = vmul.f32 %v12966_v42, %v12966_v42  ;;  %v12982_v28 = vmul.f32 %v5395_v48, %v12838_v43  ;;  %v5368_v63 = vmul.f32 0.5, %v5304_v57 }
 0x56b   : > { %v10120_v16 = vpop.eup %10119  ;;  %v5184_v50 = vmul.f32 0.7978846, %v5120_v4  ;;  %v4932_v52 = vmul.f32 %v12971_v9, %v12971_v9  ;;  %6057 = vmatmul.bf16.vlgmr.msra.gmra.mxu3 %v12968_v37  ;;  %v5087_v27 = vmul.f32 0.044715, %v5023_v19  ;;  %v5155_v33 = vadd.f32 %v5091_v29, %v12926_v45  ;;  %6148 = vmatpush.bf16.msrb.mxu1 %v8990_v47 }
 0x56c   : > { %v10122_v0 = vpop.eup %10121  ;;  %v4993_v23 = vmul.f32 %v4929_v44, %v12966_v42  ;;  %v5308_v36 = vadd.f32 1.0, %v10120_v16  ;;  %10123 = vtanh.f32 %v5181_v13  ;;  %v4967_v7 = vmul.f32 %v12833_v58, %v12833_v58 }
 0x56d   : > { %v4996_v56 = vmul.f32 %v4932_v52, %v12971_v9  ;;  %v4833_v62 = vpop.f32.mrf.mxu2  ;;  %v4882_v54 = vpop.f32.mrf.mxu3  ;;  %v4663_v43 = vadd.f32 %v12849_v53, %v14215_v10  ;;  %10125 = vtanh.f32 %v5184_v50  ;;  %v5305_v13 = vadd.f32 1.0, %v10122_v0 }
 0x56e   : > { %v5057_v48 = vmul.f32 0.044715, %v4993_v23  ;;  %v4834_v49 = vadd.f32 %v4833_v62, %v14217_v15  ;;  %v4738_v21 = vpop.f32.mrf.mxu0  ;;  %v4787_v57 = vpop.f32.mrf.mxu1  ;;  %v5372_v4 = vmul.f32 0.5, %v5308_v36  ;;  %v5432_v14 = vmul.f32 %v5368_v63, %v12901_v20 }
 0x56f   : > { %v5060_v19 = vmul.f32 0.044715, %v4996_v56  ;;  %v4739_v29 = vadd.f32 %v4738_v21, %v14216_v55  ;;  %v5151_v10 = vadd.f32 %v5087_v27, %v12802_v18  ;;  %v13004_v50 = vadd.f32 1.0, %v10116_v41  ;;  %v9043_v21 = vld [vmem:[#allocation8 + $0x158] sm:$0xf0] }
 0x570   : > { %v5121_v44 = vadd.f32 %v5057_v48, %v12966_v42  ;;  %v12994_v60 = vadd.f32 %v4882_v54, %v4834_v49  ;;  %v5436_v16 = vmul.f32 %v5372_v4, %v12923_v24  ;;  %v13010_v24 = vadd.f32 1.0, %v10118_v39  ;;  %v9689_v49 = vld [vmem:[#allocation8 + $0x154] sm:$0xf] }
 0x571   : > { %v5124_v53 = vadd.f32 %v5060_v19, %v12971_v9  ;;  %v13000_v52 = vadd.f32 %v4787_v57, %v4739_v29  ;;  %5925 = vmatmul.bf16.gmra.mxu0 %v12762_v38  ;;  %5974 = vmatmul.bf16.gmra.mxu1 %v12778_v30  ;;  %v5369_v56 = vmul.f32 0.5, %v5305_v13  ;;  %v5219_v62 = vmul.f32 0.7978846, %v5155_v33  ;;  %v9657_v33 = vld [vmem:[#allocation8 + $0x54] sm:$0xf] }
 0x572   : > { %v10124_v47 = vpop.eup %10123  ;;  %v5185_v0 = vmul.f32 0.7978846, %v5121_v44  ;;  %v4933_v23 = vmul.f32 %v12994_v60, %v12994_v60  ;;  %v13008_v20 = vpack.c.bf16 %v5436_v16, %v5432_v14  ;;  %v5031_v54 = vmul.f32 %v4967_v7, %v12833_v58  ;;  %v8915_v44 = vld [vmem:[#allocation8 + $0x58] sm:$0xf0] }
 0x573   : > { %v5188_v36 = vmul.f32 0.7978846, %v5124_v53  ;;  %v4936_v63 = vmul.f32 %v13000_v52, %v13000_v52  ;;  %v5309_v27 = vadd.f32 1.0, %v10124_v47  ;;  %v13016_v41 = vadd.f32 %v12851_v2, %v4663_v43  ;;  %v10126_v39 = vpop.eup %10125  ;;  %v9705_v53 = vld [vmem:[#allocation8 + $0x1d4] sm:$0xf] }
 0x574   : > { %v4997_v48 = vmul.f32 %v4933_v23, %v12994_v60  ;;  %6013 = vmatmul.bf16.gmra.mxu2 %v13008_v20  ;;  %v9046_v13 = vor.u32 %v9689_v49, %v9043_v21  ;;  %v8918_v16 = vor.u32 %v9657_v33, %v8915_v44  ;;  %v5095_v21 = vmul.f32 0.044715, %v5031_v54  ;;  %v8979_v54 = vld [vmem:[#allocation8 + $0xd8] sm:$0xf0] }
 0x575   : > { %v5000_v57 = vmul.f32 %v4936_v63, %v13000_v52  ;;  %v4836_v4 = vpop.f32.mrf.mxu2  ;;  %v4885_v19 = vpop.f32.mrf.mxu3  ;;  %v5373_v29 = vmul.f32 0.5, %v5309_v27  ;;  %10127 = vtanh.f32 %v5188_v36  ;;  %v5433_v63 = vmul.f32 %v5369_v56, %v12919_v31  ;;  %v9107_v36 = vld [vmem:[#allocation8 + $0x1d8] sm:$0xf0] }
 0x576   : > { %10129 = vtanh.f32 %v5185_v0  ;;  %v5061_v7 = vmul.f32 0.044715, %v4997_v48  ;;  %v4837_v2 = vadd.f32 %v4836_v4, %v14217_v15  ;;  %v4740_v43 = vpop.f32.mrf.mxu0  ;;  %v4789_v14 = vpop.f32.mrf.mxu1  ;;  %6198 = vmatpush.bf16.msrb.mxu2 %v9046_v13  ;;  %v5312_v0 = vadd.f32 1.0, %v10126_v39  ;;  %6100 = vmatpush.bf16.msrb.mxu0 %v8918_v16  ;;  %v9673_v39 = vld [vmem:[#allocation8 + $0xd4] sm:$0xf] }
 0x577   : > { %v5064_v47 = vmul.f32 0.044715, %v5000_v57  ;;  %v4741_v23 = vadd.f32 %v4740_v43, %v14216_v55  ;;  %v5437_v8 = vmul.f32 %v5373_v29, %v12943_v25  ;;  %v9110_v48 = vor.u32 %v9705_v53, %v9107_v36 }
 0x578   : > { %v5125_v27 = vadd.f32 %v5061_v7, %v12994_v60  ;;  %v13026_v49 = vadd.f32 %v4885_v19, %v4837_v2  ;;  %v4971_v31 = vmul.f32 %v13016_v41, %v13016_v41  ;;  %v13039_v19 = vpack.c.bf16 %v12982_v28, %v12976_v1 }
 0x579   : > { %v5128_v4 = vadd.f32 %v5064_v47, %v13000_v52  ;;  %v13029_v33 = vadd.f32 %v4789_v14, %v4741_v23  ;;  %v13031_v57 = vpack.c.bf16 %v5437_v8, %v5433_v63  ;;  %6247 = vmatpush.bf16.msrb.mxu3 %v9110_v48  ;;  %v5215_v13 = vmul.f32 0.7978846, %v5151_v10 }
 0x57a   : > { %v5189_v25 = vmul.f32 0.7978846, %v5125_v27  ;;  %v4937_v56 = vmul.f32 %v13026_v49, %v13026_v49  ;;  %v8982_v7 = vor.u32 %v9673_v39, %v8979_v54  ;;  %v5376_v16 = vmul.f32 0.5, %v5312_v0 }
 0x57b   : > { %v10128_v29 = vpop.eup %10127  ;;  %v5192_v44 = vmul.f32 0.7978846, %v5128_v4  ;;  %v4940_v8 = vmul.f32 %v13029_v33, %v13029_v33  ;;  %6062 = vmatmul.bf16.gmra.mxu3 %v13031_v57  ;;  %v5159_v1 = vadd.f32 %v5095_v21, %v12833_v58  ;;  %v5403_v10 = vmul.f32 0.5, %v13010_v24 }
 0x57c   : > { %v10130_v2 = vpop.eup %10129  ;;  %v5001_v43 = vmul.f32 %v4937_v56, %v13026_v49  ;;  %v5316_v14 = vadd.f32 1.0, %v10128_v29  ;;  %10131 = vtanh.f32 %v5189_v25  ;;  %6149 = vmatpush.bf16.msrb.mxu1 %v8982_v7  ;;  %v5035_v23 = vmul.f32 %v4971_v31, %v13016_v41 }
 0x57d   : > { %v5004_v28 = vmul.f32 %v4940_v8, %v13029_v33  ;;  %v4838_v53 = vpop.f32.mrf.mxu2  ;;  %v4887_v47 = vpop.f32.mrf.mxu3  ;;  %10133 = vtanh.f32 %v5219_v62  ;;  %v5313_v25 = vadd.f32 1.0, %v10130_v2  ;;  %v5440_v24 = vmul.f32 %v5376_v16, %v12946_v6 }
 0x57e   : > { %v5065_v63 = vmul.f32 0.044715, %v5001_v43  ;;  %v4839_v36 = vadd.f32 %v4838_v53, %v14217_v15  ;;  %v4743_v27 = vpop.f32.mrf.mxu0  ;;  %v4792_v48 = vpop.f32.mrf.mxu1  ;;  %v5380_v4 = vmul.f32 0.5, %v5316_v14  ;;  %10135 = vtanh.f32 %v5192_v44 }
 0x57f   : > { %v5068_v0 = vmul.f32 0.044715, %v5004_v28  ;;  %v4744_v21 = vadd.f32 %v4743_v27, %v14216_v55  ;;  %v5399_v29 = vmul.f32 0.5, %v13004_v50  ;;  %v5223_v8 = vmul.f32 0.7978846, %v5159_v1 }
 0x580   : > { %v5129_v56 = vadd.f32 %v5065_v63, %v13026_v49  ;;  %v13052_v39 = vadd.f32 %v4887_v47, %v4839_v36  ;;  %v5444_v62 = vmul.f32 %v5380_v4, %v12971_v9  ;;  %v5377_v28 = vmul.f32 0.5, %v5313_v25  ;;  %v9687_v1 = vld [vmem:[#allocation8 + $0x144] sm:$0xf]  ;;  %v9035_v63 = vld [vmem:[#allocation8 + $0x148] sm:$0xf0] }
 0x581   : > { %v5132_v31 = vadd.f32 %v5068_v0, %v13029_v33  ;;  %v13057_v54 = vadd.f32 %v4792_v48, %v4744_v21  ;;  %5930 = vmatmul.bf16.gmra.mxu0 %v12797_v26  ;;  %5979 = vmatmul.bf16.gmra.mxu1 %v13039_v19  ;;  %10137 = vtanh.f32 %v5215_v13  ;;  %v5099_v53 = vmul.f32 0.044715, %v5035_v23  ;;  %v8907_v25 = vld [vmem:[#allocation8 + $0x48] sm:$0xf0] }
 0x582   : > { %v10132_v44 = vpop.eup %10131  ;;  %v5193_v7 = vmul.f32 0.7978846, %v5129_v56  ;;  %v4941_v2 = vmul.f32 %v13052_v39, %v13052_v39  ;;  %v13064_v43 = vpack.c.bf16 %v5444_v62, %v5440_v24  ;;  %v5467_v50 = vmul.f32 %v5403_v10, %v12872_v11  ;;  %v9655_v56 = vld [vmem:[#allocation8 + $0x44] sm:$0xf] }
 0x583   : > { %v10134_v6 = vpop.eup %10133  ;;  %v5196_v9 = vmul.f32 0.7978846, %v5132_v31  ;;  %v4944_v14 = vmul.f32 %v13057_v54, %v13057_v54  ;;  %v5317_v16 = vadd.f32 1.0, %v10132_v44  ;;  %v9038_v21 = vor.u32 %v9687_v1, %v9035_v63  ;;  %v9703_v11 = vld [vmem:[#allocation8 + $0x1c4] sm:$0xf] }
 0x584   : > { %v5005_v47 = vmul.f32 %v4941_v2, %v13052_v39  ;;  %6018 = vmatmul.bf16.gmra.mxu2 %v13064_v43  ;;  %v10136_v36 = vpop.eup %10135  ;;  %v8910_v31 = vor.u32 %v9655_v56, %v8907_v25  ;;  %v5441_v2 = vmul.f32 %v5377_v28, %v12966_v42  ;;  %v5347_v56 = vadd.f32 1.0, %v10134_v6 }
 0x585   : > { %v5008_v27 = vmul.f32 %v4944_v14, %v13057_v54  ;;  %v4841_v48 = vpop.f32.mrf.mxu2  ;;  %v4890_v4 = vpop.f32.mrf.mxu3  ;;  %v5381_v0 = vmul.f32 0.5, %v5317_v16  ;;  %10139 = vtanh.f32 %v5196_v9  ;;  %6199 = vmatpush.bf16.msrb.mxu2 %v9038_v21  ;;  %v9099_v9 = vld [vmem:[#allocation8 + $0x1c8] sm:$0xf0]  ;;  %v5163_v42 = vadd.f32 %v5099_v53, %v13016_v41 }
 0x586   : > { %10141 = vtanh.f32 %v5193_v7  ;;  %v5069_v13 = vmul.f32 0.044715, %v5005_v47  ;;  %v4842_v23 = vadd.f32 %v4841_v48, %v14217_v15  ;;  %v4745_v24 = vpop.f32.mrf.mxu0  ;;  %v4794_v62 = vpop.f32.mrf.mxu1  ;;  %v5320_v7 = vadd.f32 1.0, %v10136_v36  ;;  %6101 = vmatpush.bf16.msrb.mxu0 %v8910_v31  ;;  %v9671_v36 = vld [vmem:[#allocation8 + $0xc4] sm:$0xf] }
 0x587   : > { %v5072_v10 = vmul.f32 0.044715, %v5008_v27  ;;  %v4746_v44 = vadd.f32 %v4745_v24, %v14216_v55  ;;  %v5445_v14 = vmul.f32 %v5381_v0, %v12994_v60  ;;  %v9102_v47 = vor.u32 %v9703_v11, %v9099_v9  ;;  %v10138_v25 = vpop.eup %10137  ;;  %v8971_v0 = vld [vmem:[#allocation8 + $0xc8] sm:$0xf0] }
 0x588   : > { %v5133_v16 = vadd.f32 %v5069_v13, %v13052_v39  ;;  %v13077_v1 = vadd.f32 %v4890_v4, %v4842_v23  ;;  %v5463_v4 = vmul.f32 %v5399_v29, %v12769_v34  ;;  %10143 = vtanh.f32 %v5223_v8 }
 0x589   : > { %v5136_v63 = vadd.f32 %v5072_v10, %v13057_v54  ;;  %v13080_v48 = vadd.f32 %v4794_v62, %v4746_v44  ;;  %v13082_v27 = vpack.c.bf16 %v5445_v14, %v5441_v2  ;;  %6248 = vmatpush.bf16.msrb.mxu3 %v9102_v47  ;;  %v8974_v6 = vor.u32 %v9671_v36, %v8971_v0 }
 0x58a   : > { %v5197_v60 = vmul.f32 0.7978846, %v5133_v16  ;;  %v4945_v28 = vmul.f32 %v13077_v1, %v13077_v1  ;;  %v5384_v31 = vmul.f32 0.5, %v5320_v7  ;;  %v13093_v10 = vpack.c.bf16 %v5467_v50, %v5463_v4 }
 0x58b   : > { %v10140_v21 = vpop.eup %10139  ;;  %v5200_v13 = vmul.f32 0.7978846, %v5136_v63  ;;  %v4948_v23 = vmul.f32 %v13080_v48, %v13080_v48  ;;  %6067 = vmatmul.bf16.gmra.mxu3 %v13082_v27  ;;  %6150 = vmatpush.bf16.msrb.mxu1 %v8974_v6  ;;  %v5343_v8 = vadd.f32 1.0, %v10138_v25  ;;  %v5227_v44 = vmul.f32 0.7978846, %v5163_v42 }
 0x58c   : > { %v10142_v24 = vpop.eup %10141  ;;  %v5009_v53 = vmul.f32 %v4945_v28, %v13077_v1  ;;  %v5324_v62 = vadd.f32 1.0, %v10140_v21  ;;  %10145 = vtanh.f32 %v5197_v60  ;;  %v5411_v28 = vmul.f32 0.5, %v5347_v56 }
 0x58d   : > { %10147 = vtanh.f32 %v5200_v13  ;;  %v5012_v34 = vmul.f32 %v4948_v23, %v13080_v48  ;;  %v4843_v29 = vpop.f32.mrf.mxu2  ;;  %v4892_v11 = vpop.f32.mrf.mxu3  ;;  %v5321_v60 = vadd.f32 1.0, %v10142_v24  ;;  %v5448_v50 = vmul.f32 %v5384_v31, %v13000_v52 }
 0x58e   : > { %v5073_v2 = vmul.f32 0.044715, %v5009_v53  ;;  %v4844_v14 = vadd.f32 %v4843_v29, %v14217_v15  ;;  %v4748_v9 = vpop.f32.mrf.mxu0  ;;  %v4797_v16 = vpop.f32.mrf.mxu1  ;;  %v5388_v47 = vmul.f32 0.5, %v5324_v62  ;;  %v5407_v13 = vmul.f32 0.5, %v5343_v8  ;;  %v9685_v8 = vld [vmem:[#allocation8 + $0x134] sm:$0xf] }
 0x58f   : > { %v5076_v63 = vmul.f32 0.044715, %v5012_v34  ;;  %v4749_v7 = vadd.f32 %v4748_v9, %v14216_v55  ;;  %v10144_v42 = vpop.eup %10143  ;;  %10149 = vtanh.f32 %v5227_v44  ;;  %v5385_v31 = vmul.f32 0.5, %v5321_v60 }
 0x590   : > { %v5137_v36 = vadd.f32 %v5073_v2, %v13077_v1  ;;  %v13098_v0 = vadd.f32 %v4892_v11, %v4844_v14  ;;  %v5452_v25 = vmul.f32 %v5388_v47, %v13029_v33  ;;  %v5475_v29 = vmul.f32 %v5411_v28, %v12926_v45  ;;  %v9027_v2 = vld [vmem:[#allocation8 + $0x138] sm:$0xf0] }
 0x591   : > { %v5140_v4 = vadd.f32 %v5076_v63, %v13080_v48  ;;  %v13103_v21 = vadd.f32 %v4797_v16, %v4749_v7  ;;  %5935 = vmatmul.bf16.gmra.mxu0 %v12824_v35  ;;  %5984 = vmatmul.bf16.gmra.mxu1 %v13093_v10  ;;  %v9030_v47 = vor.u32 %v9685_v8, %v9027_v2  ;;  %v9653_v63 = vld [vmem:[#allocation8 + $0x34] sm:$0xf]  ;;  %v8899_v7 = vld [vmem:[#allocation8 + $0x38] sm:$0xf0]  ;;  %v5351_v45 = vadd.f32 1.0, %v10144_v42 }
 0x592   : > { %v10146_v23 = vpop.eup %10145  ;;  %v5201_v56 = vmul.f32 0.7978846, %v5137_v36  ;;  %v4949_v6 = vmul.f32 %v13098_v0, %v13098_v0  ;;  %v13109_v24 = vpack.c.bf16 %v5452_v25, %v5448_v50 }
 0x593   : > { %v10148_v52 = vpop.eup %10147  ;;  %v5204_v33 = vmul.f32 0.7978846, %v5140_v4  ;;  %v4952_v53 = vmul.f32 %v13103_v21, %v13103_v21  ;;  %v5325_v62 = vadd.f32 1.0, %v10146_v23  ;;  %v8902_v4 = vor.u32 %v9653_v63, %v8899_v7  ;;  %v9701_v23 = vld [vmem:[#allocation8 + $0x1b4] sm:$0xf]  ;;  %6200 = vmatpush.bf16.msrb.mxu2 %v9030_v47 }
 0x594   : > { %10151 = vtanh.f32 %v5201_v56  ;;  %v5013_v34 = vmul.f32 %v4949_v6, %v13098_v0  ;;  %6023 = vmatmul.bf16.gmra.mxu2 %v13109_v24  ;;  %v5328_v11 = vadd.f32 1.0, %v10148_v52  ;;  %v5449_v6 = vmul.f32 %v5385_v31, %v13026_v49  ;;  %v8963_v63 = vld [vmem:[#allocation8 + $0xb8] sm:$0xf0] }
 0x595   : > { %v5016_v14 = vmul.f32 %v4952_v53, %v13103_v21  ;;  %v4846_v44 = vpop.f32.mrf.mxu2  ;;  %v4895_v9 = vpop.f32.mrf.mxu3  ;;  %v5389_v16 = vmul.f32 0.5, %v5325_v62  ;;  %10153 = vtanh.f32 %v5204_v33  ;;  %v9091_v33 = vld [vmem:[#allocation8 + $0x1b8] sm:$0xf0]  ;;  %v9669_v53 = vld [vmem:[#allocation8 + $0xb4] sm:$0xf]  ;;  %6102 = vmatpush.bf16.msrb.mxu0 %v8902_v4  ;;  %v5471_v47 = vmul.f32 %v5407_v13, %v12802_v18 }
 0x596   : > { %v5077_v60 = vmul.f32 0.044715, %v5013_v34  ;;  %v4847_v36 = vadd.f32 %v4846_v44, %v14217_v15  ;;  %v4750_v50 = vpop.f32.mrf.mxu0  ;;  %v4799_v25 = vpop.f32.mrf.mxu1  ;;  %v5392_v2 = vmul.f32 0.5, %v5328_v11  ;;  %v9094_v44 = vor.u32 %v9701_v23, %v9091_v33  ;;  %v8891_v11 = vld [vmem:[#allocation8 + $0x28] sm:$0xf0] }
 0x597   : > { %v5080_v28 = vmul.f32 0.044715, %v5016_v14  ;;  %v4751_v56 = vadd.f32 %v4750_v50, %v14216_v55  ;;  %v5453_v52 = vmul.f32 %v5389_v16, %v13052_v39  ;;  %v10150_v62 = vpop.eup %10149  ;;  %v8966_v49 = vor.u32 %v9669_v53, %v8963_v63  ;;  %v9667_v23 = vld [vmem:[#allocation8 + $0xa4] sm:$0xf]  ;;  %v8955_v18 = vld [vmem:[#allocation8 + $0xa8] sm:$0xf0] }
 0x598   : > { %v5141_v34 = vadd.f32 %v5077_v60, %v13098_v0  ;;  %v13122_v8 = vadd.f32 %v4895_v9, %v4847_v36  ;;  %6249 = vmatpush.bf16.msrb.mxu3 %v9094_v44  ;;  %v9651_v9 = vld [vmem:[#allocation8 + $0x24] sm:$0xf]  ;;  %v5355_v53 = vadd.f32 1.0, %v10150_v62  ;;  %v8958_v44 = vor.u32 %v9667_v23, %v8955_v18  ;;  %v8883_v62 = vld [vmem:[#allocation8 + $0x18] sm:$0xf0] }
 0x599   : > { %v5144_v42 = vadd.f32 %v5080_v28, %v13103_v21  ;;  %v13125_v14 = vadd.f32 %v4799_v25, %v4751_v56  ;;  %v13127_v7 = vpack.c.bf16 %v5453_v52, %v5449_v6  ;;  %6151 = vmatpush.bf16.msrb.mxu1 %v8966_v49  ;;  %v8894_v4 = vor.u32 %v9651_v9, %v8891_v11 }
 0x59a   : > { %v10152_v39 = vpop.eup %10151  ;;  %v5205_v31 = vmul.f32 0.7978846, %v5141_v34  ;;  %v4953_v16 = vmul.f32 %v13122_v8, %v13122_v8  ;;  %v13136_v56 = vpack.c.bf16 %v5475_v29, %v5471_v47  ;;  %v13139_v34 = vmul.f32 0.5, %v5351_v45  ;;  %v9649_v47 = vld [vmem:[#allocation8 + $0x14] sm:$0xf] }
 0x59b   : > { %v10154_v60 = vpop.eup %10153  ;;  %v5208_v36 = vmul.f32 0.7978846, %v5144_v42  ;;  %v4956_v50 = vmul.f32 %v13125_v14, %v13125_v14  ;;  %6072 = vmatmul.bf16.gmra.mxu3 %v13127_v7  ;;  %v5329_v25 = vadd.f32 1.0, %v10152_v39  ;;  %6103 = vmatpush.bf16.msrb.mxu0 %v8894_v4  ;;  %v5456_v11 = vmul.f32 %v5392_v2, %v13057_v54  ;;  %v9665_v45 = vld [vmem:[#allocation8 + $0x94] sm:$0xf] }
 0x59c   : > { %v5017_v28 = vmul.f32 %v4953_v16, %v13122_v8  ;;  %v5332_v6 = vadd.f32 1.0, %v10154_v60  ;;  %10155 = vtanh.f32 %v5205_v31  ;;  %v8886_v23 = vor.u32 %v9649_v47, %v8883_v62  ;;  %v9019_v47 = vld [vmem:[#allocation8 + $0x128] sm:$0xf0] }
 0x59d   : > { %v5020_v13 = vmul.f32 %v4956_v50, %v13125_v14  ;;  %v4848_v52 = vpop.f32.mrf.mxu2  ;;  %v4897_v33 = vpop.f32.mrf.mxu3  ;;  %v5393_v29 = vmul.f32 0.5, %v5329_v25  ;;  %10157 = vtanh.f32 %v5208_v36  ;;  %6152 = vmatpush.bf16.msrb.mxu1 %v8958_v44  ;;  %v5419_v54 = vmul.f32 0.5, %v5355_v53 }
 0x59e   : > { %v5081_v63 = vmul.f32 0.044715, %v5017_v28  ;;  %v4849_v42 = vadd.f32 %v4848_v52, %v14217_v15  ;;  %v4753_v49 = vpop.f32.mrf.mxu0  ;;  %v4802_v39 = vpop.f32.mrf.mxu1  ;;  %v5396_v16 = vmul.f32 0.5, %v5332_v6  ;;  %v8947_v28 = vld [vmem:[#allocation8 + $0x98] sm:$0xf0] }
 0x59f   : > { %v5084_v31 = vmul.f32 0.044715, %v5020_v13  ;;  %v4754_v9 = vadd.f32 %v4753_v49, %v14216_v55  ;;  %v8950_v2 = vor.u32 %v9665_v45, %v8947_v28  ;;  %6104 = vmatpush.bf16.msrb.mxu0 %v8886_v23  ;;  %v9699_v23 = vld [vmem:[#allocation8 + $0x1a4] sm:$0xf]  ;;  %v9083_v28 = vld [vmem:[#allocation8 + $0x1a8] sm:$0xf0] }
 0x5a0   : > { %v5145_v60 = vadd.f32 %v5081_v63, %v13122_v8  ;;  %v13145_v50 = vadd.f32 %v4897_v33, %v4849_v42  ;;  %v5460_v4 = vmul.f32 %v5396_v16, %v13080_v48  ;;  %v9647_v48 = vld [vmem:[#allocation8 + $0x4] sm:$0xf]  ;;  %v8875_v33 = vld [vmem:[#allocation8 + $0x8] sm:$0xf0] }
 0x5a1   : > { %v5148_v25 = vadd.f32 %v5084_v31, %v13125_v14  ;;  %v13149_v6 = vadd.f32 %v4802_v39, %v4754_v9  ;;  %5940 = vmatmul.bf16.gmra.mxu0 %v12862_v40  ;;  %5989 = vmatmul.bf16.gmra.mxu1 %v13136_v56  ;;  %v8878_v49 = vor.u32 %v9647_v48, %v8875_v33  ;;  %v9683_v16 = vld [vmem:[#allocation8 + $0x124] sm:$0xf] }
 0x5a2   : > { %v10156_v36 = vpop.eup %10155  ;;  %v5209_v18 = vmul.f32 0.7978846, %v5145_v60  ;;  %v4957_v13 = vmul.f32 %v13145_v50, %v13145_v50  ;;  %v13155_v52 = vpack.c.bf16 %v5460_v4, %v5456_v11  ;;  %6153 = vmatpush.bf16.msrb.mxu1 %v8950_v2  ;;  %v5457_v39 = vmul.f32 %v5393_v29, %v13077_v1  ;;  %v9663_v31 = vld [vmem:[#allocation8 + $0x84] sm:$0xf]  ;;  %v8939_v29 = vld [vmem:[#allocation8 + $0x88] sm:$0xf0] }
 0x5a3   : > { %v5212_v44 = vmul.f32 0.7978846, %v5148_v25  ;;  %v4960_v63 = vmul.f32 %v13149_v6, %v13149_v6  ;;  %v5333_v42 = vadd.f32 1.0, %v10156_v36  ;;  %v10158_v9 = vpop.eup %10157  ;;  %v9022_v4 = vor.u32 %v9683_v16, %v9019_v47  ;;  %6105 = vmatpush.bf16.msrb.mxu0 %v8878_v49 }
 0x5a4   : > { %v5021_v53 = vmul.f32 %v4957_v13, %v13145_v50  ;;  %6028 = vmatmul.bf16.gmra.mxu2 %v13155_v52  ;;  %v9086_v1 = vor.u32 %v9699_v23, %v9083_v28  ;;  %v9697_v28 = vld [vmem:[#allocation8 + $0x194] sm:$0xf] }
 0x5a5   : > { %v5024_v11 = vmul.f32 %v4960_v63, %v13149_v6  ;;  %v4851_v62 = vpop.f32.mrf.mxu2  ;;  %v4900_v45 = vpop.f32.mrf.mxu3  ;;  %v5397_v60 = vmul.f32 0.5, %v5333_v42  ;;  %10159 = vtanh.f32 %v5212_v44  ;;  %6201 = vmatpush.bf16.msrb.mxu2 %v9022_v4  ;;  %v8942_v42 = vor.u32 %v9663_v31, %v8939_v29  ;;  %v9681_v31 = vld [vmem:[#allocation8 + $0x114] sm:$0xf] }
 0x5a6   : > { %10161 = vtanh.f32 %v5209_v18  ;;  %v5085_v25 = vmul.f32 0.044715, %v5021_v53  ;;  %v4852_v2 = vadd.f32 %v4851_v62, %v14217_v15  ;;  %v4755_v36 = vpop.f32.mrf.mxu0  ;;  %v4804_v13 = vpop.f32.mrf.mxu1  ;;  %v5336_v18 = vadd.f32 1.0, %v10158_v9  ;;  %6250 = vmatpush.bf16.msrb.mxu3 %v9086_v1 }
 0x5a7   : > { %v5088_v48 = vmul.f32 0.044715, %v5024_v11  ;;  %v4756_v33 = vadd.f32 %v4755_v36, %v14216_v55  ;;  %v5461_v63 = vmul.f32 %v5397_v60, %v13098_v0  ;;  %6154 = vmatpush.bf16.msrb.mxu1 %v8942_v42  ;;  %v5483_v0 = vmul.f32 %v5419_v54, %v13016_v41  ;;  %v9011_v60 = vld [vmem:[#allocation8 + $0x118] sm:$0xf0] }
 0x5a8   : > { %v5149_v44 = vadd.f32 %v5085_v25, %v13145_v50  ;;  %v13167_v16 = vadd.f32 %v4900_v45, %v4852_v2  ;;  %v9014_v23 = vor.u32 %v9681_v31, %v9011_v60  ;;  %v9075_v41 = vld [vmem:[#allocation8 + $0x198] sm:$0xf0] }
 0x5a9   : > { %v5152_v53 = vadd.f32 %v5088_v48, %v13149_v6  ;;  %v13170_v47 = vadd.f32 %v4804_v13, %v4756_v33  ;;  %v13172_v62 = vpack.c.bf16 %v5461_v63, %v5457_v39  ;;  %v5479_v39 = vmul.f32 %v13139_v34, %v12833_v58 }
 0x5aa   : > { %v5213_v49 = vmul.f32 0.7978846, %v5149_v44  ;;  %v4961_v11 = vmul.f32 %v13167_v16, %v13167_v16  ;;  %v5400_v13 = vmul.f32 0.5, %v5336_v18  ;;  %6202 = vmatpush.bf16.msrb.mxu2 %v9014_v23  ;;  %v9078_v48 = vor.u32 %v9697_v28, %v9075_v41 }
 0x5ab   : > { %v10160_v4 = vpop.eup %10159  ;;  %v5216_v45 = vmul.f32 0.7978846, %v5152_v53  ;;  %v4964_v9 = vmul.f32 %v13170_v47, %v13170_v47  ;;  %6077 = vmatmul.bf16.gmra.mxu3 %v13172_v62  ;;  %v13185_v34 = vpack.c.bf16 %v5483_v0, %v5479_v39 }
 0x5ac   : > { %v10162_v25 = vpop.eup %10161  ;;  %v5025_v2 = vmul.f32 %v4961_v11, %v13167_v16  ;;  %v5340_v36 = vadd.f32 1.0, %v10160_v4  ;;  %10163 = vtanh.f32 %v5213_v49  ;;  %6251 = vmatpush.bf16.msrb.mxu3 %v9078_v48  ;;  %v5464_v60 = vmul.f32 %v5400_v13, %v13103_v21 }
 0x5ad   : > { %v5028_v54 = vmul.f32 %v4964_v9, %v13170_v47  ;;  %v4853_v1 = vpop.f32.mrf.mxu2  ;;  %v4902_v29 = vpop.f32.mrf.mxu3  ;;  %10165 = vtanh.f32 %v5216_v45  ;;  %v5337_v49 = vadd.f32 1.0, %v10162_v25 }
 0x5ae   : > { %v5089_v33 = vmul.f32 0.044715, %v5025_v2  ;;  %v4854_v63 = vadd.f32 %v4853_v1, %v14217_v15  ;;  %v4758_v42 = vpop.f32.mrf.mxu0  ;;  %v4807_v58 = vpop.f32.mrf.mxu1  ;;  %v5404_v44 = vmul.f32 0.5, %v5340_v36 }
 0x5af   : > { %v5092_v53 = vmul.f32 0.044715, %v5028_v54  ;;  %v4759_v18 = vadd.f32 %v4758_v42, %v14216_v55  ;;  %v5401_v2 = vmul.f32 0.5, %v5337_v49 }
 0x5b0   : > { %v5153_v11 = vadd.f32 %v5089_v33, %v13167_v16  ;;  %v13189_v31 = vadd.f32 %v4902_v29, %v4854_v63  ;;  %v5468_v4 = vmul.f32 %v5404_v44, %v13125_v14 }
 0x5b1   : > { %v5156_v9 = vadd.f32 %v5092_v53, %v13170_v47  ;;  %v13194_v23 = vadd.f32 %v4807_v58, %v4759_v18  ;;  %5945 = vmatmul.bf16.gmra.mxu0 %v12907_v22  ;;  %5994 = vmatmul.bf16.gmra.mxu1 %v13185_v34  ;;  %v5465_v53 = vmul.f32 %v5401_v2, %v13122_v8  ;;  %v9695_v2 = vld [vmem:[#allocation8 + $0x184] sm:$0xf] }
 0x5b2   : > { %v10164_v0 = vpop.eup %10163  ;;  %v5217_v45 = vmul.f32 0.7978846, %v5153_v11  ;;  %v4965_v39 = vmul.f32 %v13189_v31, %v13189_v31  ;;  %v13200_v28 = vpack.c.bf16 %v5468_v4, %v5464_v60 }
 0x5b3   : > { %v5220_v25 = vmul.f32 0.7978846, %v5156_v9  ;;  %v4968_v21 = vmul.f32 %v13194_v23, %v13194_v23  ;;  %v5341_v14 = vadd.f32 1.0, %v10164_v0  ;;  %v10166_v13 = vpop.eup %10165 }
 0x5b4   : > { %v5029_v36 = vmul.f32 %v4965_v39, %v13189_v31  ;;  %6033 = vmatmul.bf16.gmra.mxu2 %v13200_v28  ;;  %v5344_v60 = vadd.f32 1.0, %v10166_v13  ;;  %v9003_v39 = vld [vmem:[#allocation8 + $0x108] sm:$0xf0] }
 0x5b5   : > { %v5032_v41 = vmul.f32 %v4968_v21, %v13194_v23  ;;  %v4856_v54 = vpop.f32.mrf.mxu2  ;;  %v4905_v1 = vpop.f32.mrf.mxu3  ;;  %v5405_v29 = vmul.f32 0.5, %v5341_v14  ;;  %10167 = vtanh.f32 %v5220_v25 }
 0x5b6   : > { %10169 = vtanh.f32 %v5217_v45  ;;  %v5093_v48 = vmul.f32 0.044715, %v5029_v36  ;;  %v4857_v33 = vadd.f32 %v4856_v54, %v14217_v15  ;;  %v4760_v63 = vpop.f32.mrf.mxu0  ;;  %v4809_v42 = vpop.f32.mrf.mxu1  ;;  %v9679_v45 = vld [vmem:[#allocation8 + $0x104] sm:$0xf]  ;;  %v5408_v54 = vmul.f32 0.5, %v5344_v60 }
 0x5b7   : > { %v5096_v58 = vmul.f32 0.044715, %v5032_v41  ;;  %v4761_v44 = vadd.f32 %v4760_v63, %v14216_v55  ;;  %v5469_v18 = vmul.f32 %v5405_v29, %v13145_v50  ;;  %v9006_v8 = vor.u32 %v9679_v45, %v9003_v39 }
 0x5b8   : > { %v5157_v49 = vadd.f32 %v5093_v48, %v13189_v31  ;;  %v13212_v11 = vadd.f32 %v4905_v1, %v4857_v33  ;;  %v9067_v1 = vld [vmem:[#allocation8 + $0x188] sm:$0xf0] }
 0x5b9   : > { %v5160_v4 = vadd.f32 %v5096_v58, %v13194_v23  ;;  %v13215_v9 = vadd.f32 %v4809_v42, %v4761_v44  ;;  %v13217_v0 = vpack.c.bf16 %v5469_v18, %v5465_v53  ;;  %6203 = vmatpush.bf16.msrb.mxu2 %v9006_v8  ;;  %v9070_v33 = vor.u32 %v9695_v2, %v9067_v1 }
 0x5ba   : > { %v5221_v25 = vmul.f32 0.7978846, %v5157_v49  ;;  %v4969_v55 = vmul.f32 %v13212_v11, %v13212_v11 }
 0x5bb   : > { %v10168_v21 = vpop.eup %10167  ;;  %v5224_v50 = vmul.f32 0.7978846, %v5160_v4  ;;  %v4972_v14 = vmul.f32 %v13215_v9, %v13215_v9  ;;  %6082 = vmatmul.bf16.gmra.mxu3 %v13217_v0  ;;  %v14218_v4 = vld [vmem:[#allocation24_spill] sm:$0xff] }
 0x5bc   : > { %v10170_v36 = vpop.eup %10169  ;;  %v5033_v13 = vmul.f32 %v4969_v55, %v13212_v11  ;;  %v5348_v41 = vadd.f32 1.0, %v10168_v21  ;;  %10171 = vtanh.f32 %v5221_v25  ;;  %6252 = vmatpush.bf16.msrb.mxu3 %v9070_v33  ;;  %v5472_v55 = vmul.f32 %v5408_v54, %v13149_v6 }
 0x5bd   : > { %v5036_v29 = vmul.f32 %v4972_v14, %v13215_v9  ;;  %v4858_v48 = vpop.f32.mrf.mxu2  ;;  %10173 = vtanh.f32 %v5224_v50  ;;  %v4907_v49 = vpop.f32.mrf.mxu3  ;;  %v5345_v39 = vadd.f32 1.0, %v10170_v36 }
 0x5be   : > { %v5097_v63 = vmul.f32 0.044715, %v5033_v13  ;;  %v4859_v42 = vadd.f32 %v4858_v48, %v14217_v15  ;;  %v5911_v58 = vpop.f32.mrf.mxu0  ;;  %v5960_v44 = vpop.f32.mrf.mxu1  ;;  %v5412_v53 = vmul.f32 0.5, %v5348_v41 }
 0x5bf   : > { %v5100_v18 = vmul.f32 0.044715, %v5036_v29  ;;  %v5912_v45 = vadd.f32 %v5911_v58, %v14218_v4  ;;  %v5409_v1 = vmul.f32 0.5, %v5345_v39 }
 0x5c0   : > { %v5161_v60 = vadd.f32 %v5097_v63, %v13212_v11  ;;  %v4908_v25 = vadd.f32 %v4907_v49, %v4859_v42  ;;  %v5476_v8 = vmul.f32 %v5412_v53, %v13170_v47 }
 0x5c1   : > { %v5164_v21 = vadd.f32 %v5100_v18, %v13215_v9  ;;  %v13232_v15 = vadd.f32 %v5960_v44, %v5912_v45  ;;  %6106 = vmatmul.bf16.vlgmr.msrb.gmra.mxu0 %v12643_v51  ;;  %6155 = vmatmul.bf16.vlgmr.msrb.gmra.mxu1 %v12660_v3  ;;  %v5473_v33 = vmul.f32 %v5409_v1, %v13167_v16 }
 0x5c2   : > { %v10172_v50 = vpop.eup %10171  ;;  %v5225_v14 = vmul.f32 0.7978846, %v5161_v60  ;;  %v4973_v2 = vmul.f32 %v4908_v25, %v4908_v25  ;;  %v13236_v36 = vpack.c.bf16 %v5476_v8, %v5472_v55 }
 0x5c3   : > { %v5228_v13 = vmul.f32 0.7978846, %v5164_v21  ;;  %v5349_v41 = vadd.f32 1.0, %v10172_v50  ;;  %v10174_v6 = vpop.eup %10173 }
 0x5c4   : > { %v5037_v29 = vmul.f32 %v4973_v2, %v4908_v25  ;;  %6038 = vmatmul.bf16.gmra.mxu2 %v13236_v36  ;;  %v5352_v58 = vadd.f32 1.0, %v10174_v6 }
 0x5c5   : > { %v5413_v47 = vmul.f32 0.5, %v5349_v41  ;;  %10175 = vtanh.f32 %v5228_v13 }
 0x5c6   : > { %10177 = vtanh.f32 %v5225_v14  ;;  %v5101_v54 = vmul.f32 0.044715, %v5037_v29  ;;  %v5913_v48 = vpop.f32.mrf.mxu0  ;;  %v5962_v51 = vpop.f32.mrf.mxu1  ;;  %v5416_v60 = vmul.f32 0.5, %v5352_v58 }
 0x5c7   : > { %v5914_v3 = vadd.f32 %v5913_v48, %v14218_v4  ;;  %v5477_v63 = vmul.f32 %v5413_v47, %v13189_v31 }
 0x5c8   : > { %v5165_v42 = vadd.f32 %v5101_v54, %v4908_v25  ;;  %v5480_v31 = vmul.f32 %v5416_v60, %v13194_v23 }
 0x5c9   : > { %v5963_v44 = vadd.f32 %v5962_v51, %v5914_v3  ;;  %v13242_v53 = vpack.c.bf16 %v5477_v63, %v5473_v33 }
 0x5ca   : > { %v5229_v18 = vmul.f32 0.7978846, %v5165_v42 }
 0x5cb   : > { %v10176_v49 = vpop.eup %10175  ;;  %6087 = vmatmul.bf16.gmra.mxu3 %v13242_v53 }
 0x5cc   : > { %v10178_v45 = vpop.eup %10177  ;;  %v5356_v39 = vadd.f32 1.0, %v10176_v49  ;;  %10179 = vtanh.f32 %v5229_v18 }
 0x5cd   : > { %v5353_v50 = vadd.f32 1.0, %v10178_v45 }
 0x5ce   : > { %v5916_v55 = vpop.f32.mrf.mxu0  ;;  %v5965_v8 = vpop.f32.mrf.mxu1  ;;  %v5420_v21 = vmul.f32 0.5, %v5356_v39 }
 0x5cf   : > { %v5917_v16 = vadd.f32 %v5916_v55, %v14218_v4  ;;  %v5417_v29 = vmul.f32 0.5, %v5353_v50 }
 0x5d0   : > { %v5484_v14 = vmul.f32 %v5420_v21, %v13215_v9 }
 0x5d1   : > { %v5966_v2 = vadd.f32 %v5965_v8, %v5917_v16  ;;  %6111 = vmatmul.bf16.gmra.mxu0 %v12687_v32  ;;  %6160 = vmatmul.bf16.gmra.mxu1 %v12707_v12  ;;  %v5481_v23 = vmul.f32 %v5417_v29, %v13212_v11 }
 0x5d2   : > { %v10180_v13 = vpop.eup %10179  ;;  %v13250_v41 = vpack.c.bf16 %v5484_v14, %v5480_v31 }
 0x5d3   : > { %v5357_v1 = vadd.f32 1.0, %v10180_v13 }
 0x5d4   : > { %6043 = vmatmul.bf16.gmra.mxu2 %v13250_v41 }
 0x5d5   : > { %v5421_v6 = vmul.f32 0.5, %v5357_v1 }
 0x5d6   : > { %v5918_v47 = vpop.f32.mrf.mxu0  ;;  %v5967_v54 = vpop.f32.mrf.mxu1 }
 0x5d7   : > { %v5919_v48 = vadd.f32 %v5918_v47, %v14218_v4  ;;  %v5485_v9 = vmul.f32 %v5421_v6, %v4908_v25 }
 0x5d9   : > { %v5968_v51 = vadd.f32 %v5967_v54, %v5919_v48  ;;  %v13255_v3 = vpack.c.bf16 %v5485_v9, %v5481_v23 }
 0x5db   : > { %6092 = vmatmul.bf16.gmra.mxu3 %v13255_v3 }
 0x5de   : > { %v5921_v32 = vpop.f32.mrf.mxu0  ;;  %v5970_v12 = vpop.f32.mrf.mxu1 }
 0x5df   : > { %v5922_v33 = vadd.f32 %v5921_v32, %v14218_v4 }
 0x5e1   : > { %v5971_v63 = vadd.f32 %v5970_v12, %v5922_v33  ;;  %6116 = vmatmul.bf16.gmra.mxu0 %v12727_v17  ;;  %6165 = vmatmul.bf16.gmra.mxu1 %v12745_v59 }
 0x5e4   : > { %6204 = vmatmul.bf16.vlgmr.msrb.gmra.mxu2 %v12950_v61 }
 0x5e6   : > { %v5923_v42 = vpop.f32.mrf.mxu0  ;;  %v5972_v58 = vpop.f32.mrf.mxu1 }
 0x5e7   : > { %v5924_v11 = vadd.f32 %v5923_v42, %v14218_v4  ;;  %v6009_v25 = vpop.f32.mrf.mxu2 }
 0x5e8   : > { %v6010_v18 = vadd.f32 %v6009_v25, %v13232_v15 }
 0x5e9   : > { %v5973_v49 = vadd.f32 %v5972_v58, %v5924_v11 }
 0x5eb   : > { %6253 = vmatmul.bf16.vlgmr.msrb.gmra.mxu3 %v12968_v37 }
 0x5ee   : > { %v6058_v45 = vpop.f32.mrf.mxu3  ;;  %v5926_v39 = vpop.f32.mrf.mxu0 }
 0x5ef   : > { %v13265_v60 = vadd.f32 %v6058_v45, %v6010_v18  ;;  %v5927_v17 = vadd.f32 %v5926_v39, %v14218_v4  ;;  %v5975_v55 = vpop.f32.mrf.mxu1  ;;  %v6011_v59 = vpop.f32.mrf.mxu2 }
 0x5f0   : > { %v6012_v8 = vadd.f32 %v6011_v59, %v5963_v44 }
 0x5f1   : > { %v5976_v61 = vadd.f32 %v5975_v55, %v5927_v17  ;;  %6121 = vmatmul.bf16.gmra.mxu0 %v12762_v38  ;;  %6170 = vmatmul.bf16.gmra.mxu1 %v12778_v30 }
 0x5f4   : > { %6209 = vmatmul.bf16.gmra.mxu2 %v13008_v20 }
 0x5f6   : > { %v6060_v15 = vpop.f32.mrf.mxu3  ;;  %v5928_v21 = vpop.f32.mrf.mxu0 }
 0x5f7   : > { %v13271_v16 = vadd.f32 %v6060_v15, %v6012_v8  ;;  %v5929_v37 = vadd.f32 %v5928_v21, %v14218_v4  ;;  %v5977_v50 = vpop.f32.mrf.mxu1  ;;  %v6014_v31 = vpop.f32.mrf.mxu2 }
 0x5f8   : > { %v6015_v14 = vadd.f32 %v6014_v31, %v5966_v2 }
 0x5f9   : > { %v5978_v13 = vadd.f32 %v5977_v50, %v5929_v37 }
 0x5fb   : > { %6258 = vmatmul.bf16.gmra.mxu3 %v13031_v57 }
 0x5fe   : > { %v6063_v44 = vpop.f32.mrf.mxu3  ;;  %v5931_v1 = vpop.f32.mrf.mxu0 }
 0x5ff   : > { %v13275_v29 = vadd.f32 %v6063_v44, %v6015_v14  ;;  %v5932_v38 = vadd.f32 %v5931_v1, %v14218_v4  ;;  %v5980_v30 = vpop.f32.mrf.mxu1  ;;  %v6016_v20 = vpop.f32.mrf.mxu2 }
 0x600   : > { %v6017_v6 = vadd.f32 %v6016_v20, %v5968_v51 }
 0x601   : > { %v5981_v47 = vadd.f32 %v5980_v30, %v5932_v38  ;;  %6126 = vmatmul.bf16.gmra.mxu0 %v12797_v26  ;;  %6175 = vmatmul.bf16.gmra.mxu1 %v13039_v19 }
 0x604   : > { %6214 = vmatmul.bf16.gmra.mxu2 %v13064_v43 }
 0x606   : > { %v6065_v2 = vpop.f32.mrf.mxu3  ;;  %v13281_v54 = vpop.f32.mrf.mxu0 }
 0x607   : > { %v13283_v57 = vadd.f32 %v6065_v2, %v6017_v6  ;;  %v13285_v48 = vpop.f32.mrf.mxu1  ;;  %v6019_v23 = vpop.f32.mrf.mxu2 }
 0x608   : > { %v6020_v9 = vadd.f32 %v6019_v23, %v5971_v63 }
 0x60b   : > { %6263 = vmatmul.bf16.gmra.mxu3 %v13082_v27 }
 0x60e   : > { %v6068_v32 = vpop.f32.mrf.mxu3  ;;  %v5936_v51 = vpop.f32.mrf.mxu0 }
 0x60f   : > { %v13288_v12 = vadd.f32 %v6068_v32, %v6020_v9  ;;  %v5937_v26 = vadd.f32 %v5936_v51, %v14218_v4  ;;  %v5985_v19 = vpop.f32.mrf.mxu1  ;;  %v6021_v33 = vpop.f32.mrf.mxu2 }
 0x610   : > { %v6022_v43 = vadd.f32 %v6021_v33, %v5973_v49 }
 0x611   : > { %v5986_v42 = vadd.f32 %v5985_v19, %v5937_v26  ;;  %6131 = vmatmul.bf16.gmra.mxu0 %v12824_v35  ;;  %6180 = vmatmul.bf16.gmra.mxu1 %v13093_v10 }
 0x614   : > { %6219 = vmatmul.bf16.gmra.mxu2 %v13109_v24 }
 0x616   : > { %v6070_v58 = vpop.f32.mrf.mxu3  ;;  %v13294_v63 = vpop.f32.mrf.mxu0 }
 0x617   : > { %v13296_v27 = vadd.f32 %v6070_v58, %v6022_v43  ;;  %v13298_v11 = vpop.f32.mrf.mxu1  ;;  %v6024_v25 = vpop.f32.mrf.mxu2 }
 0x618   : > { %v6025_v18 = vadd.f32 %v6024_v25, %v5976_v61 }
 0x61b   : > { %6268 = vmatmul.bf16.gmra.mxu3 %v13127_v7 }
 0x61e   : > { %v6073_v45 = vpop.f32.mrf.mxu3  ;;  %v5941_v49 = vpop.f32.mrf.mxu0 }
 0x61f   : > { %v13301_v39 = vadd.f32 %v6073_v45, %v6025_v18  ;;  %v5942_v35 = vadd.f32 %v5941_v49, %v14218_v4  ;;  %v5990_v10 = vpop.f32.mrf.mxu1  ;;  %v6026_v17 = vpop.f32.mrf.mxu2 }
 0x620   : > { %v6027_v24 = vadd.f32 %v6026_v17, %v5978_v13 }
 0x621   : > { %v5991_v55 = vadd.f32 %v5990_v10, %v5942_v35  ;;  %6136 = vmatmul.bf16.gmra.mxu0 %v12862_v40  ;;  %6185 = vmatmul.bf16.gmra.mxu1 %v13136_v56 }
 0x624   : > { %6224 = vmatmul.bf16.gmra.mxu2 %v13155_v52 }
 0x626   : > { %v6075_v59 = vpop.f32.mrf.mxu3  ;;  %v13307_v8 = vpop.f32.mrf.mxu0 }
 0x627   : > { %v13309_v7 = vadd.f32 %v6075_v59, %v6027_v24  ;;  %v13311_v61 = vpop.f32.mrf.mxu1  ;;  %v6029_v15 = vpop.f32.mrf.mxu2  ;;  %v10246_v24 = vld [vmem:[%s10774_s13 + $0x100] sm:$0xff] }
 0x628   : > { %v6030_v21 = vadd.f32 %v6029_v15, %v5981_v47 }
 0x62b   : > { %6273 = vmatmul.bf16.gmra.mxu3 %v13172_v62 }
 0x62e   : > { %v6078_v37 = vpop.f32.mrf.mxu3  ;;  %v5946_v50 = vpop.f32.mrf.mxu0 }
 0x62f   : > { %v13314_v31 = vadd.f32 %v6078_v37, %v6030_v21  ;;  %v5947_v40 = vadd.f32 %v5946_v50, %v14218_v4  ;;  %v13317_v56 = vpop.f32.mrf.mxu2  ;;  %v5995_v52 = vpop.f32.mrf.mxu1  ;;  %v10247_v50 = vld [vmem:[%s10774_s13 + $0x108] sm:$0xff] }
 0x631   : > { %v5996_v14 = vadd.f32 %v5995_v52, %v5947_v40  ;;  %6141 = vmatmul.bf16.gmra.mxu0 %v12907_v22  ;;  %6190 = vmatmul.bf16.gmra.mxu1 %v13185_v34  ;;  %v9739_v52 = vld [vmem:[#allocation13 + $0xe4] sm:$0xf] }
 0x634   : > { %6229 = vmatmul.bf16.gmra.mxu2 %v13200_v28 }
 0x636   : > { %v13322_v13 = vpop.f32.mrf.mxu3  ;;  %v13325_v1 = vpop.f32.mrf.mxu0 }
 0x637   : > { %v6034_v44 = vpop.f32.mrf.mxu2  ;;  %v13331_v6 = vpop.f32.mrf.mxu1 }
 0x638   : > { %v6035_v62 = vadd.f32 %v6034_v44, %v5986_v42  ;;  %v9771_v44 = vld [vmem:[#allocation13 + $0x1e4] sm:$0xf] }
 0x63b   : > { %6278 = vmatmul.bf16.gmra.mxu3 %v13217_v0 }
 0x63e   : > { %v6083_v38 = vpop.f32.mrf.mxu3  ;;  %v6107_v22 = vpop.f32.mrf.mxu0 }
 0x63f   : > { %v13327_v30 = vadd.f32 %v6083_v38, %v6035_v62  ;;  %v13329_v20 = vpop.f32.mrf.mxu2  ;;  %v6156_v2 = vpop.f32.mrf.mxu1 }
 0x644   : > { %6234 = vmatmul.bf16.gmra.mxu2 %v13236_v36 }
 0x646   : > { %v13334_v34 = vpop.f32.mrf.mxu3  ;;  %v6109_v32 = vpop.f32.mrf.mxu0 }
 0x647   : > { %v6039_v28 = vpop.f32.mrf.mxu2  ;;  %v6158_v51 = vpop.f32.mrf.mxu1 }
 0x648   : > { %v6040_v47 = vadd.f32 %v6039_v28, %v5991_v55 }
 0x64b   : > { %6283 = vmatmul.bf16.gmra.mxu3 %v13242_v53 }
 0x64e   : > { %v6088_v0 = vpop.f32.mrf.mxu3  ;;  %v6112_v33 = vpop.f32.mrf.mxu0 }
 0x64f   : > { %v13337_v23 = vadd.f32 %v6088_v0, %v6040_v47  ;;  %v13339_v9 = vpop.f32.mrf.mxu2  ;;  %v6161_v58 = vpop.f32.mrf.mxu1 }
 0x654   : > { %6239 = vmatmul.bf16.gmra.mxu2 %v13250_v41  ;;  %v14219_v41 = vld [vmem:[#allocation25_spill] sm:$0xff] }
 0x655   : > { %v6108_v45 = vadd.f32 %v6107_v22, %v14219_v41  ;;  %v6110_v15 = vadd.f32 %v6109_v32, %v14219_v41 }
 0x656   : > { %v13342_v26 = vpop.f32.mrf.mxu3  ;;  %v6114_v25 = vpop.f32.mrf.mxu0 }
 0x657   : > { %v6044_v36 = vpop.f32.mrf.mxu2  ;;  %v13352_v35 = vpop.f32.mrf.mxu1  ;;  %v6157_v10 = vadd.f32 %v6156_v2, %v6108_v45  ;;  %v6159_v22 = vadd.f32 %v6158_v51, %v6110_v15  ;;  %v6113_v45 = vadd.f32 %v6112_v33, %v14219_v41  ;;  %v9241_v15 = vld [vmem:[#allocation13 + $0xe0] sm:$0xf] }
 0x658   : > { %v6045_v19 = vadd.f32 %v6044_v36, %v5996_v14  ;;  %v9243_v14 = vld [vmem:[#allocation13 + $0xf0] sm:$0xf0] }
 0x659   : > { %v9246_v38 = vor.u32 %v9739_v52, %v9243_v14  ;;  %v9773_v52 = vld [vmem:[#allocation13 + $0x1ec] sm:$0xf0]  ;;  %v6162_v14 = vadd.f32 %v6161_v58, %v6113_v45  ;;  %v9735_v45 = vld [vmem:[#allocation13 + $0xc4] sm:$0xf] }
 0x65b   : > { %6288 = vmatmul.bf16.gmra.mxu3 %v13255_v3  ;;  %v13356_v3 = vadd.f32 %v10246_v24, %v13265_v60  ;;  %v9371_v60 = vld [vmem:[#allocation13 + $0x1f0] sm:$0xf0]  ;;  %7320 = vmatpush.bf16.msra.mxu2 %v9246_v38 }
 0x65c   : > { %v9374_v2 = vor.u32 %v9771_v44, %v9371_v60  ;;  %v10249_v24 = vld [vmem:[%s10774_s13 + $0x118] sm:$0xff] }
 0x65d   : > { %v6390_v62 = vmul.f32 %v13356_v3, %v13356_v3 }
 0x65e   : > { %v6093_v43 = vpop.f32.mrf.mxu3  ;;  %v13358_v55 = vpop.f32.mrf.mxu0  ;;  %7369 = vmatpush.bf16.msra.mxu3 %v9374_v2  ;;  %v6115_v2 = vadd.f32 %v6114_v25, %v14219_v41 }
 0x65f   : > { %v13345_v53 = vadd.f32 %v6093_v43, %v6045_v19  ;;  %v13347_v42 = vpop.f32.mrf.mxu2  ;;  %v13370_v0 = vpop.f32.mrf.mxu1  ;;  %v10248_v19 = vld [vmem:[%s10774_s13 + $0x110] sm:$0xff] }
 0x660   : > { %v13374_v43 = vadd.f32 %v10248_v19, %v13271_v16  ;;  %v10251_v19 = vld [vmem:[%s10774_s13 + $0x128] sm:$0xff] }
 0x666   : > { %v13349_v18 = vpop.f32.mrf.mxu3 }
 0x667   : > { %v6205_v49 = vpop.f32.mrf.mxu2 }
 0x668   : > { %v6206_v17 = vadd.f32 %v6205_v49, %v6157_v10 }
 0x66e   : > { %v6254_v59 = vpop.f32.mrf.mxu3 }
 0x66f   : > { %v6255_v21 = vadd.f32 %v6254_v59, %v6206_v17  ;;  %v6207_v37 = vpop.f32.mrf.mxu2  ;;  %v13377_v17 = vpop.f32.mrf.mxu0 }
 0x670   : > { %v6208_v32 = vadd.f32 %v6207_v37, %v6159_v22  ;;  %v9369_v37 = vld [vmem:[#allocation13 + $0x1e0] sm:$0xf]  ;;  %v10250_v22 = vld [vmem:[%s10774_s13 + $0x120] sm:$0xff] }
 0x671   : > { %v13362_v40 = vadd.f32 %v10247_v50, %v6255_v21  ;;  %v9741_v21 = vld [vmem:[#allocation13 + $0xec] sm:$0xf0]  ;;  %v6392_v50 = vmul.f32 %v13374_v43, %v13374_v43 }
 0x672   : > { %v9242_v16 = vor.u32 %v9741_v21, %v9241_v15  ;;  %v9355_v21 = vld [vmem:[#allocation13 + $0x1d0] sm:$0xf0] }
 0x673   : > { %v6326_v28 = vadd.f32 %v13362_v40, %v13356_v3  ;;  %v6391_v47 = vmul.f32 %v13362_v40, %v13362_v40 }
 0x674   : > { %7222 = vmatpush.bf16.msra.mxu0 %v9242_v16 }
 0x675   : > { %6327 = vadd.xlane.f32.xlu2 %v6326_v28  ;;  %v6422_v36 = vadd.f32 %v6391_v47, %v6390_v62  ;;  %v9370_v62 = vor.u32 %v9773_v52, %v9369_v37  ;;  %v13390_v28 = vadd.f32 %v10250_v22, %v13275_v29  ;;  %v13392_v47 = vpop.f32.mrf.mxu1  ;;  %v6164_v37 = vadd.f32 %v13352_v35, %v6115_v2 }
 0x676   : > { %v6256_v51 = vpop.f32.mrf.mxu3  ;;  %v6118_v35 = vadd.f32 %v13358_v55, %v14219_v41 }
 0x677   : > { %v6257_v49 = vadd.f32 %v6256_v51, %v6208_v32  ;;  %6423 = vadd.xlane.f32.xlu1 %v6422_v36  ;;  %v6210_v10 = vpop.f32.mrf.mxu2  ;;  %7271 = vmatpush.bf16.msra.mxu1 %v9370_v62  ;;  %v6394_v29 = vmul.f32 %v13390_v28, %v13390_v28 }
 0x678   : > { %v6211_v38 = vadd.f32 %v6210_v10, %v6162_v14  ;;  %v9767_v10 = vld [vmem:[#allocation13 + $0x1c4] sm:$0xf] }
 0x679   : > { %v13380_v59 = vadd.f32 %v10249_v24, %v6257_v49  ;;  %v9227_v49 = vld [vmem:[#allocation13 + $0xd0] sm:$0xf0]  ;;  %v13398_v24 = vpop.f32.mrf.mxu0  ;;  %v9358_v16 = vor.u32 %v9767_v10, %v9355_v21  ;;  %v6167_v10 = vadd.f32 %v13370_v0, %v6118_v35  ;;  %v6120_v0 = vadd.f32 %v13377_v17, %v14219_v41 }
 0x67a   : > { %v9230_v15 = vor.u32 %v9735_v45, %v9227_v49  ;;  %v9769_v49 = vld [vmem:[#allocation13 + $0x1cc] sm:$0xf0] }
 0x67b   : > { %v6329_v33 = vadd.f32 %v13380_v59, %v13374_v43  ;;  %v6393_v44 = vmul.f32 %v13380_v59, %v13380_v59  ;;  %7370 = vmatpush.bf16.msra.mxu3 %v9358_v16 }
 0x67c   : > { %7321 = vmatpush.bf16.msra.mxu2 %v9230_v15 }
 0x67d   : > { %6330 = vadd.xlane.f32.xlu0 %v6329_v33  ;;  %v6425_v60 = vadd.f32 %v6393_v44, %v6392_v50  ;;  %v10252_v33 = vld [vmem:[%s10774_s13 + $0x130] sm:$0xff]  ;;  %v6171_v22 = vpop.f32.mrf.mxu1 }
 0x67e   : > { %v6259_v58 = vpop.f32.mrf.mxu3  ;;  %v13409_v44 = vadd.f32 %v10252_v33, %v13283_v57 }
 0x67f   : > { %v6260_v32 = vadd.f32 %v6259_v58, %v6211_v38  ;;  %6426 = vadd.xlane.f32.xlu2 %v6425_v60  ;;  %v6212_v36 = vpop.f32.mrf.mxu2  ;;  %v10253_v58 = vld [vmem:[%s10774_s13 + $0x138] sm:$0xff] }
 0x680   : > { %v6213_v52 = vadd.f32 %v6212_v36, %v6164_v37  ;;  %v9737_v36 = vld [vmem:[#allocation13 + $0xcc] sm:$0xf0]  ;;  %v6396_v45 = vmul.f32 %v13409_v44, %v13409_v44 }
 0x681   : > { %v13396_v51 = vadd.f32 %v10251_v19, %v6260_v32  ;;  %v9225_v32 = vld [vmem:[#allocation13 + $0xc0] sm:$0xf]  ;;  %v6124_v21 = vpop.f32.mrf.mxu0 }
 0x682   : > { %v9353_v19 = vld [vmem:[#allocation13 + $0x1c0] sm:$0xf]  ;;  %v9226_v57 = vor.u32 %v9737_v36, %v9225_v32 }
 0x683   : > { %v6332_v25 = vadd.f32 %v13396_v51, %v13390_v28  ;;  %v6395_v50 = vmul.f32 %v13396_v51, %v13396_v51  ;;  %v9354_v15 = vor.u32 %v9769_v49, %v9353_v19  ;;  %v9339_v19 = vld [vmem:[#allocation13 + $0x1b0] sm:$0xf0] }
 0x684   : > { %7223 = vmatpush.bf16.msra.mxu0 %v9226_v57 }
 0x685   : > { %6333 = vadd.xlane.f32.xlu0 %v6332_v25  ;;  %v6428_v14 = vadd.f32 %v6395_v50, %v6394_v29  ;;  %7272 = vmatpush.bf16.msra.mxu1 %v9354_v15  ;;  %v10254_v50 = vld [vmem:[%s10774_s13 + $0x140] sm:$0xff]  ;;  %v6173_v32 = vpop.f32.mrf.mxu1 }
 0x686   : > { %v6261_v62 = vpop.f32.mrf.mxu3  ;;  %v13425_v16 = vadd.f32 %v10254_v50, %v13288_v12 }
 0x687   : > { %v6262_v38 = vadd.f32 %v6261_v62, %v6213_v52  ;;  %6429 = vadd.xlane.f32.xlu2 %v6428_v14  ;;  %v6215_v60 = vpop.f32.mrf.mxu2  ;;  %v10255_v62 = vld [vmem:[%s10774_s13 + $0x148] sm:$0xff] }
 0x688   : > { %v6216_v37 = vadd.f32 %v6215_v60, %v6167_v10  ;;  %v9211_v60 = vld [vmem:[#allocation13 + $0xb0] sm:$0xf0]  ;;  %v6398_v36 = vmul.f32 %v13425_v16, %v13425_v16 }
 0x689   : > { %v13414_v2 = vadd.f32 %v10253_v58, %v6262_v38  ;;  %v9731_v38 = vld [vmem:[#allocation13 + $0xa4] sm:$0xf] }
 0x68a   : > { %v9763_v58 = vld [vmem:[#allocation13 + $0x1a4] sm:$0xf]  ;;  %v9214_v12 = vor.u32 %v9731_v38, %v9211_v60  ;;  %v9337_v38 = vld [vmem:[#allocation13 + $0x1a0] sm:$0xf] }
 0x68b   : > { %v6335_v55 = vadd.f32 %v13414_v2, %v13409_v44  ;;  %v6397_v29 = vmul.f32 %v13414_v2, %v13414_v2  ;;  %v9342_v49 = vor.u32 %v9763_v58, %v9339_v19  ;;  %v9765_v58 = vld [vmem:[#allocation13 + $0x1ac] sm:$0xf0] }
 0x68c   : > { %7322 = vmatpush.bf16.msra.mxu2 %v9214_v12  ;;  %v9338_v19 = vor.u32 %v9765_v58, %v9337_v38 }
 0x68d   : > { %6336 = vadd.xlane.f32.xlu1 %v6335_v55  ;;  %v6431_v25 = vadd.f32 %v6397_v29, %v6396_v45  ;;  %v6169_v45 = vadd.f32 %v13392_v47, %v6120_v0  ;;  %7371 = vmatpush.bf16.msra.mxu3 %v9342_v49  ;;  %v10256_v29 = vld [vmem:[%s10774_s13 + $0x150] sm:$0xff]  ;;  %v6123_v47 = vadd.f32 %v13398_v24, %v14219_v41  ;;  %v10257_v0 = vld [vmem:[%s10774_s13 + $0x158] sm:$0xff]  ;;  %v10258_v49 = vld [vmem:[%s10774_s13 + $0x160] sm:$0xff] }
 0x68e   : > { %v6264_v52 = vpop.f32.mrf.mxu3  ;;  %v13441_v15 = vadd.f32 %v10256_v29, %v13296_v27  ;;  %7273 = vmatpush.bf16.msra.mxu1 %v9338_v19  ;;  %v10260_v19 = vld [vmem:[%s10774_s13 + $0x170] sm:$0xff] }
 0x68f   : > { %v6265_v14 = vadd.f32 %v6264_v52, %v6216_v37  ;;  %6432 = vadd.xlane.f32.xlu0 %v6431_v25  ;;  %v6217_v33 = vpop.f32.mrf.mxu2  ;;  %v6127_v37 = vpop.f32.mrf.mxu0 }
 0x690   : > { %v6218_v10 = vadd.f32 %v6217_v33, %v6169_v45  ;;  %v9733_v33 = vld [vmem:[#allocation13 + $0xac] sm:$0xf0]  ;;  %v6400_v60 = vmul.f32 %v13441_v15, %v13441_v15  ;;  %v6176_v45 = vpop.f32.mrf.mxu1 }
 0x691   : > { %v13430_v35 = vadd.f32 %v10255_v62, %v6265_v14  ;;  %v9209_v62 = vld [vmem:[#allocation13 + $0xa0] sm:$0xf] }
 0x692   : > { %v9210_v27 = vor.u32 %v9733_v33, %v9209_v62  ;;  %v9727_v62 = vld [vmem:[#allocation13 + $0x84] sm:$0xf] }
 0x693   : > { %v6338_v17 = vadd.f32 %v13430_v35, %v13425_v16  ;;  %v6399_v57 = vmul.f32 %v13430_v35, %v13430_v35  ;;  %v9759_v33 = vld [vmem:[#allocation13 + $0x184] sm:$0xf] }
 0x694   : > { %7224 = vmatpush.bf16.msra.mxu0 %v9210_v27 }
 0x695   : > { %6339 = vadd.xlane.f32.xlu1 %v6338_v17  ;;  %v6434_v55 = vadd.f32 %v6399_v57, %v6398_v36  ;;  %v6172_v36 = vadd.f32 %v6171_v22, %v6123_v47  ;;  %v6125_v22 = vadd.f32 %v6124_v21, %v14219_v41 }
 0x696   : > { %v6266_v25 = vpop.f32.mrf.mxu3 }
 0x697   : > { %v6267_v50 = vadd.f32 %v6266_v25, %v6218_v10  ;;  %6435 = vadd.xlane.f32.xlu0 %v6434_v55  ;;  %v6220_v52 = vpop.f32.mrf.mxu2  ;;  %v13456_v10 = vadd.f32 %v10258_v49, %v13301_v39  ;;  %v6129_v47 = vpop.f32.mrf.mxu0  ;;  %v9323_v39 = vld [vmem:[#allocation13 + $0x190] sm:$0xf0]  ;;  %v6174_v27 = vadd.f32 %v6173_v32, %v6125_v22  ;;  %v6128_v32 = vadd.f32 %v6127_v37, %v14219_v41 }
 0x698   : > { %v6221_v17 = vadd.f32 %v6220_v52, %v6172_v36  ;;  %v9195_v52 = vld [vmem:[#allocation13 + $0x90] sm:$0xf0]  ;;  %v9326_v36 = vor.u32 %v9759_v33, %v9323_v39  ;;  %v5934_v33 = vadd.f32 %v13281_v54, %v14218_v4  ;;  %v9761_v39 = vld [vmem:[#allocation13 + $0x18c] sm:$0xf0] }
 0x699   : > { %v13446_v14 = vadd.f32 %v10257_v0, %v6267_v50  ;;  %v10259_v50 = vld [vmem:[%s10774_s13 + $0x168] sm:$0xff]  ;;  %v6402_v38 = vmul.f32 %v13456_v10, %v13456_v10  ;;  %v6177_v37 = vadd.f32 %v6176_v45, %v6128_v32 }
 0x69a   : > { %7372 = vmatpush.bf16.msra.mxu3 %v9326_v36  ;;  %v5983_v54 = vadd.f32 %v13285_v48, %v5934_v33  ;;  %v9755_v48 = vld [vmem:[#allocation13 + $0x164] sm:$0xf] }
 0x69b   : > { %v6341_v12 = vadd.f32 %v13446_v14, %v13441_v15  ;;  %v6401_v24 = vmul.f32 %v13446_v14, %v13446_v14 }
 0x69d   : > { %6342 = vadd.xlane.f32.xlu2 %v6341_v12  ;;  %v6437_v57 = vadd.f32 %v6401_v24, %v6400_v60  ;;  %v9198_v60 = vor.u32 %v9727_v62, %v9195_v52  ;;  %v9193_v62 = vld [vmem:[#allocation13 + $0x80] sm:$0xf]  ;;  %v9729_v52 = vld [vmem:[#allocation13 + $0x8c] sm:$0xf0] }
 0x69e   : > { %v6269_v55 = vpop.f32.mrf.mxu3 }
 0x69f   : > { %v6270_v29 = vadd.f32 %v6269_v55, %v6221_v17  ;;  %6438 = vadd.xlane.f32.xlu1 %v6437_v57  ;;  %v6222_v25 = vpop.f32.mrf.mxu2  ;;  %7323 = vmatpush.bf16.msra.mxu2 %v9198_v60  ;;  %v13470_v17 = vadd.f32 %v10260_v19, %v13309_v7  ;;  %v6178_v57 = vpop.f32.mrf.mxu1  ;;  %v9194_v60 = vor.u32 %v9729_v52, %v9193_v62  ;;  %v10263_v52 = vld [vmem:[%s10774_s13 + $0x188] sm:$0xff] }
 0x6a0   : > { %v6223_v12 = vadd.f32 %v6222_v25, %v6174_v27  ;;  %v9321_v25 = vld [vmem:[#allocation13 + $0x180] sm:$0xf] }
 0x6a1   : > { %v13460_v0 = vadd.f32 %v10259_v50, %v6270_v29  ;;  %v10261_v29 = vld [vmem:[%s10774_s13 + $0x178] sm:$0xff]  ;;  %v6404_v7 = vmul.f32 %v13470_v17, %v13470_v17  ;;  %7225 = vmatpush.bf16.msra.mxu0 %v9194_v60 }
 0x6a3   : > { %v6344_v21 = vadd.f32 %v13460_v0, %v13456_v10  ;;  %v6403_v58 = vmul.f32 %v13460_v0, %v13460_v0 }
 0x6a5   : > { %6345 = vadd.xlane.f32.xlu2 %v6344_v21  ;;  %v6440_v24 = vadd.f32 %v6403_v58, %v6402_v38  ;;  %v6132_v38 = vpop.f32.mrf.mxu0  ;;  %v9322_v58 = vor.u32 %v9761_v39, %v9321_v25  ;;  %v9723_v25 = vld [vmem:[#allocation13 + $0x64] sm:$0xf] }
 0x6a6   : > { %v6271_v49 = vpop.f32.mrf.mxu3 }
 0x6a7   : > { %v6272_v55 = vadd.f32 %v6271_v49, %v6223_v12  ;;  %6441 = vadd.xlane.f32.xlu1 %v6440_v24  ;;  %v6225_v22 = vpop.f32.mrf.mxu2  ;;  %7274 = vmatpush.bf16.msra.mxu1 %v9322_v58  ;;  %v10262_v24 = vld [vmem:[%s10774_s13 + $0x180] sm:$0xff]  ;;  %v6130_v49 = vadd.f32 %v6129_v47, %v14219_v41  ;;  %v6181_v62 = vpop.f32.mrf.mxu1  ;;  %v9307_v47 = vld [vmem:[#allocation13 + $0x170] sm:$0xf0] }
 0x6a8   : > { %v6226_v36 = vadd.f32 %v6225_v22, %v6177_v37  ;;  %v13487_v19 = vadd.f32 %v10262_v24, %v13314_v31 }
 0x6a9   : > { %v13474_v50 = vadd.f32 %v10261_v29, %v6272_v55  ;;  %v6032_v29 = vadd.f32 %v13317_v56, %v5983_v54  ;;  %v6179_v39 = vadd.f32 %v6178_v57, %v6130_v49  ;;  %v6133_v57 = vadd.f32 %v6132_v38, %v14219_v41  ;;  %v10265_v49 = vld [vmem:[%s10774_s13 + $0x198] sm:$0xff] }
 0x6aa   : > { %v6406_v31 = vmul.f32 %v13487_v19, %v13487_v19 }
 0x6ab   : > { %v6347_v27 = vadd.f32 %v13474_v50, %v13470_v17  ;;  %v6405_v21 = vmul.f32 %v13474_v50, %v13474_v50  ;;  %v6081_v33 = vadd.f32 %v13322_v13, %v6032_v29  ;;  %v10264_v13 = vld [vmem:[%s10774_s13 + $0x190] sm:$0xff]  ;;  %v9177_v29 = vld [vmem:[#allocation13 + $0x60] sm:$0xf]  ;;  %v6182_v38 = vadd.f32 %v6181_v62, %v6133_v57 }
 0x6ad   : > { %6348 = vadd.xlane.f32.xlu0 %v6347_v27  ;;  %v6443_v12 = vadd.f32 %v6405_v21, %v6404_v7  ;;  %v9179_v7 = vld [vmem:[#allocation13 + $0x70] sm:$0xf0]  ;;  %v9310_v27 = vor.u32 %v9755_v48, %v9307_v47  ;;  %v6134_v21 = vpop.f32.mrf.mxu0 }
 0x6ae   : > { %v6274_v45 = vpop.f32.mrf.mxu3  ;;  %v9182_v60 = vor.u32 %v9723_v25, %v9179_v7  ;;  %v9305_v25 = vld [vmem:[#allocation13 + $0x160] sm:$0xf] }
 0x6af   : > { %v6275_v32 = vadd.f32 %v6274_v45, %v6226_v36  ;;  %6444 = vadd.xlane.f32.xlu2 %v6443_v12  ;;  %v6227_v55 = vpop.f32.mrf.mxu2  ;;  %7373 = vmatpush.bf16.msra.mxu3 %v9310_v27  ;;  %v13502_v12 = vadd.f32 %v10264_v13, %v6081_v33  ;;  %v6183_v7 = vpop.f32.mrf.mxu1  ;;  %v10266_v27 = vld [vmem:[%s10774_s13 + $0x1a0] sm:$0xff]  ;;  %v6135_v13 = vadd.f32 %v6134_v21, %v14219_v41 }
 0x6b0   : > { %7324 = vmatpush.bf16.msra.mxu2 %v9182_v60  ;;  %v6228_v58 = vadd.f32 %v6227_v55, %v6179_v39  ;;  %v5939_v55 = vadd.f32 %v13294_v63, %v14218_v4 }
 0x6b1   : > { %v13492_v22 = vadd.f32 %v10263_v52, %v6275_v32  ;;  %v9725_v52 = vld [vmem:[#allocation13 + $0x6c] sm:$0xf0]  ;;  %v6408_v48 = vmul.f32 %v13502_v12, %v13502_v12  ;;  %v6184_v21 = vadd.f32 %v6183_v7, %v6135_v13 }
 0x6b2   : > { %v9178_v33 = vor.u32 %v9725_v52, %v9177_v29  ;;  %v5988_v63 = vadd.f32 %v13298_v11, %v5939_v55  ;;  %v9719_v29 = vld [vmem:[#allocation13 + $0x44] sm:$0xf]  ;;  %v9163_v52 = vld [vmem:[#allocation13 + $0x50] sm:$0xf0] }
 0x6b3   : > { %v6350_v37 = vadd.f32 %v13492_v22, %v13487_v19  ;;  %v6407_v56 = vmul.f32 %v13492_v22, %v13492_v22  ;;  %v9166_v55 = vor.u32 %v9719_v29, %v9163_v52  ;;  %v9161_v29 = vld [vmem:[#allocation13 + $0x40] sm:$0xf]  ;;  %v9721_v52 = vld [vmem:[#allocation13 + $0x4c] sm:$0xf0] }
 0x6b4   : > { %7226 = vmatpush.bf16.msra.mxu0 %v9178_v33 }
 0x6b5   : > { %6351 = vadd.xlane.f32.xlu0 %v6350_v37  ;;  %v6446_v36 = vadd.f32 %v6407_v56, %v6406_v31  ;;  %v9757_v31 = vld [vmem:[#allocation13 + $0x16c] sm:$0xf0]  ;;  %v6137_v62 = vpop.f32.mrf.mxu0  ;;  %7325 = vmatpush.bf16.msra.mxu2 %v9166_v55  ;;  %v10270_v55 = vld [vmem:[%s10774_s13 + $0x1c0] sm:$0xff] }
 0x6b6   : > { %v6276_v54 = vpop.f32.mrf.mxu3  ;;  %v9306_v39 = vor.u32 %v9757_v31, %v9305_v25  ;;  %v9751_v25 = vld [vmem:[#allocation13 + $0x144] sm:$0xf]  ;;  %v6138_v7 = vadd.f32 %v6137_v62, %v14219_v41 }
 0x6b7   : > { %v6277_v24 = vadd.f32 %v6276_v54, %v6228_v58  ;;  %6447 = vadd.xlane.f32.xlu2 %v6446_v36  ;;  %v6230_v45 = vpop.f32.mrf.mxu2  ;;  %v13519_v58 = vadd.f32 %v10266_v27, %v13327_v30 }
 0x6b8   : > { %v6231_v37 = vadd.f32 %v6230_v45, %v6182_v38  ;;  %7275 = vmatpush.bf16.msra.mxu1 %v9306_v39  ;;  %v6186_v38 = vpop.f32.mrf.mxu1  ;;  %v10268_v39 = vld [vmem:[%s10774_s13 + $0x1b0] sm:$0xff] }
 0x6b9   : > { %v13506_v32 = vadd.f32 %v10265_v49, %v6277_v24  ;;  %v6037_v24 = vadd.f32 %v13329_v20, %v5988_v63  ;;  %v10267_v49 = vld [vmem:[%s10774_s13 + $0x1a8] sm:$0xff]  ;;  %v6410_v30 = vmul.f32 %v13519_v58, %v13519_v58 }
 0x6bb   : > { %v6353_v60 = vadd.f32 %v13506_v32, %v13502_v12  ;;  %v6409_v47 = vmul.f32 %v13506_v32, %v13506_v32  ;;  %v6086_v11 = vadd.f32 %v13334_v34, %v6037_v24 }
 0x6bd   : > { %6354 = vadd.xlane.f32.xlu1 %v6353_v60  ;;  %v6449_v56 = vadd.f32 %v6409_v47, %v6408_v48  ;;  %v9291_v48 = vld [vmem:[#allocation13 + $0x150] sm:$0xf0]  ;;  %v6139_v27 = vpop.f32.mrf.mxu0 }
 0x6be   : > { %v6279_v36 = vpop.f32.mrf.mxu3  ;;  %v9294_v31 = vor.u32 %v9751_v25, %v9291_v48  ;;  %v9162_v25 = vor.u32 %v9721_v52, %v9161_v29  ;;  %v10273_v29 = vld [vmem:[%s10774_s13 + $0x1d8] sm:$0xff] }
 0x6bf   : > { %v6280_v54 = vadd.f32 %v6279_v36, %v6231_v37  ;;  %6450 = vadd.xlane.f32.xlu0 %v6449_v56  ;;  %v6232_v57 = vpop.f32.mrf.mxu2  ;;  %v13534_v37 = vadd.f32 %v10268_v39, %v6086_v11  ;;  %v10269_v36 = vld [vmem:[%s10774_s13 + $0x1b8] sm:$0xff] }
 0x6c0   : > { %v6233_v60 = vadd.f32 %v6232_v57, %v6184_v21  ;;  %7374 = vmatpush.bf16.msra.mxu3 %v9294_v31  ;;  %v6187_v57 = vadd.f32 %v6186_v38, %v6138_v7  ;;  %v6188_v48 = vpop.f32.mrf.mxu1  ;;  %7227 = vmatpush.bf16.msra.mxu0 %v9162_v25 }
 0x6c1   : > { %v13524_v45 = vadd.f32 %v10267_v49, %v6280_v54  ;;  %v5944_v54 = vadd.f32 %v13307_v8, %v14218_v4  ;;  %v6412_v49 = vmul.f32 %v13534_v37, %v13534_v37  ;;  %v13550_v8 = vadd.f32 %v10270_v55, %v13337_v23 }
 0x6c3   : > { %v6356_v33 = vadd.f32 %v13524_v45, %v13519_v58  ;;  %v6411_v20 = vmul.f32 %v13524_v45, %v13524_v45  ;;  %v6414_v23 = vmul.f32 %v13550_v8, %v13550_v8 }
 0x6c5   : > { %6357 = vadd.xlane.f32.xlu1 %v6356_v33  ;;  %v6452_v47 = vadd.f32 %v6411_v20, %v6410_v30  ;;  %v5993_v33 = vadd.f32 %v13311_v61, %v5944_v54  ;;  %v6140_v20 = vadd.f32 %v6139_v27, %v14219_v41  ;;  %v6142_v39 = vpop.f32.mrf.mxu0  ;;  %v10272_v54 = vld [vmem:[%s10774_s13 + $0x1d0] sm:$0xff] }
 0x6c6   : > { %v6281_v34 = vpop.f32.mrf.mxu3 }
 0x6c7   : > { %v6282_v56 = vadd.f32 %v6281_v34, %v6233_v60  ;;  %6453 = vadd.xlane.f32.xlu0 %v6452_v47  ;;  %v6235_v63 = vpop.f32.mrf.mxu2  ;;  %v6042_v60 = vadd.f32 %v13339_v9, %v5993_v33  ;;  %v10271_v47 = vld [vmem:[%s10774_s13 + $0x1c8] sm:$0xff] }
 0x6c8   : > { %v6236_v11 = vadd.f32 %v6235_v63, %v6187_v57 }
 0x6c9   : > { %v13538_v13 = vadd.f32 %v10269_v36, %v6282_v56  ;;  %v6091_v7 = vadd.f32 %v13342_v26, %v6042_v60  ;;  %v6189_v56 = vadd.f32 %v6188_v48, %v6140_v20  ;;  %v6191_v26 = vpop.f32.mrf.mxu1  ;;  %v5949_v48 = vadd.f32 %v13325_v1, %v14218_v4 }
 0x6cb   : > { %v6359_v24 = vadd.f32 %v13538_v13, %v13534_v37  ;;  %v6413_v62 = vmul.f32 %v13538_v13, %v13538_v13  ;;  %v13566_v57 = vadd.f32 %v10272_v54, %v6091_v7  ;;  %v10275_v7 = vld [vmem:[%s10774_s13 + $0x1e8] sm:$0xff]  ;;  %v9753_v54 = vld [vmem:[#allocation13 + $0x14c] sm:$0xf0] }
 0x6cd   : > { %6360 = vadd.xlane.f32.xlu2 %v6359_v24  ;;  %v6455_v30 = vadd.f32 %v6413_v62, %v6412_v49  ;;  %v6143_v24 = vadd.f32 %v6142_v39, %v14219_v41 }
 0x6ce   : > { %v6284_v21 = vpop.f32.mrf.mxu3 }
 0x6cf   : > { %v6285_v31 = vadd.f32 %v6284_v21, %v6236_v11  ;;  %6456 = vadd.xlane.f32.xlu1 %v6455_v30  ;;  %v6237_v38 = vpop.f32.mrf.mxu2  ;;  %v6192_v25 = vadd.f32 %v6191_v26, %v6143_v24  ;;  %v6416_v30 = vmul.f32 %v13566_v57, %v13566_v57  ;;  %v6144_v21 = vpop.f32.mrf.mxu0 }
 0x6d0   : > { %v6238_v27 = vadd.f32 %v6237_v38, %v6189_v56  ;;  %v10274_v38 = vld [vmem:[%s10774_s13 + $0x1e0] sm:$0xff] }
 0x6d1   : > { %v13556_v34 = vadd.f32 %v10271_v47, %v6285_v31  ;;  %v13582_v60 = vadd.f32 %v10274_v38, %v13345_v53  ;;  %v6145_v47 = vadd.f32 %v6144_v21, %v14219_v41  ;;  %v6193_v1 = vpop.f32.mrf.mxu1 }
 0x6d3   : > { %v6362_v61 = vadd.f32 %v13556_v34, %v13550_v8  ;;  %v6415_v63 = vmul.f32 %v13556_v34, %v13556_v34  ;;  %v6418_v53 = vmul.f32 %v13582_v60, %v13582_v60 }
 0x6d5   : > { %6363 = vadd.xlane.f32.xlu2 %v6362_v61  ;;  %v6458_v9 = vadd.f32 %v6415_v63, %v6414_v23  ;;  %v5998_v23 = vadd.f32 %v13331_v6, %v5949_v48  ;;  %v6194_v63 = vadd.f32 %v6193_v1, %v6145_v47  ;;  %v9715_v47 = vld [vmem:[#allocation13 + $0x24] sm:$0xf]  ;;  %v9275_v1 = vld [vmem:[#allocation13 + $0x130] sm:$0xf0] }
 0x6d6   : > { %v6286_v36 = vpop.f32.mrf.mxu3 }
 0x6d7   : > { %v6287_v49 = vadd.f32 %v6286_v36, %v6238_v27  ;;  %6459 = vadd.xlane.f32.xlu1 %v6458_v9  ;;  %v6240_v62 = vpop.f32.mrf.mxu2  ;;  %v6047_v4 = vadd.f32 %v13347_v42, %v5998_v23  ;;  %v9289_v42 = vld [vmem:[#allocation13 + $0x140] sm:$0xf]  ;;  %v9747_v23 = vld [vmem:[#allocation13 + $0x124] sm:$0xf] }
 0x6d8   : > { %v6241_v33 = vadd.f32 %v6240_v62, %v6192_v25  ;;  %v10276_v62 = vld [vmem:[%s10774_s13 + $0x1f0] sm:$0xff] }
 0x6d9   : > { %v13570_v52 = vadd.f32 %v10273_v29, %v6287_v49  ;;  %v6096_v6 = vadd.f32 %v13349_v18, %v6047_v4  ;;  %v9290_v49 = vor.u32 %v9753_v54, %v9289_v42 }
 0x6db   : > { %v6365_v11 = vadd.f32 %v13570_v52, %v13566_v57  ;;  %v6417_v55 = vmul.f32 %v13570_v52, %v13570_v52  ;;  %v13598_v29 = vadd.f32 %v10276_v62, %v6096_v6  ;;  %7276 = vmatpush.bf16.msra.mxu1 %v9290_v49  ;;  %v9273_v6 = vld [vmem:[#allocation13 + $0x120] sm:$0xf]  ;;  %v9711_v62 = vld [vmem:[#allocation13 + $0x4] sm:$0xf] }
 0x6dd   : > { %6366 = vadd.xlane.f32.xlu0 %v6365_v11  ;;  %v6461_v20 = vadd.f32 %v6417_v55, %v6416_v30  ;;  %v10277_v11 = vld [vmem:[%s10774_s13 + $0x1f8] sm:$0xff] }
 0x6de   : > { %v6289_v31 = vpop.f32.mrf.mxu3 }
 0x6df   : > { %v6290_v39 = vadd.f32 %v6289_v31, %v6241_v33  ;;  %6462 = vadd.xlane.f32.xlu2 %v6461_v20  ;;  %v6242_v61 = vpop.f32.mrf.mxu2  ;;  %v6420_v20 = vmul.f32 %v13598_v29, %v13598_v29 }
 0x6e0   : > { %v6243_v9 = vadd.f32 %v6242_v61, %v6194_v63  ;;  %v9145_v61 = vld [vmem:[#allocation13 + $0x20] sm:$0xf]  ;;  %v9717_v63 = vld [vmem:[#allocation13 + $0x2c] sm:$0xf0] }
 0x6e1   : > { %v13587_v56 = vadd.f32 %v10275_v7, %v6290_v39  ;;  %v9147_v39 = vld [vmem:[#allocation13 + $0x30] sm:$0xf0] }
 0x6e2   : > { %v9150_v4 = vor.u32 %v9715_v47, %v9147_v39  ;;  %v9257_v47 = vld [vmem:[#allocation13 + $0x100] sm:$0xf]  ;;  %v9745_v39 = vld [vmem:[#allocation13 + $0x10c] sm:$0xf0] }
 0x6e3   : > { %v6368_v27 = vadd.f32 %v13587_v56, %v13582_v60  ;;  %v6419_v41 = vmul.f32 %v13587_v56, %v13587_v56 }
 0x6e4   : > { %7326 = vmatpush.bf16.msra.mxu2 %v9150_v4 }
 0x6e5   : > { %6369 = vadd.xlane.f32.xlu0 %v6368_v27  ;;  %v6464_v36 = vadd.f32 %v6419_v41, %v6418_v53  ;;  %v9278_v53 = vor.u32 %v9747_v23, %v9275_v1  ;;  %v9146_v41 = vor.u32 %v9717_v63, %v9145_v61  ;;  %v9258_v23 = vor.u32 %v9745_v39, %v9257_v47 }
 0x6e6   : > { %v6291_v24 = vpop.f32.mrf.mxu3 }
 0x6e7   : > { %v6292_v26 = vadd.f32 %v6291_v24, %v6243_v9  ;;  %6465 = vadd.xlane.f32.xlu2 %v6464_v36  ;;  %v9749_v9 = vld [vmem:[#allocation13 + $0x12c] sm:$0xf0]  ;;  %7375 = vmatpush.bf16.msra.mxu3 %v9278_v53 }
 0x6e8   : > { %v6328_v25 = vpop.xlane.xlu2 %6327  ;;  %v9274_v42 = vor.u32 %v9749_v9, %v9273_v6  ;;  %7228 = vmatpush.bf16.msra.mxu0 %v9146_v41 }
 0x6e9   : > { %v13601_v30 = vadd.f32 %v10277_v11, %v6292_v26  ;;  %v13604_v55 = vmul.f32 %v6328_v25, %v11930_v46  ;;  %v9131_v25 = vld [vmem:[#allocation13 + $0x10] sm:$0xf0]  ;;  %v9743_v11 = vld [vmem:[#allocation13 + $0x104] sm:$0xf] }
 0x6ea   : > { %v6424_v18 = vpop.xlane.xlu1 %6423  ;;  %7277 = vmatpush.bf16.msra.mxu1 %v9274_v42 }
 0x6eb   : > { %v6470_v48 = vmul.f32 %v6424_v18, %v11930_v46  ;;  %v6486_v21 = vmul.f32 %v13604_v55, %v13604_v55  ;;  %v6371_v33 = vadd.f32 %v13601_v30, %v13598_v29  ;;  %v6421_v31 = vmul.f32 %v13601_v30, %v13601_v30 }
 0x6ec   : > { %v9134_v18 = vor.u32 %v9711_v62, %v9131_v25  ;;  %v6518_v47 = vsub.f32 %v13356_v3, %v13604_v55  ;;  %v6519_v39 = vsub.f32 %v13362_v40, %v13604_v55 }
 0x6ed   : > { %v6502_v38 = vsub.f32 %v6470_v48, %v6486_v21  ;;  %6372 = vadd.xlane.f32.xlu1 %v6371_v33  ;;  %v6467_v7 = vadd.f32 %v6421_v31, %v6420_v20  ;;  %v9259_v48 = vld [vmem:[#allocation13 + $0x110] sm:$0xf0]  ;;  %v9129_v21 = vld [vmem:[#allocation13] sm:$0xf]  ;;  %v9713_v33 = vld [vmem:[#allocation13 + $0xc] sm:$0xf0] }
 0x6ee   : > { %v9262_v31 = vor.u32 %v9743_v11, %v9259_v48  ;;  %7327 = vmatpush.bf16.msra.mxu2 %v9134_v18  ;;  %7278 = vmatpush.bf16.msra.mxu1 %v9258_v23 }
 0x6ef   : > { %v6550_v27 = vadd.f32 1e-05, %v6502_v38  ;;  %6468 = vadd.xlane.f32.xlu0 %v6467_v7  ;;  %v9130_v38 = vor.u32 %v9713_v33, %v9129_v21 }
 0x6f0   : > { %v6331_v36 = vpop.xlane.xlu0 %6330  ;;  %7376 = vmatpush.bf16.msra.mxu3 %v9262_v31 }
 0x6f1   : > { %10181 = vrsqrt.f32 %v6550_v27  ;;  %v13616_v54 = vmul.f32 %v6331_v36, %v11930_v46  ;;  %7229 = vmatpush.bf16.msra.mxu0 %v9130_v38  ;;  %vm6572_vm2 = vweird.f32 %v6550_v27 }
 0x6f2   : > { %v6427_v24 = vpop.xlane.xlu2 %6426 }
 0x6f3   : > { %v6487_v49 = vmul.f32 %v13616_v54, %v13616_v54  ;;  %v6471_v26 = vmul.f32 %v6427_v24, %v11930_v46  ;;  %v6521_v3 = vsub.f32 %v13380_v59, %v13616_v54 }
 0x6f5   : > { %v6503_v20 = vsub.f32 %v6471_v26, %v6487_v49 }
 0x6f7   : > { %v10182_v7 = vpop.eup %10181  ;;  %v6551_v4 = vadd.f32 1e-05, %v6503_v20 }
 0x6f8   : > { %v6567_v1 = vmul.f32 %v10182_v7, %v6550_v27  ;;  %v6334_v61 = vpop.xlane.xlu0 %6333  ;;  %vm6573_vm1 = vweird.f32 %v10182_v7 }
 0x6f9   : > { %10183 = vrsqrt.f32 %v6551_v4  ;;  %v13622_v63 = vmul.f32 %v6334_v61, %v11930_v46  ;;  %vm6574_vm3 = vmor %vm6572_vm2, %vm6573_vm1  ;;  %vm6582_vm5 = vweird.f32 %v6551_v4 }
 0x6fa   : > { %v6568_v53 = vmul.f32 %v10182_v7, %v6567_v1  ;;  %v6430_v41 = vpop.xlane.xlu2 %6429 }
 0x6fb   : > { %v6488_v6 = vmul.f32 %v13622_v63, %v13622_v63  ;;  %v6472_v9 = vmul.f32 %v6430_v41, %v11930_v46 }
 0x6fc   : > { %v6569_v36 = vmul.f32 0.5, %v6568_v53 }
 0x6fd   : > { %v6504_v42 = vsub.f32 %v6472_v9, %v6488_v6 }
 0x6fe   : > { %v6570_v24 = vsub.f32 1.5, %v6569_v36  ;;  %v6520_v36 = vsub.f32 %v13374_v43, %v13616_v54  ;;  %v9740_v54 = vld [vmem:[#allocation13 + $0xec] sm:$0xf] }
 0x6ff   : > { %v10184_v49 = vpop.eup %10183  ;;  %v13627_v26 = vadd.f32 1e-05, %v6504_v42 }
 0x700   : > { %v6571_v62 = vmul.f32 %v10182_v7, %v6570_v24  ;;  %v6577_v25 = vmul.f32 %v10184_v49, %v6551_v4  ;;  %v6337_v11 = vpop.xlane.xlu1 %6336  ;;  %vm6583_vm4 = vweird.f32 %v10184_v49 }
 0x701   : > { %10185 = vrsqrt.f32 %v13627_v26  ;;  %v13631_v18 = vmul.f32 %v6337_v11, %v11930_v46  ;;  %vm6584_vm6 = vmor %vm6582_vm5, %vm6583_vm4  ;;  %v14220_v11 = vld [vmem:[#allocation26_spill] sm:$0xff]  ;;  %vm6592_vm8 = vweird.f32 %v13627_v26 }
 0x702   : > { %v6578_v48 = vmul.f32 %v10184_v49, %v6577_v25  ;;  %v6433_v21 = vpop.xlane.xlu0 %6432  ;;  %v6575_v33 = vsel %vm6574_vm3, %v10182_v7, %v6571_v62 }
 0x703   : > { %v6473_v31 = vmul.f32 %v6433_v21, %v11930_v46  ;;  %v6489_v38 = vmul.f32 %v13631_v18, %v13631_v18  ;;  %v6726_v61 = vmul.f32 %v6575_v33, %v6518_v47  ;;  %v6727_v53 = vmul.f32 %v6575_v33, %v6519_v39  ;;  %v9251_v33 = vld [vmem:[#allocation13 + $0xf8] sm:$0xf0]  ;;  %v9249_v39 = vld [vmem:[#allocation13 + $0xe8] sm:$0xf] }
 0x704   : > { %v6579_v20 = vmul.f32 0.5, %v6578_v48  ;;  %v9379_v47 = vld [vmem:[#allocation13 + $0x1f8] sm:$0xf0] }
 0x705   : > { %v6505_v1 = vsub.f32 %v6473_v31, %v6489_v38  ;;  %v6758_v24 = vmul.f32 %v6726_v61, %v11975_v5  ;;  %v6759_v48 = vmul.f32 %v6727_v53, %v14220_v11  ;;  %v9254_v31 = vor.u32 %v9740_v54, %v9251_v33  ;;  %v9772_v38 = vld [vmem:[#allocation13 + $0x1ec] sm:$0xf]  ;;  %v9742_v53 = vld [vmem:[#allocation13 + $0xf4] sm:$0xf0] }
 0x706   : > { %v6580_v23 = vsub.f32 1.5, %v6579_v20  ;;  %v9382_v61 = vor.u32 %v9772_v38, %v9379_v47  ;;  %v9774_v38 = vld [vmem:[#allocation13 + $0x1f4] sm:$0xf0]  ;;  %v6522_v47 = vsub.f32 %v13390_v28, %v13622_v63 }
 0x707   : > { %v10186_v27 = vpop.eup %10185  ;;  %v13641_v6 = vadd.f32 1e-05, %v6505_v1  ;;  %7516 = vmatpush.bf16.msrb.mxu2 %v9254_v31 }
 0x708   : > { %v6581_v7 = vmul.f32 %v10184_v49, %v6580_v23  ;;  %v6587_v41 = vmul.f32 %v10186_v27, %v13627_v26  ;;  %v6340_v9 = vpop.xlane.xlu1 %6339  ;;  %vm6593_vm7 = vweird.f32 %v10186_v27  ;;  %7565 = vmatpush.bf16.msrb.mxu3 %v9382_v61  ;;  %v9377_v26 = vld [vmem:[#allocation13 + $0x1e8] sm:$0xf] }
 0x709   : > { %v13648_v40 = vmul.f32 %v6340_v9, %v11930_v46  ;;  %10187 = vrsqrt.f32 %v13641_v6  ;;  %vm6594_vm9 = vmor %vm6592_vm8, %vm6593_vm7  ;;  %vm6602_vm11 = vweird.f32 %v13641_v6 }
 0x70a   : > { %v6585_v55 = vsel %vm6584_vm6, %v10184_v49, %v6581_v7  ;;  %v6588_v42 = vmul.f32 %v10186_v27, %v6587_v41  ;;  %v6436_v4 = vpop.xlane.xlu0 %6435  ;;  %v14221_v7 = vld [vmem:[#allocation27_spill] sm:$0xff] }
 0x70b   : > { %v6728_v62 = vmul.f32 %v6585_v55, %v6520_v36  ;;  %v6729_v25 = vmul.f32 %v6585_v55, %v6521_v3  ;;  %v6474_v43 = vmul.f32 %v6436_v4, %v11930_v46  ;;  %v6490_v59 = vmul.f32 %v13648_v40, %v13648_v40  ;;  %v14222_v36 = vld [vmem:[#allocation28_spill] sm:$0xff] }
 0x70c   : > { %v6589_v21 = vmul.f32 0.5, %v6588_v42  ;;  %v6790_v41 = vadd.f32 %v6758_v24, %v14221_v7  ;;  %v9250_v55 = vor.u32 %v9742_v53, %v9249_v39  ;;  %v6791_v54 = vadd.f32 %v6759_v48, %v14222_v36 }
 0x70d   : > { %v6760_v49 = vmul.f32 %v6728_v62, %v11975_v5  ;;  %v6761_v20 = vmul.f32 %v6729_v25, %v14220_v11  ;;  %v6506_v1 = vsub.f32 %v6474_v43, %v6490_v59  ;;  %v6523_v39 = vsub.f32 %v13396_v51, %v13622_v63 }
 0x70e   : > { %v6590_v23 = vsub.f32 1.5, %v6589_v21  ;;  %7418 = vmatpush.bf16.msrb.mxu0 %v9250_v55  ;;  %v6524_v63 = vsub.f32 %v13409_v44, %v13631_v18 }
 0x70f   : > { %v6792_v9 = vadd.f32 %v6760_v49, %v14221_v7  ;;  %v6793_v3 = vadd.f32 %v6761_v20, %v14222_v36  ;;  %v10188_v42 = vpop.eup %10187  ;;  %v13661_v62 = vadd.f32 1e-05, %v6506_v1 }
 0x710   : > { %v6591_v4 = vmul.f32 %v10186_v27, %v6590_v23  ;;  %v6343_v25 = vpop.xlane.xlu2 %6342  ;;  %v6597_v21 = vmul.f32 %v10188_v42, %v13641_v6  ;;  %vm6603_vm10 = vweird.f32 %v10188_v42 }
 0x711   : > { %v13666_v43 = vmul.f32 %v6343_v25, %v11930_v46  ;;  %v13668_v24 = vpack.c.bf16 %v6792_v9, %v6790_v41  ;;  %10189 = vrsqrt.f32 %v13661_v62  ;;  %v13672_v33 = vpack.c.bf16 %v6793_v3, %v6791_v54  ;;  %vm6604_vm12 = vmor %vm6602_vm11, %vm6603_vm10 }
 0x712   : > { %v6439_v59 = vpop.xlane.xlu1 %6438  ;;  %v6598_v49 = vmul.f32 %v10188_v42, %v6597_v21  ;;  %v6595_v48 = vsel %vm6594_vm9, %v10186_v27, %v6591_v4  ;;  %v9378_v27 = vor.u32 %v9774_v38, %v9377_v26  ;;  %v6525_v25 = vsub.f32 %v13414_v2, %v13631_v18  ;;  %v9736_v26 = vld [vmem:[#allocation13 + $0xcc] sm:$0xf]  ;;  %v9235_v38 = vld [vmem:[#allocation13 + $0xd8] sm:$0xf0] }
 0x713   : > { %7230 = vmatmul.bf16.vlgmr.msra.gmra.mxu0 %v13668_v24  ;;  %v6475_v20 = vmul.f32 %v6439_v59, %v11930_v46  ;;  %v6491_v31 = vmul.f32 %v13666_v43, %v13666_v43  ;;  %7279 = vmatmul.bf16.vlgmr.msra.gmra.mxu1 %v13672_v33  ;;  %v6730_v61 = vmul.f32 %v6595_v48, %v6522_v47  ;;  %v9768_v2 = vld [vmem:[#allocation13 + $0x1cc] sm:$0xf]  ;;  %vm6612_vm14 = vweird.f32 %v13661_v62 }
 0x714   : > { %7328 = vmatmul.bf16.vlgmr.msra.gmra.mxu2 %v13668_v24  ;;  %v6599_v23 = vmul.f32 0.5, %v6598_v49  ;;  %7377 = vmatmul.bf16.vlgmr.msra.gmra.mxu3 %v13672_v33  ;;  %v6731_v53 = vmul.f32 %v6595_v48, %v6523_v39  ;;  %v9238_v47 = vor.u32 %v9736_v26, %v9235_v38  ;;  %v9363_v39 = vld [vmem:[#allocation13 + $0x1d8] sm:$0xf0] }
 0x715   : > { %v6507_v1 = vsub.f32 %v6475_v20, %v6491_v31  ;;  %7467 = vmatpush.bf16.msrb.mxu1 %v9378_v27  ;;  %v6762_v49 = vmul.f32 %v6730_v61, %v11975_v5  ;;  %v9366_v61 = vor.u32 %v9768_v2, %v9363_v39  ;;  %v6526_v39 = vsub.f32 %v13425_v16, %v13648_v40 }
 0x716   : > { %v6600_v41 = vsub.f32 1.5, %v6599_v23  ;;  %v6763_v6 = vmul.f32 %v6731_v53, %v14220_v11  ;;  %v9233_v23 = vld [vmem:[#allocation13 + $0xc8] sm:$0xf]  ;;  %v9738_v53 = vld [vmem:[#allocation13 + $0xd4] sm:$0xf0]  ;;  %7517 = vmatpush.bf16.msrb.mxu2 %v9238_v47 }
 0x717   : > { %v10190_v9 = vpop.eup %10189  ;;  %v13685_v3 = vadd.f32 1e-05, %v6507_v1  ;;  %7566 = vmatpush.bf16.msrb.mxu3 %v9366_v61  ;;  %v9361_v47 = vld [vmem:[#allocation13 + $0x1c8] sm:$0xf] }
 0x718   : > { %v6346_v55 = vpop.xlane.xlu2 %6345  ;;  %v6601_v4 = vmul.f32 %v10188_v42, %v6600_v41  ;;  %v6607_v28 = vmul.f32 %v10190_v9, %v13661_v62  ;;  %vm6613_vm13 = vweird.f32 %v10190_v9  ;;  %v9770_v62 = vld [vmem:[#allocation13 + $0x1d4] sm:$0xf0] }
 0x719   : > { %v13690_v51 = vmul.f32 %v6346_v55, %v11930_v46  ;;  %10191 = vrsqrt.f32 %v13685_v3  ;;  %v6794_v55 = vadd.f32 %v6762_v49, %v14221_v7  ;;  %vm6614_vm15 = vmor %vm6612_vm14, %vm6613_vm13  ;;  %vm6622_vm1 = vweird.f32 %v13685_v3 }
 0x71a   : > { %v6442_v54 = vpop.xlane.xlu1 %6441  ;;  %v6605_v21 = vsel %vm6604_vm12, %v10188_v42, %v6601_v4  ;;  %v6608_v59 = vmul.f32 %v10190_v9, %v6607_v28  ;;  %v6795_v4 = vadd.f32 %v6763_v6, %v14222_v36  ;;  %v9234_v28 = vor.u32 %v9738_v53, %v9233_v23 }
 0x71b   : > { %v6732_v48 = vmul.f32 %v6605_v21, %v6524_v63  ;;  %v6733_v20 = vmul.f32 %v6605_v21, %v6525_v25  ;;  %v6476_v31 = vmul.f32 %v6442_v54, %v11930_v46  ;;  %v6492_v44 = vmul.f32 %v13690_v51, %v13690_v51 }
 0x71c   : > { %v6609_v18 = vmul.f32 0.5, %v6608_v59  ;;  %7419 = vmatpush.bf16.msrb.mxu0 %v9234_v28  ;;  %v6527_v23 = vsub.f32 %v13430_v35, %v13648_v40  ;;  %v6528_v28 = vsub.f32 %v13441_v15, %v13666_v43 }
 0x71d   : > { %v6508_v42 = vsub.f32 %v6476_v31, %v6492_v44  ;;  %v6764_v27 = vmul.f32 %v6732_v48, %v11975_v5  ;;  %v6765_v1 = vmul.f32 %v6733_v20, %v14220_v11 }
 0x71e   : > { %v6610_v41 = vsub.f32 1.5, %v6609_v18 }
 0x71f   : > { %v10192_v63 = vpop.eup %10191  ;;  %v13706_v25 = vadd.f32 1e-05, %v6508_v42  ;;  %v6796_v21 = vadd.f32 %v6764_v27, %v14221_v7  ;;  %v6797_v59 = vadd.f32 %v6765_v1, %v14222_v36 }
 0x720   : > { %v6349_v54 = vpop.xlane.xlu0 %6348  ;;  %v6611_v48 = vmul.f32 %v10190_v9, %v6610_v41  ;;  %v6617_v20 = vmul.f32 %v10192_v63, %v13685_v3  ;;  %vm6623_vm0 = vweird.f32 %v10192_v63 }
 0x721   : > { %v13712_v31 = vmul.f32 %v6349_v54, %v11930_v46  ;;  %10193 = vrsqrt.f32 %v13706_v25  ;;  %v13716_v6 = vpack.c.bf16 %v6796_v21, %v6794_v55  ;;  %v13718_v44 = vpack.c.bf16 %v6797_v59, %v6795_v4  ;;  %vm6624_vm2 = vmor %vm6622_vm1, %vm6623_vm0 }
 0x722   : > { %v6445_v49 = vpop.xlane.xlu2 %6444  ;;  %v6618_v26 = vmul.f32 %v10192_v63, %v6617_v20  ;;  %v6615_v38 = vsel %vm6614_vm15, %v10190_v9, %v6611_v48  ;;  %v9362_v9 = vor.u32 %v9770_v62, %v9361_v47  ;;  %v6529_v54 = vsub.f32 %v13446_v14, %v13666_v43  ;;  %v9764_v14 = vld [vmem:[#allocation13 + $0x1ac] sm:$0xf]  ;;  %v9347_v62 = vld [vmem:[#allocation13 + $0x1b8] sm:$0xf0] }
 0x723   : > { %v6493_v2 = vmul.f32 %v13712_v31, %v13712_v31  ;;  %v6477_v18 = vmul.f32 %v6445_v49, %v11930_v46  ;;  %7235 = vmatmul.bf16.gmra.mxu0 %v13716_v6  ;;  %7284 = vmatmul.bf16.gmra.mxu1 %v13718_v44  ;;  %v6734_v1 = vmul.f32 %v6615_v38, %v6526_v39  ;;  %v9217_v39 = vld [vmem:[#allocation13 + $0xa8] sm:$0xf]  ;;  %vm6632_vm4 = vweird.f32 %v13706_v25 }
 0x724   : > { %v6619_v42 = vmul.f32 0.5, %v6618_v26  ;;  %7333 = vmatmul.bf16.gmra.mxu2 %v13716_v6  ;;  %7382 = vmatmul.bf16.gmra.mxu3 %v13718_v44  ;;  %v6735_v61 = vmul.f32 %v6615_v38, %v6527_v23 }
 0x725   : > { %v6509_v27 = vsub.f32 %v6477_v18, %v6493_v2  ;;  %7468 = vmatpush.bf16.msrb.mxu1 %v9362_v9  ;;  %v6766_v20 = vmul.f32 %v6734_v1, %v11975_v5  ;;  %v9732_v2 = vld [vmem:[#allocation13 + $0xac] sm:$0xf]  ;;  %v9219_v18 = vld [vmem:[#allocation13 + $0xb8] sm:$0xf0]  ;;  %v9350_v9 = vor.u32 %v9764_v14, %v9347_v62  ;;  %v9345_v14 = vld [vmem:[#allocation13 + $0x1a8] sm:$0xf] }
 0x726   : > { %v6620_v53 = vsub.f32 1.5, %v6619_v42  ;;  %v6767_v3 = vmul.f32 %v6735_v61, %v14220_v11  ;;  %v9222_v47 = vor.u32 %v9732_v2, %v9219_v18 }
 0x727   : > { %v10194_v41 = vpop.eup %10193  ;;  %v13732_v55 = vadd.f32 1e-05, %v6509_v27  ;;  %v9734_v27 = vld [vmem:[#allocation13 + $0xb4] sm:$0xf0]  ;;  %v6798_v61 = vadd.f32 %v6766_v20, %v14221_v7  ;;  %7567 = vmatpush.bf16.msrb.mxu3 %v9350_v9 }
 0x728   : > { %v6352_v16 = vpop.xlane.xlu0 %6351  ;;  %v6621_v4 = vmul.f32 %v10192_v63, %v6620_v53  ;;  %v6627_v35 = vmul.f32 %v10194_v41, %v13706_v25  ;;  %v6799_v53 = vadd.f32 %v6767_v3, %v14222_v36  ;;  %7518 = vmatpush.bf16.msrb.mxu2 %v9222_v47  ;;  %vm6633_vm3 = vweird.f32 %v10194_v41  ;;  %v9766_v25 = vld [vmem:[#allocation13 + $0x1b4] sm:$0xf0] }
 0x729   : > { %v13737_v40 = vmul.f32 %v6352_v16, %v11930_v46  ;;  %10195 = vrsqrt.f32 %v13732_v55  ;;  %v9218_v16 = vor.u32 %v9734_v27, %v9217_v39  ;;  %vm6634_vm5 = vmor %vm6632_vm4, %vm6633_vm3  ;;  %v6531_v47 = vsub.f32 %v13460_v0, %v13690_v51 }
 0x72a   : > { %v6448_v21 = vpop.xlane.xlu2 %6447  ;;  %v6625_v59 = vsel %vm6624_vm2, %v10192_v63, %v6621_v4  ;;  %v6628_v48 = vmul.f32 %v10194_v41, %v6627_v35  ;;  %vm6642_vm7 = vweird.f32 %v13732_v55 }
 0x72b   : > { %v6736_v49 = vmul.f32 %v6625_v59, %v6528_v28  ;;  %v6737_v26 = vmul.f32 %v6625_v59, %v6529_v54  ;;  %v6494_v38 = vmul.f32 %v13737_v40, %v13737_v40  ;;  %v6478_v15 = vmul.f32 %v6448_v21, %v11930_v46  ;;  %7420 = vmatpush.bf16.msrb.mxu0 %v9218_v16 }
 0x72c   : > { %v6629_v43 = vmul.f32 0.5, %v6628_v48 }
 0x72d   : > { %v6510_v63 = vsub.f32 %v6478_v15, %v6494_v38  ;;  %v6768_v23 = vmul.f32 %v6736_v49, %v11975_v5  ;;  %v6769_v42 = vmul.f32 %v6737_v26, %v14220_v11 }
 0x72e   : > { %v6630_v1 = vsub.f32 1.5, %v6629_v43  ;;  %v6530_v43 = vsub.f32 %v13456_v10, %v13690_v51 }
 0x72f   : > { %v10196_v4 = vpop.eup %10195  ;;  %v13753_v35 = vadd.f32 1e-05, %v6510_v63  ;;  %v6800_v54 = vadd.f32 %v6768_v23, %v14221_v7  ;;  %v6801_v21 = vadd.f32 %v6769_v42, %v14222_v36 }
 0x730   : > { %v6355_v28 = vpop.xlane.xlu1 %6354  ;;  %v6631_v59 = vmul.f32 %v10194_v41, %v6630_v1  ;;  %v6637_v48 = vmul.f32 %v10196_v4, %v13732_v55  ;;  %vm6643_vm6 = vweird.f32 %v10196_v4 }
 0x731   : > { %v13759_v49 = vmul.f32 %v6355_v28, %v11930_v46  ;;  %10197 = vrsqrt.f32 %v13753_v35  ;;  %v13763_v3 = vpack.c.bf16 %v6800_v54, %v6798_v61  ;;  %v13765_v26 = vpack.c.bf16 %v6801_v21, %v6799_v53  ;;  %vm6644_vm8 = vmor %vm6642_vm7, %vm6643_vm6 }
 0x732   : > { %v6451_v20 = vpop.xlane.xlu0 %6450  ;;  %v6638_v38 = vmul.f32 %v10196_v4, %v6637_v48  ;;  %v6635_v15 = vsel %vm6634_vm5, %v10194_v41, %v6631_v59  ;;  %v9346_v41 = vor.u32 %v9766_v25, %v9345_v14  ;;  %v6532_v61 = vsub.f32 %v13470_v17, %v13712_v31  ;;  %v9201_v14 = vld [vmem:[#allocation13 + $0x88] sm:$0xf] }
 0x733   : > { %v6479_v2 = vmul.f32 %v6451_v20, %v11930_v46  ;;  %v6495_v18 = vmul.f32 %v13759_v49, %v13759_v49  ;;  %7240 = vmatmul.bf16.gmra.mxu0 %v13763_v3  ;;  %7289 = vmatmul.bf16.gmra.mxu1 %v13765_v26  ;;  %v6738_v63 = vmul.f32 %v6635_v15, %v6530_v43  ;;  %vm6652_vm10 = vweird.f32 %v13753_v35 }
 0x734   : > { %v6639_v62 = vmul.f32 0.5, %v6638_v38  ;;  %7338 = vmatmul.bf16.gmra.mxu2 %v13763_v3  ;;  %7387 = vmatmul.bf16.gmra.mxu3 %v13765_v26  ;;  %v6739_v23 = vmul.f32 %v6635_v15, %v6531_v47  ;;  %v6533_v53 = vsub.f32 %v13474_v50, %v13712_v31  ;;  %v9728_v38 = vld [vmem:[#allocation13 + $0x8c] sm:$0xf]  ;;  %v9203_v15 = vld [vmem:[#allocation13 + $0x98] sm:$0xf0] }
 0x735   : > { %v6511_v39 = vsub.f32 %v6479_v2, %v6495_v18  ;;  %7469 = vmatpush.bf16.msrb.mxu1 %v9346_v41  ;;  %v6770_v21 = vmul.f32 %v6738_v63, %v11975_v5  ;;  %v9760_v50 = vld [vmem:[#allocation13 + $0x18c] sm:$0xf]  ;;  %v9206_v2 = vor.u32 %v9728_v38, %v9203_v15  ;;  %v9331_v18 = vld [vmem:[#allocation13 + $0x198] sm:$0xf0]  ;;  %v9329_v38 = vld [vmem:[#allocation13 + $0x188] sm:$0xf]  ;;  %v6534_v15 = vsub.f32 %v13487_v19, %v13737_v40 }
 0x736   : > { %v6640_v42 = vsub.f32 1.5, %v6639_v62  ;;  %v6771_v55 = vmul.f32 %v6739_v23, %v14220_v11  ;;  %v9334_v47 = vor.u32 %v9760_v50, %v9331_v18  ;;  %v9730_v62 = vld [vmem:[#allocation13 + $0x94] sm:$0xf0]  ;;  %v6535_v50 = vsub.f32 %v13492_v22, %v13737_v40 }
 0x737   : > { %v10198_v9 = vpop.eup %10197  ;;  %v13779_v27 = vadd.f32 1e-05, %v6511_v39  ;;  %v6802_v39 = vadd.f32 %v6770_v21, %v14221_v7  ;;  %7519 = vmatpush.bf16.msrb.mxu2 %v9206_v2  ;;  %v9202_v23 = vor.u32 %v9730_v62, %v9201_v14  ;;  %v6536_v62 = vsub.f32 %v13502_v12, %v13759_v49 }
 0x738   : > { %v6358_v10 = vpop.xlane.xlu1 %6357  ;;  %v6641_v1 = vmul.f32 %v10196_v4, %v6640_v42  ;;  %v6647_v0 = vmul.f32 %v10198_v9, %v13753_v35  ;;  %v6803_v63 = vadd.f32 %v6771_v55, %v14222_v36  ;;  %vm6653_vm9 = vweird.f32 %v10198_v9  ;;  %7568 = vmatpush.bf16.msrb.mxu3 %v9334_v47  ;;  %v9762_v35 = vld [vmem:[#allocation13 + $0x194] sm:$0xf0] }
 0x739   : > { %v13784_v51 = vmul.f32 %v6358_v10, %v11930_v46  ;;  %10199 = vrsqrt.f32 %v13779_v27  ;;  %7421 = vmatpush.bf16.msrb.mxu0 %v9202_v23  ;;  %vm6654_vm11 = vmor %vm6652_vm10, %vm6653_vm9  ;;  %vm6662_vm13 = vweird.f32 %v13779_v27 }
 0x73a   : > { %v6454_v16 = vpop.xlane.xlu0 %6453  ;;  %v6645_v28 = vsel %vm6644_vm8, %v10196_v4, %v6641_v1  ;;  %v6648_v54 = vmul.f32 %v10198_v9, %v6647_v0 }
 0x73b   : > { %v6740_v59 = vmul.f32 %v6645_v28, %v6532_v61  ;;  %v6741_v48 = vmul.f32 %v6645_v28, %v6533_v53  ;;  %v6480_v20 = vmul.f32 %v6454_v16, %v11930_v46  ;;  %v6496_v17 = vmul.f32 %v13784_v51, %v13784_v51 }
 0x73c   : > { %v6649_v31 = vmul.f32 0.5, %v6648_v54 }
 0x73d   : > { %v6512_v4 = vsub.f32 %v6480_v20, %v6496_v17  ;;  %v6772_v25 = vmul.f32 %v6740_v59, %v11975_v5  ;;  %v6773_v43 = vmul.f32 %v6741_v48, %v14220_v11 }
 0x73e   : > { %v6650_v41 = vsub.f32 1.5, %v6649_v31 }
 0x73f   : > { %v10200_v42 = vpop.eup %10199  ;;  %v13800_v10 = vadd.f32 1e-05, %v6512_v4  ;;  %v6804_v0 = vadd.f32 %v6772_v25, %v14221_v7  ;;  %v6805_v61 = vadd.f32 %v6773_v43, %v14222_v36 }
 0x740   : > { %v6361_v1 = vpop.xlane.xlu2 %6360  ;;  %v6651_v53 = vmul.f32 %v10198_v9, %v6650_v41  ;;  %v6657_v16 = vmul.f32 %v10200_v42, %v13779_v27  ;;  %vm6663_vm12 = vweird.f32 %v10200_v42  ;;  %v6537_v41 = vsub.f32 %v13506_v32, %v13759_v49  ;;  %v9756_v32 = vld [vmem:[#allocation13 + $0x16c] sm:$0xf] }
 0x741   : > { %v13806_v28 = vmul.f32 %v6361_v1, %v11930_v46  ;;  %10201 = vrsqrt.f32 %v13800_v10  ;;  %v13810_v21 = vpack.c.bf16 %v6804_v0, %v6802_v39  ;;  %v13812_v55 = vpack.c.bf16 %v6805_v61, %v6803_v63  ;;  %vm6664_vm14 = vmor %vm6662_vm13, %vm6663_vm12 }
 0x742   : > { %v6457_v54 = vpop.xlane.xlu1 %6456  ;;  %v6658_v59 = vmul.f32 %v10200_v42, %v6657_v16  ;;  %v6655_v48 = vsel %vm6654_vm11, %v10198_v9, %v6651_v53  ;;  %v9330_v9 = vor.u32 %v9762_v35, %v9329_v38  ;;  %v9724_v16 = vld [vmem:[#allocation13 + $0x6c] sm:$0xf]  ;;  %vm6672_vm0 = vweird.f32 %v13800_v10 }
 0x743   : > { %v6481_v20 = vmul.f32 %v6457_v54, %v11930_v46  ;;  %v6497_v17 = vmul.f32 %v13806_v28, %v13806_v28  ;;  %7245 = vmatmul.bf16.gmra.mxu0 %v13810_v21  ;;  %7294 = vmatmul.bf16.gmra.mxu1 %v13812_v55  ;;  %v6742_v18 = vmul.f32 %v6655_v48, %v6534_v15  ;;  %v9187_v54 = vld [vmem:[#allocation13 + $0x78] sm:$0xf0]  ;;  %v9726_v15 = vld [vmem:[#allocation13 + $0x74] sm:$0xf0] }
 0x744   : > { %v6659_v31 = vmul.f32 0.5, %v6658_v59  ;;  %7343 = vmatmul.bf16.gmra.mxu2 %v13810_v21  ;;  %7392 = vmatmul.bf16.gmra.mxu3 %v13812_v55  ;;  %v6743_v14 = vmul.f32 %v6655_v48, %v6535_v50  ;;  %v9190_v59 = vor.u32 %v9724_v16, %v9187_v54  ;;  %v9315_v48 = vld [vmem:[#allocation13 + $0x178] sm:$0xf0] }
 0x745   : > { %v6513_v2 = vsub.f32 %v6481_v20, %v6497_v17  ;;  %7470 = vmatpush.bf16.msrb.mxu1 %v9330_v9  ;;  %v6774_v1 = vmul.f32 %v6742_v18, %v11975_v5  ;;  %v9185_v20 = vld [vmem:[#allocation13 + $0x68] sm:$0xf]  ;;  %v9318_v35 = vor.u32 %v9756_v32, %v9315_v48 }
 0x746   : > { %v6660_v4 = vsub.f32 1.5, %v6659_v31  ;;  %v6775_v27 = vmul.f32 %v6743_v14, %v14220_v11  ;;  %7520 = vmatpush.bf16.msrb.mxu2 %v9190_v59 }
 0x747   : > { %v10202_v25 = vpop.eup %10201  ;;  %v13826_v43 = vadd.f32 1e-05, %v6513_v2  ;;  %v6806_v31 = vadd.f32 %v6774_v1, %v14221_v7  ;;  %v9186_v2 = vor.u32 %v9726_v15, %v9185_v20  ;;  %7569 = vmatpush.bf16.msrb.mxu3 %v9318_v35 }
 0x748   : > { %v6364_v19 = vpop.xlane.xlu2 %6363  ;;  %v6661_v47 = vmul.f32 %v10200_v42, %v6660_v4  ;;  %v6667_v22 = vmul.f32 %v10202_v25, %v13800_v10  ;;  %v6807_v9 = vadd.f32 %v6775_v27, %v14222_v36  ;;  %vm6673_vm15 = vweird.f32 %v10202_v25  ;;  %v9758_v10 = vld [vmem:[#allocation13 + $0x174] sm:$0xf0] }
 0x749   : > { %v13831_v40 = vmul.f32 %v6364_v19, %v11930_v46  ;;  %10203 = vrsqrt.f32 %v13826_v43  ;;  %7422 = vmatpush.bf16.msrb.mxu0 %v9186_v2  ;;  %vm6674_vm1 = vmor %vm6672_vm0, %vm6673_vm15  ;;  %vm6682_vm3 = vweird.f32 %v13826_v43 }
 0x74a   : > { %v6460_v39 = vpop.xlane.xlu1 %6459  ;;  %v6665_v63 = vsel %vm6664_vm14, %v10200_v42, %v6661_v47  ;;  %v6668_v23 = vmul.f32 %v10202_v25, %v6667_v22 }
 0x74b   : > { %v6744_v0 = vmul.f32 %v6665_v63, %v6536_v62  ;;  %v6745_v61 = vmul.f32 %v6665_v63, %v6537_v41  ;;  %v6482_v53 = vmul.f32 %v6460_v39, %v11930_v46  ;;  %v6498_v12 = vmul.f32 %v13831_v40, %v13831_v40 }
 0x74c   : > { %v6669_v49 = vmul.f32 0.5, %v6668_v23 }
 0x74d   : > { %v6514_v42 = vsub.f32 %v6482_v53, %v6498_v12  ;;  %v6776_v17 = vmul.f32 %v6744_v0, %v11975_v5  ;;  %v6777_v38 = vmul.f32 %v6745_v61, %v14220_v11  ;;  %v9313_v53 = vld [vmem:[#allocation13 + $0x168] sm:$0xf]  ;;  %v6538_v12 = vsub.f32 %v13519_v58, %v13784_v51 }
 0x74e   : > { %v6670_v50 = vsub.f32 1.5, %v6669_v49  ;;  %v9314_v54 = vor.u32 %v9758_v10, %v9313_v53 }
 0x74f   : > { %v10204_v18 = vpop.eup %10203  ;;  %v13847_v14 = vadd.f32 1e-05, %v6514_v42  ;;  %v6808_v19 = vadd.f32 %v6776_v17, %v14221_v7  ;;  %v6809_v47 = vadd.f32 %v6777_v38, %v14222_v36 }
 0x750   : > { %v6367_v4 = vpop.xlane.xlu0 %6366  ;;  %v6671_v22 = vmul.f32 %v10202_v25, %v6670_v50  ;;  %v6677_v62 = vmul.f32 %v10204_v18, %v13826_v43  ;;  %vm6683_vm2 = vweird.f32 %v10204_v18  ;;  %7471 = vmatpush.bf16.msrb.mxu1 %v9314_v54 }
 0x751   : > { %v13853_v41 = vmul.f32 %v6367_v4, %v11930_v46  ;;  %10205 = vrsqrt.f32 %v13847_v14  ;;  %v13857_v63 = vpack.c.bf16 %v6808_v19, %v6806_v31  ;;  %v13859_v23 = vpack.c.bf16 %v6809_v47, %v6807_v9  ;;  %vm6684_vm4 = vmor %vm6682_vm3, %vm6683_vm2 }
 0x752   : > { %v6463_v39 = vpop.xlane.xlu2 %6462  ;;  %v6678_v1 = vmul.f32 %v10204_v18, %v6677_v62  ;;  %v6675_v27 = vsel %vm6674_vm1, %v10202_v25, %v6671_v22  ;;  %v6539_v25 = vsub.f32 %v13524_v45, %v13784_v51  ;;  %v6540_v45 = vsub.f32 %v13534_v37, %v13806_v28 }
 0x753   : > { %v6499_v0 = vmul.f32 %v13853_v41, %v13853_v41  ;;  %v6483_v61 = vmul.f32 %v6463_v39, %v11930_v46  ;;  %7250 = vmatmul.bf16.gmra.mxu0 %v13857_v63  ;;  %7299 = vmatmul.bf16.gmra.mxu1 %v13859_v23  ;;  %v6746_v49 = vmul.f32 %v6675_v27, %v6538_v12  ;;  %v9722_v12 = vld [vmem:[#allocation13 + $0x54] sm:$0xf0]  ;;  %vm6692_vm6 = vweird.f32 %v13847_v14 }
 0x754   : > { %v6679_v16 = vmul.f32 0.5, %v6678_v1  ;;  %7348 = vmatmul.bf16.gmra.mxu2 %v13857_v63  ;;  %7397 = vmatmul.bf16.gmra.mxu3 %v13859_v23  ;;  %v6747_v42 = vmul.f32 %v6675_v27, %v6539_v25  ;;  %v6541_v51 = vsub.f32 %v13538_v13, %v13806_v28  ;;  %v9720_v13 = vld [vmem:[#allocation13 + $0x4c] sm:$0xf]  ;;  %v9171_v28 = vld [vmem:[#allocation13 + $0x58] sm:$0xf0] }
 0x755   : > { %v6515_v32 = vsub.f32 %v6483_v61, %v6499_v0  ;;  %v6778_v31 = vmul.f32 %v6746_v49, %v11975_v5  ;;  %v9174_v39 = vor.u32 %v9720_v13, %v9171_v28  ;;  %v9752_v1 = vld [vmem:[#allocation13 + $0x14c] sm:$0xf]  ;;  %v9299_v27 = vld [vmem:[#allocation13 + $0x158] sm:$0xf0]  ;;  %v9169_v0 = vld [vmem:[#allocation13 + $0x48] sm:$0xf] }
 0x756   : > { %v6680_v59 = vsub.f32 1.5, %v6679_v16  ;;  %v6779_v47 = vmul.f32 %v6747_v42, %v14220_v11  ;;  %v9302_v10 = vor.u32 %v9752_v1, %v9299_v27  ;;  %v9297_v16 = vld [vmem:[#allocation13 + $0x148] sm:$0xf]  ;;  %v9716_v42 = vld [vmem:[#allocation13 + $0x2c] sm:$0xf] }
 0x757   : > { %v13873_v48 = vpop.eup %10205  ;;  %v13876_v58 = vadd.f32 1e-05, %v6515_v32  ;;  %v6810_v53 = vadd.f32 %v6778_v31, %v14221_v7  ;;  %7521 = vmatpush.bf16.msrb.mxu2 %v9174_v39  ;;  %v9718_v13 = vld [vmem:[#allocation13 + $0x34] sm:$0xf0] }
 0x758   : > { %v6370_v20 = vpop.xlane.xlu0 %6369  ;;  %v6681_v17 = vmul.f32 %v10204_v18, %v6680_v59  ;;  %v6687_v38 = vmul.f32 %v13873_v48, %v13847_v14  ;;  %vm6693_vm5 = vweird.f32 %v13873_v48  ;;  %v9170_v59 = vor.u32 %v9722_v12, %v9169_v0  ;;  %7570 = vmatpush.bf16.msrb.mxu3 %v9302_v10  ;;  %v9744_v10 = vld [vmem:[#allocation13 + $0x10c] sm:$0xf] }
 0x759   : > { %v13881_v35 = vmul.f32 %v6370_v20, %v11930_v46  ;;  %10207 = vrsqrt.f32 %v13876_v58  ;;  %v9754_v20 = vld [vmem:[#allocation13 + $0x154] sm:$0xf0]  ;;  %vm6694_vm7 = vmor %vm6692_vm6, %vm6693_vm5  ;;  %v6542_v0 = vsub.f32 %v13550_v8, %v13831_v40  ;;  %vm6702_vm9 = vweird.f32 %v13876_v58 }
 0x75a   : > { %v6466_v43 = vpop.xlane.xlu2 %6465  ;;  %v6685_v15 = vsel %vm6684_vm4, %v10204_v18, %v6681_v17  ;;  %v6688_v50 = vmul.f32 %v13873_v48, %v6687_v38  ;;  %7423 = vmatpush.bf16.msrb.mxu0 %v9170_v59  ;;  %v9267_v59 = vld [vmem:[#allocation13 + $0x118] sm:$0xf0] }
 0x75b   : > { %v6748_v9 = vmul.f32 %v6685_v15, %v6540_v45  ;;  %v6749_v2 = vmul.f32 %v6685_v15, %v6541_v51  ;;  %v6500_v4 = vmul.f32 %v13881_v35, %v13881_v35  ;;  %v6484_v19 = vmul.f32 %v6466_v43, %v11930_v46  ;;  %v9155_v15 = vld [vmem:[#allocation13 + $0x38] sm:$0xf0] }
 0x75c   : > { %v6689_v37 = vmul.f32 0.5, %v6688_v50  ;;  %v6811_v51 = vadd.f32 %v6779_v47, %v14222_v36  ;;  %v9298_v43 = vor.u32 %v9754_v20, %v9297_v16  ;;  %v9158_v14 = vor.u32 %v9716_v42, %v9155_v15  ;;  %v9153_v47 = vld [vmem:[#allocation13 + $0x28] sm:$0xf] }
 0x75d   : > { %v6516_v22 = vsub.f32 %v6484_v19, %v6500_v4  ;;  %v6780_v62 = vmul.f32 %v6748_v9, %v11975_v5  ;;  %v6781_v18 = vmul.f32 %v6749_v2, %v14220_v11  ;;  %v9748_v9 = vld [vmem:[#allocation13 + $0x12c] sm:$0xf]  ;;  %v9283_v2 = vld [vmem:[#allocation13 + $0x138] sm:$0xf0]  ;;  %v9137_v20 = vld [vmem:[#allocation13 + $0x8] sm:$0xf] }
 0x75e   : > { %v6690_v61 = vsub.f32 1.5, %v6689_v37  ;;  %7472 = vmatpush.bf16.msrb.mxu1 %v9298_v43  ;;  %v9286_v27 = vor.u32 %v9748_v9, %v9283_v2  ;;  %7522 = vmatpush.bf16.msrb.mxu2 %v9158_v14  ;;  %v6544_v9 = vsub.f32 %v13566_v57, %v13853_v41  ;;  %v6545_v2 = vsub.f32 %v13570_v52, %v13853_v41 }
 0x75f   : > { %v13898_v54 = vpop.eup %10207  ;;  %v13900_v32 = vadd.f32 1e-05, %v6516_v22  ;;  %v6812_v25 = vadd.f32 %v6780_v62, %v14221_v7  ;;  %v6813_v49 = vadd.f32 %v6781_v18, %v14222_v36  ;;  %v9281_v22 = vld [vmem:[#allocation13 + $0x128] sm:$0xf]  ;;  %v9750_v62 = vld [vmem:[#allocation13 + $0x134] sm:$0xf0] }
 0x760   : > { %v6691_v17 = vmul.f32 %v13873_v48, %v6690_v61  ;;  %v6697_v38 = vmul.f32 %v13898_v54, %v13876_v58  ;;  %v6373_v45 = vpop.xlane.xlu1 %6372  ;;  %vm6703_vm8 = vweird.f32 %v13898_v54  ;;  %v9712_v61 = vld [vmem:[#allocation13 + $0xc] sm:$0xf]  ;;  %7571 = vmatpush.bf16.msrb.mxu3 %v9286_v27 }
 0x761   : > { %10209 = vrsqrt.f32 %v13900_v32  ;;  %v13911_v50 = vmul.f32 %v6373_v45, %v11930_v46  ;;  %v13913_v31 = vpack.c.bf16 %v6812_v25, %v6810_v53  ;;  %v13918_v37 = vpack.c.bf16 %v6813_v49, %v6811_v51  ;;  %v9139_v53 = vld [vmem:[#allocation13 + $0x18] sm:$0xf0]  ;;  %v9746_v45 = vld [vmem:[#allocation13 + $0x114] sm:$0xf0]  ;;  %vm6704_vm10 = vmor %vm6702_vm9, %vm6703_vm8 }
 0x762   : > { %v6698_v4 = vmul.f32 %v13898_v54, %v6697_v38  ;;  %v6469_v19 = vpop.xlane.xlu0 %6468  ;;  %v6695_v28 = vsel %vm6694_vm7, %v13873_v48, %v6691_v17  ;;  %v6543_v48 = vsub.f32 %v13556_v34, %v13831_v40  ;;  %v9282_v25 = vor.u32 %v9750_v62, %v9281_v22  ;;  %v9714_v40 = vld [vmem:[#allocation13 + $0x14] sm:$0xf0]  ;;  %v9265_v38 = vld [vmem:[#allocation13 + $0x108] sm:$0xf] }
 0x763   : > { %7255 = vmatmul.bf16.gmra.mxu0 %v13913_v31  ;;  %v6485_v39 = vmul.f32 %v6469_v19, %v11930_v46  ;;  %v6501_v1 = vmul.f32 %v13911_v50, %v13911_v50  ;;  %7304 = vmatmul.bf16.gmra.mxu1 %v13918_v37  ;;  %v9154_v46 = vor.u32 %v9718_v13, %v9153_v47  ;;  %vm6712_vm12 = vweird.f32 %v13900_v32 }
 0x764   : > { %v6699_v18 = vmul.f32 0.5, %v6698_v4  ;;  %7353 = vmatmul.bf16.gmra.mxu2 %v13913_v31  ;;  %7402 = vmatmul.bf16.gmra.mxu3 %v13918_v37  ;;  %v9142_v49 = vor.u32 %v9712_v61, %v9139_v53  ;;  %v6750_v42 = vmul.f32 %v6695_v28, %v6542_v0  ;;  %v6751_v17 = vmul.f32 %v6695_v28, %v6543_v48 }
 0x765   : > { %v6517_v16 = vsub.f32 %v6485_v39, %v6501_v1  ;;  %7424 = vmatpush.bf16.msrb.mxu0 %v9154_v46  ;;  %v9270_v34 = vor.u32 %v9744_v10, %v9267_v59  ;;  %7473 = vmatpush.bf16.msrb.mxu1 %v9282_v25  ;;  %v9138_v4 = vor.u32 %v9714_v40, %v9137_v20 }
 0x766   : > { %v6700_v12 = vsub.f32 1.5, %v6699_v18  ;;  %7523 = vmatpush.bf16.msrb.mxu2 %v9142_v49  ;;  %v9266_v19 = vor.u32 %v9746_v45, %v9265_v38  ;;  %v6782_v28 = vmul.f32 %v6750_v42, %v11975_v5  ;;  %v6783_v57 = vmul.f32 %v6751_v17, %v14220_v11 }
 0x767   : > { %v10210_v8 = vpop.eup %10209  ;;  %v6565_v15 = vadd.f32 1e-05, %v6517_v16  ;;  %7572 = vmatpush.bf16.msrb.mxu3 %v9270_v34  ;;  %v6546_v16 = vsub.f32 %v13582_v60, %v13881_v35  ;;  %v6547_v25 = vsub.f32 %v13587_v56, %v13881_v35  ;;  %v6548_v42 = vsub.f32 %v13598_v29, %v13911_v50 }
 0x768   : > { %v6701_v51 = vmul.f32 %v13898_v54, %v6700_v12  ;;  %v6707_v43 = vmul.f32 %v10210_v8, %v13900_v32  ;;  %v6814_v18 = vadd.f32 %v6782_v28, %v14221_v7  ;;  %v6815_v39 = vadd.f32 %v6783_v57, %v14222_v36 }
 0x769   : > { %10211 = vrsqrt.f32 %v6565_v15  ;;  %7425 = vmatpush.bf16.msrb.mxu0 %v9138_v4  ;;  %7474 = vmatpush.bf16.msrb.mxu1 %v9266_v19  ;;  %vm6713_vm11 = vweird.f32 %v10210_v8  ;;  %vm6722_vm15 = vweird.f32 %v6565_v15 }
 0x76a   : > { %v6705_v14 = vsel %vm6704_vm10, %v13898_v54, %v6701_v51  ;;  %v6708_v47 = vmul.f32 %v10210_v8, %v6707_v43  ;;  %vm6714_vm13 = vmor %vm6712_vm12, %vm6713_vm11 }
 0x76b   : > { %v6752_v58 = vmul.f32 %v6705_v14, %v6544_v9  ;;  %v6753_v13 = vmul.f32 %v6705_v14, %v6545_v2  ;;  %v14224_v9 = vld [vmem:[#allocation30_spill] sm:$0xff] }
 0x76c   : > { %v6709_v22 = vmul.f32 0.5, %v6708_v47 }
 0x76d   : > { %v6784_v52 = vmul.f32 %v6752_v58, %v11975_v5  ;;  %v6785_v41 = vmul.f32 %v6753_v13, %v14220_v11 }
 0x76e   : > { %v6710_v62 = vsub.f32 1.5, %v6709_v22 }
 0x76f   : > { %v6816_v54 = vadd.f32 %v6784_v52, %v14221_v7  ;;  %v6817_v1 = vadd.f32 %v6785_v41, %v14222_v36  ;;  %v10212_v27 = vpop.eup %10211 }
 0x770   : > { %v6711_v0 = vmul.f32 %v10210_v8, %v6710_v62  ;;  %v6717_v48 = vmul.f32 %v10212_v27, %v6565_v15  ;;  %vm6723_vm14 = vweird.f32 %v10212_v27 }
 0x771   : > { %v13951_v46 = vpack.c.bf16 %v6816_v54, %v6814_v18  ;;  %v13953_v61 = vpack.c.bf16 %v6817_v1, %v6815_v39  ;;  %vm6724_vm0 = vmor %vm6722_vm15, %vm6723_vm14 }
 0x772   : > { %v6718_v53 = vmul.f32 %v10212_v27, %v6717_v48  ;;  %v6715_v10 = vsel %vm6714_vm13, %v10210_v8, %v6711_v0  ;;  %v6549_v8 = vsub.f32 %v13601_v30, %v13911_v50 }
 0x773   : > { %7260 = vmatmul.bf16.gmra.mxu0 %v13951_v46  ;;  %7309 = vmatmul.bf16.gmra.mxu1 %v13953_v61  ;;  %v6754_v32 = vmul.f32 %v6715_v10, %v6546_v16  ;;  %v6755_v59 = vmul.f32 %v6715_v10, %v6547_v25 }
 0x774   : > { %7358 = vmatmul.bf16.gmra.mxu2 %v13951_v46  ;;  %v6719_v12 = vmul.f32 0.5, %v6718_v53  ;;  %7407 = vmatmul.bf16.gmra.mxu3 %v13953_v61 }
 0x775   : > { %v6786_v60 = vmul.f32 %v6754_v32, %v11975_v5  ;;  %v6787_v56 = vmul.f32 %v6755_v59, %v14220_v11 }
 0x776   : > { %v6720_v49 = vsub.f32 1.5, %v6719_v12 }
 0x777   : > { %v6818_v45 = vadd.f32 %v6786_v60, %v14221_v7  ;;  %v6819_v29 = vadd.f32 %v6787_v56, %v14222_v36 }
 0x778   : > { %v6721_v20 = vmul.f32 %v10212_v27, %v6720_v49 }
 0x77a   : > { %v6725_v17 = vsel %vm6724_vm0, %v10212_v27, %v6721_v20 }
 0x77b   : > { %v6756_v34 = vmul.f32 %v6725_v17, %v6548_v42  ;;  %v6757_v40 = vmul.f32 %v6725_v17, %v6549_v8 }
 0x77d   : > { %v6788_v35 = vmul.f32 %v6756_v34, %v11975_v5  ;;  %v6789_v38 = vmul.f32 %v6757_v40, %v14220_v11 }
 0x77f   : > { %v6820_v51 = vadd.f32 %v6788_v35, %v14221_v7  ;;  %v6821_v30 = vadd.f32 %v6789_v38, %v14222_v36  ;;  %v14223_v7 = vld [vmem:[#allocation29_spill] sm:$0xff] }
 0x781   : > { %v13976_v50 = vpack.c.bf16 %v6820_v51, %v6818_v45  ;;  %v13978_v43 = vpack.c.bf16 %v6821_v30, %v6819_v29 }
 0x783   : > { %7265 = vmatmul.bf16.gmra.mxu0 %v13976_v50  ;;  %7314 = vmatmul.bf16.gmra.mxu1 %v13978_v43 }
 0x784   : > { %7363 = vmatmul.bf16.gmra.mxu2 %v13976_v50  ;;  %7412 = vmatmul.bf16.gmra.mxu3 %v13978_v43 }
 0x790   : > { %v7231_v5 = vpop.f32.mrf.mxu0  ;;  %v7280_v11 = vpop.f32.mrf.mxu1 }
 0x791   : > { %v7232_v36 = vadd.f32 %v7231_v5, %v14223_v7 }
 0x793   : > { %7426 = vmatmul.bf16.vlgmr.msrb.gmra.mxu0 %v13668_v24  ;;  %7475 = vmatmul.bf16.vlgmr.msrb.gmra.mxu1 %v13672_v33  ;;  %v7281_v47 = vadd.f32 %v7280_v11, %v7232_v36 }
 0x794   : > { %7524 = vmatmul.bf16.vlgmr.msrb.gmra.mxu2 %v13668_v24  ;;  %7573 = vmatmul.bf16.vlgmr.msrb.gmra.mxu3 %v13672_v33 }
 0x797   : > { %v7329_v15 = vpop.f32.mrf.mxu2  ;;  %v7378_v4 = vpop.f32.mrf.mxu3 }
 0x798   : > { %v7330_v2 = vadd.f32 %v7329_v15, %v14224_v9  ;;  %v7233_v19 = vpop.f32.mrf.mxu0  ;;  %v7282_v14 = vpop.f32.mrf.mxu1 }
 0x799   : > { %v7234_v28 = vadd.f32 %v7233_v19, %v14223_v7 }
 0x79a   : > { %v7379_v58 = vadd.f32 %v7378_v4, %v7330_v2 }
 0x79b   : > { %v7283_v41 = vadd.f32 %v7282_v14, %v7234_v28 }
 0x79c   : > { %v7614_v13 = vpack.c.bf16 %v7379_v58, %v7281_v47 }
 0x79e   : > { %7646 = vst [vmem:[%s12350_s19 + $0x100] sm:$0xff] %v7614_v13 }
 0x79f   : > { %v7331_v57 = vpop.f32.mrf.mxu2  ;;  %v7380_v52 = vpop.f32.mrf.mxu3 }
 0x7a0   : > { %v7332_v22 = vadd.f32 %v7331_v57, %v14224_v9  ;;  %v7236_v24 = vpop.f32.mrf.mxu0  ;;  %v7285_v62 = vpop.f32.mrf.mxu1 }
 0x7a1   : > { %v7237_v54 = vadd.f32 %v7236_v24, %v14223_v7 }
 0x7a2   : > { %v7381_v33 = vadd.f32 %v7380_v52, %v7332_v22 }
 0x7a3   : > { %7431 = vmatmul.bf16.gmra.mxu0 %v13716_v6  ;;  %7480 = vmatmul.bf16.gmra.mxu1 %v13718_v44  ;;  %v7286_v53 = vadd.f32 %v7285_v62, %v7237_v54 }
 0x7a4   : > { %v7616_v18 = vpack.c.bf16 %v7381_v33, %v7283_v41  ;;  %7529 = vmatmul.bf16.gmra.mxu2 %v13716_v6  ;;  %7578 = vmatmul.bf16.gmra.mxu3 %v13718_v44 }
 0x7a6   : > { %7648 = vst [vmem:[%s12350_s19 + $0x110] sm:$0xff] %v7616_v18 }
 0x7a7   : > { %v7334_v39 = vpop.f32.mrf.mxu2  ;;  %v7383_v27 = vpop.f32.mrf.mxu3 }
 0x7a8   : > { %v7335_v1 = vadd.f32 %v7334_v39, %v14224_v9  ;;  %v7238_v0 = vpop.f32.mrf.mxu0  ;;  %v7287_v48 = vpop.f32.mrf.mxu1 }
 0x7a9   : > { %v7239_v16 = vadd.f32 %v7238_v0, %v14223_v7 }
 0x7aa   : > { %v7384_v10 = vadd.f32 %v7383_v27, %v7335_v1 }
 0x7ab   : > { %v7288_v59 = vadd.f32 %v7287_v48, %v7239_v16 }
 0x7ac   : > { %v7618_v12 = vpack.c.bf16 %v7384_v10, %v7286_v53 }
 0x7ae   : > { %7650 = vst [vmem:[%s12350_s19 + $0x120] sm:$0xff] %v7618_v12 }
 0x7af   : > { %v7336_v25 = vpop.f32.mrf.mxu2  ;;  %v7385_v49 = vpop.f32.mrf.mxu3 }
 0x7b0   : > { %v7337_v6 = vadd.f32 %v7336_v25, %v14224_v9  ;;  %v7241_v44 = vpop.f32.mrf.mxu0  ;;  %v7290_v32 = vpop.f32.mrf.mxu1 }
 0x7b1   : > { %v7242_v8 = vadd.f32 %v7241_v44, %v14223_v7 }
 0x7b2   : > { %v7386_v20 = vadd.f32 %v7385_v49, %v7337_v6 }
 0x7b3   : > { %7436 = vmatmul.bf16.gmra.mxu0 %v13763_v3  ;;  %7485 = vmatmul.bf16.gmra.mxu1 %v13765_v26  ;;  %v7291_v35 = vadd.f32 %v7290_v32, %v7242_v8 }
 0x7b4   : > { %v7620_v42 = vpack.c.bf16 %v7386_v20, %v7288_v59  ;;  %7534 = vmatmul.bf16.gmra.mxu2 %v13763_v3  ;;  %7583 = vmatmul.bf16.gmra.mxu3 %v13765_v26 }
 0x7b6   : > { %7652 = vst [vmem:[%s12350_s19 + $0x130] sm:$0xff] %v7620_v42 }
 0x7b7   : > { %v7339_v17 = vpop.f32.mrf.mxu2  ;;  %v7388_v40 = vpop.f32.mrf.mxu3 }
 0x7b8   : > { %v7340_v34 = vadd.f32 %v7339_v17, %v14224_v9  ;;  %v7243_v60 = vpop.f32.mrf.mxu0  ;;  %v7292_v56 = vpop.f32.mrf.mxu1 }
 0x7b9   : > { %v7244_v51 = vadd.f32 %v7243_v60, %v14223_v7 }
 0x7ba   : > { %v7389_v38 = vadd.f32 %v7388_v40, %v7340_v34 }
 0x7bb   : > { %v7293_v11 = vadd.f32 %v7292_v56, %v7244_v51 }
 0x7bc   : > { %v7622_v45 = vpack.c.bf16 %v7389_v38, %v7291_v35 }
 0x7be   : > { %7654 = vst [vmem:[%s12350_s19 + $0x140] sm:$0xff] %v7622_v45 }
 0x7bf   : > { %v7341_v29 = vpop.f32.mrf.mxu2  ;;  %v7390_v26 = vpop.f32.mrf.mxu3 }
 0x7c0   : > { %v7342_v3 = vadd.f32 %v7341_v29, %v14224_v9  ;;  %v7246_v30 = vpop.f32.mrf.mxu0  ;;  %v7295_v5 = vpop.f32.mrf.mxu1 }
 0x7c1   : > { %v7247_v2 = vadd.f32 %v7246_v30, %v14223_v7 }
 0x7c2   : > { %v7391_v36 = vadd.f32 %v7390_v26, %v7342_v3 }
 0x7c3   : > { %7441 = vmatmul.bf16.gmra.mxu0 %v13810_v21  ;;  %7490 = vmatmul.bf16.gmra.mxu1 %v13812_v55  ;;  %v7296_v13 = vadd.f32 %v7295_v5, %v7247_v2 }
 0x7c4   : > { %v7624_v15 = vpack.c.bf16 %v7391_v36, %v7293_v11  ;;  %7539 = vmatmul.bf16.gmra.mxu2 %v13810_v21  ;;  %7588 = vmatmul.bf16.gmra.mxu3 %v13812_v55 }
 0x7c6   : > { %7656 = vst [vmem:[%s12350_s19 + $0x150] sm:$0xff] %v7624_v15 }
 0x7c7   : > { %v7344_v4 = vpop.f32.mrf.mxu2  ;;  %v7393_v14 = vpop.f32.mrf.mxu3 }
 0x7c8   : > { %v7345_v19 = vadd.f32 %v7344_v4, %v14224_v9  ;;  %v7248_v47 = vpop.f32.mrf.mxu0  ;;  %v7297_v58 = vpop.f32.mrf.mxu1 }
 0x7c9   : > { %v7249_v22 = vadd.f32 %v7248_v47, %v14223_v7 }
 0x7ca   : > { %v7394_v28 = vadd.f32 %v7393_v14, %v7345_v19 }
 0x7cb   : > { %v7298_v33 = vadd.f32 %v7297_v58, %v7249_v22 }
 0x7cc   : > { %v7626_v57 = vpack.c.bf16 %v7394_v28, %v7296_v13 }
 0x7ce   : > { %7658 = vst [vmem:[%s12350_s19 + $0x160] sm:$0xff] %v7626_v57 }
 0x7cf   : > { %v7346_v52 = vpop.f32.mrf.mxu2  ;;  %v7395_v55 = vpop.f32.mrf.mxu3 }
 0x7d0   : > { %v7347_v21 = vadd.f32 %v7346_v52, %v14224_v9  ;;  %v7251_v24 = vpop.f32.mrf.mxu0  ;;  %v7300_v41 = vpop.f32.mrf.mxu1 }
 0x7d1   : > { %v7252_v54 = vadd.f32 %v7251_v24, %v14223_v7 }
 0x7d2   : > { %v7396_v62 = vadd.f32 %v7395_v55, %v7347_v21 }
 0x7d3   : > { %7446 = vmatmul.bf16.gmra.mxu0 %v13857_v63  ;;  %7495 = vmatmul.bf16.gmra.mxu1 %v13859_v23  ;;  %v7301_v53 = vadd.f32 %v7300_v41, %v7252_v54 }
 0x7d4   : > { %v7628_v18 = vpack.c.bf16 %v7396_v62, %v7298_v33  ;;  %7544 = vmatmul.bf16.gmra.mxu2 %v13857_v63  ;;  %7593 = vmatmul.bf16.gmra.mxu3 %v13859_v23 }
 0x7d6   : > { %7660 = vst [vmem:[%s12350_s19 + $0x170] sm:$0xff] %v7628_v18 }
 0x7d7   : > { %v7349_v39 = vpop.f32.mrf.mxu2  ;;  %v7398_v27 = vpop.f32.mrf.mxu3 }
 0x7d8   : > { %v7350_v1 = vadd.f32 %v7349_v39, %v14224_v9  ;;  %v7253_v0 = vpop.f32.mrf.mxu0  ;;  %v7302_v48 = vpop.f32.mrf.mxu1 }
 0x7d9   : > { %v7254_v16 = vadd.f32 %v7253_v0, %v14223_v7 }
 0x7da   : > { %v7399_v10 = vadd.f32 %v7398_v27, %v7350_v1 }
 0x7db   : > { %v7303_v44 = vadd.f32 %v7302_v48, %v7254_v16 }
 0x7dc   : > { %v7630_v12 = vpack.c.bf16 %v7399_v10, %v7301_v53 }
 0x7de   : > { %7662 = vst [vmem:[%s12350_s19 + $0x180] sm:$0xff] %v7630_v12 }
 0x7df   : > { %v7351_v25 = vpop.f32.mrf.mxu2  ;;  %v7400_v23 = vpop.f32.mrf.mxu3 }
 0x7e0   : > { %v7352_v63 = vadd.f32 %v7351_v25, %v14224_v9  ;;  %v7256_v6 = vpop.f32.mrf.mxu0  ;;  %v7305_v49 = vpop.f32.mrf.mxu1  ;;  %v14225_v25 = vld [vmem:[#allocation31_spill] sm:$0xff] }
 0x7e1   : > { %v7257_v20 = vadd.f32 %v7256_v6, %v14223_v7 }
 0x7e2   : > { %v7401_v32 = vadd.f32 %v7400_v23, %v7352_v63 }
 0x7e3   : > { %7451 = vmatmul.bf16.gmra.mxu0 %v13913_v31  ;;  %7500 = vmatmul.bf16.gmra.mxu1 %v13918_v37  ;;  %v7306_v60 = vadd.f32 %v7305_v49, %v7257_v20  ;;  %v14226_v49 = vld [vmem:[#allocation32_spill] sm:$0xff] }
 0x7e4   : > { %v7632_v59 = vpack.c.bf16 %v7401_v32, %v7303_v44  ;;  %7549 = vmatmul.bf16.gmra.mxu2 %v13913_v31  ;;  %7598 = vmatmul.bf16.gmra.mxu3 %v13918_v37 }
 0x7e6   : > { %7664 = vst [vmem:[%s12350_s19 + $0x190] sm:$0xff] %v7632_v59 }
 0x7e7   : > { %v7354_v42 = vpop.f32.mrf.mxu2  ;;  %v7403_v17 = vpop.f32.mrf.mxu3 }
 0x7e8   : > { %v7355_v8 = vadd.f32 %v7354_v42, %v14224_v9  ;;  %v7258_v34 = vpop.f32.mrf.mxu0  ;;  %v7307_v40 = vpop.f32.mrf.mxu1 }
 0x7e9   : > { %v7259_v38 = vadd.f32 %v7258_v34, %v14223_v7 }
 0x7ea   : > { %v7404_v56 = vadd.f32 %v7403_v17, %v7355_v8 }
 0x7eb   : > { %v7308_v3 = vadd.f32 %v7307_v40, %v7259_v38 }
 0x7ec   : > { %v7634_v35 = vpack.c.bf16 %v7404_v56, %v7306_v60 }
 0x7ee   : > { %7666 = vst [vmem:[%s12350_s19 + $0x1a0] sm:$0xff] %v7634_v35 }
 0x7ef   : > { %v7356_v45 = vpop.f32.mrf.mxu2  ;;  %v7405_v37 = vpop.f32.mrf.mxu3 }
 0x7f0   : > { %v7357_v31 = vadd.f32 %v7356_v45, %v14224_v9  ;;  %v7261_v51 = vpop.f32.mrf.mxu0  ;;  %v7310_v29 = vpop.f32.mrf.mxu1 }
 0x7f1   : > { %v7262_v5 = vadd.f32 %v7261_v51, %v14223_v7 }
 0x7f2   : > { %v7406_v26 = vadd.f32 %v7405_v37, %v7357_v31 }
 0x7f3   : > { %7456 = vmatmul.bf16.gmra.mxu0 %v13951_v46  ;;  %7505 = vmatmul.bf16.gmra.mxu1 %v13953_v61  ;;  %v7311_v19 = vadd.f32 %v7310_v29, %v7262_v5 }
 0x7f4   : > { %v7636_v30 = vpack.c.bf16 %v7406_v26, %v7308_v3  ;;  %7554 = vmatmul.bf16.gmra.mxu2 %v13951_v46  ;;  %7603 = vmatmul.bf16.gmra.mxu3 %v13953_v61 }
 0x7f6   : > { %7668 = vst [vmem:[%s12350_s19 + $0x1b0] sm:$0xff] %v7636_v30 }
 0x7f7   : > { %v7359_v11 = vpop.f32.mrf.mxu2  ;;  %v7408_v15 = vpop.f32.mrf.mxu3 }
 0x7f8   : > { %v7360_v36 = vadd.f32 %v7359_v11, %v14224_v9  ;;  %v7263_v2 = vpop.f32.mrf.mxu0  ;;  %v7312_v4 = vpop.f32.mrf.mxu1 }
 0x7f9   : > { %v7264_v58 = vadd.f32 %v7263_v2, %v14223_v7 }
 0x7fa   : > { %v7409_v14 = vadd.f32 %v7408_v15, %v7360_v36 }
 0x7fb   : > { %v7313_v22 = vadd.f32 %v7312_v4, %v7264_v58 }
 0x7fc   : > { %v7638_v47 = vpack.c.bf16 %v7409_v14, %v7311_v19 }
 0x7fe   : > { %7670 = vst [vmem:[%s12350_s19 + $0x1c0] sm:$0xff] %v7638_v47 }
 0x7ff   : > { %v7361_v13 = vpop.f32.mrf.mxu2  ;;  %v7410_v61 = vpop.f32.mrf.mxu3 }
 0x800   : > { %v7362_v46 = vadd.f32 %v7361_v13, %v14224_v9  ;;  %v7266_v28 = vpop.f32.mrf.mxu0  ;;  %v7315_v57 = vpop.f32.mrf.mxu1 }
 0x801   : > { %v7267_v55 = vadd.f32 %v7266_v28, %v14223_v7 }
 0x802   : > { %v7411_v52 = vadd.f32 %v7410_v61, %v7362_v46 }
 0x803   : > { %7461 = vmatmul.bf16.gmra.mxu0 %v13976_v50  ;;  %7510 = vmatmul.bf16.gmra.mxu1 %v13978_v43  ;;  %v7316_v54 = vadd.f32 %v7315_v57, %v7267_v55 }
 0x804   : > { %v7640_v21 = vpack.c.bf16 %v7411_v52, %v7313_v22  ;;  %7559 = vmatmul.bf16.gmra.mxu2 %v13976_v50  ;;  %7608 = vmatmul.bf16.gmra.mxu3 %v13978_v43 }
 0x806   : > { %7672 = vst [vmem:[%s12350_s19 + $0x1d0] sm:$0xff] %v7640_v21 }
 0x807   : > { %v7364_v24 = vpop.f32.mrf.mxu2  ;;  %v7413_v41 = vpop.f32.mrf.mxu3 }
 0x808   : > { %v7365_v33 = vadd.f32 %v7364_v24, %v14224_v9  ;;  %v7268_v62 = vpop.f32.mrf.mxu0  ;;  %v7317_v18 = vpop.f32.mrf.mxu1 }
 0x809   : > { %v7269_v27 = vadd.f32 %v7268_v62, %v14223_v7 }
 0x80a   : > { %v7414_v39 = vadd.f32 %v7413_v41, %v7365_v33 }
 0x80b   : > { %v7318_v10 = vadd.f32 %v7317_v18, %v7269_v27 }
 0x80c   : > { %v7642_v1 = vpack.c.bf16 %v7414_v39, %v7316_v54 }
 0x80e   : > { %7674 = vst [vmem:[%s12350_s19 + $0x1e0] sm:$0xff] %v7642_v1 }
 0x80f   : > { %v7366_v0 = vpop.f32.mrf.mxu2  ;;  %v7415_v50 = vpop.f32.mrf.mxu3 }
 0x810   : > { %v7367_v43 = vadd.f32 %v7366_v0, %v14224_v9  ;;  %v7427_v48 = vpop.f32.mrf.mxu0  ;;  %v7476_v53 = vpop.f32.mrf.mxu1 }
 0x811   : > { %v7428_v63 = vadd.f32 %v7427_v48, %v14225_v25 }
 0x812   : > { %v7416_v12 = vadd.f32 %v7415_v50, %v7367_v43 }
 0x813   : > { %v7477_v59 = vadd.f32 %v7476_v53, %v7428_v63 }
 0x814   : > { %v7644_v16 = vpack.c.bf16 %v7416_v12, %v7318_v10 }
 0x816   : > { %7676 = vst [vmem:[%s12350_s19 + $0x1f0] sm:$0xff] %v7644_v16 }
 0x817   : > { %v7525_v23 = vpop.f32.mrf.mxu2  ;;  %v7574_v6 = vpop.f32.mrf.mxu3 }
 0x818   : > { %v7526_v44 = vadd.f32 %v7525_v23, %v14226_v49  ;;  %v7429_v32 = vpop.f32.mrf.mxu0  ;;  %v7478_v7 = vpop.f32.mrf.mxu1 }
 0x819   : > { %v7430_v9 = vadd.f32 %v7429_v32, %v14225_v25 }
 0x81a   : > { %v7575_v20 = vadd.f32 %v7574_v6, %v7526_v44 }
 0x81b   : > { %v7479_v56 = vadd.f32 %v7478_v7, %v7430_v9 }
 0x81c   : > { %v7615_v42 = vpack.c.bf16 %v7575_v20, %v7477_v59 }
 0x81e   : > { %7647 = vst [vmem:[%s12350_s19 + $0x108] sm:$0xff] %v7615_v42 }
 0x81f   : > { %v7527_v8 = vpop.f32.mrf.mxu2  ;;  %v7576_v17 = vpop.f32.mrf.mxu3 }
 0x820   : > { %v7528_v34 = vadd.f32 %v7527_v8, %v14226_v49  ;;  %v7432_v40 = vpop.f32.mrf.mxu0  ;;  %v7481_v60 = vpop.f32.mrf.mxu1 }
 0x821   : > { %v7433_v45 = vadd.f32 %v7432_v40, %v14225_v25 }
 0x822   : > { %v7577_v35 = vadd.f32 %v7576_v17, %v7528_v34 }
 0x823   : > { %v7482_v26 = vadd.f32 %v7481_v60, %v7433_v45 }
 0x824   : > { %v7617_v38 = vpack.c.bf16 %v7577_v35, %v7479_v56 }
 0x826   : > { %7649 = vst [vmem:[%s12350_s19 + $0x118] sm:$0xff] %v7617_v38 }
 0x827   : > { %v7530_v31 = vpop.f32.mrf.mxu2  ;;  %v7579_v37 = vpop.f32.mrf.mxu3 }
 0x828   : > { %v7531_v51 = vadd.f32 %v7530_v31, %v14226_v49  ;;  %v7434_v29 = vpop.f32.mrf.mxu0  ;;  %v7483_v3 = vpop.f32.mrf.mxu1 }
 0x829   : > { %v7435_v11 = vadd.f32 %v7434_v29, %v14225_v25 }
 0x82a   : > { %v7580_v30 = vadd.f32 %v7579_v37, %v7531_v51 }
 0x82b   : > { %v7484_v14 = vadd.f32 %v7483_v3, %v7435_v11 }
 0x82c   : > { %v7619_v5 = vpack.c.bf16 %v7580_v30, %v7482_v26 }
 0x82e   : > { %7651 = vst [vmem:[%s12350_s19 + $0x128] sm:$0xff] %v7619_v5 }
 0x82f   : > { %v7532_v36 = vpop.f32.mrf.mxu2  ;;  %v7581_v15 = vpop.f32.mrf.mxu3 }
 0x830   : > { %v7533_v2 = vadd.f32 %v7532_v36, %v14226_v49  ;;  %v7437_v4 = vpop.f32.mrf.mxu0  ;;  %v7486_v19 = vpop.f32.mrf.mxu1 }
 0x831   : > { %v7438_v13 = vadd.f32 %v7437_v4, %v14225_v25 }
 0x832   : > { %v7582_v47 = vadd.f32 %v7581_v15, %v7533_v2 }
 0x833   : > { %v7487_v52 = vadd.f32 %v7486_v19, %v7438_v13 }
 0x834   : > { %v7621_v58 = vpack.c.bf16 %v7582_v47, %v7484_v14 }
 0x836   : > { %7653 = vst [vmem:[%s12350_s19 + $0x138] sm:$0xff] %v7621_v58 }
 0x837   : > { %v7535_v46 = vpop.f32.mrf.mxu2  ;;  %v7584_v61 = vpop.f32.mrf.mxu3 }
 0x838   : > { %v7536_v28 = vadd.f32 %v7535_v46, %v14226_v49  ;;  %v7439_v57 = vpop.f32.mrf.mxu0  ;;  %v7488_v22 = vpop.f32.mrf.mxu1 }
 0x839   : > { %v7440_v24 = vadd.f32 %v7439_v57, %v14225_v25 }
 0x83a   : > { %v7585_v21 = vadd.f32 %v7584_v61, %v7536_v28 }
 0x83b   : > { %v7489_v39 = vadd.f32 %v7488_v22, %v7440_v24 }
 0x83c   : > { %v7623_v55 = vpack.c.bf16 %v7585_v21, %v7487_v52 }
 0x83e   : > { %7655 = vst [vmem:[%s12350_s19 + $0x148] sm:$0xff] %v7623_v55 }
 0x83f   : > { %v7537_v41 = vpop.f32.mrf.mxu2  ;;  %v7586_v33 = vpop.f32.mrf.mxu3 }
 0x840   : > { %v7538_v62 = vadd.f32 %v7537_v41, %v14226_v49  ;;  %v7442_v18 = vpop.f32.mrf.mxu0  ;;  %v7491_v54 = vpop.f32.mrf.mxu1 }
 0x841   : > { %v7443_v0 = vadd.f32 %v7442_v18, %v14225_v25 }
 0x842   : > { %v7587_v1 = vadd.f32 %v7586_v33, %v7538_v62 }
 0x843   : > { %v7492_v12 = vadd.f32 %v7491_v54, %v7443_v0 }
 0x844   : > { %v7625_v27 = vpack.c.bf16 %v7587_v1, %v7489_v39 }
 0x846   : > { %7657 = vst [vmem:[%s12350_s19 + $0x158] sm:$0xff] %v7625_v27 }
 0x847   : > { %v7540_v50 = vpop.f32.mrf.mxu2  ;;  %v7589_v43 = vpop.f32.mrf.mxu3 }
 0x848   : > { %v7541_v48 = vadd.f32 %v7540_v50, %v14226_v49  ;;  %v7444_v53 = vpop.f32.mrf.mxu0  ;;  %v7493_v10 = vpop.f32.mrf.mxu1 }
 0x849   : > { %v7445_v23 = vadd.f32 %v7444_v53, %v14225_v25 }
 0x84a   : > { %v7590_v16 = vadd.f32 %v7589_v43, %v7541_v48 }
 0x84b   : > { %v7494_v20 = vadd.f32 %v7493_v10, %v7445_v23 }
 0x84c   : > { %v7627_v63 = vpack.c.bf16 %v7590_v16, %v7492_v12 }
 0x84e   : > { %7659 = vst [vmem:[%s12350_s19 + $0x168] sm:$0xff] %v7627_v63 }
 0x84f   : > { %v7542_v6 = vpop.f32.mrf.mxu2  ;;  %v7591_v44 = vpop.f32.mrf.mxu3 }
 0x850   : > { %v7543_v32 = vadd.f32 %v7542_v6, %v14226_v49  ;;  %v7447_v7 = vpop.f32.mrf.mxu0  ;;  %v7496_v59 = vpop.f32.mrf.mxu1 }
 0x851   : > { %v7448_v8 = vadd.f32 %v7447_v7, %v14225_v25 }
 0x852   : > { %v7592_v42 = vadd.f32 %v7591_v44, %v7543_v32 }
 0x853   : > { %v7497_v35 = vadd.f32 %v7496_v59, %v7448_v8 }
 0x854   : > { %v7629_v9 = vpack.c.bf16 %v7592_v42, %v7494_v20 }
 0x856   : > { %7661 = vst [vmem:[%s12350_s19 + $0x178] sm:$0xff] %v7629_v9 }
 0x857   : > { %v7545_v17 = vpop.f32.mrf.mxu2  ;;  %v7594_v34 = vpop.f32.mrf.mxu3 }
 0x858   : > { %v7546_v40 = vadd.f32 %v7545_v17, %v14226_v49  ;;  %v7449_v60 = vpop.f32.mrf.mxu0  ;;  %v7498_v56 = vpop.f32.mrf.mxu1 }
 0x859   : > { %v7450_v31 = vadd.f32 %v7449_v60, %v14225_v25 }
 0x85a   : > { %v7595_v38 = vadd.f32 %v7594_v34, %v7546_v40 }
 0x85b   : > { %v7499_v30 = vadd.f32 %v7498_v56, %v7450_v31 }
 0x85c   : > { %v7631_v45 = vpack.c.bf16 %v7595_v38, %v7497_v35 }
 0x85e   : > { %7663 = vst [vmem:[%s12350_s19 + $0x188] sm:$0xff] %v7631_v45 }
 0x85f   : > { %v7547_v37 = vpop.f32.mrf.mxu2  ;;  %v7596_v51 = vpop.f32.mrf.mxu3 }
 0x860   : > { %v7548_v29 = vadd.f32 %v7547_v37, %v14226_v49  ;;  %v7452_v3 = vpop.f32.mrf.mxu0  ;;  %v7501_v26 = vpop.f32.mrf.mxu1 }
 0x861   : > { %v7453_v36 = vadd.f32 %v7452_v3, %v14225_v25 }
 0x862   : > { %v7597_v5 = vadd.f32 %v7596_v51, %v7548_v29 }
 0x863   : > { %v7502_v47 = vadd.f32 %v7501_v26, %v7453_v36 }
 0x864   : > { %v7633_v11 = vpack.c.bf16 %v7597_v5, %v7499_v30 }
 0x866   : > { %7665 = vst [vmem:[%s12350_s19 + $0x198] sm:$0xff] %v7633_v11 }
 0x867   : > { %v7550_v15 = vpop.f32.mrf.mxu2  ;;  %v7599_v2 = vpop.f32.mrf.mxu3 }
 0x868   : > { %v7551_v4 = vadd.f32 %v7550_v15, %v14226_v49  ;;  %v7454_v19 = vpop.f32.mrf.mxu0  ;;  %v7503_v14 = vpop.f32.mrf.mxu1 }
 0x869   : > { %v7455_v46 = vadd.f32 %v7454_v19, %v14225_v25 }
 0x86a   : > { %v7600_v58 = vadd.f32 %v7599_v2, %v7551_v4 }
 0x86b   : > { %v7504_v52 = vadd.f32 %v7503_v14, %v7455_v46 }
 0x86c   : > { %v7635_v13 = vpack.c.bf16 %v7600_v58, %v7502_v47 }
 0x86e   : > { %7667 = vst [vmem:[%s12350_s19 + $0x1a8] sm:$0xff] %v7635_v13 }
 0x86f   : > { %v7552_v61 = vpop.f32.mrf.mxu2  ;;  %v7601_v28 = vpop.f32.mrf.mxu3 }
 0x870   : > { %v7553_v57 = vadd.f32 %v7552_v61, %v14226_v49  ;;  %v7457_v22 = vpop.f32.mrf.mxu0  ;;  %v7506_v55 = vpop.f32.mrf.mxu1 }
 0x871   : > { %v7458_v41 = vadd.f32 %v7457_v22, %v14225_v25 }
 0x872   : > { %v7602_v21 = vadd.f32 %v7601_v28, %v7553_v57 }
 0x873   : > { %v7507_v39 = vadd.f32 %v7506_v55, %v7458_v41 }
 0x874   : > { %v7637_v24 = vpack.c.bf16 %v7602_v21, %v7504_v52 }
 0x876   : > { %7669 = vst [vmem:[%s12350_s19 + $0x1b8] sm:$0xff] %v7637_v24 }
 0x877   : > { %v7555_v33 = vpop.f32.mrf.mxu2  ;;  %v7604_v62 = vpop.f32.mrf.mxu3 }
 0x878   : > { %v7556_v18 = vadd.f32 %v7555_v33, %v14226_v49  ;;  %v7459_v54 = vpop.f32.mrf.mxu0  ;;  %v7508_v0 = vpop.f32.mrf.mxu1 }
 0x879   : > { %v7460_v50 = vadd.f32 %v7459_v54, %v14225_v25 }
 0x87a   : > { %v7605_v1 = vadd.f32 %v7604_v62, %v7556_v18 }
 0x87b   : > { %v7509_v12 = vadd.f32 %v7508_v0, %v7460_v50 }
 0x87c   : > { %v7639_v27 = vpack.c.bf16 %v7605_v1, %v7507_v39 }
 0x87e   : > { %7671 = vst [vmem:[%s12350_s19 + $0x1c8] sm:$0xff] %v7639_v27 }
 0x87f   : > { %v7557_v43 = vpop.f32.mrf.mxu2  ;;  %v7606_v48 = vpop.f32.mrf.mxu3 }
 0x880   : > { %v7558_v53 = vadd.f32 %v7557_v43, %v14226_v49  ;;  %v7462_v10 = vpop.f32.mrf.mxu0  ;;  %v7511_v6 = vpop.f32.mrf.mxu1 }
 0x881   : > { %v7463_v23 = vadd.f32 %v7462_v10, %v14225_v25 }
 0x882   : > { %v7607_v16 = vadd.f32 %v7606_v48, %v7558_v53 }
 0x883   : > { %v7512_v59 = vadd.f32 %v7511_v6, %v7463_v23 }
 0x884   : > { %v7641_v63 = vpack.c.bf16 %v7607_v16, %v7509_v12 }
 0x886   : > { %7673 = vst [vmem:[%s12350_s19 + $0x1d8] sm:$0xff] %v7641_v63 }
 0x887   : > { %v7560_v44 = vpop.f32.mrf.mxu2  ;;  %v7609_v32 = vpop.f32.mrf.mxu3 }
 0x888   : > { %v7561_v7 = vadd.f32 %v7560_v44, %v14226_v49  ;;  %v7464_v42 = vpop.f32.mrf.mxu0  ;;  %v7513_v40 = vpop.f32.mrf.mxu1 }
 0x889   : > { %v7465_v8 = vadd.f32 %v7464_v42, %v14225_v25 }
 0x88a   : > { %v7610_v20 = vadd.f32 %v7609_v32, %v7561_v7 }
 0x88b   : > { %v7514_v56 = vadd.f32 %v7513_v40, %v7465_v8 }
 0x88c   : > { %v7643_v9 = vpack.c.bf16 %v7610_v20, %v7512_v59 }
 0x88e   : > { %7675 = vst [vmem:[%s12350_s19 + $0x1e8] sm:$0xff] %v7643_v9 }
 0x88f   : > { %v7562_v17 = vpop.f32.mrf.mxu2  ;;  %v7611_v60 = vpop.f32.mrf.mxu3 }
 0x890   : > { %v7563_v34 = vadd.f32 %v7562_v17, %v14226_v49 }
 0x892   : > { %v7612_v35 = vadd.f32 %v7611_v60, %v7563_v34 }
 0x894   : > { %v7645_v38 = vpack.c.bf16 %v7612_v35, %v7514_v56 }
 0x896   : > { %7677 = vst [vmem:[%s12350_s19 + $0x1f8] sm:$0xff] %v7645_v38 }
 0x897   : > { %10515 = shalt.err (!%p10512_p9)
}
 0x898   : > { %s10579_s15 = smov 256   ;;  %s10580_s25 = smov 16  }
 0x899   : > { %9803 = dma.vmem_to_hbm [thread:$0]  (%p10734_p4), %s7693_s23, 8192, %s7695_s28, %s7679_s16, %s10579_s15, %s10579_s15, %s10580_s25  }
 0x89a PF: > { %s7709_s19 = sand.u32 1, %s10554_s30   ;;  %p14227_p10 = scmp.ge.s32.totalorder %s10566_s12, 2 }
 0x89b   : > { %s7710_s21 = scalar_lea.sflag [#allocation4], %s7709_s19 }
 0x89c   : > { %p9829_p13 = pnand %p14227_p10, %p10738_p6 }
 0x89e   : > { %p9830_p11 = pneg %p9829_p13 }
 0x8a0   : > { %10549 = dma.done.wait (%p9830_p11), %s7710_s21, 8192  }
 0x8a1   : > { %10551 = vsyncadd (%p9830_p11), %s7710_s21, 4294959104  ;;  %p25_p0 = scmp.ge.s32.totalorder %s10708_s24, 4   ;;  %s14228_s30 = smov %s10558_s10 }
 0x8a2   : > { %s14229_s10 = smov %s10562_s11  ;;  %s14230_s11 = smov %s10719_s22 }
 0x8a3   : > { %s14231_s12 = smov %s10708_s24  ;;  %27 = sbr.rel (!%p25_p0) target bundleno = 13 (0xd), region = 125 }
 0x8a8   :  { %7716 = vsyncpa [#allocation3], 1 }
 0x8a9   :  { %7718 = vsyncpa [#allocation3 + $0x1], 1 }
 0x8aa   :  { %7719 = vsyncpa [#allocation6], 1 }
 0x8ab   :  { %7720 = vsyncpa [#allocation9], 1 }
 0x8ac   :  { %7721 = vsyncpa [#allocation12], 1 }
 0x8ad   :  { %7722 = vsyncpa [#allocation4], 1 }
 0x8ae   :  { %7724 = vsyncpa [#allocation4 + $0x1], 1 }

</bundles_post_ra>
